<compile_context>
chip_gen: v6e
topology: v6e:2x2x1
jax: 0.10.0
libtpu: 0.0.40
codegen_flags: <defaults>
</compile_context>

<pallas_src>
import jax
import jax.numpy as jnp
import jax.scipy.linalg as jsl
import numpy as np
from jax.experimental import pallas as pl
from jax.experimental.pallas import tpu as pltpu

# ---------------- problem sizes (small, consistent with the module) ----------
B = 2            # batch
CIN = 32         # inplanes (2048 in the original; scaled down)
P = 16           # planes   (128 in the original; scaled down)
IC = P // 2      # inter_channels of the non-local block
H = W = 8
N = H * W        # flattened spatial
NUM_BRANCHES = 20
EPS = 1e-5


# ---------------- Pallas kernel: all 20 branches for one batch element -------
def nonlocal_fused_kernel(x_ref,      # (1, CIN+1, N)   x channels + ones row
                          w1_ref,     # (NB*P, CIN+1)   conv1*bn1_scale | bn1_shift
                          wtpg_ref,   # (3*NB*IC, NB*P) block-diag [theta;phi;g]
                          vc_ref,     # (NB, 2, IC)     [v ; (c2,0,...)]
                          w2_ref,     # (NB, 1, P)      conv2 weight
                          o_ref):     # (1, NB, 1, N)   output slab (this batch)
    nb, _, p = w2_ref.shape
    ic = vc_ref.shape[2]

    x_aug = x_ref[0]                                              # [CIN+1, N]

    # conv1 + bn1 + relu: single dense matmul (bias folded via the ones row).
    h = jnp.maximum(
        jnp.dot(w1_ref[...], x_aug, preferred_element_type=jnp.float32),
        0.0)                                                      # [NB*P, N]

    # theta | phi | g projections: one block-diagonal matmul.
    tpg = jnp.dot(wtpg_ref[...], h,
                  preferred_element_type=jnp.float32)             # [3*NB*IC, N]

    # Per-branch slabs: sublane-tile-aligned row slices (offsets multiples of 8).
    # Only theta needs a small [IC, N] -> [N, IC] transpose (XLU, hidden).
    th_l, ph_l, g_l, h_l = [], [], [], []
    for k in range(nb):
        r = k * ic
        th_l.append(tpg[r:r + ic, :].T)                           # [N, IC]
        ph_l.append(tpg[nb * ic + r: nb * ic + r + ic, :])        # [IC, N]
        g_l.append(tpg[2 * nb * ic + r: 2 * nb * ic + r + ic, :])
        h_l.append(h[k * p:(k + 1) * p, :])                       # [P, N]
    theta_b = jnp.stack(th_l)                                     # [NB, N, IC]
    phi_b = jnp.stack(ph_l)                                       # [NB, IC, N]
    g_b = jnp.stack(g_l)                                          # [NB, IC, N]
    h_b = jnp.stack(h_l)                                          # [NB, P, N]

    # embedded-Gaussian attention: softmax(theta @ phi^T) @ g
    f = jnp.einsum("knd,kdm->knm", theta_b, phi_b,
                   preferred_element_type=jnp.float32)            # [NB, N, N]
    f_max = jnp.max(f, axis=-1, keepdims=True)
    pexp = jnp.exp(f - f_max)
    l = jnp.sum(pexp, axis=-1, keepdims=True)                     # [NB, N, 1]
    inv_l = pl.reciprocal(l, approx=True)                         # EUP slot
    inv_l = inv_l * (2.0 - l * inv_l)                             # Newton -> f32
    prob = pexp * inv_l
    y = jnp.einsum("kdm,knm->kdn", g_b, prob,
                   preferred_element_type=jnp.float32)            # [NB, IC, N]

    # conv2( bn_w(W_conv(y)) + h ):  W_conv/bn_w/conv2 collapsed into v & c2,
    # residual path through conv2 directly.
    vc = vc_ref[...]
    v_b = vc[:, 0:1, :]                                           # [NB, 1, IC]
    c2 = vc[:, 1:2, 0:1]                                          # [NB, 1, 1]
    yo = jnp.einsum("kod,kdn->kon", v_b, y,
                    preferred_element_type=jnp.float32)           # [NB, 1, N]
    ho = jnp.einsum("kop,kpn->kon", w2_ref[...], h_b,
                    preferred_element_type=jnp.float32)           # [NB, 1, N]
    o_ref[0] = (yo + ho + c2).astype(o_ref.dtype)


# ---------------- host-side weight folding ------------------------------------
def _prepare_weights(params):
    nb, cin, p = params["w1"].shape
    ic = p // 2

    # conv1 * bn1_scale in "channels-on-sublanes" layout, bn1_shift as an
    # extra column matched with an appended ones-row of x.
    w1s = params["w1"] * params["bn1_scale"]                      # [NB, CIN, P]
    w1_col = jnp.transpose(w1s, (0, 2, 1)).reshape(nb * p, cin)   # [NB*P, CIN]
    b1_col = jnp.transpose(params["bn1_shift"], (0, 2, 1)).reshape(nb * p, 1)
    w1aug = jnp.concatenate([w1_col, b1_col], axis=1)             # [NB*P, CIN+1]

    # theta/phi/g block-diagonal weights (rows grouped by projection).
    wtpg = params["wtpg"]                                         # [NB, P, 3*IC]
    wth = jnp.transpose(wtpg[..., 0 * ic:1 * ic], (0, 2, 1))      # [NB, IC, P]
    wph = jnp.transpose(wtpg[..., 1 * ic:2 * ic], (0, 2, 1))
    wg = jnp.transpose(wtpg[..., 2 * ic:3 * ic], (0, 2, 1))
    th_bd = jsl.block_diag(*[wth[k] for k in range(nb)])          # [NB*IC, NB*P]
    ph_bd = jsl.block_diag(*[wph[k] for k in range(nb)])
    g_bd = jsl.block_diag(*[wg[k] for k in range(nb)])
    wtpg_bd = jnp.concatenate([th_bd, ph_bd, g_bd], axis=0)       # [3*NB*IC, NB*P]

    # Collapse (conv2 o bn_W o W_conv) on the attention path:
    #   v[k, d] = sum_p w2[k, p] * ww[k, d, p] * bnw_scale[k, p]
    #   c2[k]   = sum_p w2[k, p] * bnw_shift[k, p]
    w2_flat = params["w2"][..., 0]                                # [NB, P]
    ww_s = params["ww"] * params["bnw_scale"]                     # [NB, IC, P]
    v = jnp.einsum("kdp,kp->kd", ww_s, w2_flat)                   # [NB, IC]
    c2 = jnp.einsum("kp,kp->k", params["bnw_shift"][:, 0, :], w2_flat)
    c2_row = jnp.concatenate(
        [c2[:, None], jnp.zeros((nb, ic - 1), jnp.float32)], axis=1)
    vc = jnp.stack([v, c2_row], axis=1)                           # [NB, 2, IC]

    w2_b = jnp.transpose(params["w2"], (0, 2, 1))                 # [NB, 1, P]
    return w1aug, wtpg_bd, vc, w2_b


# ---------------- wrapper ------------------------------------------------------
def nonlocal_forward(x_nchw, params):
    """x_nchw: [B, CIN, H, W]  ->  [B, NUM_BRANCHES, H, W]"""
    b, cin, h_, w_ = x_nchw.shape
    n = h_ * w_
    nb = NUM_BRANCHES

    # NCHW -> [B, C, N] (channels on sublanes, spatial on lanes) + ones row.
    x_t = x_nchw.reshape(b, cin, n).astype(jnp.float32)
    x_aug = jnp.concatenate([x_t, jnp.ones((b, 1, n), jnp.float32)], axis=1)

    w1aug, wtpg_bd, vc, w2_b = _prepare_weights(params)

    out = pl.pallas_call(
        nonlocal_fused_kernel,
        out_shape=jax.ShapeDtypeStruct((b, nb, 1, n), jnp.float32),
        grid=(b,),
        in_specs=[
            pl.BlockSpec((1, cin + 1, n), lambda bi: (bi, 0, 0)),     # x (per step)
            pl.BlockSpec((nb * P, cin + 1), lambda bi: (0, 0)),       # conv1 (folded)
            pl.BlockSpec((3 * nb * IC, nb * P), lambda bi: (0, 0)),   # theta|phi|g
            pl.BlockSpec((nb, 2, IC), lambda bi: (0, 0, 0)),          # v | c2
            pl.BlockSpec((nb, 1, P), lambda bi: (0, 0, 0)),           # conv2
        ],
        out_specs=pl.BlockSpec((1, nb, 1, n), lambda bi: (bi, 0, 0, 0)),
        compiler_params=pltpu.CompilerParams(
            dimension_semantics=("parallel",)),
    )(x_aug, w1aug, wtpg_bd, vc, w2_b)

    return out.reshape(b, nb, h_, w_)


# ---------------- pure-JAX reference (mirrors PyTorch semantics) --------------
def reference_forward(x_nchw, params):
    b, cin, h_, w_ = x_nchw.shape
    n = h_ * w_
    xf = jnp.transpose(x_nchw.reshape(b, cin, n), (0, 2, 1)).astype(jnp.float32)
    # branch axis k, batch axis b
    hcl = jnp.einsum("bnc,kcp->bknp", xf, params["w1"])
    hcl = hcl * params["bn1_scale"][None] + params["bn1_shift"][None]
    hcl = jnp.maximum(hcl, 0.0)                               # [B, NB, N, P]
    tpg = jnp.einsum("bknp,kpc->bknc", hcl, params["wtpg"])   # [B, NB, N, 3*IC]
    theta, phi, g = tpg[..., :IC], tpg[..., IC:2 * IC], tpg[..., 2 * IC:]
    f = jnp.einsum("bknd,bkmd->bknm", theta, phi)
    p = jax.nn.softmax(f, axis=-1)
    y = jnp.einsum("bknm,bkmd->bknd", p, g)                   # [B, NB, N, IC]
    wy = jnp.einsum("bknd,kdp->bknp", y, params["ww"])
    wy = wy * params["bnw_scale"][None] + params["bnw_shift"][None]
    z = wy + hcl
    o = jnp.einsum("bknp,kpo->bkno", z, params["w2"])[..., 0]  # [B, NB, N]
    return o.reshape(b, NUM_BRANCHES, h_, w_)


# ---------------- deterministic parameter init --------------------------------
def make_params(key):
    ks = jax.random.split(key, 12)

    def rnd(k, shape, scale):
        return jax.random.normal(k, shape, jnp.float32) * scale

    # raw BN params (inference form), fused into scale/shift
    def fuse_bn(kg, kb, km, kv, c):
        gamma = 1.0 + 0.1 * jax.random.normal(kg, (NUM_BRANCHES, 1, c), jnp.float32)
        beta = 0.1 * jax.random.normal(kb, (NUM_BRANCHES, 1, c), jnp.float32)
        mean = 0.1 * jax.random.normal(km, (NUM_BRANCHES, 1, c), jnp.float32)
        var = jnp.abs(1.0 + 0.1 * jax.random.normal(kv, (NUM_BRANCHES, 1, c),
                                                    jnp.float32))
        scale = gamma / jnp.sqrt(var + EPS)
        shift = beta - mean * scale
        return scale, shift

    bn1_scale, bn1_shift = fuse_bn(ks[0], ks[1], ks[2], ks[3], P)
    bnw_scale, bnw_shift = fuse_bn(ks[4], ks[5], ks[6], ks[7], P)

    return {
        # 1x1 conv weights stored as [branch, in_ch, out_ch] (transposed
        # relative to PyTorch's [out, in, 1, 1]).
        "w1": rnd(ks[8], (NUM_BRANCHES, CIN, P), 1.0 / np.sqrt(CIN)),
        "bn1_scale": bn1_scale,
        "bn1_shift": bn1_shift,
        "wtpg": rnd(ks[9], (NUM_BRANCHES, P, 3 * IC), 1.0 / np.sqrt(P)),
        "ww": rnd(ks[10], (NUM_BRANCHES, IC, P), 1.0 / np.sqrt(IC)),
        "bnw_scale": bnw_scale,
        "bnw_shift": bnw_shift,
        "w2": rnd(ks[11], (NUM_BRANCHES, P, 1), 1.0 / np.sqrt(P)),
    }


if __name__ == "__main__":
    key = jax.random.PRNGKey(0)
    kx, kp = jax.random.split(key)
    x = jax.random.normal(kx, (B, CIN, H, W), jnp.float32)
    params = make_params(kp)

    out = nonlocal_forward(x, params)
    out = jax.block_until_ready(out)
    assert out.shape == (B, NUM_BRANCHES, H, W), out.shape

    ref = jax.block_until_ready(reference_forward(x, params))
    # Small slack for BN/conv folding reorder and the Newton-refined reciprocal.
    np.testing.assert_allclose(np.asarray(out), np.asarray(ref),
                               rtol=2e-4, atol=2e-4)

    print("KERNEL_OK")
</pallas_src>

<mosaic_0001>
module attributes {stable_mosaic.version = 11 : i64} {
  func.func @nonlocal_fused_kernel(%arg0: i32, %arg1: memref<1x33x64xf32, #tpu.memory_space<vmem>>, %arg2: memref<320x33xf32, #tpu.memory_space<vmem>>, %arg3: memref<480x320xf32, #tpu.memory_space<vmem>>, %arg4: memref<20x2x8xf32, #tpu.memory_space<vmem>>, %arg5: memref<20x1x16xf32, #tpu.memory_space<vmem>>, %arg6: memref<1x20x1x64xf32, #tpu.memory_space<vmem>>) attributes {dimension_semantics = [#tpu.dimension_semantics<parallel>], iteration_bounds = array<i64: 2>, scalar_prefetch = 0 : i64, scratch_operands = 0 : i64, tpu.core_type = #tpu.core_type<tc>, window_params = [{transform_indices = @transform_0, window_bounds = array<i64: 1, 33, 64>}, {pipeline_mode = #tpu.pipeline_mode<synchronous>, transform_indices = @transform_1, window_bounds = array<i64: 320, 33>}, {pipeline_mode = #tpu.pipeline_mode<synchronous>, transform_indices = @transform_2, window_bounds = array<i64: 480, 320>}, {pipeline_mode = #tpu.pipeline_mode<synchronous>, transform_indices = @transform_3, window_bounds = array<i64: 20, 2, 8>}, {pipeline_mode = #tpu.pipeline_mode<synchronous>, transform_indices = @transform_4, window_bounds = array<i64: 20, 1, 16>}, {transform_indices = @transform_5, window_bounds = array<i64: 1, 20, 1, 64>}]} {
    %c0 = arith.constant 0 : index
    %c0_0 = arith.constant 0 : index
    %c0_1 = arith.constant 0 : index
    %0 = vector.load %arg1[%c0, %c0_0, %c0_1] : memref<1x33x64xf32, #tpu.memory_space<vmem>>, vector<1x33x64xf32>
    %1 = vector.shape_cast %0 : vector<1x33x64xf32> to vector<33x64xf32>
    %c0_2 = arith.constant 0 : index
    %c0_3 = arith.constant 0 : index
    %2 = vector.load %arg2[%c0_2, %c0_3] : memref<320x33xf32, #tpu.memory_space<vmem>>, vector<320x33xf32>
    %cst = arith.constant dense<0.000000e+00> : vector<320x64xf32>
    %3 = tpu.matmul %2, %1, %cst {dimension_numbers = #tpu.dot_dimension_numbers<[1], [0], [0], [1], [0, 0, 1, 1], [], []>} : vector<320x33xf32>, vector<33x64xf32>, vector<320x64xf32> -> vector<320x64xf32>
    %cst_4 = arith.constant 0.000000e+00 : f32
    %4 = vector.broadcast %cst_4 : f32 to vector<320x64xf32>
    %5 = arith.maximumf %3, %4 : vector<320x64xf32>
    %c0_5 = arith.constant 0 : index
    %c0_6 = arith.constant 0 : index
    %6 = vector.load %arg3[%c0_5, %c0_6] : memref<480x320xf32, #tpu.memory_space<vmem>>, vector<480x320xf32>
    %cst_7 = arith.constant dense<0.000000e+00> : vector<480x64xf32>
    %7 = tpu.matmul %6, %5, %cst_7 {dimension_numbers = #tpu.dot_dimension_numbers<[1], [0], [0], [1], [0, 0, 1, 1], [], []>} : vector<480x320xf32>, vector<320x64xf32>, vector<480x64xf32> -> vector<480x64xf32>
    %8 = vector.extract_strided_slice %7 {offsets = [0, 0], sizes = [8, 64], strides = [1, 1]} : vector<480x64xf32> to vector<8x64xf32>
    %9 = tpu.transpose %8, [1, 0] : vector<8x64xf32> -> vector<64x8xf32>
    %10 = vector.extract_strided_slice %7 {offsets = [160, 0], sizes = [8, 64], strides = [1, 1]} : vector<480x64xf32> to vector<8x64xf32>
    %11 = vector.extract_strided_slice %7 {offsets = [320, 0], sizes = [8, 64], strides = [1, 1]} : vector<480x64xf32> to vector<8x64xf32>
    %12 = vector.extract_strided_slice %5 {offsets = [0, 0], sizes = [16, 64], strides = [1, 1]} : vector<320x64xf32> to vector<16x64xf32>
    %13 = vector.extract_strided_slice %7 {offsets = [8, 0], sizes = [8, 64], strides = [1, 1]} : vector<480x64xf32> to vector<8x64xf32>
    %14 = tpu.transpose %13, [1, 0] : vector<8x64xf32> -> vector<64x8xf32>
    %15 = vector.extract_strided_slice %7 {offsets = [168, 0], sizes = [8, 64], strides = [1, 1]} : vector<480x64xf32> to vector<8x64xf32>
    %16 = vector.extract_strided_slice %7 {offsets = [328, 0], sizes = [8, 64], strides = [1, 1]} : vector<480x64xf32> to vector<8x64xf32>
    %17 = vector.extract_strided_slice %5 {offsets = [16, 0], sizes = [16, 64], strides = [1, 1]} : vector<320x64xf32> to vector<16x64xf32>
    %18 = vector.extract_strided_slice %7 {offsets = [16, 0], sizes = [8, 64], strides = [1, 1]} : vector<480x64xf32> to vector<8x64xf32>
    %19 = tpu.transpose %18, [1, 0] : vector<8x64xf32> -> vector<64x8xf32>
    %20 = vector.extract_strided_slice %7 {offsets = [176, 0], sizes = [8, 64], strides = [1, 1]} : vector<480x64xf32> to vector<8x64xf32>
    %21 = vector.extract_strided_slice %7 {offsets = [336, 0], sizes = [8, 64], strides = [1, 1]} : vector<480x64xf32> to vector<8x64xf32>
    %22 = vector.extract_strided_slice %5 {offsets = [32, 0], sizes = [16, 64], strides = [1, 1]} : vector<320x64xf32> to vector<16x64xf32>
    %23 = vector.extract_strided_slice %7 {offsets = [24, 0], sizes = [8, 64], strides = [1, 1]} : vector<480x64xf32> to vector<8x64xf32>
    %24 = tpu.transpose %23, [1, 0] : vector<8x64xf32> -> vector<64x8xf32>
    %25 = vector.extract_strided_slice %7 {offsets = [184, 0], sizes = [8, 64], strides = [1, 1]} : vector<480x64xf32> to vector<8x64xf32>
    %26 = vector.extract_strided_slice %7 {offsets = [344, 0], sizes = [8, 64], strides = [1, 1]} : vector<480x64xf32> to vector<8x64xf32>
    %27 = vector.extract_strided_slice %5 {offsets = [48, 0], sizes = [16, 64], strides = [1, 1]} : vector<320x64xf32> to vector<16x64xf32>
    %28 = vector.extract_strided_slice %7 {offsets = [32, 0], sizes = [8, 64], strides = [1, 1]} : vector<480x64xf32> to vector<8x64xf32>
    %29 = tpu.transpose %28, [1, 0] : vector<8x64xf32> -> vector<64x8xf32>
    %30 = vector.extract_strided_slice %7 {offsets = [192, 0], sizes = [8, 64], strides = [1, 1]} : vector<480x64xf32> to vector<8x64xf32>
    %31 = vector.extract_strided_slice %7 {offsets = [352, 0], sizes = [8, 64], strides = [1, 1]} : vector<480x64xf32> to vector<8x64xf32>
    %32 = vector.extract_strided_slice %5 {offsets = [64, 0], sizes = [16, 64], strides = [1, 1]} : vector<320x64xf32> to vector<16x64xf32>
    %33 = vector.extract_strided_slice %7 {offsets = [40, 0], sizes = [8, 64], strides = [1, 1]} : vector<480x64xf32> to vector<8x64xf32>
    %34 = tpu.transpose %33, [1, 0] : vector<8x64xf32> -> vector<64x8xf32>
    %35 = vector.extract_strided_slice %7 {offsets = [200, 0], sizes = [8, 64], strides = [1, 1]} : vector<480x64xf32> to vector<8x64xf32>
    %36 = vector.extract_strided_slice %7 {offsets = [360, 0], sizes = [8, 64], strides = [1, 1]} : vector<480x64xf32> to vector<8x64xf32>
    %37 = vector.extract_strided_slice %5 {offsets = [80, 0], sizes = [16, 64], strides = [1, 1]} : vector<320x64xf32> to vector<16x64xf32>
    %38 = vector.extract_strided_slice %7 {offsets = [48, 0], sizes = [8, 64], strides = [1, 1]} : vector<480x64xf32> to vector<8x64xf32>
    %39 = tpu.transpose %38, [1, 0] : vector<8x64xf32> -> vector<64x8xf32>
    %40 = vector.extract_strided_slice %7 {offsets = [208, 0], sizes = [8, 64], strides = [1, 1]} : vector<480x64xf32> to vector<8x64xf32>
    %41 = vector.extract_strided_slice %7 {offsets = [368, 0], sizes = [8, 64], strides = [1, 1]} : vector<480x64xf32> to vector<8x64xf32>
    %42 = vector.extract_strided_slice %5 {offsets = [96, 0], sizes = [16, 64], strides = [1, 1]} : vector<320x64xf32> to vector<16x64xf32>
    %43 = vector.extract_strided_slice %7 {offsets = [56, 0], sizes = [8, 64], strides = [1, 1]} : vector<480x64xf32> to vector<8x64xf32>
    %44 = tpu.transpose %43, [1, 0] : vector<8x64xf32> -> vector<64x8xf32>
    %45 = vector.extract_strided_slice %7 {offsets = [216, 0], sizes = [8, 64], strides = [1, 1]} : vector<480x64xf32> to vector<8x64xf32>
    %46 = vector.extract_strided_slice %7 {offsets = [376, 0], sizes = [8, 64], strides = [1, 1]} : vector<480x64xf32> to vector<8x64xf32>
    %47 = vector.extract_strided_slice %5 {offsets = [112, 0], sizes = [16, 64], strides = [1, 1]} : vector<320x64xf32> to vector<16x64xf32>
    %48 = vector.extract_strided_slice %7 {offsets = [64, 0], sizes = [8, 64], strides = [1, 1]} : vector<480x64xf32> to vector<8x64xf32>
    %49 = tpu.transpose %48, [1, 0] : vector<8x64xf32> -> vector<64x8xf32>
    %50 = vector.extract_strided_slice %7 {offsets = [224, 0], sizes = [8, 64], strides = [1, 1]} : vector<480x64xf32> to vector<8x64xf32>
    %51 = vector.extract_strided_slice %7 {offsets = [384, 0], sizes = [8, 64], strides = [1, 1]} : vector<480x64xf32> to vector<8x64xf32>
    %52 = vector.extract_strided_slice %5 {offsets = [128, 0], sizes = [16, 64], strides = [1, 1]} : vector<320x64xf32> to vector<16x64xf32>
    %53 = vector.extract_strided_slice %7 {offsets = [72, 0], sizes = [8, 64], strides = [1, 1]} : vector<480x64xf32> to vector<8x64xf32>
    %54 = tpu.transpose %53, [1, 0] : vector<8x64xf32> -> vector<64x8xf32>
    %55 = vector.extract_strided_slice %7 {offsets = [232, 0], sizes = [8, 64], strides = [1, 1]} : vector<480x64xf32> to vector<8x64xf32>
    %56 = vector.extract_strided_slice %7 {offsets = [392, 0], sizes = [8, 64], strides = [1, 1]} : vector<480x64xf32> to vector<8x64xf32>
    %57 = vector.extract_strided_slice %5 {offsets = [144, 0], sizes = [16, 64], strides = [1, 1]} : vector<320x64xf32> to vector<16x64xf32>
    %58 = vector.extract_strided_slice %7 {offsets = [80, 0], sizes = [8, 64], strides = [1, 1]} : vector<480x64xf32> to vector<8x64xf32>
    %59 = tpu.transpose %58, [1, 0] : vector<8x64xf32> -> vector<64x8xf32>
    %60 = vector.extract_strided_slice %7 {offsets = [240, 0], sizes = [8, 64], strides = [1, 1]} : vector<480x64xf32> to vector<8x64xf32>
    %61 = vector.extract_strided_slice %7 {offsets = [400, 0], sizes = [8, 64], strides = [1, 1]} : vector<480x64xf32> to vector<8x64xf32>
    %62 = vector.extract_strided_slice %5 {offsets = [160, 0], sizes = [16, 64], strides = [1, 1]} : vector<320x64xf32> to vector<16x64xf32>
    %63 = vector.extract_strided_slice %7 {offsets = [88, 0], sizes = [8, 64], strides = [1, 1]} : vector<480x64xf32> to vector<8x64xf32>
    %64 = tpu.transpose %63, [1, 0] : vector<8x64xf32> -> vector<64x8xf32>
    %65 = vector.extract_strided_slice %7 {offsets = [248, 0], sizes = [8, 64], strides = [1, 1]} : vector<480x64xf32> to vector<8x64xf32>
    %66 = vector.extract_strided_slice %7 {offsets = [408, 0], sizes = [8, 64], strides = [1, 1]} : vector<480x64xf32> to vector<8x64xf32>
    %67 = vector.extract_strided_slice %5 {offsets = [176, 0], sizes = [16, 64], strides = [1, 1]} : vector<320x64xf32> to vector<16x64xf32>
    %68 = vector.extract_strided_slice %7 {offsets = [96, 0], sizes = [8, 64], strides = [1, 1]} : vector<480x64xf32> to vector<8x64xf32>
    %69 = tpu.transpose %68, [1, 0] : vector<8x64xf32> -> vector<64x8xf32>
    %70 = vector.extract_strided_slice %7 {offsets = [256, 0], sizes = [8, 64], strides = [1, 1]} : vector<480x64xf32> to vector<8x64xf32>
    %71 = vector.extract_strided_slice %7 {offsets = [416, 0], sizes = [8, 64], strides = [1, 1]} : vector<480x64xf32> to vector<8x64xf32>
    %72 = vector.extract_strided_slice %5 {offsets = [192, 0], sizes = [16, 64], strides = [1, 1]} : vector<320x64xf32> to vector<16x64xf32>
    %73 = vector.extract_strided_slice %7 {offsets = [104, 0], sizes = [8, 64], strides = [1, 1]} : vector<480x64xf32> to vector<8x64xf32>
    %74 = tpu.transpose %73, [1, 0] : vector<8x64xf32> -> vector<64x8xf32>
    %75 = vector.extract_strided_slice %7 {offsets = [264, 0], sizes = [8, 64], strides = [1, 1]} : vector<480x64xf32> to vector<8x64xf32>
    %76 = vector.extract_strided_slice %7 {offsets = [424, 0], sizes = [8, 64], strides = [1, 1]} : vector<480x64xf32> to vector<8x64xf32>
    %77 = vector.extract_strided_slice %5 {offsets = [208, 0], sizes = [16, 64], strides = [1, 1]} : vector<320x64xf32> to vector<16x64xf32>
    %78 = vector.extract_strided_slice %7 {offsets = [112, 0], sizes = [8, 64], strides = [1, 1]} : vector<480x64xf32> to vector<8x64xf32>
    %79 = tpu.transpose %78, [1, 0] : vector<8x64xf32> -> vector<64x8xf32>
    %80 = vector.extract_strided_slice %7 {offsets = [272, 0], sizes = [8, 64], strides = [1, 1]} : vector<480x64xf32> to vector<8x64xf32>
    %81 = vector.extract_strided_slice %7 {offsets = [432, 0], sizes = [8, 64], strides = [1, 1]} : vector<480x64xf32> to vector<8x64xf32>
    %82 = vector.extract_strided_slice %5 {offsets = [224, 0], sizes = [16, 64], strides = [1, 1]} : vector<320x64xf32> to vector<16x64xf32>
    %83 = vector.extract_strided_slice %7 {offsets = [120, 0], sizes = [8, 64], strides = [1, 1]} : vector<480x64xf32> to vector<8x64xf32>
    %84 = tpu.transpose %83, [1, 0] : vector<8x64xf32> -> vector<64x8xf32>
    %85 = vector.extract_strided_slice %7 {offsets = [280, 0], sizes = [8, 64], strides = [1, 1]} : vector<480x64xf32> to vector<8x64xf32>
    %86 = vector.extract_strided_slice %7 {offsets = [440, 0], sizes = [8, 64], strides = [1, 1]} : vector<480x64xf32> to vector<8x64xf32>
    %87 = vector.extract_strided_slice %5 {offsets = [240, 0], sizes = [16, 64], strides = [1, 1]} : vector<320x64xf32> to vector<16x64xf32>
    %88 = vector.extract_strided_slice %7 {offsets = [128, 0], sizes = [8, 64], strides = [1, 1]} : vector<480x64xf32> to vector<8x64xf32>
    %89 = tpu.transpose %88, [1, 0] : vector<8x64xf32> -> vector<64x8xf32>
    %90 = vector.extract_strided_slice %7 {offsets = [288, 0], sizes = [8, 64], strides = [1, 1]} : vector<480x64xf32> to vector<8x64xf32>
    %91 = vector.extract_strided_slice %7 {offsets = [448, 0], sizes = [8, 64], strides = [1, 1]} : vector<480x64xf32> to vector<8x64xf32>
    %92 = vector.extract_strided_slice %5 {offsets = [256, 0], sizes = [16, 64], strides = [1, 1]} : vector<320x64xf32> to vector<16x64xf32>
    %93 = vector.extract_strided_slice %7 {offsets = [136, 0], sizes = [8, 64], strides = [1, 1]} : vector<480x64xf32> to vector<8x64xf32>
    %94 = tpu.transpose %93, [1, 0] : vector<8x64xf32> -> vector<64x8xf32>
    %95 = vector.extract_strided_slice %7 {offsets = [296, 0], sizes = [8, 64], strides = [1, 1]} : vector<480x64xf32> to vector<8x64xf32>
    %96 = vector.extract_strided_slice %7 {offsets = [456, 0], sizes = [8, 64], strides = [1, 1]} : vector<480x64xf32> to vector<8x64xf32>
    %97 = vector.extract_strided_slice %5 {offsets = [272, 0], sizes = [16, 64], strides = [1, 1]} : vector<320x64xf32> to vector<16x64xf32>
    %98 = vector.extract_strided_slice %7 {offsets = [144, 0], sizes = [8, 64], strides = [1, 1]} : vector<480x64xf32> to vector<8x64xf32>
    %99 = tpu.transpose %98, [1, 0] : vector<8x64xf32> -> vector<64x8xf32>
    %100 = vector.extract_strided_slice %7 {offsets = [304, 0], sizes = [8, 64], strides = [1, 1]} : vector<480x64xf32> to vector<8x64xf32>
    %101 = vector.extract_strided_slice %7 {offsets = [464, 0], sizes = [8, 64], strides = [1, 1]} : vector<480x64xf32> to vector<8x64xf32>
    %102 = vector.extract_strided_slice %5 {offsets = [288, 0], sizes = [16, 64], strides = [1, 1]} : vector<320x64xf32> to vector<16x64xf32>
    %103 = vector.extract_strided_slice %7 {offsets = [152, 0], sizes = [8, 64], strides = [1, 1]} : vector<480x64xf32> to vector<8x64xf32>
    %104 = tpu.transpose %103, [1, 0] : vector<8x64xf32> -> vector<64x8xf32>
    %105 = vector.extract_strided_slice %7 {offsets = [312, 0], sizes = [8, 64], strides = [1, 1]} : vector<480x64xf32> to vector<8x64xf32>
    %106 = vector.extract_strided_slice %7 {offsets = [472, 0], sizes = [8, 64], strides = [1, 1]} : vector<480x64xf32> to vector<8x64xf32>
    %107 = vector.extract_strided_slice %5 {offsets = [304, 0], sizes = [16, 64], strides = [1, 1]} : vector<320x64xf32> to vector<16x64xf32>
    %108 = vector.shape_cast %9 : vector<64x8xf32> to vector<1x64x8xf32>
    %109 = vector.shape_cast %14 : vector<64x8xf32> to vector<1x64x8xf32>
    %110 = vector.shape_cast %19 : vector<64x8xf32> to vector<1x64x8xf32>
    %111 = vector.shape_cast %24 : vector<64x8xf32> to vector<1x64x8xf32>
    %112 = vector.shape_cast %29 : vector<64x8xf32> to vector<1x64x8xf32>
    %113 = vector.shape_cast %34 : vector<64x8xf32> to vector<1x64x8xf32>
    %114 = vector.shape_cast %39 : vector<64x8xf32> to vector<1x64x8xf32>
    %115 = vector.shape_cast %44 : vector<64x8xf32> to vector<1x64x8xf32>
    %116 = vector.shape_cast %49 : vector<64x8xf32> to vector<1x64x8xf32>
    %117 = vector.shape_cast %54 : vector<64x8xf32> to vector<1x64x8xf32>
    %118 = vector.shape_cast %59 : vector<64x8xf32> to vector<1x64x8xf32>
    %119 = vector.shape_cast %64 : vector<64x8xf32> to vector<1x64x8xf32>
    %120 = vector.shape_cast %69 : vector<64x8xf32> to vector<1x64x8xf32>
    %121 = vector.shape_cast %74 : vector<64x8xf32> to vector<1x64x8xf32>
    %122 = vector.shape_cast %79 : vector<64x8xf32> to vector<1x64x8xf32>
    %123 = vector.shape_cast %84 : vector<64x8xf32> to vector<1x64x8xf32>
    %124 = vector.shape_cast %89 : vector<64x8xf32> to vector<1x64x8xf32>
    %125 = vector.shape_cast %94 : vector<64x8xf32> to vector<1x64x8xf32>
    %126 = vector.shape_cast %99 : vector<64x8xf32> to vector<1x64x8xf32>
    %127 = vector.shape_cast %104 : vector<64x8xf32> to vector<1x64x8xf32>
    %128 = tpu.concatenate %108, %109, %110, %111, %112, %113, %114, %115, %116, %117, %118, %119, %120, %121, %122, %123 in 0 : vector<1x64x8xf32>, vector<1x64x8xf32>, vector<1x64x8xf32>, vector<1x64x8xf32>, vector<1x64x8xf32>, vector<1x64x8xf32>, vector<1x64x8xf32>, vector<1x64x8xf32>, vector<1x64x8xf32>, vector<1x64x8xf32>, vector<1x64x8xf32>, vector<1x64x8xf32>, vector<1x64x8xf32>, vector<1x64x8xf32>, vector<1x64x8xf32>, vector<1x64x8xf32> -> vector<16x64x8xf32>
    %129 = tpu.concatenate %124, %125, %126, %127 in 0 : vector<1x64x8xf32>, vector<1x64x8xf32>, vector<1x64x8xf32>, vector<1x64x8xf32> -> vector<4x64x8xf32>
    %130 = tpu.concatenate %128, %129 in 0 : vector<16x64x8xf32>, vector<4x64x8xf32> -> vector<20x64x8xf32>
    %131 = vector.shape_cast %10 : vector<8x64xf32> to vector<1x8x64xf32>
    %132 = vector.shape_cast %15 : vector<8x64xf32> to vector<1x8x64xf32>
    %133 = vector.shape_cast %20 : vector<8x64xf32> to vector<1x8x64xf32>
    %134 = vector.shape_cast %25 : vector<8x64xf32> to vector<1x8x64xf32>
    %135 = vector.shape_cast %30 : vector<8x64xf32> to vector<1x8x64xf32>
    %136 = vector.shape_cast %35 : vector<8x64xf32> to vector<1x8x64xf32>
    %137 = vector.shape_cast %40 : vector<8x64xf32> to vector<1x8x64xf32>
    %138 = vector.shape_cast %45 : vector<8x64xf32> to vector<1x8x64xf32>
    %139 = vector.shape_cast %50 : vector<8x64xf32> to vector<1x8x64xf32>
    %140 = vector.shape_cast %55 : vector<8x64xf32> to vector<1x8x64xf32>
    %141 = vector.shape_cast %60 : vector<8x64xf32> to vector<1x8x64xf32>
    %142 = vector.shape_cast %65 : vector<8x64xf32> to vector<1x8x64xf32>
    %143 = vector.shape_cast %70 : vector<8x64xf32> to vector<1x8x64xf32>
    %144 = vector.shape_cast %75 : vector<8x64xf32> to vector<1x8x64xf32>
    %145 = vector.shape_cast %80 : vector<8x64xf32> to vector<1x8x64xf32>
    %146 = vector.shape_cast %85 : vector<8x64xf32> to vector<1x8x64xf32>
    %147 = vector.shape_cast %90 : vector<8x64xf32> to vector<1x8x64xf32>
    %148 = vector.shape_cast %95 : vector<8x64xf32> to vector<1x8x64xf32>
    %149 = vector.shape_cast %100 : vector<8x64xf32> to vector<1x8x64xf32>
    %150 = vector.shape_cast %105 : vector<8x64xf32> to vector<1x8x64xf32>
    %151 = tpu.concatenate %131, %132, %133, %134, %135, %136, %137, %138, %139, %140, %141, %142, %143, %144, %145, %146 in 0 : vector<1x8x64xf32>, vector<1x8x64xf32>, vector<1x8x64xf32>, vector<1x8x64xf32>, vector<1x8x64xf32>, vector<1x8x64xf32>, vector<1x8x64xf32>, vector<1x8x64xf32>, vector<1x8x64xf32>, vector<1x8x64xf32>, vector<1x8x64xf32>, vector<1x8x64xf32>, vector<1x8x64xf32>, vector<1x8x64xf32>, vector<1x8x64xf32>, vector<1x8x64xf32> -> vector<16x8x64xf32>
    %152 = tpu.concatenate %147, %148, %149, %150 in 0 : vector<1x8x64xf32>, vector<1x8x64xf32>, vector<1x8x64xf32>, vector<1x8x64xf32> -> vector<4x8x64xf32>
    %153 = tpu.concatenate %151, %152 in 0 : vector<16x8x64xf32>, vector<4x8x64xf32> -> vector<20x8x64xf32>
    %154 = vector.shape_cast %11 : vector<8x64xf32> to vector<1x8x64xf32>
    %155 = vector.shape_cast %16 : vector<8x64xf32> to vector<1x8x64xf32>
    %156 = vector.shape_cast %21 : vector<8x64xf32> to vector<1x8x64xf32>
    %157 = vector.shape_cast %26 : vector<8x64xf32> to vector<1x8x64xf32>
    %158 = vector.shape_cast %31 : vector<8x64xf32> to vector<1x8x64xf32>
    %159 = vector.shape_cast %36 : vector<8x64xf32> to vector<1x8x64xf32>
    %160 = vector.shape_cast %41 : vector<8x64xf32> to vector<1x8x64xf32>
    %161 = vector.shape_cast %46 : vector<8x64xf32> to vector<1x8x64xf32>
    %162 = vector.shape_cast %51 : vector<8x64xf32> to vector<1x8x64xf32>
    %163 = vector.shape_cast %56 : vector<8x64xf32> to vector<1x8x64xf32>
    %164 = vector.shape_cast %61 : vector<8x64xf32> to vector<1x8x64xf32>
    %165 = vector.shape_cast %66 : vector<8x64xf32> to vector<1x8x64xf32>
    %166 = vector.shape_cast %71 : vector<8x64xf32> to vector<1x8x64xf32>
    %167 = vector.shape_cast %76 : vector<8x64xf32> to vector<1x8x64xf32>
    %168 = vector.shape_cast %81 : vector<8x64xf32> to vector<1x8x64xf32>
    %169 = vector.shape_cast %86 : vector<8x64xf32> to vector<1x8x64xf32>
    %170 = vector.shape_cast %91 : vector<8x64xf32> to vector<1x8x64xf32>
    %171 = vector.shape_cast %96 : vector<8x64xf32> to vector<1x8x64xf32>
    %172 = vector.shape_cast %101 : vector<8x64xf32> to vector<1x8x64xf32>
    %173 = vector.shape_cast %106 : vector<8x64xf32> to vector<1x8x64xf32>
    %174 = tpu.concatenate %154, %155, %156, %157, %158, %159, %160, %161, %162, %163, %164, %165, %166, %167, %168, %169 in 0 : vector<1x8x64xf32>, vector<1x8x64xf32>, vector<1x8x64xf32>, vector<1x8x64xf32>, vector<1x8x64xf32>, vector<1x8x64xf32>, vector<1x8x64xf32>, vector<1x8x64xf32>, vector<1x8x64xf32>, vector<1x8x64xf32>, vector<1x8x64xf32>, vector<1x8x64xf32>, vector<1x8x64xf32>, vector<1x8x64xf32>, vector<1x8x64xf32>, vector<1x8x64xf32> -> vector<16x8x64xf32>
    %175 = tpu.concatenate %170, %171, %172, %173 in 0 : vector<1x8x64xf32>, vector<1x8x64xf32>, vector<1x8x64xf32>, vector<1x8x64xf32> -> vector<4x8x64xf32>
    %176 = tpu.concatenate %174, %175 in 0 : vector<16x8x64xf32>, vector<4x8x64xf32> -> vector<20x8x64xf32>
    %177 = vector.shape_cast %12 : vector<16x64xf32> to vector<1x16x64xf32>
    %178 = vector.shape_cast %17 : vector<16x64xf32> to vector<1x16x64xf32>
    %179 = vector.shape_cast %22 : vector<16x64xf32> to vector<1x16x64xf32>
    %180 = vector.shape_cast %27 : vector<16x64xf32> to vector<1x16x64xf32>
    %181 = vector.shape_cast %32 : vector<16x64xf32> to vector<1x16x64xf32>
    %182 = vector.shape_cast %37 : vector<16x64xf32> to vector<1x16x64xf32>
    %183 = vector.shape_cast %42 : vector<16x64xf32> to vector<1x16x64xf32>
    %184 = vector.shape_cast %47 : vector<16x64xf32> to vector<1x16x64xf32>
    %185 = vector.shape_cast %52 : vector<16x64xf32> to vector<1x16x64xf32>
    %186 = vector.shape_cast %57 : vector<16x64xf32> to vector<1x16x64xf32>
    %187 = vector.shape_cast %62 : vector<16x64xf32> to vector<1x16x64xf32>
    %188 = vector.shape_cast %67 : vector<16x64xf32> to vector<1x16x64xf32>
    %189 = vector.shape_cast %72 : vector<16x64xf32> to vector<1x16x64xf32>
    %190 = vector.shape_cast %77 : vector<16x64xf32> to vector<1x16x64xf32>
    %191 = vector.shape_cast %82 : vector<16x64xf32> to vector<1x16x64xf32>
    %192 = vector.shape_cast %87 : vector<16x64xf32> to vector<1x16x64xf32>
    %193 = vector.shape_cast %92 : vector<16x64xf32> to vector<1x16x64xf32>
    %194 = vector.shape_cast %97 : vector<16x64xf32> to vector<1x16x64xf32>
    %195 = vector.shape_cast %102 : vector<16x64xf32> to vector<1x16x64xf32>
    %196 = vector.shape_cast %107 : vector<16x64xf32> to vector<1x16x64xf32>
    %197 = tpu.concatenate %177, %178, %179, %180, %181, %182, %183, %184, %185, %186, %187, %188, %189, %190, %191, %192 in 0 : vector<1x16x64xf32>, vector<1x16x64xf32>, vector<1x16x64xf32>, vector<1x16x64xf32>, vector<1x16x64xf32>, vector<1x16x64xf32>, vector<1x16x64xf32>, vector<1x16x64xf32>, vector<1x16x64xf32>, vector<1x16x64xf32>, vector<1x16x64xf32>, vector<1x16x64xf32>, vector<1x16x64xf32>, vector<1x16x64xf32>, vector<1x16x64xf32>, vector<1x16x64xf32> -> vector<16x16x64xf32>
    %198 = tpu.concatenate %193, %194, %195, %196 in 0 : vector<1x16x64xf32>, vector<1x16x64xf32>, vector<1x16x64xf32>, vector<1x16x64xf32> -> vector<4x16x64xf32>
    %199 = tpu.concatenate %197, %198 in 0 : vector<16x16x64xf32>, vector<4x16x64xf32> -> vector<20x16x64xf32>
    "tpu.trace_start"() <{level = 10 : i32, message = "knd,kdm->knm"}> : () -> ()
    %cst_8 = arith.constant dense<0.000000e+00> : vector<20x64x64xf32>
    %200 = tpu.matmul %130, %153, %cst_8 {dimension_numbers = #tpu.dot_dimension_numbers<[2], [1], [1], [2], [0, 0, 0, 1, 1, 2], [0], [0]>} : vector<20x64x8xf32>, vector<20x8x64xf32>, vector<20x64x64xf32> -> vector<20x64x64xf32>
    "tpu.trace_stop"() : () -> ()
    %cst_9 = arith.constant dense<0xFF800000> : vector<20x64xf32>
    %201 = vector.multi_reduction <maximumf>, %200, %cst_9 [2] : vector<20x64x64xf32> to vector<20x64xf32>
    %202 = vector.shape_cast %201 : vector<20x64xf32> to vector<20x64x1xf32>
    %203 = vector.broadcast %202 : vector<20x64x1xf32> to vector<20x64x64xf32>
    %204 = arith.subf %200, %203 : vector<20x64x64xf32>
    %205 = math.exp %204 : vector<20x64x64xf32>
    %cst_10 = arith.constant dense<0.000000e+00> : vector<20x64xf32>
    %206 = vector.multi_reduction <add>, %205, %cst_10 [2] : vector<20x64x64xf32> to vector<20x64xf32>
    %207 = vector.shape_cast %206 : vector<20x64xf32> to vector<20x64x1xf32>
    %208 = tpu.reciprocal %207 {approx = true} : vector<20x64x1xf32> -> vector<20x64x1xf32>
    %209 = arith.mulf %207, %208 : vector<20x64x1xf32>
    %cst_11 = arith.constant 2.000000e+00 : f32
    %210 = vector.broadcast %cst_11 : f32 to vector<20x64x1xf32>
    %211 = arith.subf %210, %209 : vector<20x64x1xf32>
    %212 = arith.mulf %208, %211 : vector<20x64x1xf32>
    %213 = vector.broadcast %212 : vector<20x64x1xf32> to vector<20x64x64xf32>
    %214 = arith.mulf %205, %213 : vector<20x64x64xf32>
    "tpu.trace_start"() <{level = 10 : i32, message = "kdm,knm->kdn"}> : () -> ()
    %cst_12 = arith.constant dense<0.000000e+00> : vector<20x8x64xf32>
    %215 = tpu.matmul %176, %214, %cst_12 {dimension_numbers = #tpu.dot_dimension_numbers<[2], [2], [1], [1], [0, 0, 0, 1, 1, 1], [0], [0]>} : vector<20x8x64xf32>, vector<20x64x64xf32>, vector<20x8x64xf32> -> vector<20x8x64xf32>
    "tpu.trace_stop"() : () -> ()
    %c0_13 = arith.constant 0 : index
    %c0_14 = arith.constant 0 : index
    %c0_15 = arith.constant 0 : index
    %216 = vector.load %arg4[%c0_13, %c0_14, %c0_15] : memref<20x2x8xf32, #tpu.memory_space<vmem>>, vector<20x2x8xf32>
    %217 = vector.extract_strided_slice %216 {offsets = [0, 0, 0], sizes = [20, 1, 8], strides = [1, 1, 1]} : vector<20x2x8xf32> to vector<20x1x8xf32>
    %218 = vector.extract_strided_slice %216 {offsets = [0, 1, 0], sizes = [20, 1, 1], strides = [1, 1, 1]} : vector<20x2x8xf32> to vector<20x1x1xf32>
    "tpu.trace_start"() <{level = 10 : i32, message = "kod,kdn->kon"}> : () -> ()
    %cst_16 = arith.constant dense<0.000000e+00> : vector<20x1x64xf32>
    %219 = tpu.matmul %217, %215, %cst_16 {dimension_numbers = #tpu.dot_dimension_numbers<[2], [1], [1], [2], [0, 0, 0, 1, 1, 2], [0], [0]>} : vector<20x1x8xf32>, vector<20x8x64xf32>, vector<20x1x64xf32> -> vector<20x1x64xf32>
    "tpu.trace_stop"() : () -> ()
    %c0_17 = arith.constant 0 : index
    %c0_18 = arith.constant 0 : index
    %c0_19 = arith.constant 0 : index
    %220 = vector.load %arg5[%c0_17, %c0_18, %c0_19] : memref<20x1x16xf32, #tpu.memory_space<vmem>>, vector<20x1x16xf32>
    "tpu.trace_start"() <{level = 10 : i32, message = "kop,kpn->kon"}> : () -> ()
    %cst_20 = arith.constant dense<0.000000e+00> : vector<20x1x64xf32>
    %221 = tpu.matmul %220, %199, %cst_20 {dimension_numbers = #tpu.dot_dimension_numbers<[2], [1], [1], [2], [0, 0, 0, 1, 1, 2], [0], [0]>} : vector<20x1x16xf32>, vector<20x16x64xf32>, vector<20x1x64xf32> -> vector<20x1x64xf32>
    "tpu.trace_stop"() : () -> ()
    %222 = arith.addf %219, %221 : vector<20x1x64xf32>
    %223 = vector.broadcast %218 : vector<20x1x1xf32> to vector<20x1x64xf32>
    %224 = arith.addf %222, %223 : vector<20x1x64xf32>
    %c0_21 = arith.constant 0 : index
    %c0_22 = arith.constant 0 : index
    %c0_23 = arith.constant 0 : index
    %c0_24 = arith.constant 0 : index
    %225 = vector.load %arg6[%c0_21, %c0_22, %c0_23, %c0_24] : memref<1x20x1x64xf32, #tpu.memory_space<vmem>>, vector<1x20x1x64xf32>
    %226 = vector.shape_cast %225 : vector<1x20x1x64xf32> to vector<20x1x64xf32>
    %227 = vector.shape_cast %224 : vector<20x1x64xf32> to vector<1x20x1x64xf32>
    tpu.vector_store %arg6[%c0_21, %c0_22, %c0_23, %c0_24], %227 {strides = array<i32>} : memref<1x20x1x64xf32, #tpu.memory_space<vmem>>, vector<1x20x1x64xf32>,
    return
  }
  func.func @transform_0(%arg0: i32) -> (i32, i32, i32) {
    %c0_i32 = arith.constant 0 : i32
    %c0_i32_0 = arith.constant 0 : i32
    %c0_i32_1 = arith.constant 0 : i32
    return %arg0, %c0_i32, %c0_i32_0 : i32, i32, i32
  }
  func.func @transform_1(%arg0: i32) -> (i32, i32) {
    %c0_i32 = arith.constant 0 : i32
    %c0_i32_0 = arith.constant 0 : i32
    %c0_i32_1 = arith.constant 0 : i32
    return %c0_i32, %c0_i32_0 : i32, i32
  }
  func.func @transform_2(%arg0: i32) -> (i32, i32) {
    %c0_i32 = arith.constant 0 : i32
    %c0_i32_0 = arith.constant 0 : i32
    %c0_i32_1 = arith.constant 0 : i32
    return %c0_i32, %c0_i32_0 : i32, i32
  }
  func.func @transform_3(%arg0: i32) -> (i32, i32, i32) {
    %c0_i32 = arith.constant 0 : i32
    %c0_i32_0 = arith.constant 0 : i32
    %c0_i32_1 = arith.constant 0 : i32
    %c0_i32_2 = arith.constant 0 : i32
    return %c0_i32, %c0_i32_0, %c0_i32_1 : i32, i32, i32
  }
  func.func @transform_4(%arg0: i32) -> (i32, i32, i32) {
    %c0_i32 = arith.constant 0 : i32
    %c0_i32_0 = arith.constant 0 : i32
    %c0_i32_1 = arith.constant 0 : i32
    %c0_i32_2 = arith.constant 0 : i32
    return %c0_i32, %c0_i32_0, %c0_i32_1 : i32, i32, i32
  }
  func.func @transform_5(%arg0: i32) -> (i32, i32, i32, i32) {
    %c0_i32 = arith.constant 0 : i32
    %c0_i32_0 = arith.constant 0 : i32
    %c0_i32_1 = arith.constant 0 : i32
    %c0_i32_2 = arith.constant 0 : i32
    return %arg0, %c0_i32, %c0_i32_0, %c0_i32_1 : i32, i32, i32, i32
  }
}

</mosaic_0001>

<bundles_post_ra>
// kernel: tpu_custom_call.1
= control target key start
LH: loop header
LB: loop body
LE: loop exit
PB: predicated region body
PF: predicated region fallthrough
CT: control target
= control target key end

     0   :  { %10 = vsyncpa [#allocation3], 0  ;;  %s20692_s0 = inlined_call_operand.vmem [shape: f32[2,33,64], index: 0, kind: input, shape index: {}]   ;;  %s20693_s1 = inlined_call_operand.vmem [shape: f32[320,33], index: 1, kind: input, shape index: {}]   ;;  %s20694_s2 = inlined_call_operand.vmem [shape: f32[480,320], index: 2, kind: input, shape index: {}]   ;;  %s20695_s3 = inlined_call_operand.vmem [shape: f32[20,2,8], index: 3, kind: input, shape index: {}]   ;;  %s20696_s4 = inlined_call_operand.vmem [shape: f32[20,1,16], index: 4, kind: input, shape index: {}]   ;;  %s20697_s5 = inlined_call_operand.hbm [shape: f32[2,20,1,64], index: 5, kind: output, shape index: {}]  }
   0x1   :  { %12 = vsyncpa [#allocation3 + $0x1], 0  ;;  %s15293_s18 = smov 0   ;;  %s15295_s19 = smov 0  }
   0x2   :  { %s15297_s20 = smov 0   ;;  %s15299_s21 = smov 0  }
   0x3 LB: > { %s15314_s22 = sadd.s32 4294967295, %s15255_s21   ;;  %s12368_s23 = sadd.s32 4294967294, %s15255_s21   ;;  %s15255_s21 = sphi %s15299_s21, %s21848_s21   ;;  %s15251_s20 = sphi %s15297_s20, %s21847_s20   ;;  %s15247_s19 = sphi %s15295_s19, %s21846_s19   ;;  %s15243_s18 = sphi %s15293_s18, %s21845_s18  }
   0x4   : > { %s15318_s24 = sadd.s32 1, %s15255_s21   ;;  %s135_s25 = sadd.s32 1, %s15251_s20 }
   0x5   : > { %s132_s26 = ssub.s32 %s15255_s21, %s15318_s24  ;;  %p145_p0 = scmp.ne.s32.totalorder %s15251_s20, %s15247_s19 }
   0x6   : > { %p133_p1 = scmp.eq.s32.totalorder %s132_s26, 0  ;;  %p146_p2 = scmp.eq.s32.totalorder %s15314_s22, 1 }
   0x7   : > { %p151_p3 = scmp.ne.s32.totalorder %s15247_s19, %s15243_s18  ;;  %p152_p4 = scmp.eq.s32.totalorder %s12368_s23, 1 }
   0x8   : > { %s15329_s27 = scalar_select %p133_p1, %s15251_s20, %s135_s25  }
   0x9   : > { %p15331_p5 = por %p146_p2, %p145_p0  ;;  %p15335_p6 = por %p152_p4, %p151_p3 }
   0xa   : > { %p12371_p7 = scmp.ge.s32.totalorder %s15255_s21, 1  ;;  %p190_p8 = scmp.lt.s32.totalorder %s15255_s21, 3 }
   0xc   : > { %p191_p9 = pnand %p12371_p7, %p190_p8 }
   0xe   : > { %194 = sbr.rel (%p191_p9) target bundleno = 2180 (0x884), region = 40 }
  0x13   : > { %p218_p10 = scmp.lt.s32.totalorder %s15314_s22, 1  ;;  %v228_v0 = vld [vmem:[%s20693_s1] sm:$0xff]  ;;  %vm268_vm0 = vcmask 269312   ;;  %vm389_vm1 = vcmask 1040384   ;;  %v229_v6 = vld [vmem:[%s20693_s1 + $0x8] sm:$0xff]  ;;  %v230_v7 = vld [vmem:[%s20693_s1 + $0x10] sm:$0xff] }
  0x14   : > { %13440 = vmatprep.mubr.msk.f32.mxu0 %vm268_vm0, %v228_v0  ;;  %v231_v8 = vld [vmem:[%s20693_s1 + $0x18] sm:$0xff]  ;;  %v232_v9 = vld [vmem:[%s20693_s1 + $0x20] sm:$0xff]  ;;  %v233_v10 = vld [vmem:[%s20693_s1 + $0x28] sm:$0xff]  ;;  %v20730_v45 = vmov 0.0   ;;  %vm878_vm2 = vcmask 523264   ;;  %vm2429_vm3 = vcmask 64512  }
  0x15   : > { %s219_s7 = scalar_select %p218_p10, %s15314_s22, 1  ;;  %v234_v11 = vld [vmem:[%s20693_s1 + $0x30] sm:$0xff]  ;;  %v235_v12 = vld [vmem:[%s20693_s1 + $0x38] sm:$0xff]  ;;  %v236_v13 = vld [vmem:[%s20693_s1 + $0x40] sm:$0xff]  ;;  %1059 = vmatprep.subr.mxu1 %v20730_v45  ;;  %vm15258_vm4 = vmmov 0   ;;  %vm9230_vm5 = vcmask 130048  }
  0x16   : > { %v237_v14 = vld [vmem:[%s20693_s1 + $0x48] sm:$0xff]  ;;  %v238_v15 = vld [vmem:[%s20693_s1 + $0x50] sm:$0xff]  ;;  %v239_v16 = vld [vmem:[%s20693_s1 + $0x58] sm:$0xff]  ;;  %s215_s23 = sand.u32 1, %s15247_s19   ;;  %vm12271_vm6 = vcmask 516096   ;;  %s14508_s30 = smul.u32 320, %s15314_s22 }
  0x17   : > { %s14507_s8 = smul.u32 40, %s219_s7  ;;  %v240_v17 = vld [vmem:[%s20693_s1 + $0x60] sm:$0xff]  ;;  %v241_v18 = vld [vmem:[%s20693_s1 + $0x68] sm:$0xff]  ;;  %v242_v19 = vld [vmem:[%s20693_s1 + $0x70] sm:$0xff]  ;;  %s20652_s22 = scalar_lea.sflag [#allocation3], %s215_s23 }
  0x18   : > { %v243_v20 = vld [vmem:[%s20693_s1 + $0x78] sm:$0xff]  ;;  %v244_v21 = vld [vmem:[%s20693_s1 + $0x80] sm:$0xff]  ;;  %v245_v22 = vld [vmem:[%s20693_s1 + $0x88] sm:$0xff]  ;;  %s14506_s25 = smul.u32 20, %s215_s23  ;;  %s20646_s9 = scalar_lea.hbm %s20697_s5, %s14508_s30 }
  0x19   : > { %s222_s11 = scalar_lea.vmem %s20692_s0, %s14507_s8  ;;  %v246_v23 = vld [vmem:[%s20693_s1 + $0x90] sm:$0xff]  ;;  %v247_v24 = vld [vmem:[%s20693_s1 + $0x98] sm:$0xff]  ;;  %v248_v25 = vld [vmem:[%s20693_s1 + $0xa0] sm:$0xff] }
  0x1a   : > { %v227_v1 = vld [vmem:[%s222_s11 + $0x20] sm:$0x1]  ;;  %v226_v2 = vld [vmem:[%s222_s11 + $0x18] sm:$0xff]  ;;  %v225_v3 = vld [vmem:[%s222_s11 + $0x10] sm:$0xff]  ;;  %s20569_s26 = scalar_lea.vmem [#allocation2], %s14506_s25 }
  0x1b   : > { %13430 = vmatprep.subr.msk.mxu0 %vm389_vm1, %v227_v1  ;;  %v224_v4 = vld [vmem:[%s222_s11 + $0x8] sm:$0xff]  ;;  %v223_v5 = vld [vmem:[%s222_s11] sm:$0xff]  ;;  %v250_v27 = vld [vmem:[%s20693_s1 + $0xb0] sm:$0xff]  ;;  %s12306_s6 = sshll.u32 %s20569_s26, 4  ;;  %s15260_s11 = smov [#allocation2]   ;;  %s20641_s6 = int_to_ptr.vmem [resolvable:$true] %s12306_s6 }
  0x1c   : > { %13431 = vmatpush3.msk.msra.mxu0 %vm389_vm1, %v227_v1  ;;  %v249_v26 = vld [vmem:[%s20693_s1 + $0xa8] sm:$0xff]  ;;  %v251_v28 = vld [vmem:[%s20693_s1 + $0xb8] sm:$0xff]  ;;  %v252_v29 = vld [vmem:[%s20693_s1 + $0xc0] sm:$0xff]  ;;  %s15195_s10 = scalar_lea.vmem %s20641_s6, 320  ;;  %s15199_s12 = sshll.u32 %s15260_s11, 4  ;;  %s15200_s12 = int_to_ptr.vmem [resolvable:$false] %s15199_s12 }
  0x1d   : > { %13432 = vmatprep.subr.mxu0 %v226_v2  ;;  %v253_v30 = vld [vmem:[%s20693_s1 + $0xc8] sm:$0xff]  ;;  %v254_v31 = vld [vmem:[%s20693_s1 + $0xd0] sm:$0xff]  ;;  %v255_v32 = vld [vmem:[%s20693_s1 + $0xd8] sm:$0xff]  ;;  %p15196_p11 = scmp.ne.s32.totalorder %s20641_s6, %s15195_s10  ;;  %s15201_s13 = scalar_lea.vmem %s15200_s12, 640 }
  0x1e   : > { %13433 = vmatpush3.msra.mxu0 %v226_v2  ;;  %v256_v33 = vld [vmem:[%s20693_s1 + $0xe0] sm:$0xff]  ;;  %v257_v34 = vld [vmem:[%s20693_s1 + $0xe8] sm:$0xff]  ;;  %v258_v35 = vld [vmem:[%s20693_s1 + $0xf0] sm:$0xff]  ;;  %p15202_p0 = scmp.lt.s32.totalorder %s20641_s6, %s15200_s12  ;;  %p15203_p1 = scmp.lt.s32.totalorder %s15201_s13, %s15195_s10 }
  0x1f   : > { %13434 = vmatprep.subr.mxu0 %v225_v3  ;;  %v259_v36 = vld [vmem:[%s20693_s1 + $0xf8] sm:$0xff]  ;;  %v260_v37 = vld [vmem:[%s20693_s1 + $0x100] sm:$0xff]  ;;  %v261_v38 = vld [vmem:[%s20693_s1 + $0x108] sm:$0xff]  ;;  %p15197_p12 = pnand %p15196_p11, %p15331_p5 }
  0x20   : > { %13435 = vmatpush3.msra.mxu0 %v225_v3  ;;  %v262_v39 = vld [vmem:[%s20693_s1 + $0x110] sm:$0xff]  ;;  %v263_v40 = vld [vmem:[%s20693_s1 + $0x118] sm:$0xff]  ;;  %v264_v41 = vld [vmem:[%s20693_s1 + $0x120] sm:$0xff]  ;;  %p15204_p2 = por %p15203_p1, %p15202_p0 }
  0x21   : > { %13436 = vmatprep.subr.mxu0 %v224_v4  ;;  %v265_v42 = vld [vmem:[%s20693_s1 + $0x128] sm:$0xff]  ;;  %v266_v43 = vld [vmem:[%s20693_s1 + $0x130] sm:$0xff]  ;;  %v267_v44 = vld [vmem:[%s20693_s1 + $0x138] sm:$0xff]  ;;  %p15198_p13 = pneg %p15197_p12 }
  0x22   : > { %13437 = vmatpush3.msra.mxu0 %v224_v4  ;;  %v699_v46 = vld [vmem:[%s20694_s2 + $0x8] sm:$0xff]  ;;  %v700_v47 = vld [vmem:[%s20694_s2 + $0x10] sm:$0xff] }
  0x23   : > { %13438 = vmatprep.subr.mxu0 %v223_v5  ;;  %1123 = vmatprep.mubr.f32.mxu1 %v699_v46  ;;  %p15205_p3 = pnand %p15204_p2, %p15198_p13 }
  0x24   : > { %13439 = vmatpush3.msra.mxu0 %v223_v5 }
  0x25   : > { %13441 = vmatmul.mubr.msk.f32.vlgmr.msra.gmra.mxu0 %vm268_vm0, %v229_v6 }
  0x26   : > { %13443 = vmatprep.mubr.msk.f32.mxu0 %vm268_vm0, %v230_v7 }
  0x29   : > { %13444 = vmatmul.mubr.msk.f32.gmra.mxu0 %vm268_vm0, %v231_v8 }
  0x2a   : > { %13446 = vmatprep.mubr.msk.f32.mxu0 %vm268_vm0, %v232_v9 }
  0x2d   : > { %13447 = vmatmul.mubr.msk.f32.gmra.mxu0 %vm268_vm0, %v233_v10 }
  0x2e   : > { %13449 = vmatprep.mubr.msk.f32.mxu0 %vm268_vm0, %v234_v11 }
  0x31   : > { %13450 = vmatmul.mubr.msk.f32.gmra.mxu0 %vm268_vm0, %v235_v12 }
  0x32   : > { %13452 = vmatprep.mubr.msk.f32.mxu0 %vm268_vm0, %v236_v13 }
  0x35   : > { %13453 = vmatmul.mubr.msk.f32.gmra.mxu0 %vm268_vm0, %v237_v14 }
  0x36   : > { %13455 = vmatprep.mubr.msk.f32.mxu0 %vm268_vm0, %v238_v15 }
  0x39   : > { %13456 = vmatmul.mubr.msk.f32.gmra.mxu0 %vm268_vm0, %v239_v16 }
  0x3a   : > { %13458 = vmatprep.mubr.msk.f32.mxu0 %vm268_vm0, %v240_v17 }
  0x3d   : > { %13459 = vmatmul.mubr.msk.f32.gmra.mxu0 %vm268_vm0, %v241_v18 }
  0x3e   : > { %13461 = vmatprep.mubr.msk.f32.mxu0 %vm268_vm0, %v242_v19 }
  0x41   : > { %13462 = vmatmul.mubr.msk.f32.gmra.mxu0 %vm268_vm0, %v243_v20 }
  0x42   : > { %13464 = vmatprep.mubr.msk.f32.mxu0 %vm268_vm0, %v244_v21 }
  0x45   : > { %13465 = vmatmul.mubr.msk.f32.gmra.mxu0 %vm268_vm0, %v245_v22 }
  0x46   : > { %13467 = vmatprep.mubr.msk.f32.mxu0 %vm268_vm0, %v246_v23 }
  0x49   : > { %13468 = vmatmul.mubr.msk.f32.gmra.mxu0 %vm268_vm0, %v247_v24 }
  0x4a   : > { %13470 = vmatprep.mubr.msk.f32.mxu0 %vm268_vm0, %v248_v25 }
  0x4d   : > { %13471 = vmatmul.mubr.msk.f32.gmra.mxu0 %vm268_vm0, %v249_v26 }
  0x4e   : > { %13473 = vmatprep.mubr.msk.f32.mxu0 %vm268_vm0, %v250_v27 }
  0x51   : > { %13474 = vmatmul.mubr.msk.f32.gmra.mxu0 %vm268_vm0, %v251_v28 }
  0x52   : > { %13476 = vmatprep.mubr.msk.f32.mxu0 %vm268_vm0, %v252_v29 }
  0x55   : > { %13477 = vmatmul.mubr.msk.f32.gmra.mxu0 %vm268_vm0, %v253_v30 }
  0x56   : > { %13479 = vmatprep.mubr.msk.f32.mxu0 %vm268_vm0, %v254_v31 }
  0x59   : > { %13480 = vmatmul.mubr.msk.f32.gmra.mxu0 %vm268_vm0, %v255_v32 }
  0x5a   : > { %13482 = vmatprep.mubr.msk.f32.mxu0 %vm268_vm0, %v256_v33 }
  0x5d   : > { %13483 = vmatmul.mubr.msk.f32.gmra.mxu0 %vm268_vm0, %v257_v34 }
  0x5e   : > { %13485 = vmatprep.mubr.msk.f32.mxu0 %vm268_vm0, %v258_v35 }
  0x61   : > { %13486 = vmatmul.mubr.msk.f32.gmra.mxu0 %vm268_vm0, %v259_v36 }
  0x62   : > { %13488 = vmatprep.mubr.msk.f32.mxu0 %vm268_vm0, %v260_v37 }
  0x65   : > { %13489 = vmatmul.mubr.msk.f32.gmra.mxu0 %vm268_vm0, %v261_v38 }
  0x66   : > { %13491 = vmatprep.mubr.msk.f32.mxu0 %vm268_vm0, %v262_v39 }
  0x69   : > { %13492 = vmatmul.mubr.msk.f32.gmra.mxu0 %vm268_vm0, %v263_v40 }
  0x6a   : > { %13494 = vmatprep.mubr.msk.f32.mxu0 %vm268_vm0, %v264_v41 }
  0x6d   : > { %13495 = vmatmul.mubr.msk.f32.gmra.mxu0 %vm268_vm0, %v265_v42 }
  0x6e   : > { %13497 = vmatprep.mubr.msk.f32.mxu0 %vm268_vm0, %v266_v43 }
  0x71   : > { %13498 = vmatmul.mubr.msk.f32.gmra.mxu0 %vm268_vm0, %v267_v44 }
  0x72   : > { %13516 = vmatprep.mubr.msk.f32.mxu0 %vm878_vm2, %v700_v47 }
  0xe5   : > { %v15514_v48 = vpop.f32.mrf.mxu0 }
  0xe6   : > { %21048 = vst [vmem:[#allocation5_spill] sm:$0xff] %v15514_v48  ;;  %v20717_v27 = vmax.f32 %v15514_v48, 0.0 }
  0xe7   : > { %v15516_v49 = vpop.f32.mrf.mxu0 }
  0xe8   : > { %21049 = vst [vmem:[#allocation6_spill] sm:$0xff] %v15516_v49  ;;  %v20715_v29 = vmax.f32 %v15516_v49, 0.0 }
  0xe9   : > { %v15518_v50 = vpop.f32.mrf.mxu0 }
  0xea   : > { %21050 = vst [vmem:[#allocation7_spill] sm:$0xff] %v15518_v50  ;;  %v20729_v23 = vmax.f32 %v15518_v50, 0.0 }
  0xeb   : > { %v15520_v51 = vpop.f32.mrf.mxu0 }
  0xec   : > { %21051 = vst [vmem:[#allocation8_spill] sm:$0xff] %v15520_v51  ;;  %v20728_v25 = vmax.f32 %v15520_v51, 0.0 }
  0xed   : > { %v15522_v52 = vpop.f32.mrf.mxu0 }
  0xee   : > { %21052 = vst [vmem:[#allocation9_spill] sm:$0xff] %v15522_v52  ;;  %v20713_v19 = vmax.f32 %v15522_v52, 0.0 }
  0xef   : > { %v15524_v53 = vpop.f32.mrf.mxu0 }
  0xf0   : > { %21053 = vst [vmem:[#allocation10_spill] sm:$0xff] %v15524_v53  ;;  %v20709_v21 = vmax.f32 %v15524_v53, 0.0 }
  0xf1   : > { %v15526_v54 = vpop.f32.mrf.mxu0 }
  0xf2   : > { %21054 = vst [vmem:[#allocation11_spill] sm:$0xff] %v15526_v54  ;;  %v20727_v15 = vmax.f32 %v15526_v54, 0.0 }
  0xf3   : > { %v15528_v55 = vpop.f32.mrf.mxu0 }
  0xf4   : > { %21055 = vst [vmem:[#allocation12_spill] sm:$0xff] %v15528_v55  ;;  %v20726_v17 = vmax.f32 %v15528_v55, 0.0 }
  0xf5   : > { %v15530_v56 = vpop.f32.mrf.mxu0 }
  0xf6   : > { %21056 = vst [vmem:[#allocation13_spill] sm:$0xff] %v15530_v56  ;;  %v20705_v11 = vmax.f32 %v15530_v56, 0.0 }
  0xf7   : > { %v15532_v57 = vpop.f32.mrf.mxu0 }
  0xf8   : > { %21057 = vst [vmem:[#allocation14_spill] sm:$0xff] %v15532_v57  ;;  %v20702_v13 = vmax.f32 %v15532_v57, 0.0 }
  0xf9   : > { %v15534_v58 = vpop.f32.mrf.mxu0 }
  0xfa   : > { %21058 = vst [vmem:[#allocation15_spill] sm:$0xff] %v15534_v58  ;;  %v20725_v7 = vmax.f32 %v15534_v58, 0.0 }
  0xfb   : > { %v15536_v59 = vpop.f32.mrf.mxu0 }
  0xfc   : > { %21059 = vst [vmem:[#allocation16_spill] sm:$0xff] %v15536_v59  ;;  %v20724_v9 = vmax.f32 %v15536_v59, 0.0 }
  0xfd   : > { %v15538_v60 = vpop.f32.mrf.mxu0 }
  0xfe   : > { %21060 = vst [vmem:[#allocation17_spill] sm:$0xff] %v15538_v60  ;;  %v20701_v3 = vmax.f32 %v15538_v60, 0.0 }
  0xff   : > { %v15540_v61 = vpop.f32.mrf.mxu0 }
 0x100   : > { %21061 = vst [vmem:[#allocation18_spill] sm:$0xff] %v15540_v61  ;;  %v20700_v5 = vmax.f32 %v15540_v61, 0.0 }
 0x101   : > { %v15542_v62 = vpop.f32.mrf.mxu0 }
 0x102   : > { %21062 = vst [vmem:[#allocation19_spill] sm:$0xff] %v15542_v62  ;;  %v20723_v63 = vmax.f32 %v15542_v62, 0.0 }
 0x103   : > { %v15545_v0 = vpop.f32.mrf.mxu0 }
 0x104   : > { %21063 = vst [vmem:[#allocation20_spill] sm:$0xff] %v15545_v0  ;;  %v20722_v1 = vmax.f32 %v15545_v0, 0.0  ;;  %1060 = vmatpush1.msra.mxu1 %v20723_v63 }
 0x105   : > { %v15550_v2 = vpop.f32.mrf.mxu0  ;;  %1061 = vmatprep.subr.mxu1 %v20730_v45 }
 0x106   : > { %21064 = vst [vmem:[#allocation21_spill] sm:$0xff] %v15550_v2  ;;  %1062 = vmatpush1.msra.mxu1 %v20722_v1  ;;  %v854_v1 = vld [vmem:[%s20694_s2 + $0x4e0] sm:$0xff] }
 0x107   : > { %v15556_v4 = vpop.f32.mrf.mxu0  ;;  %1063 = vmatprep.subr.mxu1 %v20730_v45 }
 0x108   : > { %21065 = vst [vmem:[#allocation22_spill] sm:$0xff] %v15556_v4  ;;  %1064 = vmatpush1.msra.mxu1 %v20701_v3 }
 0x109   : > { %v15562_v6 = vpop.f32.mrf.mxu0  ;;  %1065 = vmatprep.subr.mxu1 %v20730_v45 }
 0x10a   : > { %21066 = vst [vmem:[#allocation23_spill] sm:$0xff] %v15562_v6  ;;  %1066 = vmatpush1.msra.mxu1 %v20700_v5 }
 0x10b   : > { %v15568_v8 = vpop.f32.mrf.mxu0  ;;  %1067 = vmatprep.subr.mxu1 %v20730_v45 }
 0x10c   : > { %21067 = vst [vmem:[#allocation24_spill] sm:$0xff] %v15568_v8  ;;  %1068 = vmatpush1.msra.mxu1 %v20725_v7 }
 0x10d   : > { %v15574_v10 = vpop.f32.mrf.mxu0  ;;  %1069 = vmatprep.subr.mxu1 %v20730_v45 }
 0x10e   : > { %21068 = vst [vmem:[#allocation25_spill] sm:$0xff] %v15574_v10  ;;  %1070 = vmatpush1.msra.mxu1 %v20724_v9  ;;  %v857_v9 = vld [vmem:[%s20694_s2 + $0x4f8] sm:$0xff] }
 0x10f   : > { %v15580_v12 = vpop.f32.mrf.mxu0  ;;  %1071 = vmatprep.subr.mxu1 %v20730_v45 }
 0x110   : > { %21069 = vst [vmem:[#allocation26_spill] sm:$0xff] %v15580_v12  ;;  %1072 = vmatpush1.msra.mxu1 %v20705_v11 }
 0x111   : > { %v15586_v14 = vpop.f32.mrf.mxu0  ;;  %1073 = vmatprep.subr.mxu1 %v20730_v45 }
 0x112   : > { %21070 = vst [vmem:[#allocation27_spill] sm:$0xff] %v15586_v14  ;;  %1074 = vmatpush1.msra.mxu1 %v20702_v13 }
 0x113   : > { %v15592_v16 = vpop.f32.mrf.mxu0  ;;  %1075 = vmatprep.subr.mxu1 %v20730_v45 }
 0x114   : > { %21071 = vst [vmem:[#allocation28_spill] sm:$0xff] %v15592_v16  ;;  %1076 = vmatpush1.msra.mxu1 %v20727_v15  ;;  %v20718_v3 = vmax.f32 %v15592_v16, 0.0 }
 0x115   : > { %v15598_v18 = vpop.f32.mrf.mxu0  ;;  %1077 = vmatprep.subr.mxu1 %v20730_v45 }
 0x116   : > { %21072 = vst [vmem:[#allocation29_spill] sm:$0xff] %v15598_v18  ;;  %1078 = vmatpush1.msra.mxu1 %v20726_v17  ;;  %v20703_v43 = vmax.f32 %v15598_v18, 0.0  ;;  %v860_v17 = vld [vmem:[%s20694_s2 + $0x510] sm:$0xff] }
 0x117   : > { %v15604_v20 = vpop.f32.mrf.mxu0  ;;  %1079 = vmatprep.subr.mxu1 %v20730_v45 }
 0x118   : > { %21073 = vst [vmem:[#allocation30_spill] sm:$0xff] %v15604_v20  ;;  %1080 = vmatpush1.msra.mxu1 %v20713_v19  ;;  %v20704_v46 = vmax.f32 %v15604_v20, 0.0  ;;  %v705_v19 = vld [vmem:[%s20694_s2 + $0x38] sm:$0xff] }
 0x119   : > { %v15610_v22 = vpop.f32.mrf.mxu0  ;;  %1081 = vmatprep.subr.mxu1 %v20730_v45 }
 0x11a   : > { %21074 = vst [vmem:[#allocation31_spill] sm:$0xff] %v15610_v22  ;;  %1082 = vmatpush1.msra.mxu1 %v20709_v21  ;;  %v20716_v39 = vmax.f32 %v15610_v22, 0.0  ;;  %v703_v21 = vld [vmem:[%s20694_s2 + $0x28] sm:$0xff] }
 0x11b   : > { %v15616_v24 = vpop.f32.mrf.mxu0  ;;  %1083 = vmatprep.subr.mxu1 %v20730_v45 }
 0x11c   : > { %21075 = vst [vmem:[#allocation32_spill] sm:$0xff] %v15616_v24  ;;  %1084 = vmatpush1.msra.mxu1 %v20729_v23  ;;  %v20714_v41 = vmax.f32 %v15616_v24, 0.0 }
 0x11d   : > { %v15622_v26 = vpop.f32.mrf.mxu0  ;;  %1085 = vmatprep.subr.mxu1 %v20730_v45 }
 0x11e   : > { %21076 = vst [vmem:[#allocation33_spill] sm:$0xff] %v15622_v26  ;;  %1086 = vmatpush1.msra.mxu1 %v20728_v25  ;;  %v20699_v35 = vmax.f32 %v15622_v26, 0.0 }
 0x11f   : > { %v15628_v28 = vpop.f32.mrf.mxu0  ;;  %1087 = vmatprep.subr.mxu1 %v20730_v45 }
 0x120   : > { %21077 = vst [vmem:[#allocation34_spill] sm:$0xff] %v15628_v28  ;;  %1088 = vmatpush1.msra.mxu1 %v20717_v27  ;;  %v20698_v37 = vmax.f32 %v15628_v28, 0.0 }
 0x121   : > { %v15634_v30 = vpop.f32.mrf.mxu0  ;;  %1089 = vmatprep.subr.mxu1 %v20730_v45 }
 0x122   : > { %21078 = vst [vmem:[#allocation35_spill] sm:$0xff] %v15634_v30  ;;  %v20711_v31 = vmax.f32 %v15634_v30, 0.0  ;;  %1090 = vmatpush1.msra.mxu1 %v20715_v29 }
 0x123   : > { %v15640_v32 = vpop.f32.mrf.mxu0  ;;  %1091 = vmatprep.subr.mxu1 %v20730_v45 }
 0x124   : > { %21079 = vst [vmem:[#allocation36_spill] sm:$0xff] %v15640_v32  ;;  %v20708_v33 = vmax.f32 %v15640_v32, 0.0  ;;  %1092 = vmatpush2.msra.mxu1 %v20711_v31  ;;  %v701_v31 = vld [vmem:[%s20694_s2 + $0x18] sm:$0xff] }
 0x125   : > { %v13490_v34 = vpop.f32.mrf.mxu0  ;;  %1093 = vmatprep.subr.mxu1 %v20730_v45 }
 0x126   : > { %1094 = vmatpush2.msra.mxu1 %v20708_v33 }
 0x127   : > { %v15650_v36 = vpop.f32.mrf.mxu0  ;;  %1095 = vmatprep.subr.mxu1 %v20730_v45 }
 0x128   : > { %1096 = vmatpush2.msra.mxu1 %v20699_v35  ;;  %v15729_v33 = vmax.f32 %v15650_v36, 0.0  ;;  %v702_v36 = vld [vmem:[%s20694_s2 + $0x20] sm:$0xff] }
 0x129   : > { %v13493_v38 = vpop.f32.mrf.mxu0  ;;  %1097 = vmatprep.subr.mxu1 %v20730_v45 }
 0x12a   : > { %1098 = vmatpush2.msra.mxu1 %v20698_v37  ;;  %v20719_v37 = vmax.f32 %v15586_v14, 0.0  ;;  %v15704_v11 = vmax.f32 %v13493_v38, 0.0  ;;  %v20710_v38 = vmax.f32 %v15550_v2, 0.0  ;;  %21087 = vst [vmem:[#allocation44_spill] sm:$0xff] %v15729_v33 }
 0x12b   : > { %v629_v40 = vpop.f32.mrf.mxu0  ;;  %1099 = vmatprep.subr.mxu1 %v20730_v45 }
 0x12c   : > { %1100 = vmatpush2.msra.mxu1 %v20716_v39  ;;  %21084 = vst [vmem:[#allocation41_spill] sm:$0xff] %v15704_v11  ;;  %v839_v39 = vld [vmem:[%s20694_s2 + $0x468] sm:$0xff] }
 0x12d   : > { %v13496_v42 = vpop.f32.mrf.mxu0  ;;  %1101 = vmatprep.subr.mxu1 %v20730_v45 }
 0x12e   : > { %1102 = vmatpush2.msra.mxu1 %v20714_v41 }
 0x12f   : > { %v639_v44 = vpop.f32.mrf.mxu0  ;;  %1103 = vmatprep.subr.mxu1 %v20730_v45 }
 0x130   : > { %1104 = vmatpush2.msra.mxu1 %v20703_v43  ;;  %v15688_v43 = vmax.f32 %v13496_v42, 0.0  ;;  %v20721_v42 = vmax.f32 %v15562_v6, 0.0 }
 0x131   : > { %v13499_v47 = vpop.f32.mrf.mxu0  ;;  %1105 = vmatprep.subr.mxu1 %v20730_v45 }
 0x132   : > { %v15674_v35 = vmax.f32 %v13499_v47, 0.0  ;;  %1106 = vmatpush2.msra.mxu1 %v20704_v46  ;;  %v20706_v47 = vmax.f32 %v15574_v10, 0.0  ;;  %21082 = vst [vmem:[#allocation39_spill] sm:$0xff] %v15688_v43  ;;  %v15696_v46 = vmax.f32 %v639_v44, 0.0  ;;  %v20720_v44 = vmax.f32 %v15568_v8, 0.0 }
 0x133   : > { %v649_v5 = vpop.f32.mrf.mxu0  ;;  %1107 = vmatprep.subr.mxu1 %v20730_v45 }
 0x134   : > { %21080 = vst [vmem:[#allocation37_spill] sm:$0xff] %v15674_v35  ;;  %v15680_v13 = vmax.f32 %v649_v5, 0.0  ;;  %1108 = vmatpush2.msra.mxu1 %v20719_v37  ;;  %13500 = vmatprep.subr.mxu0 %v15674_v35  ;;  %v20707_v5 = vmax.f32 %v15580_v12, 0.0  ;;  %21083 = vst [vmem:[#allocation40_spill] sm:$0xff] %v15696_v46 }
 0x135   : > { %1109 = vmatprep.subr.mxu1 %v20730_v45  ;;  %13501 = vmatpush3.msra.mxu0 %v15674_v35 }
 0x136   : > { %21081 = vst [vmem:[#allocation38_spill] sm:$0xff] %v15680_v13  ;;  %1110 = vmatpush2.msra.mxu1 %v20718_v3  ;;  %13502 = vmatprep.subr.mxu0 %v15680_v13 }
 0x137   : > { %1111 = vmatprep.subr.mxu1 %v20730_v45  ;;  %13503 = vmatpush3.msra.mxu0 %v15680_v13 }
 0x138   : > { %1112 = vmatpush2.msra.mxu1 %v20706_v47  ;;  %13504 = vmatprep.subr.mxu0 %v15688_v43  ;;  %v15712_v47 = vmax.f32 %v629_v40, 0.0  ;;  %v20712_v40 = vmax.f32 %v15556_v4, 0.0 }
 0x139   : > { %1113 = vmatprep.subr.mxu1 %v20730_v45  ;;  %13505 = vmatpush3.msra.mxu0 %v15688_v43 }
 0x13a   : > { %1114 = vmatpush2.msra.mxu1 %v20707_v5  ;;  %13506 = vmatprep.subr.mxu0 %v15696_v46  ;;  %21085 = vst [vmem:[#allocation42_spill] sm:$0xff] %v15712_v47  ;;  %v15720_v5 = vmax.f32 %v13490_v34, 0.0  ;;  %v698_v34 = vld [vmem:[%s20694_s2] sm:$0xff] }
 0x13b   : > { %1115 = vmatprep.subr.mxu1 %v20730_v45  ;;  %13507 = vmatpush3.msra.mxu0 %v15696_v46 }
 0x13c   : > { %1116 = vmatpush2.msra.mxu1 %v20721_v42  ;;  %13508 = vmatprep.subr.mxu0 %v15704_v11  ;;  %21086 = vst [vmem:[#allocation43_spill] sm:$0xff] %v15720_v5 }
 0x13d   : > { %1117 = vmatprep.subr.mxu1 %v20730_v45  ;;  %13509 = vmatpush3.msra.mxu0 %v15704_v11 }
 0x13e   : > { %1118 = vmatpush2.msra.mxu1 %v20720_v44  ;;  %13510 = vmatprep.subr.mxu0 %v15712_v47 }
 0x13f   : > { %1119 = vmatprep.subr.mxu1 %v20730_v45  ;;  %13511 = vmatpush3.msra.mxu0 %v15712_v47 }
 0x140   : > { %1120 = vmatpush2.msra.mxu1 %v20710_v38  ;;  %13512 = vmatprep.subr.mxu0 %v15720_v5  ;;  %v706_v38 = vld [vmem:[%s20694_s2 + $0x40] sm:$0xff] }
 0x141   : > { %1121 = vmatprep.subr.mxu1 %v20730_v45  ;;  %13513 = vmatpush3.msra.mxu0 %v15720_v5 }
 0x142   : > { %1122 = vmatpush2.msra.mxu1 %v20712_v40  ;;  %13514 = vmatprep.subr.mxu0 %v15729_v33  ;;  %v709_v40 = vld [vmem:[%s20694_s2 + $0x58] sm:$0xff] }
 0x143   : > { %1124 = vmatmul.mubr.f32.vlgmr.msra.gmra.mxu1 %v698_v34  ;;  %13515 = vmatpush3.msra.mxu0 %v15729_v33  ;;  %v712_v34 = vld [vmem:[%s20694_s2 + $0x70] sm:$0xff] }
 0x144   : > { %13517 = vmatmul.mubr.msk.f32.vlgmr.msra.gmra.mxu0 %vm878_vm2, %v703_v21  ;;  %1128 = vmatprep.mubr.f32.mxu1 %v702_v36  ;;  %v704_v21 = vld [vmem:[%s20694_s2 + $0x30] sm:$0xff]  ;;  %v715_v36 = vld [vmem:[%s20694_s2 + $0x88] sm:$0xff] }
 0x145   : > { %13519 = vmatprep.mubr.msk.f32.mxu0 %vm878_vm2, %v706_v38  ;;  %v708_v38 = vld [vmem:[%s20694_s2 + $0x50] sm:$0xff] }
 0x147   : > { %1129 = vmatmul.mubr.f32.gmra.mxu1 %v701_v31  ;;  %v718_v31 = vld [vmem:[%s20694_s2 + $0xa0] sm:$0xff] }
 0x148   : > { %13520 = vmatmul.mubr.msk.f32.gmra.mxu0 %vm878_vm2, %v709_v40  ;;  %1133 = vmatprep.mubr.f32.mxu1 %v705_v19  ;;  %v707_v19 = vld [vmem:[%s20694_s2 + $0x48] sm:$0xff] }
 0x149   : > { %13522 = vmatprep.mubr.msk.f32.mxu0 %vm878_vm2, %v712_v34  ;;  %v711_v40 = vld [vmem:[%s20694_s2 + $0x68] sm:$0xff]  ;;  %v721_v34 = vld [vmem:[%s20694_s2 + $0xb8] sm:$0xff] }
 0x14b   : > { %1134 = vmatmul.mubr.f32.gmra.mxu1 %v704_v21  ;;  %v724_v21 = vld [vmem:[%s20694_s2 + $0xd0] sm:$0xff] }
 0x14c   : > { %1138 = vmatprep.mubr.f32.mxu1 %v708_v38  ;;  %13523 = vmatmul.mubr.msk.f32.gmra.mxu0 %vm878_vm2, %v715_v36  ;;  %v710_v38 = vld [vmem:[%s20694_s2 + $0x60] sm:$0xff] }
 0x14d   : > { %13525 = vmatprep.mubr.msk.f32.mxu0 %vm878_vm2, %v718_v31  ;;  %v714_v36 = vld [vmem:[%s20694_s2 + $0x80] sm:$0xff]  ;;  %v727_v31 = vld [vmem:[%s20694_s2 + $0xe8] sm:$0xff] }
 0x14f   : > { %1139 = vmatmul.mubr.f32.gmra.mxu1 %v707_v19  ;;  %v730_v19 = vld [vmem:[%s20694_s2 + $0x100] sm:$0xff] }
 0x150   : > { %1143 = vmatprep.mubr.f32.mxu1 %v711_v40  ;;  %13526 = vmatmul.mubr.msk.f32.gmra.mxu0 %vm878_vm2, %v721_v34  ;;  %v713_v40 = vld [vmem:[%s20694_s2 + $0x78] sm:$0xff] }
 0x151   : > { %13528 = vmatprep.mubr.msk.f32.mxu0 %vm878_vm2, %v724_v21  ;;  %v717_v34 = vld [vmem:[%s20694_s2 + $0x98] sm:$0xff] }
 0x152   : > { %v733_v21 = vld [vmem:[%s20694_s2 + $0x118] sm:$0xff] }
 0x153   : > { %1144 = vmatmul.mubr.f32.gmra.mxu1 %v710_v38  ;;  %v736_v38 = vld [vmem:[%s20694_s2 + $0x130] sm:$0xff] }
 0x154   : > { %1148 = vmatprep.mubr.f32.mxu1 %v714_v36  ;;  %13529 = vmatmul.mubr.msk.f32.gmra.mxu0 %vm878_vm2, %v727_v31  ;;  %v716_v36 = vld [vmem:[%s20694_s2 + $0x90] sm:$0xff] }
 0x155   : > { %13531 = vmatprep.mubr.msk.f32.mxu0 %vm878_vm2, %v730_v19  ;;  %v720_v31 = vld [vmem:[%s20694_s2 + $0xb0] sm:$0xff]  ;;  %v739_v19 = vld [vmem:[%s20694_s2 + $0x148] sm:$0xff] }
 0x157   : > { %1149 = vmatmul.mubr.f32.gmra.mxu1 %v713_v40  ;;  %v742_v40 = vld [vmem:[%s20694_s2 + $0x160] sm:$0xff] }
 0x158   : > { %1153 = vmatprep.mubr.f32.mxu1 %v717_v34  ;;  %13532 = vmatmul.mubr.msk.f32.gmra.mxu0 %vm878_vm2, %v733_v21  ;;  %v719_v34 = vld [vmem:[%s20694_s2 + $0xa8] sm:$0xff] }
 0x159   : > { %13534 = vmatprep.mubr.msk.f32.mxu0 %vm878_vm2, %v736_v38  ;;  %v723_v21 = vld [vmem:[%s20694_s2 + $0xc8] sm:$0xff]  ;;  %v745_v38 = vld [vmem:[%s20694_s2 + $0x178] sm:$0xff] }
 0x15b   : > { %1154 = vmatmul.mubr.f32.gmra.mxu1 %v716_v36  ;;  %v748_v36 = vld [vmem:[%s20694_s2 + $0x190] sm:$0xff] }
 0x15c   : > { %1158 = vmatprep.mubr.f32.mxu1 %v720_v31  ;;  %13535 = vmatmul.mubr.msk.f32.gmra.mxu0 %vm878_vm2, %v739_v19  ;;  %v722_v31 = vld [vmem:[%s20694_s2 + $0xc0] sm:$0xff] }
 0x15d   : > { %13537 = vmatprep.mubr.msk.f32.mxu0 %vm878_vm2, %v742_v40  ;;  %v726_v19 = vld [vmem:[%s20694_s2 + $0xe0] sm:$0xff]  ;;  %v751_v40 = vld [vmem:[%s20694_s2 + $0x1a8] sm:$0xff] }
 0x15f   : > { %1159 = vmatmul.mubr.f32.gmra.mxu1 %v719_v34  ;;  %v754_v34 = vld [vmem:[%s20694_s2 + $0x1c0] sm:$0xff] }
 0x160   : > { %1163 = vmatprep.mubr.f32.mxu1 %v723_v21  ;;  %13538 = vmatmul.mubr.msk.f32.gmra.mxu0 %vm878_vm2, %v745_v38  ;;  %v725_v21 = vld [vmem:[%s20694_s2 + $0xd8] sm:$0xff] }
 0x161   : > { %13540 = vmatprep.mubr.msk.f32.mxu0 %vm878_vm2, %v748_v36  ;;  %v729_v38 = vld [vmem:[%s20694_s2 + $0xf8] sm:$0xff] }
 0x162   : > { %v757_v36 = vld [vmem:[%s20694_s2 + $0x1d8] sm:$0xff] }
 0x163   : > { %1164 = vmatmul.mubr.f32.gmra.mxu1 %v722_v31  ;;  %v760_v31 = vld [vmem:[%s20694_s2 + $0x1f0] sm:$0xff] }
 0x164   : > { %1168 = vmatprep.mubr.f32.mxu1 %v726_v19  ;;  %13541 = vmatmul.mubr.msk.f32.gmra.mxu0 %vm878_vm2, %v751_v40  ;;  %v728_v19 = vld [vmem:[%s20694_s2 + $0xf0] sm:$0xff] }
 0x165   : > { %13543 = vmatprep.mubr.msk.f32.mxu0 %vm878_vm2, %v754_v34  ;;  %v732_v40 = vld [vmem:[%s20694_s2 + $0x110] sm:$0xff]  ;;  %v763_v34 = vld [vmem:[%s20694_s2 + $0x208] sm:$0xff] }
 0x167   : > { %1169 = vmatmul.mubr.f32.gmra.mxu1 %v725_v21  ;;  %v766_v21 = vld [vmem:[%s20694_s2 + $0x220] sm:$0xff] }
 0x168   : > { %1173 = vmatprep.mubr.f32.mxu1 %v729_v38  ;;  %13544 = vmatmul.mubr.msk.f32.gmra.mxu0 %vm878_vm2, %v757_v36  ;;  %v731_v38 = vld [vmem:[%s20694_s2 + $0x108] sm:$0xff] }
 0x169   : > { %13546 = vmatprep.mubr.msk.f32.mxu0 %vm878_vm2, %v760_v31  ;;  %v735_v36 = vld [vmem:[%s20694_s2 + $0x128] sm:$0xff]  ;;  %v769_v31 = vld [vmem:[%s20694_s2 + $0x238] sm:$0xff] }
 0x16b   : > { %1174 = vmatmul.mubr.f32.gmra.mxu1 %v728_v19  ;;  %v772_v19 = vld [vmem:[%s20694_s2 + $0x250] sm:$0xff] }
 0x16c   : > { %1178 = vmatprep.mubr.f32.mxu1 %v732_v40  ;;  %13547 = vmatmul.mubr.msk.f32.gmra.mxu0 %vm878_vm2, %v763_v34  ;;  %v734_v40 = vld [vmem:[%s20694_s2 + $0x120] sm:$0xff] }
 0x16d   : > { %13549 = vmatprep.mubr.msk.f32.mxu0 %vm878_vm2, %v766_v21  ;;  %v738_v34 = vld [vmem:[%s20694_s2 + $0x140] sm:$0xff]  ;;  %v775_v21 = vld [vmem:[%s20694_s2 + $0x268] sm:$0xff] }
 0x16f   : > { %1179 = vmatmul.mubr.f32.gmra.mxu1 %v731_v38  ;;  %v778_v38 = vld [vmem:[%s20694_s2 + $0x280] sm:$0xff] }
 0x170   : > { %1183 = vmatprep.mubr.f32.mxu1 %v735_v36  ;;  %13550 = vmatmul.mubr.msk.f32.gmra.mxu0 %vm878_vm2, %v769_v31  ;;  %v737_v36 = vld [vmem:[%s20694_s2 + $0x138] sm:$0xff] }
 0x171   : > { %13552 = vmatprep.mubr.msk.f32.mxu0 %vm878_vm2, %v772_v19  ;;  %v741_v31 = vld [vmem:[%s20694_s2 + $0x158] sm:$0xff] }
 0x172   : > { %v781_v19 = vld [vmem:[%s20694_s2 + $0x298] sm:$0xff] }
 0x173   : > { %1184 = vmatmul.mubr.f32.gmra.mxu1 %v734_v40  ;;  %v740_v40 = vld [vmem:[%s20694_s2 + $0x150] sm:$0xff] }
 0x174   : > { %1188 = vmatprep.mubr.f32.mxu1 %v738_v34  ;;  %13553 = vmatmul.mubr.msk.f32.gmra.mxu0 %vm878_vm2, %v775_v21  ;;  %v744_v34 = vld [vmem:[%s20694_s2 + $0x170] sm:$0xff]  ;;  %v743_v21 = vld [vmem:[%s20694_s2 + $0x168] sm:$0xff] }
 0x175   : > { %13555 = vmatprep.mubr.msk.f32.mxu0 %vm878_vm2, %v778_v38  ;;  %v747_v38 = vld [vmem:[%s20694_s2 + $0x188] sm:$0xff] }
 0x177   : > { %1189 = vmatmul.mubr.f32.gmra.mxu1 %v737_v36  ;;  %v746_v36 = vld [vmem:[%s20694_s2 + $0x180] sm:$0xff] }
 0x178   : > { %1193 = vmatprep.mubr.f32.mxu1 %v741_v31  ;;  %13556 = vmatmul.mubr.msk.f32.gmra.mxu0 %vm878_vm2, %v781_v19  ;;  %v750_v31 = vld [vmem:[%s20694_s2 + $0x1a0] sm:$0xff]  ;;  %v749_v19 = vld [vmem:[%s20694_s2 + $0x198] sm:$0xff] }
 0x17b   : > { %1194 = vmatmul.mubr.f32.gmra.mxu1 %v740_v40  ;;  %v753_v40 = vld [vmem:[%s20694_s2 + $0x1b8] sm:$0xff] }
 0x17c   : > { %1198 = vmatprep.mubr.f32.mxu1 %v744_v34  ;;  %v752_v34 = vld [vmem:[%s20694_s2 + $0x1b0] sm:$0xff] }
 0x17f   : > { %1199 = vmatmul.mubr.f32.gmra.mxu1 %v743_v21  ;;  %v756_v21 = vld [vmem:[%s20694_s2 + $0x1d0] sm:$0xff] }
 0x180   : > { %1203 = vmatprep.mubr.f32.mxu1 %v747_v38  ;;  %v755_v38 = vld [vmem:[%s20694_s2 + $0x1c8] sm:$0xff] }
 0x183   : > { %1204 = vmatmul.mubr.f32.gmra.mxu1 %v746_v36  ;;  %v759_v36 = vld [vmem:[%s20694_s2 + $0x1e8] sm:$0xff] }
 0x184   : > { %1208 = vmatprep.mubr.f32.mxu1 %v750_v31  ;;  %v758_v31 = vld [vmem:[%s20694_s2 + $0x1e0] sm:$0xff] }
 0x187   : > { %1209 = vmatmul.mubr.f32.gmra.mxu1 %v749_v19  ;;  %v762_v19 = vld [vmem:[%s20694_s2 + $0x200] sm:$0xff] }
 0x188   : > { %1213 = vmatprep.mubr.f32.mxu1 %v753_v40  ;;  %v761_v40 = vld [vmem:[%s20694_s2 + $0x1f8] sm:$0xff] }
 0x18b   : > { %1214 = vmatmul.mubr.f32.gmra.mxu1 %v752_v34  ;;  %v765_v34 = vld [vmem:[%s20694_s2 + $0x218] sm:$0xff] }
 0x18c   : > { %1218 = vmatprep.mubr.f32.mxu1 %v756_v21  ;;  %v764_v21 = vld [vmem:[%s20694_s2 + $0x210] sm:$0xff] }
 0x18f   : > { %1219 = vmatmul.mubr.f32.gmra.mxu1 %v755_v38  ;;  %v768_v38 = vld [vmem:[%s20694_s2 + $0x230] sm:$0xff] }
 0x190   : > { %1223 = vmatprep.mubr.f32.mxu1 %v759_v36  ;;  %v767_v36 = vld [vmem:[%s20694_s2 + $0x228] sm:$0xff] }
 0x193   : > { %1224 = vmatmul.mubr.f32.gmra.mxu1 %v758_v31  ;;  %v771_v31 = vld [vmem:[%s20694_s2 + $0x248] sm:$0xff] }
 0x194   : > { %1228 = vmatprep.mubr.f32.mxu1 %v762_v19  ;;  %v770_v19 = vld [vmem:[%s20694_s2 + $0x240] sm:$0xff] }
 0x197   : > { %1229 = vmatmul.mubr.f32.gmra.mxu1 %v761_v40  ;;  %v774_v40 = vld [vmem:[%s20694_s2 + $0x260] sm:$0xff] }
 0x198   : > { %1233 = vmatprep.mubr.f32.mxu1 %v765_v34  ;;  %v773_v34 = vld [vmem:[%s20694_s2 + $0x258] sm:$0xff] }
 0x19b   : > { %1234 = vmatmul.mubr.f32.gmra.mxu1 %v764_v21  ;;  %v777_v21 = vld [vmem:[%s20694_s2 + $0x278] sm:$0xff] }
 0x19c   : > { %1238 = vmatprep.mubr.f32.mxu1 %v768_v38  ;;  %v776_v38 = vld [vmem:[%s20694_s2 + $0x270] sm:$0xff] }
 0x19f   : > { %1239 = vmatmul.mubr.f32.gmra.mxu1 %v767_v36  ;;  %v780_v36 = vld [vmem:[%s20694_s2 + $0x290] sm:$0xff] }
 0x1a0   : > { %1243 = vmatprep.mubr.f32.mxu1 %v771_v31  ;;  %v779_v31 = vld [vmem:[%s20694_s2 + $0x288] sm:$0xff] }
 0x1a3   : > { %1244 = vmatmul.mubr.f32.gmra.mxu1 %v770_v19  ;;  %v783_v19 = vld [vmem:[%s20694_s2 + $0x2a8] sm:$0xff] }
 0x1a4   : > { %1248 = vmatprep.mubr.f32.mxu1 %v774_v40  ;;  %v782_v40 = vld [vmem:[%s20694_s2 + $0x2a0] sm:$0xff] }
 0x1a7   : > { %1249 = vmatmul.mubr.f32.gmra.mxu1 %v773_v34  ;;  %v786_v34 = vld [vmem:[%s20694_s2 + $0x2c0] sm:$0xff] }
 0x1a8   : > { %1253 = vmatprep.mubr.f32.mxu1 %v777_v21  ;;  %v785_v21 = vld [vmem:[%s20694_s2 + $0x2b8] sm:$0xff] }
 0x1ab   : > { %1254 = vmatmul.mubr.f32.gmra.mxu1 %v776_v38  ;;  %v789_v38 = vld [vmem:[%s20694_s2 + $0x2d8] sm:$0xff] }
 0x1ac   : > { %1258 = vmatprep.mubr.f32.mxu1 %v780_v36  ;;  %v788_v36 = vld [vmem:[%s20694_s2 + $0x2d0] sm:$0xff] }
 0x1af   : > { %1259 = vmatmul.mubr.f32.gmra.mxu1 %v779_v31  ;;  %v792_v31 = vld [vmem:[%s20694_s2 + $0x2f0] sm:$0xff] }
 0x1b0   : > { %1263 = vmatprep.mubr.f32.mxu1 %v783_v19  ;;  %v784_v19 = vld [vmem:[%s20694_s2 + $0x2b0] sm:$0xff] }
 0x1b1   : > { %13558 = vmatprep.mubr.msk.f32.mxu0 %vm878_vm2, %v784_v19  ;;  %v798_v19 = vld [vmem:[%s20694_s2 + $0x320] sm:$0xff] }
 0x1b3   : > { %1264 = vmatmul.mubr.f32.gmra.mxu1 %v782_v40  ;;  %v791_v40 = vld [vmem:[%s20694_s2 + $0x2e8] sm:$0xff] }
 0x1b4   : > { %1268 = vmatprep.mubr.f32.mxu1 %v786_v34  ;;  %v787_v34 = vld [vmem:[%s20694_s2 + $0x2c8] sm:$0xff] }
 0x1b5   : > { %13559 = vmatmul.mubr.msk.f32.gmra.mxu0 %vm878_vm2, %v787_v34  ;;  %v797_v34 = vld [vmem:[%s20694_s2 + $0x318] sm:$0xff] }
 0x1b7   : > { %1269 = vmatmul.mubr.f32.gmra.mxu1 %v785_v21  ;;  %v795_v21 = vld [vmem:[%s20694_s2 + $0x308] sm:$0xff] }
 0x1b8   : > { %1273 = vmatprep.mubr.f32.mxu1 %v789_v38  ;;  %v790_v38 = vld [vmem:[%s20694_s2 + $0x2e0] sm:$0xff] }
 0x1b9   : > { %13561 = vmatprep.mubr.msk.f32.mxu0 %vm878_vm2, %v790_v38  ;;  %v801_v38 = vld [vmem:[%s20694_s2 + $0x338] sm:$0xff] }
 0x1bb   : > { %1274 = vmatmul.mubr.f32.gmra.mxu1 %v788_v36  ;;  %v794_v36 = vld [vmem:[%s20694_s2 + $0x300] sm:$0xff] }
 0x1bc   : > { %1278 = vmatprep.mubr.f32.mxu1 %v792_v31  ;;  %v793_v31 = vld [vmem:[%s20694_s2 + $0x2f8] sm:$0xff] }
 0x1bd   : > { %13562 = vmatmul.mubr.msk.f32.gmra.mxu0 %vm878_vm2, %v793_v31  ;;  %v800_v31 = vld [vmem:[%s20694_s2 + $0x330] sm:$0xff] }
 0x1bf   : > { %1279 = vmatmul.mubr.f32.gmra.mxu1 %v791_v40  ;;  %v796_v40 = vld [vmem:[%s20694_s2 + $0x310] sm:$0xff] }
 0x1c0   : > { %1283 = vmatprep.mubr.f32.mxu1 %v795_v21  ;;  %13564 = vmatprep.mubr.msk.f32.mxu0 %vm878_vm2, %v796_v40  ;;  %v799_v21 = vld [vmem:[%s20694_s2 + $0x328] sm:$0xff]  ;;  %v804_v40 = vld [vmem:[%s20694_s2 + $0x350] sm:$0xff] }
 0x1c1   : > { %13565 = vmatmul.mubr.msk.f32.gmra.mxu0 %vm878_vm2, %v799_v21  ;;  %v803_v21 = vld [vmem:[%s20694_s2 + $0x348] sm:$0xff] }
 0x1c3   : > { %1284 = vmatmul.mubr.f32.gmra.mxu1 %v794_v36  ;;  %v802_v36 = vld [vmem:[%s20694_s2 + $0x340] sm:$0xff] }
 0x1c4   : > { %1288 = vmatprep.mubr.f32.mxu1 %v798_v19  ;;  %13567 = vmatprep.mubr.msk.f32.mxu0 %vm878_vm2, %v802_v36  ;;  %v805_v19 = vld [vmem:[%s20694_s2 + $0x358] sm:$0xff]  ;;  %v807_v36 = vld [vmem:[%s20694_s2 + $0x368] sm:$0xff] }
 0x1c5   : > { %13568 = vmatmul.mubr.msk.f32.gmra.mxu0 %vm878_vm2, %v805_v19  ;;  %v806_v19 = vld [vmem:[%s20694_s2 + $0x360] sm:$0xff] }
 0x1c7   : > { %1289 = vmatmul.mubr.f32.gmra.mxu1 %v797_v34  ;;  %v808_v34 = vld [vmem:[%s20694_s2 + $0x370] sm:$0xff] }
 0x1c8   : > { %1293 = vmatprep.mubr.f32.mxu1 %v801_v38  ;;  %13570 = vmatprep.mubr.msk.f32.mxu0 %vm878_vm2, %v808_v34  ;;  %v811_v38 = vld [vmem:[%s20694_s2 + $0x388] sm:$0xff]  ;;  %v810_v34 = vld [vmem:[%s20694_s2 + $0x380] sm:$0xff] }
 0x1c9   : > { %13571 = vmatmul.mubr.msk.f32.gmra.mxu0 %vm878_vm2, %v811_v38  ;;  %v809_v38 = vld [vmem:[%s20694_s2 + $0x378] sm:$0xff] }
 0x1cb   : > { %1294 = vmatmul.mubr.f32.gmra.mxu1 %v800_v31  ;;  %v814_v31 = vld [vmem:[%s20694_s2 + $0x3a0] sm:$0xff] }
 0x1cc   : > { %1298 = vmatprep.mubr.f32.mxu1 %v804_v40  ;;  %13573 = vmatprep.mubr.msk.f32.mxu0 %vm878_vm2, %v814_v31  ;;  %v817_v40 = vld [vmem:[%s20694_s2 + $0x3b8] sm:$0xff] }
 0x1cd   : > { %13574 = vmatmul.mubr.msk.f32.gmra.mxu0 %vm878_vm2, %v817_v40  ;;  %v813_v31 = vld [vmem:[%s20694_s2 + $0x398] sm:$0xff]  ;;  %v812_v40 = vld [vmem:[%s20694_s2 + $0x390] sm:$0xff] }
 0x1cf   : > { %1299 = vmatmul.mubr.f32.gmra.mxu1 %v803_v21  ;;  %v820_v21 = vld [vmem:[%s20694_s2 + $0x3d0] sm:$0xff] }
 0x1d0   : > { %1303 = vmatprep.mubr.f32.mxu1 %v807_v36  ;;  %13576 = vmatprep.mubr.msk.f32.mxu0 %vm878_vm2, %v820_v21  ;;  %v823_v36 = vld [vmem:[%s20694_s2 + $0x3e8] sm:$0xff]  ;;  %v816_v21 = vld [vmem:[%s20694_s2 + $0x3b0] sm:$0xff] }
 0x1d1   : > { %13577 = vmatmul.mubr.msk.f32.gmra.mxu0 %vm878_vm2, %v823_v36  ;;  %v815_v36 = vld [vmem:[%s20694_s2 + $0x3a8] sm:$0xff] }
 0x1d3   : > { %1304 = vmatmul.mubr.f32.gmra.mxu1 %v806_v19  ;;  %v826_v19 = vld [vmem:[%s20694_s2 + $0x400] sm:$0xff] }
 0x1d4   : > { %1308 = vmatprep.mubr.f32.mxu1 %v810_v34  ;;  %13579 = vmatprep.mubr.msk.f32.mxu0 %vm878_vm2, %v826_v19  ;;  %v829_v34 = vld [vmem:[%s20694_s2 + $0x418] sm:$0xff]  ;;  %v819_v19 = vld [vmem:[%s20694_s2 + $0x3c8] sm:$0xff] }
 0x1d5   : > { %13580 = vmatmul.mubr.msk.f32.gmra.mxu0 %vm878_vm2, %v829_v34  ;;  %v818_v34 = vld [vmem:[%s20694_s2 + $0x3c0] sm:$0xff] }
 0x1d7   : > { %1309 = vmatmul.mubr.f32.gmra.mxu1 %v809_v38  ;;  %v832_v38 = vld [vmem:[%s20694_s2 + $0x430] sm:$0xff] }
 0x1d8   : > { %1313 = vmatprep.mubr.f32.mxu1 %v813_v31  ;;  %13582 = vmatprep.mubr.msk.f32.mxu0 %vm878_vm2, %v832_v38  ;;  %v835_v31 = vld [vmem:[%s20694_s2 + $0x448] sm:$0xff]  ;;  %v822_v38 = vld [vmem:[%s20694_s2 + $0x3e0] sm:$0xff] }
 0x1d9   : > { %13583 = vmatmul.mubr.msk.f32.gmra.mxu0 %vm878_vm2, %v835_v31  ;;  %v821_v31 = vld [vmem:[%s20694_s2 + $0x3d8] sm:$0xff] }
 0x1db   : > { %1314 = vmatmul.mubr.f32.gmra.mxu1 %v812_v40  ;;  %v838_v40 = vld [vmem:[%s20694_s2 + $0x460] sm:$0xff] }
 0x1dc   : > { %1318 = vmatprep.mubr.f32.mxu1 %v816_v21  ;;  %13585 = vmatprep.mubr.msk.f32.mxu0 %vm878_vm2, %v838_v40  ;;  %v841_v21 = vld [vmem:[%s20694_s2 + $0x478] sm:$0xff]  ;;  %v850_v40 = vld [vmem:[%s20694_s2 + $0x4c0] sm:$0xff] }
 0x1dd   : > { %13586 = vmatmul.mubr.msk.f32.gmra.mxu0 %vm878_vm2, %v841_v21  ;;  %v825_v21 = vld [vmem:[%s20694_s2 + $0x3f8] sm:$0xff] }
 0x1df   : > { %1319 = vmatmul.mubr.f32.gmra.mxu1 %v815_v36  ;;  %v844_v36 = vld [vmem:[%s20694_s2 + $0x490] sm:$0xff] }
 0x1e0   : > { %1323 = vmatprep.mubr.f32.mxu1 %v819_v19  ;;  %13588 = vmatprep.mubr.msk.f32.mxu0 %vm878_vm2, %v844_v36  ;;  %v847_v19 = vld [vmem:[%s20694_s2 + $0x4a8] sm:$0xff]  ;;  %v824_v36 = vld [vmem:[%s20694_s2 + $0x3f0] sm:$0xff] }
 0x1e1   : > { %13589 = vmatmul.mubr.msk.f32.gmra.mxu0 %vm878_vm2, %v847_v19  ;;  %v828_v19 = vld [vmem:[%s20694_s2 + $0x410] sm:$0xff] }
 0x1e2   : > { %13591 = vmatprep.mubr.msk.f32.mxu0 %vm878_vm2, %v850_v40  ;;  %v862_v40 = vld [vmem:[%s20694_s2 + $0x520] sm:$0xff] }
 0x1e3   : > { %1324 = vmatmul.mubr.f32.gmra.mxu1 %v818_v34  ;;  %v853_v34 = vld [vmem:[%s20694_s2 + $0x4d8] sm:$0xff] }
 0x1e4   : > { %1328 = vmatprep.mubr.f32.mxu1 %v822_v38  ;;  %v856_v38 = vld [vmem:[%s20694_s2 + $0x4f0] sm:$0xff] }
 0x1e5   : > { %13592 = vmatmul.mubr.msk.f32.gmra.mxu0 %vm878_vm2, %v853_v34  ;;  %v831_v34 = vld [vmem:[%s20694_s2 + $0x428] sm:$0xff] }
 0x1e6   : > { %13594 = vmatprep.mubr.msk.f32.mxu0 %vm878_vm2, %v856_v38  ;;  %v830_v38 = vld [vmem:[%s20694_s2 + $0x420] sm:$0xff] }
 0x1e7   : > { %1329 = vmatmul.mubr.f32.gmra.mxu1 %v821_v31  ;;  %v859_v31 = vld [vmem:[%s20694_s2 + $0x508] sm:$0xff] }
 0x1e8   : > { %1333 = vmatprep.mubr.f32.mxu1 %v825_v21  ;;  %v827_v21 = vld [vmem:[%s20694_s2 + $0x408] sm:$0xff] }
 0x1e9   : > { %13595 = vmatmul.mubr.msk.f32.gmra.mxu0 %vm878_vm2, %v859_v31  ;;  %v868_v31 = vld [vmem:[%s20694_s2 + $0x550] sm:$0xff] }
 0x1ea   : > { %13597 = vmatprep.mubr.msk.f32.mxu0 %vm878_vm2, %v862_v40  ;;  %v834_v40 = vld [vmem:[%s20694_s2 + $0x440] sm:$0xff] }
 0x1eb   : > { %1334 = vmatmul.mubr.f32.gmra.mxu1 %v824_v36  ;;  %v865_v36 = vld [vmem:[%s20694_s2 + $0x538] sm:$0xff] }
 0x1ec   : > { %1338 = vmatprep.mubr.f32.mxu1 %v828_v19  ;;  %v871_v19 = vld [vmem:[%s20694_s2 + $0x568] sm:$0xff] }
 0x1ed   : > { %13598 = vmatmul.mubr.msk.f32.gmra.mxu0 %vm878_vm2, %v865_v36 }
 0x1ee   : > { %13600 = vmatprep.mubr.msk.f32.mxu0 %vm878_vm2, %v868_v31  ;;  %v836_v31 = vld [vmem:[%s20694_s2 + $0x450] sm:$0xff] }
 0x1ef   : > { %1339 = vmatmul.mubr.f32.gmra.mxu1 %v827_v21  ;;  %v833_v21 = vld [vmem:[%s20694_s2 + $0x438] sm:$0xff] }
 0x1f0   : > { %1343 = vmatprep.mubr.f32.mxu1 %v831_v34  ;;  %v874_v34 = vld [vmem:[%s20694_s2 + $0x580] sm:$0xff] }
 0x1f1   : > { %13601 = vmatmul.mubr.msk.f32.gmra.mxu0 %vm878_vm2, %v871_v19  ;;  %v877_v19 = vld [vmem:[%s20694_s2 + $0x598] sm:$0xff] }
 0x1f2   : > { %13603 = vmatprep.mubr.msk.f32.mxu0 %vm878_vm2, %v874_v34  ;;  %v840_v34 = vld [vmem:[%s20694_s2 + $0x470] sm:$0xff] }
 0x1f3   : > { %1344 = vmatmul.mubr.f32.gmra.mxu1 %v830_v38  ;;  %v837_v38 = vld [vmem:[%s20694_s2 + $0x458] sm:$0xff] }
 0x1f4   : > { %1348 = vmatprep.mubr.f32.mxu1 %v834_v40 }
 0x1f5   : > { %13604 = vmatmul.mubr.msk.f32.gmra.mxu0 %vm878_vm2, %v877_v19  ;;  %v843_v19 = vld [vmem:[%s20694_s2 + $0x488] sm:$0xff] }
 0x1f7   : > { %1349 = vmatmul.mubr.f32.gmra.mxu1 %v833_v21 }
 0x1f8   : > { %1353 = vmatprep.mubr.f32.mxu1 %v837_v38 }
 0x1fb   : > { %1354 = vmatmul.mubr.f32.gmra.mxu1 %v836_v31 }
 0x1fc   : > { %1358 = vmatprep.mubr.f32.mxu1 %v840_v34 }
 0x1ff   : > { %1359 = vmatmul.mubr.f32.gmra.mxu1 %v839_v39  ;;  %v845_v39 = vld [vmem:[%s20694_s2 + $0x498] sm:$0xff] }
 0x200   : > { %1363 = vmatprep.mubr.f32.mxu1 %v843_v19 }
 0x203   : > { %v1125_v36 = vpop.f32.mrf.mxu1 }
 0x204   : > { %v16251_v40 = vpop.f32.mrf.mxu0 }
 0x205   : > { %v1127_v21 = vpop.f32.mrf.mxu1 }
 0x206   : > { %v1490_v41 = vpop.f32.mrf.mxu0 }
 0x207   : > { %v1130_v38 = vpop.f32.mrf.mxu1  ;;  %v1491_v29 = vadd.f32 %v1490_v41, %v1125_v36  ;;  %v842_v41 = vld [vmem:[%s20694_s2 + $0x480] sm:$0xff] }
 0x208   : > { %v13521_v27 = vpop.f32.mrf.mxu0  ;;  %1364 = vmatmul.mubr.f32.gmra.mxu1 %v842_v41  ;;  %v848_v41 = vld [vmem:[%s20694_s2 + $0x4b0] sm:$0xff] }
 0x209   : > { %v1132_v3 = vpop.f32.mrf.mxu1  ;;  %1789 = vxpose.xlu0.b32.start.end [1/1] (short) (narrow) %v1491_v29, 64 }
 0x20a   : > { %v1500_v31 = vpop.f32.mrf.mxu0  ;;  %v846_v3 = vld [vmem:[%s20694_s2 + $0x4a0] sm:$0xff] }
 0x20b   : > { %v1135_v21 = vpop.f32.mrf.mxu1  ;;  %1368 = vmatprep.mubr.f32.mxu1 %v846_v3  ;;  %v852_v3 = vld [vmem:[%s20694_s2 + $0x4d0] sm:$0xff] }
 0x20c   : > { %v1501_v36 = vadd.f32 %v1500_v31, %v1135_v21  ;;  %1369 = vmatmul.mubr.f32.gmra.mxu1 %v845_v39  ;;  %v16275_v37 = vpop.f32.mrf.mxu0  ;;  %v849_v31 = vld [vmem:[%s20694_s2 + $0x4b8] sm:$0xff] }
 0x20d   : > { %v1137_v34 = vpop.f32.mrf.mxu1  ;;  %1373 = vmatprep.mubr.f32.mxu1 %v849_v31  ;;  %v851_v31 = vld [vmem:[%s20694_s2 + $0x4c8] sm:$0xff] }
 0x20e   : > { %1853 = vxpose.xlu1.b32.start.end [1/1] (short) (narrow) %v1501_v36, 64  ;;  %v16285_v36 = vpop.f32.mrf.mxu0 }
 0x20f   : > { %v1140_v29 = vpop.f32.mrf.mxu1 }
 0x210   : > { %1374 = vmatmul.mubr.f32.gmra.mxu1 %v848_v41  ;;  %v855_v41 = vld [vmem:[%s20694_s2 + $0x4e8] sm:$0xff] }
 0x211   : > { %v1142_v19 = vpop.f32.mrf.mxu1  ;;  %1378 = vmatprep.mubr.f32.mxu1 %v852_v3 }
 0x212   : > { %v16292_v19 = vpop.f32.mrf.mxu0 }
 0x213   : > { %v16280_v21 = vpop.f32.mrf.mxu1 }
 0x214   : > { %1379 = vmatmul.mubr.f32.gmra.mxu1 %v851_v31  ;;  %v16302_v42 = vpop.f32.mrf.mxu0  ;;  %v1511_v28 = vadd.f32 %v16285_v36, %v16280_v21 }
 0x215   : > { %v1147_v34 = vpop.f32.mrf.mxu1  ;;  %1383 = vmatprep.mubr.f32.mxu1 %v855_v41 }
 0x216   : > { %v13530_v63 = vpop.f32.mrf.mxu0 }
 0x217   : > { %v16290_v39 = vpop.f32.mrf.mxu1 }
 0x218   : > { %1384 = vmatmul.mubr.f32.gmra.mxu1 %v854_v1  ;;  %v16315_v7 = vpop.f32.mrf.mxu0  ;;  %v861_v1 = vld [vmem:[%s20694_s2 + $0x518] sm:$0xff] }
 0x219   : > { %v1152_v44 = vpop.f32.mrf.mxu1 }
 0x21a   : > { %v858_v44 = vld [vmem:[%s20694_s2 + $0x500] sm:$0xff]  ;;  %v13533_v25 = vpop.f32.mrf.mxu0 }
 0x21b   : > { %v16300_v34 = vpop.f32.mrf.mxu1  ;;  %1388 = vmatprep.mubr.f32.mxu1 %v858_v44  ;;  %v1496_v44 = vadd.f32 %v16251_v40, %v1130_v38 }
 0x21c   : > { %1389 = vmatmul.mubr.f32.gmra.mxu1 %v857_v9  ;;  %v864_v9 = vld [vmem:[%s20694_s2 + $0x530] sm:$0xff]  ;;  %v16334_v40 = vpop.f32.mrf.mxu0 }
 0x21d   : > { %v1157_v3 = vpop.f32.mrf.mxu1  ;;  %1393 = vmatprep.mubr.f32.mxu1 %v861_v1  ;;  %v863_v1 = vld [vmem:[%s20694_s2 + $0x528] sm:$0xff] }
 0x21f   : > { %v16310_v31 = vpop.f32.mrf.mxu1 }
 0x220   : > { %1394 = vmatmul.mubr.f32.gmra.mxu1 %v860_v17 }
 0x221   : > { %v1162_v41 = vpop.f32.mrf.mxu1  ;;  %1398 = vmatprep.mubr.f32.mxu1 %v864_v9 }
 0x222   : > { %v1506_v41 = vadd.f32 %v13521_v27, %v1140_v29  ;;  %v866_v27 = vld [vmem:[%s20694_s2 + $0x540] sm:$0xff]  ;;  %v869_v29 = vld [vmem:[%s20694_s2 + $0x558] sm:$0xff] }
 0x223   : > { %v16320_v3 = vpop.f32.mrf.mxu1 }
 0x224   : > { %1399 = vmatmul.mubr.f32.gmra.mxu1 %v863_v1  ;;  %v873_v1 = vld [vmem:[%s20694_s2 + $0x578] sm:$0xff] }
 0x225   : > { %v1167_v15 = vpop.f32.mrf.mxu1 }
 0x226   : > { %1821 = vxpose.xlu0.b32.start.end [1/1] (short) (narrow) %v1496_v44, 64  ;;  %v867_v15 = vld [vmem:[%s20694_s2 + $0x548] sm:$0xff] }
 0x227   : > { %v1170_v23 = vpop.f32.mrf.mxu1  ;;  %1403 = vmatprep.mubr.f32.mxu1 %v867_v15 }
 0x228   : > { %v16332_v45 = vadd.f32 %v13530_v63, %v1170_v23  ;;  %1404 = vmatmul.mubr.f32.gmra.mxu1 %v866_v27  ;;  %v13536_v63 = vpop.f32.mrf.mxu0  ;;  %v870_v23 = vld [vmem:[%s20694_s2 + $0x560] sm:$0xff]  ;;  %v872_v27 = vld [vmem:[%s20694_s2 + $0x570] sm:$0xff] }
 0x229   : > { %v1172_v46 = vpop.f32.mrf.mxu1  ;;  %1408 = vmatprep.mubr.f32.mxu1 %v870_v23 }
 0x22b   : > { %v16339_v17 = vpop.f32.mrf.mxu1  ;;  %1885 = vxpose.xlu1.b32.start.end [1/1] (short) (narrow) %v1506_v41, 64  ;;  %v16352_v41 = vpop.f32.mrf.mxu0 }
 0x22c   : > { %1409 = vmatmul.mubr.f32.gmra.mxu1 %v869_v29  ;;  %v875_v29 = vld [vmem:[%s20694_s2 + $0x588] sm:$0xff] }
 0x22d   : > { %v1177_v38 = vpop.f32.mrf.mxu1  ;;  %1413 = vmatprep.mubr.f32.mxu1 %v873_v1  ;;  %v13539_v23 = vpop.f32.mrf.mxu0 }
 0x22f   : > { %v1180_v46 = vpop.f32.mrf.mxu1  ;;  %v16370_v43 = vpop.f32.mrf.mxu0 }
 0x230   : > { %v16350_v44 = vadd.f32 %v13533_v25, %v1180_v46  ;;  %1414 = vmatmul.mubr.f32.gmra.mxu1 %v872_v27  ;;  %v876_v25 = vld [vmem:[%s20694_s2 + $0x590] sm:$0xff] }
 0x231   : > { %v1182_v9 = vpop.f32.mrf.mxu1  ;;  %1418 = vmatprep.mubr.f32.mxu1 %v876_v25 }
 0x233   : > { %v16357_v15 = vpop.f32.mrf.mxu1 }
 0x234   : > { %1419 = vmatmul.mubr.f32.gmra.mxu1 %v875_v29  ;;  %v1551_v62 = vadd.f32 %v16352_v41, %v16357_v15 }
 0x235   : > { %v1187_v38 = vpop.f32.mrf.mxu1 }
 0x236   : > { %v13542_v38 = vpop.f32.mrf.mxu0 }
 0x237   : > { %v1190_v46 = vpop.f32.mrf.mxu1 }
 0x238   : > { %v16368_v9 = vadd.f32 %v13536_v63, %v1190_v46  ;;  %v16378_v20 = vpop.f32.mrf.mxu0  ;;  %v1516_v63 = vadd.f32 %v16275_v37, %v16290_v39 }
 0x239   : > { %v1192_v1 = vpop.f32.mrf.mxu1 }
 0x23a   : > { %v13545_v29 = vpop.f32.mrf.mxu0 }
 0x23b   : > { %v16372_v33 = vpop.f32.mrf.mxu1 }
 0x23c   : > { %v16386_v10 = vpop.f32.mrf.mxu0 }
 0x23d   : > { %v1197_v27 = vpop.f32.mrf.mxu1 }
 0x23e   : > { %v13548_v36 = vpop.f32.mrf.mxu0 }
 0x23f   : > { %v1200_v5 = vpop.f32.mrf.mxu1 }
 0x240   : > { %v16376_v26 = vadd.f32 %v13539_v23, %v1200_v5  ;;  %v1590_v4 = vpop.f32.mrf.mxu0 }
 0x241   : > { %v1202_v25 = vpop.f32.mrf.mxu1 }
 0x243   : > { %v16380_v18 = vpop.f32.mrf.mxu1  ;;  %1917 = vxpose.xlu0.b32.start.end [1/1] (short) (narrow) %v1511_v28, 64 }
 0x245   : > { %v1207_v46 = vpop.f32.mrf.mxu1 }
 0x247   : > { %v1210_v1 = vpop.f32.mrf.mxu1 }
 0x248   : > { %v16384_v27 = vadd.f32 %v13542_v38, %v1210_v1  ;;  %1949 = vxpose.xlu1.b32.start.end [1/1] (short) (narrow) %v1516_v63, 64 }
 0x249   : > { %v1212_v12 = vpop.f32.mrf.mxu1 }
 0x24a   : > { %v13551_v12 = vpop.f32.mrf.mxu0 }
 0x24b   : > { %v16388_v5 = vpop.f32.mrf.mxu1 }
 0x24c   : > { %v1600_v13 = vpop.f32.mrf.mxu0 }
 0x24d   : > { %v1217_v21 = vpop.f32.mrf.mxu1 }
 0x24e   : > { %v1521_v21 = vadd.f32 %v16302_v42, %v16300_v34 }
 0x24f   : > { %v1220_v23 = vpop.f32.mrf.mxu1 }
 0x250   : > { %v16390_v25 = vadd.f32 %v13545_v29, %v1220_v23  ;;  %v13554_v23 = vpop.f32.mrf.mxu0 }
 0x251   : > { %v1222_v28 = vpop.f32.mrf.mxu1 }
 0x253   : > { %v1225_v2 = vpop.f32.mrf.mxu1 }
 0x254   : > { %v1591_v37 = vadd.f32 %v1590_v4, %v1225_v2  ;;  %v1526_v2 = vadd.f32 %v16292_v19, %v16310_v31 }
 0x255   : > { %v1227_v39 = vpop.f32.mrf.mxu1 }
 0x256   : > { %13606 = vmatprep.subr.mxu0 %v1591_v37 }
 0x257   : > { %v1230_v46 = vpop.f32.mrf.mxu1  ;;  %13607 = vmatpush3.msra.mxu0 %v1591_v37 }
 0x258   : > { %v1596_v38 = vadd.f32 %v13548_v36, %v1230_v46  ;;  %v16400_v36 = vpop.f32.mrf.mxu0 }
 0x259   : > { %v1232_v63 = vpop.f32.mrf.mxu1 }
 0x25a   : > { %13620 = vmatprep.subr.mxu0 %v1596_v38  ;;  %v13557_v46 = vpop.f32.mrf.mxu0 }
 0x25b   : > { %v1235_v1 = vpop.f32.mrf.mxu1 }
 0x25c   : > { %v1620_v34 = vpop.f32.mrf.mxu0 }
 0x25d   : > { %v1237_v61 = vpop.f32.mrf.mxu1 }
 0x25f   : > { %v1240_v29 = vpop.f32.mrf.mxu1 }
 0x260   : > { %v16394_v28 = vadd.f32 %v13551_v12, %v1240_v29  ;;  %1981 = vxpose.xlu0.b32.start.end [1/1] (short) (narrow) %v1521_v21, 64 }
 0x261   : > { %v1242_v4 = vpop.f32.mrf.mxu1 }
 0x262   : > { %v1531_v4 = vadd.f32 %v16315_v7, %v16320_v3 }
 0x263   : > { %v16398_v37 = vpop.f32.mrf.mxu1 }
 0x265   : > { %v1247_v39 = vpop.f32.mrf.mxu1  ;;  %2013 = vxpose.xlu1.b32.start.end [1/1] (short) (narrow) %v1526_v2, 64 }
 0x267   : > { %v1250_v63 = vpop.f32.mrf.mxu1 }
 0x268   : > { %v16402_v42 = vadd.f32 %v13554_v23, %v1250_v63 }
 0x269   : > { %v1252_v61 = vpop.f32.mrf.mxu1 }
 0x26b   : > { %v1255_v35 = vpop.f32.mrf.mxu1 }
 0x26c   : > { %v1621_v12 = vadd.f32 %v1620_v34, %v1255_v35 }
 0x26d   : > { %v1257_v29 = vpop.f32.mrf.mxu1 }
 0x26e   : > { %13690 = vmatprep.subr.mxu1 %v1621_v12 }
 0x26f   : > { %v1260_v21 = vpop.f32.mrf.mxu1  ;;  %13691 = vmatpush3.msra.mxu1 %v1621_v12 }
 0x270   : > { %v16404_v19 = vadd.f32 %v13557_v46, %v1260_v21  ;;  %v16412_v46 = vadd.f32 %v1600_v13, %v1235_v1 }
 0x271   : > { %v1262_v31 = vpop.f32.mrf.mxu1 }
 0x273   : > { %v1265_v2 = vpop.f32.mrf.mxu1 }
 0x275   : > { %v1267_v39 = vpop.f32.mrf.mxu1  ;;  %v13560_v3 = vpop.f32.mrf.mxu0 }
 0x277   : > { %v1270_v60 = vpop.f32.mrf.mxu1  ;;  %v1630_v21 = vpop.f32.mrf.mxu0 }
 0x279   : > { %v1272_v23 = vpop.f32.mrf.mxu1 }
 0x27b   : > { %v16409_v35 = vpop.f32.mrf.mxu1 }
 0x27d   : > { %2045 = vxpose.xlu0.b32.start.end [1/1] (short) (narrow) %v1531_v4, 64  ;;  %v1277_v61 = vpop.f32.mrf.mxu1  ;;  %v16425_v1 = vpop.f32.mrf.mxu0 }
 0x27e   : > { %v16434_v61 = vadd.f32 %v1630_v21, %v1265_v2  ;;  %v1541_v2 = vadd.f32 %v16334_v40, %v16339_v17 }
 0x27f   : > { %v16414_v12 = vpop.f32.mrf.mxu1  ;;  %v16427_v23 = vpop.f32.mrf.mxu0 }
 0x280   : > { %13718 = vmatprep.subr.mxu1 %v16434_v61 }
 0x282   : > { %2077 = vxpose.xlu1.b32.start.end [1/1] (short) (narrow) %v16332_v45, 64  ;;  %v1282_v45 = vpop.f32.mrf.mxu1 }
 0x283   : > { %v16438_v45 = vadd.f32 %v13560_v3, %v1270_v60 }
 0x284   : > { %v16423_v13 = vpop.f32.mrf.mxu1 }
 0x285   : > { %v1805_v63 = vpop.trf.xlu0 }
 0x286   : > { %13608 = vmatprep.mubr.msk.f32.mxu0 %vm2429_vm3, %v1805_v63  ;;  %v1287_v4 = vpop.f32.mrf.mxu1 }
 0x288   : > { %v16432_v63 = vpop.f32.mrf.mxu1 }
 0x289   : > { %v1806_v34 = vpop.trf.xlu0 }
 0x28a   : > { %13609 = vmatmul.mubr.msk.f32.vlgmr.msra.gmra.mxu0 %vm2429_vm3, %v1806_v34  ;;  %v16417_v7 = vpop.trf.xlu1  ;;  %v16436_v34 = vpop.f32.mrf.mxu0 }
 0x28b   : > { %13621 = vmatpush3.msra.mxu0 %v1596_v38 }
 0x28c   : > { %13634 = vmatprep.subr.mxu0 %v16412_v46  ;;  %v16441_v4 = vpop.f32.mrf.mxu0 }
 0x28d   : > { %v1807_v29 = vpop.trf.xlu0 }
 0x28e   : > { %13611 = vmatprep.mubr.msk.f32.mxu0 %vm2429_vm3, %v1807_v29  ;;  %v16421_v31 = vpop.trf.xlu1  ;;  %v1292_v29 = vpop.f32.mrf.mxu1 }
 0x28f   : > { %v16450_v56 = vpop.f32.mrf.mxu0 }
 0x291   : > { %v1808_v39 = vpop.trf.xlu0  ;;  %v16457_v32 = vpop.f32.mrf.mxu0 }
 0x292   : > { %13612 = vmatmul.mubr.msk.f32.gmra.mxu0 %vm2429_vm3, %v1808_v39  ;;  %v16430_v38 = vpop.trf.xlu1  ;;  %v16446_v39 = vpop.f32.mrf.mxu1 }
 0x294   : > { %v1297_v21 = vpop.f32.mrf.mxu1 }
 0x295   : > { %v1809_v47 = vpop.trf.xlu0  ;;  %v16465_v21 = vpop.f32.mrf.mxu0 }
 0x296   : > { %13614 = vmatprep.mubr.msk.f32.mxu0 %vm2429_vm3, %v1809_v47  ;;  %v16444_v57 = vpop.trf.xlu1  ;;  %v16455_v3 = vpop.f32.mrf.mxu1 }
 0x297   : > { %v16472_v24 = vpop.f32.mrf.mxu0 }
 0x298   : > { %v1302_v29 = vpop.f32.mrf.mxu1 }
 0x299   : > { %v1810_v11 = vpop.trf.xlu0  ;;  %v13575_v22 = vpop.f32.mrf.mxu0 }
 0x29a   : > { %2109 = vxpose.xlu0.b32.start.end [1/1] (short) (narrow) %v1541_v2, 64  ;;  %13615 = vmatmul.mubr.msk.f32.gmra.mxu0 %vm2429_vm3, %v1810_v11  ;;  %v16453_v60 = vpop.trf.xlu1  ;;  %v16462_v40 = vpop.f32.mrf.mxu1 }
 0x29b   : > { %v16484_v14 = vpop.f32.mrf.mxu0 }
 0x29c   : > { %v1307_v17 = vpop.f32.mrf.mxu1 }
 0x29d   : > { %v1811_v47 = vpop.trf.xlu0 }
 0x29e   : > { %13617 = vmatprep.mubr.msk.f32.mxu0 %vm2429_vm3, %v1811_v47  ;;  %v16460_v53 = vpop.trf.xlu1  ;;  %v16470_v29 = vpop.f32.mrf.mxu1 }
 0x29f   : > { %2141 = vxpose.xlu1.b32.start.end [1/1] (short) (narrow) %v16350_v44, 64 }
 0x2a0   : > { %v1312_v30 = vpop.f32.mrf.mxu1 }
 0x2a1   : > { %v1812_v2 = vpop.trf.xlu0 }
 0x2a2   : > { %13618 = vmatmul.mubr.msk.f32.gmra.mxu0 %vm2429_vm3, %v1812_v2  ;;  %v16468_v11 = vpop.trf.xlu1  ;;  %v16477_v49 = vpop.f32.mrf.mxu1 }
 0x2a4   : > { %v1317_v44 = vpop.f32.mrf.mxu1 }
 0x2a5   : > { %v1837_v52 = vpop.trf.xlu0 }
 0x2a6   : > { %13622 = vmatprep.mubr.msk.f32.mxu0 %vm2429_vm3, %v1837_v52  ;;  %v16475_v47 = vpop.trf.xlu1  ;;  %v1320_v48 = vpop.f32.mrf.mxu1 }
 0x2a8   : > { %v1322_v30 = vpop.f32.mrf.mxu1 }
 0x2a9   : > { %v1838_v17 = vpop.trf.xlu0 }
 0x2aa   : > { %13623 = vmatmul.mubr.msk.f32.vlgmr.msra.gmra.mxu0 %vm2429_vm3, %v1838_v17  ;;  %v16480_v2 = vpop.trf.xlu1  ;;  %v16489_v44 = vpop.f32.mrf.mxu1 }
 0x2ab   : > { %13635 = vmatpush3.msra.mxu0 %v16412_v46  ;;  %21088 = vst [vmem:[#allocation45_spill] sm:$0xff] %v16489_v44  ;;  %v16491_v17 = vpop.f32.mrf.mxu0 }
 0x2ac   : > { %13648 = vmatprep.subr.mxu0 %v16394_v28  ;;  %v1327_v8 = vpop.f32.mrf.mxu1 }
 0x2ad   : > { %v1839_v16 = vpop.trf.xlu0 }
 0x2ae   : > { %13625 = vmatprep.mubr.msk.f32.mxu0 %vm2429_vm3, %v1839_v16  ;;  %v16487_v52 = vpop.trf.xlu1  ;;  %v16496_v46 = vpop.f32.mrf.mxu1 }
 0x2af   : > { %v16500_v16 = vpop.f32.mrf.mxu0 }
 0x2b0   : > { %v1332_v30 = vpop.f32.mrf.mxu1  ;;  %21089 = vst [vmem:[#allocation46_spill] sm:$0xff] %v16500_v16 }
 0x2b1   : > { %v1840_v6 = vpop.trf.xlu0  ;;  %v16507_v54 = vpop.f32.mrf.mxu0 }
 0x2b2   : > { %13626 = vmatmul.mubr.msk.f32.gmra.mxu0 %vm2429_vm3, %v1840_v6  ;;  %v16494_v0 = vpop.trf.xlu1  ;;  %v16505_v8 = vpop.f32.mrf.mxu1 }
 0x2b3   : > { %21090 = vst [vmem:[#allocation47_spill] sm:$0xff] %v16505_v8 }
 0x2b4   : > { %v1337_v55 = vpop.f32.mrf.mxu1 }
 0x2b5   : > { %v1841_v59 = vpop.trf.xlu0 }
 0x2b6   : > { %13628 = vmatprep.mubr.msk.f32.mxu0 %vm2429_vm3, %v1841_v59  ;;  %v16503_v58 = vpop.trf.xlu1  ;;  %v16512_v51 = vpop.f32.mrf.mxu1 }
 0x2b7   : > { %2173 = vxpose.xlu0.b32.start.end [1/1] (short) (narrow) %v1551_v62, 64  ;;  %v16515_v59 = vpop.f32.mrf.mxu0 }
 0x2b8   : > { %v1342_v41 = vpop.f32.mrf.mxu1  ;;  %21091 = vst [vmem:[#allocation48_spill] sm:$0xff] %v16515_v59 }
 0x2b9   : > { %v1842_v6 = vpop.trf.xlu0  ;;  %v16522_v16 = vpop.f32.mrf.mxu0 }
 0x2ba   : > { %13629 = vmatmul.mubr.msk.f32.gmra.mxu0 %vm2429_vm3, %v1842_v6  ;;  %v16510_v30 = vpop.trf.xlu1  ;;  %v16520_v55 = vpop.f32.mrf.mxu1 }
 0x2bb   : > { %21092 = vst [vmem:[#allocation49_spill] sm:$0xff] %v16520_v55  ;;  %v16533_v59 = vpop.f32.mrf.mxu0 }
 0x2bc   : > { %2205 = vxpose.xlu1.b32.start.end [1/1] (short) (narrow) %v16368_v9, 64  ;;  %v1347_v62 = vpop.f32.mrf.mxu1  ;;  %v1611_v9 = vadd.f32 %v16400_v36, %v16398_v37  ;;  %21093 = vst [vmem:[#allocation50_spill] sm:$0xff] %v16533_v59 }
 0x2bd   : > { %v1843_v15 = vpop.trf.xlu0  ;;  %v13587_v37 = vpop.f32.mrf.mxu0 }
 0x2be   : > { %13631 = vmatprep.mubr.msk.f32.mxu0 %vm2429_vm3, %v1843_v15  ;;  %v16518_v50 = vpop.trf.xlu1  ;;  %v1350_v44 = vpop.f32.mrf.mxu1 }
 0x2bf   : > { %v16550_v59 = vpop.f32.mrf.mxu0 }
 0x2c0   : > { %v1352_v41 = vpop.f32.mrf.mxu1  ;;  %21096 = vst [vmem:[#allocation53_spill] sm:$0xff] %v16550_v59 }
 0x2c1   : > { %v1844_v8 = vpop.trf.xlu0  ;;  %v16546_v41 = vadd.f32 %v13575_v22, %v1320_v48  ;;  %v13590_v22 = vpop.f32.mrf.mxu0 }
 0x2c2   : > { %13632 = vmatmul.mubr.msk.f32.gmra.mxu0 %vm2429_vm3, %v1844_v8  ;;  %v16525_v6 = vpop.trf.xlu1  ;;  %v16537_v55 = vpop.f32.mrf.mxu1 }
 0x2c3   : > { %13636 = vmatprep.mubr.msk.f32.mxu0 %vm2429_vm3, %v16417_v7  ;;  %21094 = vst [vmem:[#allocation51_spill] sm:$0xff] %v16537_v55  ;;  %21095 = vst [vmem:[#allocation52_spill] sm:$0xff] %v16546_v41  ;;  %v16568_v41 = vpop.f32.mrf.mxu0 }
 0x2c4   : > { %v1357_v7 = vpop.f32.mrf.mxu1  ;;  %21098 = vst [vmem:[#allocation55_spill] sm:$0xff] %v16568_v41 }
 0x2c5   : > { %v16531_v15 = vpop.trf.xlu0 }
 0x2c6   : > { %13637 = vmatmul.mubr.msk.f32.vlgmr.msra.gmra.mxu0 %vm2429_vm3, %v16421_v31  ;;  %v1908_v62 = vpop.trf.xlu1  ;;  %v1360_v31 = vpop.f32.mrf.mxu1 }
 0x2c7   : > { %13649 = vmatpush3.msra.mxu0 %v16394_v28  ;;  %13639 = vmatprep.mubr.msk.f32.mxu0 %vm2429_vm3, %v16430_v38 }
 0x2c8   : > { %13662 = vmatprep.subr.mxu0 %v1611_v9  ;;  %v1362_v55 = vpop.f32.mrf.mxu1 }
 0x2c9   : > { %v1934_v8 = vpop.trf.xlu0 }
 0x2ca   : > { %13640 = vmatmul.mubr.msk.f32.gmra.mxu0 %vm2429_vm3, %v16444_v57  ;;  %v16544_v36 = vpop.trf.xlu1  ;;  %v16556_v7 = vpop.f32.mrf.mxu1 }
 0x2cb   : > { %13642 = vmatprep.mubr.msk.f32.mxu0 %vm2429_vm3, %v16453_v60  ;;  %21097 = vst [vmem:[#allocation54_spill] sm:$0xff] %v16556_v7  ;;  %v1561_v60 = vadd.f32 %v16370_v43, %v16372_v33  ;;  %v16576_v33 = vadd.f32 %v16491_v17, %v16496_v46  ;;  %v16590_v17 = vadd.f32 %v16507_v54, %v16512_v51 }
 0x2cc   : > { %v1367_v48 = vpop.f32.mrf.mxu1 }
 0x2cd   : > { %v1935_v28 = vpop.trf.xlu0  ;;  %21099 = vst [vmem:[#allocation56_spill] sm:$0xff] %v16576_v33  ;;  %v13593_v48 = vpop.f32.mrf.mxu0  ;;  %21101 = vst [vmem:[#allocation58_spill] sm:$0xff] %v16590_v17 }
 0x2ce   : > { %13643 = vmatmul.mubr.msk.f32.gmra.mxu0 %vm2429_vm3, %v16460_v53  ;;  %v16554_v38 = vpop.trf.xlu1  ;;  %v1370_v59 = vpop.f32.mrf.mxu1 }
 0x2cf   : > { %13645 = vmatprep.mubr.msk.f32.mxu0 %vm2429_vm3, %v16468_v11 }
 0x2d0   : > { %v1372_v53 = vpop.f32.mrf.mxu1 }
 0x2d1   : > { %v1936_v57 = vpop.trf.xlu0 }
 0x2d2   : > { %13646 = vmatmul.mubr.msk.f32.gmra.mxu0 %vm2429_vm3, %v16475_v47  ;;  %v16564_v55 = vpop.trf.xlu1  ;;  %v16578_v43 = vpop.f32.mrf.mxu1 }
 0x2d3   : > { %13650 = vmatprep.mubr.msk.f32.mxu0 %vm2429_vm3, %v16480_v2  ;;  %21100 = vst [vmem:[#allocation57_spill] sm:$0xff] %v16578_v43 }
 0x2d4   : > { %2237 = vxpose.xlu0.b32.start.end [1/1] (short) (narrow) %v1561_v60, 64  ;;  %v1377_v47 = vpop.f32.mrf.mxu1  ;;  %v16594_v60 = vpop.f32.mrf.mxu0 }
 0x2d5   : > { %v1937_v7 = vpop.trf.xlu0  ;;  %21102 = vst [vmem:[#allocation59_spill] sm:$0xff] %v16594_v60 }
 0x2d6   : > { %13651 = vmatmul.mubr.msk.f32.vlgmr.msra.gmra.mxu0 %vm2429_vm3, %v16487_v52  ;;  %v16572_v11 = vpop.trf.xlu1  ;;  %v1380_v46 = vpop.f32.mrf.mxu1 }
 0x2d7   : > { %13663 = vmatpush3.msra.mxu0 %v1611_v9  ;;  %13653 = vmatprep.mubr.msk.f32.mxu0 %vm2429_vm3, %v16494_v0 }
 0x2d8   : > { %13676 = vmatprep.subr.mxu0 %v16402_v42  ;;  %v1382_v0 = vpop.f32.mrf.mxu1 }
 0x2d9   : > { %2269 = vxpose.xlu1.b32.start.end [1/1] (short) (narrow) %v16376_v26, 64  ;;  %v1938_v2 = vpop.trf.xlu0  ;;  %v16610_v0 = vadd.f32 %v13587_v37, %v1360_v31 }
 0x2da   : > { %13654 = vmatmul.mubr.msk.f32.gmra.mxu0 %vm2429_vm3, %v16503_v58  ;;  %v16586_v52 = vpop.trf.xlu1  ;;  %v16601_v58 = vadd.f32 %v16522_v16, %v1350_v44  ;;  %v16603_v53 = vpop.f32.mrf.mxu1 }
 0x2db   : > { %13656 = vmatprep.mubr.msk.f32.mxu0 %vm2429_vm3, %v16510_v30  ;;  %21104 = vst [vmem:[#allocation61_spill] sm:$0xff] %v16603_v53  ;;  %v13596_v30 = vpop.f32.mrf.mxu0  ;;  %21105 = vst [vmem:[#allocation62_spill] sm:$0xff] %v16610_v0 }
 0x2dc   : > { %21103 = vst [vmem:[#allocation60_spill] sm:$0xff] %v16601_v58  ;;  %v1387_v51 = vpop.f32.mrf.mxu1 }
 0x2dd   : > { %v1939_v9 = vpop.trf.xlu0  ;;  %v16614_v60 = vpop.f32.mrf.mxu0  ;;  %v16620_v51 = vadd.f32 %v13590_v22, %v1370_v59  ;;  %v16633_v22 = vadd.f32 %v13593_v48, %v1380_v46 }
 0x2de   : > { %13657 = vmatmul.mubr.msk.f32.gmra.mxu0 %vm2429_vm3, %v16518_v50  ;;  %v16598_v26 = vpop.trf.xlu1  ;;  %v1390_v50 = vpop.f32.mrf.mxu1  ;;  %21106 = vst [vmem:[#allocation63_spill] sm:$0xff] %v16614_v60 }
 0x2df   : > { %13659 = vmatprep.mubr.msk.f32.mxu0 %vm2429_vm3, %v16525_v6  ;;  %21107 = vst [vmem:[#allocation64_spill] sm:$0xff] %v16620_v51  ;;  %v13599_v31 = vpop.f32.mrf.mxu0  ;;  %21109 = vst [vmem:[#allocation66_spill] sm:$0xff] %v16633_v22 }
 0x2e0   : > { %v1392_v44 = vpop.f32.mrf.mxu1 }
 0x2e1   : > { %v1940_v54 = vpop.trf.xlu0 }
 0x2e2   : > { %13660 = vmatmul.mubr.msk.f32.gmra.mxu0 %vm2429_vm3, %v1908_v62  ;;  %v16608_v47 = vpop.trf.xlu1  ;;  %v16622_v62 = vpop.f32.mrf.mxu1 }
 0x2e3   : > { %13664 = vmatprep.mubr.msk.f32.mxu0 %vm2429_vm3, %v16531_v15  ;;  %21108 = vst [vmem:[#allocation65_spill] sm:$0xff] %v16622_v62  ;;  %v16629_v15 = vadd.f32 %v16427_v23, %v16409_v35  ;;  %v16638_v23 = vpop.f32.mrf.mxu0 }
 0x2e4   : > { %v1397_v37 = vpop.f32.mrf.mxu1  ;;  %21110 = vst [vmem:[#allocation67_spill] sm:$0xff] %v16638_v23 }
 0x2e5   : > { %v1997_v16 = vpop.trf.xlu0 }
 0x2e6   : > { %13665 = vmatmul.mubr.msk.f32.vlgmr.msra.gmra.mxu0 %vm2429_vm3, %v1934_v8  ;;  %13692 = vmatprep.mubr.msk.f32.mxu1 %vm2429_vm3, %v1997_v16  ;;  %v16618_v6 = vpop.trf.xlu1  ;;  %v1400_v44 = vpop.f32.mrf.mxu1 }
 0x2e7   : > { %13677 = vmatpush3.msra.mxu0 %v16402_v42  ;;  %13667 = vmatprep.mubr.msk.f32.mxu0 %vm2429_vm3, %v1935_v28  ;;  %v13602_v16 = vpop.f32.mrf.mxu0  ;;  %v16651_v37 = vadd.f32 %v13599_v31, %v1400_v44 }
 0x2e8   : > { %13704 = vmatprep.subr.mxu0 %v16404_v19  ;;  %v1402_v42 = vpop.f32.mrf.mxu1 }
 0x2e9   : > { %v1998_v8 = vpop.trf.xlu0  ;;  %21113 = vst [vmem:[#allocation70_spill] sm:$0xff] %v16651_v37 }
 0x2ea   : > { %13668 = vmatmul.mubr.msk.f32.gmra.mxu0 %vm2429_vm3, %v1936_v57  ;;  %13693 = vmatmul.mubr.msk.f32.vlgmr.msra.gmra.mxu1 %vm2429_vm3, %v1998_v8  ;;  %v2029_v59 = vpop.trf.xlu1  ;;  %v16642_v57 = vadd.f32 %v13596_v30, %v1390_v50  ;;  %v16644_v48 = vpop.f32.mrf.mxu1 }
 0x2eb   : > { %13670 = vmatprep.mubr.msk.f32.mxu0 %vm2429_vm3, %v1937_v7  ;;  %13719 = vmatpush3.msra.mxu1 %v16434_v61  ;;  %21112 = vst [vmem:[#allocation69_spill] sm:$0xff] %v16644_v48  ;;  %v1571_v7 = vadd.f32 %v16378_v20, %v16380_v18  ;;  %v16655_v18 = vpop.f32.mrf.mxu0 }
 0x2ec   : > { %13746 = vmatprep.subr.mxu1 %v16629_v15  ;;  %21111 = vst [vmem:[#allocation68_spill] sm:$0xff] %v16642_v57  ;;  %v1407_v61 = vpop.f32.mrf.mxu1  ;;  %21114 = vst [vmem:[#allocation71_spill] sm:$0xff] %v16655_v18 }
 0x2ed   : > { %v1999_v35 = vpop.trf.xlu0 }
 0x2ee   : > { %13671 = vmatmul.mubr.msk.f32.gmra.mxu0 %vm2429_vm3, %v1938_v2  ;;  %13695 = vmatprep.mubr.msk.f32.mxu1 %vm2429_vm3, %v1999_v35  ;;  %v2030_v28 = vpop.trf.xlu1  ;;  %v1410_v30 = vpop.f32.mrf.mxu1 }
 0x2ef   : > { %13673 = vmatprep.mubr.msk.f32.mxu0 %vm2429_vm3, %v1939_v9  ;;  %v16660_v9 = vadd.f32 %v13602_v16, %v1410_v30 }
 0x2f0   : > { %v1412_v50 = vpop.f32.mrf.mxu1 }
 0x2f1   : > { %2301 = vxpose.xlu0.b32.start.end [1/1] (short) (narrow) %v1571_v7, 64  ;;  %v2000_v46 = vpop.trf.xlu0  ;;  %21115 = vst [vmem:[#allocation72_spill] sm:$0xff] %v16660_v9  ;;  %v1661_v50 = vadd.f32 %v16457_v32, %v16446_v39 }
 0x2f2   : > { %13674 = vmatmul.mubr.msk.f32.gmra.mxu0 %vm2429_vm3, %v1940_v54  ;;  %13696 = vmatmul.mubr.msk.f32.gmra.mxu1 %vm2429_vm3, %v2000_v46  ;;  %v2031_v2 = vpop.trf.xlu1  ;;  %v16662_v54 = vpop.f32.mrf.mxu1 }
 0x2f3   : > { %13678 = vmatprep.mubr.msk.f32.mxu0 %vm2429_vm3, %v16544_v36  ;;  %21116 = vst [vmem:[#allocation73_spill] sm:$0xff] %v16662_v54 }
 0x2f4   : > { %v1417_v36 = vpop.f32.mrf.mxu1 }
 0x2f5   : > { %v2001_v8 = vpop.trf.xlu0  ;;  %v1666_v36 = vadd.f32 %v16450_v56, %v16455_v3 }
 0x2f6   : > { %2333 = vxpose.xlu1.b32.start.end [1/1] (short) (narrow) %v16384_v27, 64  ;;  %13679 = vmatmul.mubr.msk.f32.vlgmr.msra.gmra.mxu0 %vm2429_vm3, %v16554_v38  ;;  %v2032_v20 = vpop.trf.xlu1  ;;  %v13605_v27 = vpop.f32.mrf.mxu0 }
 0x2f7   : > { %13705 = vmatpush3.msra.mxu0 %v16404_v19  ;;  %13698 = vmatprep.mubr.msk.f32.mxu1 %vm2429_vm3, %v2001_v8  ;;  %v1420_v44 = vpop.f32.mrf.mxu1 }
 0x2f8   : > { %13681 = vmatprep.mubr.msk.f32.mxu0 %vm2429_vm3, %v16564_v55  ;;  %13732 = vmatprep.subr.mxu0 %v16438_v45  ;;  %v16674_v19 = vadd.f32 %v13605_v27, %v1420_v44 }
 0x2f9   : > { %v2002_v31 = vpop.trf.xlu0  ;;  %v1422_v42 = vpop.f32.mrf.mxu1 }
 0x2fa   : > { %13699 = vmatmul.mubr.msk.f32.gmra.mxu1 %vm2429_vm3, %v2002_v31  ;;  %13682 = vmatmul.mubr.msk.f32.gmra.mxu0 %vm2429_vm3, %v16572_v11  ;;  %v2033_v38 = vpop.trf.xlu1  ;;  %21117 = vst [vmem:[#allocation74_spill] sm:$0xff] %v16674_v19 }
 0x2fb   : > { %13684 = vmatprep.mubr.msk.f32.mxu0 %vm2429_vm3, %v16586_v52  ;;  %v1646_v52 = vadd.f32 %v16425_v1, %v16414_v12  ;;  %v1581_v1 = vadd.f32 %v16386_v10, %v16388_v5  ;;  %v1656_v10 = vadd.f32 %v16436_v34, %v16432_v63 }
 0x2fd   : > { %v2003_v35 = vpop.trf.xlu0 }
 0x2fe   : > { %13685 = vmatmul.mubr.msk.f32.gmra.mxu0 %vm2429_vm3, %v16598_v26  ;;  %13701 = vmatprep.mubr.msk.f32.mxu1 %vm2429_vm3, %v2003_v35  ;;  %v2034_v55 = vpop.trf.xlu1 }
 0x2ff   : > { %13687 = vmatprep.mubr.msk.f32.mxu0 %vm2429_vm3, %v16608_v47  ;;  %v1651_v47 = vadd.f32 %v16441_v4, %v16423_v13 }
 0x301   : > { %v2004_v7 = vpop.trf.xlu0 }
 0x302   : > { %13702 = vmatmul.mubr.msk.f32.gmra.mxu1 %vm2429_vm3, %v2004_v7  ;;  %13688 = vmatmul.mubr.msk.f32.gmra.mxu0 %vm2429_vm3, %v16618_v6  ;;  %v2035_v11 = vpop.trf.xlu1 }
 0x303   : > { %13706 = vmatprep.mubr.msk.f32.mxu0 %vm2429_vm3, %v2029_v59 }
 0x305   : > { %v2061_v61 = vpop.trf.xlu0 }
 0x306   : > { %13707 = vmatmul.mubr.msk.f32.vlgmr.msra.gmra.mxu0 %vm2429_vm3, %v2030_v28  ;;  %13720 = vmatprep.mubr.msk.f32.mxu1 %vm2429_vm3, %v2061_v61  ;;  %v2036_v26 = vpop.trf.xlu1  ;;  %v16742_v61 = vadd.f32 %v16472_v24, %v16462_v40 }
 0x307   : > { %13709 = vmatprep.mubr.msk.f32.mxu0 %vm2429_vm3, %v2031_v2  ;;  %13733 = vmatpush3.msra.mxu0 %v16438_v45 }
 0x308   : > { %13760 = vmatprep.subr.mxu0 %v1646_v52 }
 0x309   : > { %v2062_v6 = vpop.trf.xlu0 }
 0x30a   : > { %13721 = vmatmul.mubr.msk.f32.vlgmr.msra.gmra.mxu1 %vm2429_vm3, %v2062_v6  ;;  %13710 = vmatmul.mubr.msk.f32.gmra.mxu0 %vm2429_vm3, %v2032_v20  ;;  %v2093_v12 = vpop.trf.xlu1  ;;  %v16746_v6 = vpop.f32.mrf.mxu0 }
 0x30b   : > { %13712 = vmatprep.mubr.msk.f32.mxu0 %vm2429_vm3, %v2033_v38  ;;  %13747 = vmatpush3.msra.mxu1 %v16629_v15  ;;  %21118 = vst [vmem:[#allocation75_spill] sm:$0xff] %v16746_v6 }
 0x30c   : > { %13774 = vmatprep.subr.mxu1 %v1651_v47 }
 0x30d   : > { %v2063_v59 = vpop.trf.xlu0 }
 0x30e   : > { %2365 = vxpose.xlu0.b32.start.end [1/1] (short) (narrow) %v1581_v1, 64  ;;  %v2094_v45 = vpop.trf.xlu1  ;;  %13713 = vmatmul.mubr.msk.f32.gmra.mxu0 %vm2429_vm3, %v2034_v55 }
 0x30f   : > { %13723 = vmatprep.mubr.msk.f32.mxu1 %vm2429_vm3, %v2063_v59  ;;  %13715 = vmatprep.mubr.msk.f32.mxu0 %vm2429_vm3, %v2035_v11 }
 0x311   : > { %v2064_v13 = vpop.trf.xlu0 }
 0x312   : > { %v2095_v4 = vpop.trf.xlu1  ;;  %13724 = vmatmul.mubr.msk.f32.gmra.mxu1 %vm2429_vm3, %v2064_v13  ;;  %13716 = vmatmul.mubr.msk.f32.gmra.mxu0 %vm2429_vm3, %v2036_v26 }
 0x313   : > { %2397 = vxpose.xlu1.b32.start.end [1/1] (short) (narrow) %v16390_v25, 64  ;;  %13734 = vmatprep.mubr.msk.f32.mxu0 %vm2429_vm3, %v2093_v12  ;;  %v16751_v12 = vadd.f32 %v16465_v21, %v16470_v29 }
 0x315   : > { %v2065_v5 = vpop.trf.xlu0 }
 0x316   : > { %v2096_v15 = vpop.trf.xlu1  ;;  %13735 = vmatmul.mubr.msk.f32.vlgmr.msra.gmra.mxu0 %vm2429_vm3, %v2094_v45  ;;  %13726 = vmatprep.mubr.msk.f32.mxu1 %vm2429_vm3, %v2065_v5 }
 0x317   : > { %13737 = vmatprep.mubr.msk.f32.mxu0 %vm2429_vm3, %v2095_v4  ;;  %13761 = vmatpush3.msra.mxu0 %v1646_v52 }
 0x318   : > { %13788 = vmatprep.subr.mxu0 %v1656_v10 }
 0x319   : > { %v2066_v28 = vpop.trf.xlu0 }
 0x31a   : > { %v2097_v46 = vpop.trf.xlu1  ;;  %13727 = vmatmul.mubr.msk.f32.gmra.mxu1 %vm2429_vm3, %v2066_v28  ;;  %13738 = vmatmul.mubr.msk.f32.gmra.mxu0 %vm2429_vm3, %v2096_v15 }
 0x31b   : > { %13740 = vmatprep.mubr.msk.f32.mxu0 %vm2429_vm3, %v2097_v46 }
 0x31d   : > { %v2067_v25 = vpop.trf.xlu0 }
 0x31e   : > { %v2098_v63 = vpop.trf.xlu1  ;;  %13729 = vmatprep.mubr.msk.f32.mxu1 %vm2429_vm3, %v2067_v25 }
 0x31f   : > { %13741 = vmatmul.mubr.msk.f32.gmra.mxu0 %vm2429_vm3, %v2098_v63 }
 0x321   : > { %v2068_v34 = vpop.trf.xlu0 }
 0x322   : > { %v2099_v16 = vpop.trf.xlu1  ;;  %13730 = vmatmul.mubr.msk.f32.gmra.mxu1 %vm2429_vm3, %v2068_v34 }
 0x323   : > { %13743 = vmatprep.mubr.msk.f32.mxu0 %vm2429_vm3, %v2099_v16 }
 0x325   : > { %v2125_v2 = vpop.trf.xlu0 }
 0x326   : > { %v2100_v30 = vpop.trf.xlu1  ;;  %13748 = vmatprep.mubr.msk.f32.mxu1 %vm2429_vm3, %v2125_v2 }
 0x327   : > { %13744 = vmatmul.mubr.msk.f32.gmra.mxu0 %vm2429_vm3, %v2100_v30 }
 0x329   : > { %v2126_v8 = vpop.trf.xlu0 }
 0x32a   : > { %v2157_v20 = vpop.trf.xlu1  ;;  %13749 = vmatmul.mubr.msk.f32.vlgmr.msra.gmra.mxu1 %vm2429_vm3, %v2126_v8 }
 0x32b   : > { %13762 = vmatprep.mubr.msk.f32.mxu0 %vm2429_vm3, %v2157_v20  ;;  %13775 = vmatpush3.msra.mxu1 %v1651_v47 }
 0x32c   : > { %13802 = vmatprep.subr.mxu1 %v1661_v50 }
 0x32d   : > { %v2127_v31 = vpop.trf.xlu0 }
 0x32e   : > { %v2158_v27 = vpop.trf.xlu1  ;;  %13751 = vmatprep.mubr.msk.f32.mxu1 %vm2429_vm3, %v2127_v31 }
 0x32f   : > { %13763 = vmatmul.mubr.msk.f32.vlgmr.msra.gmra.mxu0 %vm2429_vm3, %v2158_v27 }
 0x330   : > { %13789 = vmatpush3.msra.mxu0 %v1656_v10 }
 0x331   : > { %v2128_v38 = vpop.trf.xlu0  ;;  %13816 = vmatprep.subr.mxu0 %v1666_v36 }
 0x332   : > { %v2159_v32 = vpop.trf.xlu1  ;;  %13752 = vmatmul.mubr.msk.f32.gmra.mxu1 %vm2429_vm3, %v2128_v38 }
 0x333   : > { %13765 = vmatprep.mubr.msk.f32.mxu0 %vm2429_vm3, %v2159_v32 }
 0x335   : > { %v2129_v39 = vpop.trf.xlu0 }
 0x336   : > { %v2160_v44 = vpop.trf.xlu1  ;;  %13754 = vmatprep.mubr.msk.f32.mxu1 %vm2429_vm3, %v2129_v39 }
 0x337   : > { %13766 = vmatmul.mubr.msk.f32.gmra.mxu0 %vm2429_vm3, %v2160_v44 }
 0x339   : > { %v2130_v56 = vpop.trf.xlu0 }
 0x33a   : > { %v2161_v3 = vpop.trf.xlu1  ;;  %13755 = vmatmul.mubr.msk.f32.gmra.mxu1 %vm2429_vm3, %v2130_v56 }
 0x33b   : > { %13768 = vmatprep.mubr.msk.f32.mxu0 %vm2429_vm3, %v2161_v3 }
 0x33d   : > { %v2131_v42 = vpop.trf.xlu0 }
 0x33e   : > { %v2162_v35 = vpop.trf.xlu1  ;;  %13757 = vmatprep.mubr.msk.f32.mxu1 %vm2429_vm3, %v2131_v42  ;;  %v16803_v42 = vadd.f32 %v16484_v14, %v16477_v49 }
 0x33f   : > { %13769 = vmatmul.mubr.msk.f32.gmra.mxu0 %vm2429_vm3, %v2162_v35 }
 0x341   : > { %v2132_v55 = vpop.trf.xlu0 }
 0x342   : > { %v2163_v7 = vpop.trf.xlu1  ;;  %13758 = vmatmul.mubr.msk.f32.gmra.mxu1 %vm2429_vm3, %v2132_v55 }
 0x343   : > { %13771 = vmatprep.mubr.msk.f32.mxu0 %vm2429_vm3, %v2163_v7 }
 0x345   : > { %v2189_v11 = vpop.trf.xlu0 }
 0x346   : > { %v2164_v52 = vpop.trf.xlu1  ;;  %13776 = vmatprep.mubr.msk.f32.mxu1 %vm2429_vm3, %v2189_v11 }
 0x347   : > { %13772 = vmatmul.mubr.msk.f32.gmra.mxu0 %vm2429_vm3, %v2164_v52 }
 0x349   : > { %v2190_v26 = vpop.trf.xlu0 }
 0x34a   : > { %v2221_v47 = vpop.trf.xlu1  ;;  %13777 = vmatmul.mubr.msk.f32.vlgmr.msra.gmra.mxu1 %vm2429_vm3, %v2190_v26  ;;  %v16755_v24 = vpop.f32.mrf.mxu0 }
 0x34b   : > { %13790 = vmatprep.mubr.msk.f32.mxu0 %vm2429_vm3, %v2221_v47  ;;  %13803 = vmatpush3.msra.mxu1 %v1661_v50  ;;  %v5013_v29 = vsel %vm878_vm2, %v16755_v24, -inf }
 0x34c   : > { %13830 = vmatprep.subr.mxu1 %v16742_v61  ;;  %v16760_v13 = vpop.f32.mrf.mxu0 }
 0x34d   : > { %v2191_v1 = vpop.trf.xlu0  ;;  %v5010_v15 = vsel %vm878_vm2, %v16760_v13, -inf }
 0x34e   : > { %v2222_v59 = vpop.trf.xlu1  ;;  %13779 = vmatprep.mubr.msk.f32.mxu1 %vm2429_vm3, %v2191_v1 }
 0x34f   : > { %13791 = vmatmul.mubr.msk.f32.vlgmr.msra.gmra.mxu0 %vm2429_vm3, %v2222_v59 }
 0x350   : > { %13817 = vmatpush3.msra.mxu0 %v1666_v36 }
 0x351   : > { %v2192_v40 = vpop.trf.xlu0  ;;  %13844 = vmatprep.subr.mxu0 %v16751_v12 }
 0x352   : > { %v2223_v45 = vpop.trf.xlu1  ;;  %13780 = vmatmul.mubr.msk.f32.gmra.mxu1 %vm2429_vm3, %v2192_v40  ;;  %v16764_v4 = vpop.f32.mrf.mxu0 }
 0x353   : > { %13793 = vmatprep.mubr.msk.f32.mxu0 %vm2429_vm3, %v2223_v45  ;;  %v5019_v34 = vsel %vm878_vm2, %v16764_v4, -inf }
 0x354   : > { %v16770_v28 = vpop.f32.mrf.mxu0 }
 0x355   : > { %v2193_v21 = vpop.trf.xlu0  ;;  %v5016_v8 = vsel %vm878_vm2, %v16770_v28, -inf }
 0x356   : > { %v2224_v10 = vpop.trf.xlu1  ;;  %13782 = vmatprep.mubr.msk.f32.mxu1 %vm2429_vm3, %v2193_v21 }
 0x357   : > { %5014 = vmax.xlane.f32.xlu0 %v5013_v29  ;;  %13794 = vmatmul.mubr.msk.f32.gmra.mxu0 %vm2429_vm3, %v2224_v10 }
 0x359   : > { %v2194_v5 = vpop.trf.xlu0 }
 0x35a   : > { %v2225_v46 = vpop.trf.xlu1  ;;  %13783 = vmatmul.mubr.msk.f32.gmra.mxu1 %vm2429_vm3, %v2194_v5  ;;  %v16774_v25 = vpop.f32.mrf.mxu0 }
 0x35b   : > { %5011 = vmax.xlane.f32.xlu0 %v5010_v15  ;;  %13796 = vmatprep.mubr.msk.f32.mxu0 %vm2429_vm3, %v2225_v46  ;;  %v5025_v38 = vsel %vm878_vm2, %v16774_v25, -inf }
 0x35c   : > { %v16780_v2 = vpop.f32.mrf.mxu0 }
 0x35d   : > { %v2195_v63 = vpop.trf.xlu0  ;;  %v5022_v56 = vsel %vm878_vm2, %v16780_v2, -inf }
 0x35e   : > { %v2226_v16 = vpop.trf.xlu1  ;;  %13785 = vmatprep.mubr.msk.f32.mxu1 %vm2429_vm3, %v2195_v63 }
 0x35f   : > { %5020 = vmax.xlane.f32.xlu0 %v5019_v34  ;;  %13797 = vmatmul.mubr.msk.f32.gmra.mxu0 %vm2429_vm3, %v2226_v16 }
 0x361   : > { %v2196_v30 = vpop.trf.xlu0 }
 0x362   : > { %v16782_v50 = vpop.f32.mrf.mxu0  ;;  %v2227_v20 = vpop.trf.xlu1  ;;  %13786 = vmatmul.mubr.msk.f32.gmra.mxu1 %vm2429_vm3, %v2196_v30 }
 0x363   : > { %5017 = vmax.xlane.f32.xlu0 %v5016_v8  ;;  %13799 = vmatprep.mubr.msk.f32.mxu0 %vm2429_vm3, %v2227_v20  ;;  %v5031_v11 = vsel %vm878_vm2, %v16782_v50, -inf }
 0x364   : > { %v16788_v36 = vpop.f32.mrf.mxu0 }
 0x365   : > { %v5028_v31 = vsel %vm878_vm2, %v16788_v36, -inf  ;;  %v2253_v27 = vpop.trf.xlu0 }
 0x366   : > { %5029 = vmax.xlane.f32.xlu1 %v5028_v31  ;;  %v2228_v32 = vpop.trf.xlu1  ;;  %13804 = vmatprep.mubr.msk.f32.mxu1 %vm2429_vm3, %v2253_v27 }
 0x367   : > { %5026 = vmax.xlane.f32.xlu0 %v5025_v38  ;;  %13800 = vmatmul.mubr.msk.f32.gmra.mxu0 %vm2429_vm3, %v2228_v32 }
 0x369   : > { %v2254_v39 = vpop.trf.xlu0 }
 0x36a   : > { %v16796_v44 = vpop.f32.mrf.mxu0  ;;  %v2285_v3 = vpop.trf.xlu1  ;;  %13805 = vmatmul.mubr.msk.f32.vlgmr.msra.gmra.mxu1 %vm2429_vm3, %v2254_v39 }
 0x36b   : > { %5023 = vmax.xlane.f32.xlu0 %v5022_v56  ;;  %v5037_v35 = vsel %vm878_vm2, %v16796_v44, -inf  ;;  %13818 = vmatprep.mubr.msk.f32.mxu0 %vm2429_vm3, %v2285_v3 }
 0x36c   : > { %5038 = vmax.xlane.f32.xlu1 %v5037_v35  ;;  %v16808_v55 = vpop.f32.mrf.mxu0  ;;  %13831 = vmatpush3.msra.mxu1 %v16742_v61  ;;  %v21119_v61 = vld [vmem:[#allocation52_spill] sm:$0xff] }
 0x36d   : > { %v2255_v7 = vpop.trf.xlu0  ;;  %13858 = vmatprep.subr.mxu1 %v16803_v42  ;;  %v5034_v49 = vsel %vm878_vm2, %v16808_v55, -inf }
 0x36e   : > { %v2286_v52 = vpop.trf.xlu1  ;;  %13807 = vmatprep.mubr.msk.f32.mxu1 %vm2429_vm3, %v2255_v7 }
 0x36f   : > { %5032 = vmax.xlane.f32.xlu0 %v5031_v11  ;;  %13819 = vmatmul.mubr.msk.f32.vlgmr.msra.gmra.mxu0 %vm2429_vm3, %v2286_v52  ;;  %v21124_v52 = vmov 0.0  }
 0x370   : > { %5035 = vmax.xlane.f32.xlu1 %v5034_v49  ;;  %13845 = vmatpush3.msra.mxu0 %v16751_v12 }
 0x371   : > { %v2256_v14 = vpop.trf.xlu0  ;;  %13872 = vmatprep.subr.mxu0 %v21119_v61 }
 0x372   : > { %v16820_v26 = vpop.f32.mrf.mxu0  ;;  %v2287_v47 = vpop.trf.xlu1  ;;  %13808 = vmatmul.mubr.msk.f32.gmra.mxu1 %vm2429_vm3, %v2256_v14 }
 0x373   : > { %v5043_v1 = vsel %vm878_vm2, %v16820_v26, -inf  ;;  %13821 = vmatprep.mubr.msk.f32.mxu0 %vm2429_vm3, %v2287_v47 }
 0x374   : > { %5044 = vmax.xlane.f32.xlu1 %v5043_v1  ;;  %v16826_v59 = vpop.f32.mrf.mxu0 }
 0x375   : > { %v2257_v40 = vpop.trf.xlu0  ;;  %v5040_v12 = vsel %vm878_vm2, %v16826_v59, -inf }
 0x376   : > { %v2288_v45 = vpop.trf.xlu1  ;;  %13810 = vmatprep.mubr.msk.f32.mxu1 %vm2429_vm3, %v2257_v40 }
 0x377   : > { %13822 = vmatmul.mubr.msk.f32.gmra.mxu0 %vm2429_vm3, %v2288_v45 }
 0x378   : > { %5041 = vmax.xlane.f32.xlu1 %v5040_v12 }
 0x379   : > { %v2258_v21 = vpop.trf.xlu0 }
 0x37a   : > { %v16832_v29 = vpop.f32.mrf.mxu0  ;;  %v2289_v10 = vpop.trf.xlu1  ;;  %13811 = vmatmul.mubr.msk.f32.gmra.mxu1 %vm2429_vm3, %v2258_v21 }
 0x37b   : > { %v5049_v5 = vsel %vm878_vm2, %v16832_v29, -inf  ;;  %13824 = vmatprep.mubr.msk.f32.mxu0 %vm2429_vm3, %v2289_v10 }
 0x37c   : > { %5050 = vmax.xlane.f32.xlu1 %v5049_v5  ;;  %v16838_v15 = vpop.f32.mrf.mxu0 }
 0x37d   : > { %v2259_v46 = vpop.trf.xlu0  ;;  %v5046_v34 = vsel %vm878_vm2, %v16838_v15, -inf }
 0x37e   : > { %v2290_v63 = vpop.trf.xlu1  ;;  %13813 = vmatprep.mubr.msk.f32.mxu1 %vm2429_vm3, %v2259_v46 }
 0x37f   : > { %13825 = vmatmul.mubr.msk.f32.gmra.mxu0 %vm2429_vm3, %v2290_v63 }
 0x380   : > { %5047 = vmax.xlane.f32.xlu1 %v5046_v34 }
 0x381   : > { %v2260_v16 = vpop.trf.xlu0 }
 0x382   : > { %v16844_v30 = vpop.f32.mrf.mxu0  ;;  %v2291_v8 = vpop.trf.xlu1  ;;  %13814 = vmatmul.mubr.msk.f32.gmra.mxu1 %vm2429_vm3, %v2260_v16 }
 0x383   : > { %v5055_v20 = vsel %vm878_vm2, %v16844_v30, -inf  ;;  %13827 = vmatprep.mubr.msk.f32.mxu0 %vm2429_vm3, %v2291_v8 }
 0x384   : > { %5056 = vmax.xlane.f32.xlu1 %v5055_v20  ;;  %v16850_v31 = vpop.f32.mrf.mxu0 }
 0x385   : > { %v2317_v27 = vpop.trf.xlu0  ;;  %v5052_v39 = vsel %vm878_vm2, %v16850_v31, -inf }
 0x386   : > { %v16852_v38 = vpop.f32.mrf.mxu0  ;;  %v2292_v32 = vpop.trf.xlu1  ;;  %13832 = vmatprep.mubr.msk.f32.mxu1 %vm2429_vm3, %v2317_v27 }
 0x387   : > { %21120 = vst [vmem:[#allocation52_spill] sm:$0xff] %v16852_v38  ;;  %13828 = vmatmul.mubr.msk.f32.gmra.mxu0 %vm2429_vm3, %v2292_v32 }
 0x388   : > { %5053 = vmax.xlane.f32.xlu1 %v5052_v39  ;;  %v16858_v56 = vpop.f32.mrf.mxu0 }
 0x389   : > { %21121 = vst [vmem:[#allocation76_spill] sm:$0xff] %v16858_v56  ;;  %v2318_v3 = vpop.trf.xlu0 }
 0x38a   : > { %v16860_v35 = vpop.f32.mrf.mxu0  ;;  %v2349_v7 = vpop.trf.xlu1  ;;  %13833 = vmatmul.mubr.msk.f32.vlgmr.msra.gmra.mxu1 %vm2429_vm3, %v2318_v3 }
 0x38b   : > { %21122 = vst [vmem:[#allocation77_spill] sm:$0xff] %v16860_v35  ;;  %13846 = vmatprep.mubr.msk.f32.mxu0 %vm2429_vm3, %v2349_v7  ;;  %13859 = vmatpush3.msra.mxu1 %v16803_v42 }
 0x38c   : > { %v16865_v11 = vpop.f32.mrf.mxu0  ;;  %13886 = vmatprep.subr.mxu1 %v21124_v52 }
 0x38d   : > { %21123 = vst [vmem:[#allocation78_spill] sm:$0xff] %v16865_v11  ;;  %v2319_v49 = vpop.trf.xlu0 }
 0x38e   : > { %v16868_v14 = vpop.f32.mrf.mxu0  ;;  %v2350_v47 = vpop.trf.xlu1  ;;  %13835 = vmatprep.mubr.msk.f32.mxu1 %vm2429_vm3, %v2319_v49 }
 0x38f   : > { %21125 = vst [vmem:[#allocation79_spill] sm:$0xff] %v16868_v14  ;;  %13847 = vmatmul.mubr.msk.f32.vlgmr.msra.gmra.mxu0 %vm2429_vm3, %v2350_v47 }
 0x390   : > { %v16872_v1 = vpop.f32.mrf.mxu0  ;;  %13873 = vmatpush3.msra.mxu0 %v21119_v61 }
 0x391   : > { %21126 = vst [vmem:[#allocation80_spill] sm:$0xff] %v16872_v1  ;;  %v2320_v40 = vpop.trf.xlu0  ;;  %13905 = vmatprep.subr.mxu0 %v21124_v52 }
 0x392   : > { %v16876_v42 = vpop.f32.mrf.mxu0  ;;  %v2351_v45 = vpop.trf.xlu1  ;;  %13836 = vmatmul.mubr.msk.f32.gmra.mxu1 %vm2429_vm3, %v2320_v40 }
 0x393   : > { %21127 = vst [vmem:[#allocation81_spill] sm:$0xff] %v16876_v42  ;;  %13849 = vmatprep.mubr.msk.f32.mxu0 %vm2429_vm3, %v2351_v45 }
 0x394   : > { %v16880_v12 = vpop.f32.mrf.mxu0 }
 0x395   : > { %21128 = vst [vmem:[#allocation82_spill] sm:$0xff] %v16880_v12  ;;  %v2321_v21 = vpop.trf.xlu0 }
 0x396   : > { %v16882_v10 = vpop.f32.mrf.mxu0  ;;  %v2352_v5 = vpop.trf.xlu1  ;;  %13838 = vmatprep.mubr.msk.f32.mxu1 %vm2429_vm3, %v2321_v21 }
 0x397   : > { %v5085_v61 = vsel %vm878_vm2, %v16882_v10, -inf  ;;  %13850 = vmatmul.mubr.msk.f32.gmra.mxu0 %vm2429_vm3, %v2352_v5 }
 0x398   : > { %5086 = vmax.xlane.f32.xlu1 %v5085_v61  ;;  %v16888_v46 = vpop.f32.mrf.mxu0 }
 0x399   : > { %v5082_v63 = vsel %vm878_vm2, %v16888_v46, -inf  ;;  %v2322_v34 = vpop.trf.xlu0 }
 0x39a   : > { %v16892_v16 = vpop.f32.mrf.mxu0  ;;  %v2353_v8 = vpop.trf.xlu1  ;;  %13839 = vmatmul.mubr.msk.f32.gmra.mxu1 %vm2429_vm3, %v2322_v34 }
 0x39b   : > { %13852 = vmatprep.mubr.msk.f32.mxu0 %vm2429_vm3, %v2353_v8  ;;  %v5091_v27 = vsel %vm878_vm2, %v16892_v16, -inf }
 0x39c   : > { %5083 = vmax.xlane.f32.xlu1 %v5082_v63  ;;  %v16896_v20 = vpop.f32.mrf.mxu0 }
 0x39d   : > { %v2323_v32 = vpop.trf.xlu0  ;;  %v5088_v49 = vsel %vm878_vm2, %v16896_v20, -inf }
 0x39e   : > { %v16900_v39 = vpop.f32.mrf.mxu0  ;;  %v2354_v3 = vpop.trf.xlu1  ;;  %13841 = vmatprep.mubr.msk.f32.mxu1 %vm2429_vm3, %v2323_v32 }
 0x39f   : > { %13853 = vmatmul.mubr.msk.f32.gmra.mxu0 %vm2429_vm3, %v2354_v3  ;;  %v5097_v5 = vsel %vm878_vm2, %v16900_v39, -inf }
 0x3a0   : > { %5092 = vmax.xlane.f32.xlu1 %v5091_v27  ;;  %v16904_v7 = vpop.f32.mrf.mxu0 }
 0x3a1   : > { %v2324_v47 = vpop.trf.xlu0  ;;  %v5094_v27 = vsel %vm878_vm2, %v16904_v7, -inf }
 0x3a2   : > { %v16908_v40 = vpop.f32.mrf.mxu0  ;;  %v2355_v45 = vpop.trf.xlu1  ;;  %13842 = vmatmul.mubr.msk.f32.gmra.mxu1 %vm2429_vm3, %v2324_v47 }
 0x3a3   : > { %21129 = vst [vmem:[#allocation83_spill] sm:$0xff] %v16908_v40  ;;  %13855 = vmatprep.mubr.msk.f32.mxu0 %vm2429_vm3, %v2355_v45 }
 0x3a4   : > { %5089 = vmax.xlane.f32.xlu1 %v5088_v49  ;;  %v16912_v21 = vpop.f32.mrf.mxu0 }
 0x3a5   : > { %21130 = vst [vmem:[#allocation84_spill] sm:$0xff] %v16912_v21  ;;  %v2381_v61 = vpop.trf.xlu0 }
 0x3a6   : > { %v16916_v63 = vpop.f32.mrf.mxu0  ;;  %v2356_v34 = vpop.trf.xlu1  ;;  %13860 = vmatprep.mubr.msk.f32.mxu1 %vm2429_vm3, %v2381_v61 }
 0x3a7   : > { %21131 = vst [vmem:[#allocation85_spill] sm:$0xff] %v16916_v63  ;;  %13856 = vmatmul.mubr.msk.f32.gmra.mxu0 %vm2429_vm3, %v2356_v34  ;;  %v5103_v34 = vsel %vm878_vm2, %v16908_v40, -inf }
 0x3a8   : > { %5098 = vmax.xlane.f32.xlu1 %v5097_v5  ;;  %v16920_v8 = vpop.f32.mrf.mxu0 }
 0x3a9   : > { %21132 = vst [vmem:[#allocation86_spill] sm:$0xff] %v16920_v8  ;;  %v2382_v32 = vpop.trf.xlu0 }
 0x3aa   : > { %v16924_v3 = vpop.f32.mrf.mxu0  ;;  %v16926_v49 = vpop.f32.mrf.mxu1  ;;  %13861 = vmatmul.mubr.msk.f32.vlgmr.msra.gmra.mxu1 %vm2429_vm3, %v2382_v32 }
 0x3ab   : > { %21133 = vst [vmem:[#allocation87_spill] sm:$0xff] %v16924_v3  ;;  %21134 = vst [vmem:[#allocation88_spill] sm:$0xff] %v16926_v49  ;;  %v5157_v47 = vsel %vm878_vm2, %v16926_v49, -inf  ;;  %v2413_v45 = vpop.trf.xlu1 }
 0x3ac   : > { %5095 = vmax.xlane.f32.xlu1 %v5094_v27  ;;  %v16931_v61 = vpop.f32.mrf.mxu0  ;;  %5158 = vmax.xlane.f32.xlu0 %v5157_v47  ;;  %v16933_v5 = vpop.f32.mrf.mxu1  ;;  %v5100_v47 = vsel %vm878_vm2, %v16912_v21, -inf }
 0x3ad   : > { %21135 = vst [vmem:[#allocation89_spill] sm:$0xff] %v16931_v61  ;;  %21136 = vst [vmem:[#allocation90_spill] sm:$0xff] %v16933_v5  ;;  %v2383_v6 = vpop.trf.xlu0  ;;  %13874 = vmatprep.mubr.msk.f32.mxu0 %vm2429_vm3, %v2413_v45  ;;  %v5154_v32 = vsel %vm878_vm2, %v16933_v5, -inf  ;;  %v5112_v5 = vsel %vm878_vm2, %v16931_v61, -inf }
 0x3ae   : > { %v16938_v54 = vpop.f32.mrf.mxu0  ;;  %13863 = vmatprep.mubr.msk.f32.mxu1 %vm2429_vm3, %v2383_v6 }
 0x3af   : > { %21137 = vst [vmem:[#allocation91_spill] sm:$0xff] %v16938_v54  ;;  %v2414_v19 = vpop.trf.xlu1 }
 0x3b0   : > { %5104 = vmax.xlane.f32.xlu1 %v5103_v34  ;;  %v16943_v27 = vpop.f32.mrf.mxu0  ;;  %5155 = vmax.xlane.f32.xlu0 %v5154_v32 }
 0x3b1   : > { %21138 = vst [vmem:[#allocation92_spill] sm:$0xff] %v16943_v27  ;;  %v2384_v18 = vpop.trf.xlu0  ;;  %13875 = vmatmul.mubr.msk.f32.vlgmr.msra.gmra.mxu0 %vm2429_vm3, %v2414_v19 }
 0x3b2   : > { %v16948_v48 = vpop.f32.mrf.mxu0  ;;  %v16950_v45 = vpop.f32.mrf.mxu1  ;;  %13864 = vmatmul.mubr.msk.f32.gmra.mxu1 %vm2429_vm3, %v2384_v18 }
 0x3b3   : > { %21139 = vst [vmem:[#allocation93_spill] sm:$0xff] %v16948_v48  ;;  %21140 = vst [vmem:[#allocation94_spill] sm:$0xff] %v16950_v45  ;;  %v5163_v6 = vsel %vm878_vm2, %v16950_v45, -inf  ;;  %v2415_v9 = vpop.trf.xlu1 }
 0x3b4   : > { %5101 = vmax.xlane.f32.xlu1 %v5100_v47  ;;  %v16955_v34 = vpop.f32.mrf.mxu0  ;;  %5164 = vmax.xlane.f32.xlu0 %v5163_v6  ;;  %v16957_v32 = vpop.f32.mrf.mxu1 }
 0x3b5   : > { %21141 = vst [vmem:[#allocation95_spill] sm:$0xff] %v16955_v34  ;;  %21142 = vst [vmem:[#allocation96_spill] sm:$0xff] %v16957_v32  ;;  %v2385_v23 = vpop.trf.xlu0  ;;  %13877 = vmatprep.mubr.msk.f32.mxu0 %vm2429_vm3, %v2415_v9  ;;  %v5160_v62 = vsel %vm878_vm2, %v16957_v32, -inf }
 0x3b6   : > { %v16960_v19 = vpop.f32.mrf.mxu0  ;;  %13866 = vmatprep.mubr.msk.f32.mxu1 %vm2429_vm3, %v2385_v23 }
 0x3b7   : > { %21143 = vst [vmem:[#allocation97_spill] sm:$0xff] %v16960_v19  ;;  %v5133_v18 = vsel %vm878_vm2, %v16960_v19, -inf  ;;  %v2416_v37 = vpop.trf.xlu1 }
 0x3b8   : > { %5134 = vmax.xlane.f32.xlu1 %v5133_v18  ;;  %5161 = vmax.xlane.f32.xlu0 %v5160_v62  ;;  %v16967_v47 = vpop.f32.mrf.mxu0 }
 0x3b9   : > { %21144 = vst [vmem:[#allocation98_spill] sm:$0xff] %v16967_v47  ;;  %v5130_v6 = vsel %vm878_vm2, %v16967_v47, -inf  ;;  %v2386_v60 = vpop.trf.xlu0  ;;  %13878 = vmatmul.mubr.msk.f32.gmra.mxu0 %vm2429_vm3, %v2416_v37  ;;  %v5061_v37 = vsel %vm878_vm2, %v16852_v38, -inf }
 0x3ba   : > { %v16972_v9 = vpop.f32.mrf.mxu1  ;;  %v16974_v23 = vpop.f32.mrf.mxu0  ;;  %13867 = vmatmul.mubr.msk.f32.gmra.mxu1 %vm2429_vm3, %v2386_v60 }
 0x3bb   : > { %21145 = vst [vmem:[#allocation99_spill] sm:$0xff] %v16972_v9  ;;  %21146 = vst [vmem:[#allocation100_spill] sm:$0xff] %v16974_v23  ;;  %v5169_v53 = vsel %vm878_vm2, %v16972_v9, -inf  ;;  %v2417_v57 = vpop.trf.xlu1  ;;  %v5139_v62 = vsel %vm878_vm2, %v16974_v23, -inf }
 0x3bc   : > { %5131 = vmax.xlane.f32.xlu1 %v5130_v6  ;;  %5170 = vmax.xlane.f32.xlu0 %v5169_v53  ;;  %v16982_v43 = vpop.f32.mrf.mxu0  ;;  %v16987_v22 = vpop.f32.mrf.mxu1 }
 0x3bd   : > { %v2387_v18 = vpop.trf.xlu0  ;;  %13880 = vmatprep.mubr.msk.f32.mxu0 %vm2429_vm3, %v2417_v57  ;;  %21147 = vst [vmem:[#allocation101_spill] sm:$0xff] %v16982_v43  ;;  %21148 = vst [vmem:[#allocation102_spill] sm:$0xff] %v16987_v22  ;;  %v5136_v53 = vsel %vm878_vm2, %v16982_v43, -inf  ;;  %v5166_v57 = vsel %vm878_vm2, %v16987_v22, -inf }
 0x3be   : > { %13869 = vmatprep.mubr.msk.f32.mxu1 %vm2429_vm3, %v2387_v18  ;;  %v16992_v41 = vpop.f32.mrf.mxu0 }
 0x3bf   : > { %v2418_v60 = vpop.trf.xlu1  ;;  %21149 = vst [vmem:[#allocation103_spill] sm:$0xff] %v16992_v41 }
 0x3c0   : > { %5140 = vmax.xlane.f32.xlu1 %v5139_v62  ;;  %5062 = vmax.xlane.f32.xlu0 %v5061_v37  ;;  %v5145_v62 = vsel %vm878_vm2, %v16992_v41, -inf  ;;  %v17000_v37 = vpop.f32.mrf.mxu0 }
 0x3c1   : > { %v2388_v6 = vpop.trf.xlu0  ;;  %13881 = vmatmul.mubr.msk.f32.gmra.mxu0 %vm2429_vm3, %v2418_v60  ;;  %21150 = vst [vmem:[#allocation104_spill] sm:$0xff] %v17000_v37  ;;  %v5058_v60 = vsel %vm878_vm2, %v16858_v56, -inf  ;;  %v5142_v0 = vsel %vm878_vm2, %v17000_v37, -inf }
 0x3c2   : > { %13870 = vmatmul.mubr.msk.f32.gmra.mxu1 %vm2429_vm3, %v2388_v6  ;;  %v17004_v51 = vpop.f32.mrf.mxu1 }
 0x3c3   : > { %v2419_v18 = vpop.trf.xlu1  ;;  %21151 = vst [vmem:[#allocation105_spill] sm:$0xff] %v17004_v51 }
 0x3c4   : > { %5137 = vmax.xlane.f32.xlu1 %v5136_v53  ;;  %5167 = vmax.xlane.f32.xlu0 %v5166_v57  ;;  %v5175_v53 = vsel %vm878_vm2, %v17004_v51, -inf  ;;  %v17011_v57 = vpop.f32.mrf.mxu0  ;;  %v17019_v58 = vpop.f32.mrf.mxu1 }
 0x3c5   : > { %13883 = vmatprep.mubr.msk.f32.mxu0 %vm2429_vm3, %v2419_v18  ;;  %21152 = vst [vmem:[#allocation106_spill] sm:$0xff] %v17011_v57  ;;  %v5151_v18 = vsel %vm878_vm2, %v17011_v57, -inf  ;;  %21154 = vst [vmem:[#allocation108_spill] sm:$0xff] %v17019_v58 }
 0x3c7   : > { %v2420_v6 = vpop.trf.xlu1 }
 0x3c8   : > { %5146 = vmax.xlane.f32.xlu1 %v5145_v62  ;;  %5059 = vmax.xlane.f32.xlu0 %v5058_v60  ;;  %v17015_v62 = vpop.f32.mrf.mxu0  ;;  %v5067_v60 = vsel %vm878_vm2, %v16860_v35, -inf }
 0x3c9   : > { %13884 = vmatmul.mubr.msk.f32.gmra.mxu0 %vm2429_vm3, %v2420_v6  ;;  %21153 = vst [vmem:[#allocation107_spill] sm:$0xff] %v17015_v62  ;;  %v5148_v17 = vsel %vm878_vm2, %v17015_v62, -inf }
 0x3ca   : > { %v17023_v6 = vpop.f32.mrf.mxu0 }
 0x3cb   : > { %21155 = vst [vmem:[#allocation109_spill] sm:$0xff] %v17023_v6 }
 0x3cc   : > { %5143 = vmax.xlane.f32.xlu1 %v5142_v0  ;;  %5176 = vmax.xlane.f32.xlu0 %v5175_v53  ;;  %v5172_v0 = vsel %vm878_vm2, %v17019_v58, -inf  ;;  %v5181_v53 = vsel %vm878_vm2, %v17023_v6, -inf  ;;  %v17029_v33 = vpop.f32.mrf.mxu0 }
 0x3cd   : > { %21156 = vst [vmem:[#allocation110_spill] sm:$0xff] %v17029_v33  ;;  %v5178_v62 = vsel %vm878_vm2, %v17029_v33, -inf }
 0x3d0   : > { %5152 = vmax.xlane.f32.xlu1 %v5151_v18  ;;  %5068 = vmax.xlane.f32.xlu0 %v5067_v60  ;;  %v5064_v18 = vsel %vm878_vm2, %v16865_v11, -inf  ;;  %v17033_v60 = vpop.f32.mrf.mxu1  ;;  %v5109_v11 = vsel %vm878_vm2, %v16916_v63, -inf }
 0x3d1   : > { %21157 = vst [vmem:[#allocation111_spill] sm:$0xff] %v17033_v60  ;;  %v5205_v57 = vsel %vm878_vm2, %v17033_v60, -inf }
 0x3d4   : > { %5149 = vmax.xlane.f32.xlu1 %v5148_v17  ;;  %5173 = vmax.xlane.f32.xlu0 %v5172_v0  ;;  %v17039_v17 = vpop.f32.mrf.mxu0 }
 0x3d5   : > { %21158 = vst [vmem:[#allocation112_spill] sm:$0xff] %v17039_v17  ;;  %v5187_v0 = vsel %vm878_vm2, %v17039_v17, -inf }
 0x3d6   : > { %v17043_v6 = vpop.f32.mrf.mxu0 }
 0x3d7   : > { %21159 = vst [vmem:[#allocation113_spill] sm:$0xff] %v17043_v6  ;;  %v5184_v33 = vsel %vm878_vm2, %v17043_v6, -inf }
 0x3d8   : > { %5182 = vmax.xlane.f32.xlu1 %v5181_v53  ;;  %5065 = vmax.xlane.f32.xlu0 %v5064_v18  ;;  %v5073_v53 = vsel %vm878_vm2, %v16868_v14, -inf  ;;  %v17047_v18 = vpop.f32.mrf.mxu1  ;;  %v17051_v60 = vpop.f32.mrf.mxu0 }
 0x3d9   : > { %21160 = vst [vmem:[#allocation114_spill] sm:$0xff] %v17047_v18  ;;  %21161 = vst [vmem:[#allocation115_spill] sm:$0xff] %v17051_v60 }
 0x3da   : > { %v17057_v17 = vpop.f32.mrf.mxu0 }
 0x3db   : > { %21162 = vst [vmem:[#allocation116_spill] sm:$0xff] %v17057_v17  ;;  %v5190_v6 = vsel %vm878_vm2, %v17057_v17, -inf }
 0x3dc   : > { %5179 = vmax.xlane.f32.xlu1 %v5178_v62  ;;  %5206 = vmax.xlane.f32.xlu0 %v5205_v57  ;;  %v5202_v57 = vsel %vm878_vm2, %v17047_v18, -inf  ;;  %v5193_v62 = vsel %vm878_vm2, %v17051_v60, -inf }
 0x3e0   : > { %5188 = vmax.xlane.f32.xlu1 %v5187_v0  ;;  %5074 = vmax.xlane.f32.xlu0 %v5073_v53  ;;  %v5070_v0 = vsel %vm878_vm2, %v16872_v1, -inf  ;;  %v17061_v53 = vpop.f32.mrf.mxu1  ;;  %v17143_v52 = vpop.xlane.xlu0 %5014 }
 0x3e1   : > { %21163 = vst [vmem:[#allocation117_spill] sm:$0xff] %v17061_v53  ;;  %v5211_v18 = vsel %vm878_vm2, %v17061_v53, -inf }
 0x3e4   : > { %5185 = vmax.xlane.f32.xlu1 %v5184_v33  ;;  %5203 = vmax.xlane.f32.xlu0 %v5202_v57  ;;  %v17067_v33 = vpop.f32.mrf.mxu0 }
 0x3e5   : > { %21164 = vst [vmem:[#allocation118_spill] sm:$0xff] %v17067_v33  ;;  %v5199_v57 = vsel %vm878_vm2, %v17067_v33, -inf  ;;  %v5076_v33 = vsel %vm878_vm2, %v16880_v12, -inf }
 0x3e6   : > { %v17071_v60 = vpop.f32.mrf.mxu0 }
 0x3e7   : > { %21165 = vst [vmem:[#allocation119_spill] sm:$0xff] %v17071_v60  ;;  %v5196_v37 = vsel %vm878_vm2, %v17071_v60, -inf }
 0x3e8   : > { %5194 = vmax.xlane.f32.xlu1 %v5193_v62  ;;  %5071 = vmax.xlane.f32.xlu0 %v5070_v0  ;;  %v5079_v62 = vsel %vm878_vm2, %v16876_v42, -inf  ;;  %v17075_v0 = vpop.f32.mrf.mxu1  ;;  %v17081_v41 = vpop.f32.mrf.mxu0 }
 0x3e9   : > { %21166 = vst [vmem:[#allocation120_spill] sm:$0xff] %v17075_v0  ;;  %21167 = vst [vmem:[#allocation121_spill] sm:$0xff] %v17081_v41 }
 0x3ea   : > { %v17093_v60 = vpop.f32.mrf.mxu1 }
 0x3eb   : > { %21169 = vst [vmem:[#allocation123_spill] sm:$0xff] %v17093_v60 }
 0x3ec   : > { %5191 = vmax.xlane.f32.xlu1 %v5190_v6  ;;  %5212 = vmax.xlane.f32.xlu0 %v5211_v18  ;;  %v5208_v6 = vsel %vm878_vm2, %v17075_v0, -inf }
 0x3ef   : > { %v17077_v17 = vpop.xlane.xlu1 %5029 }
 0x3f0   : > { %5200 = vmax.xlane.f32.xlu1 %v5199_v57  ;;  %5080 = vmax.xlane.f32.xlu0 %v5079_v62  ;;  %v5229_v57 = vsel %vm878_vm2, %v17081_v41, -inf  ;;  %v17089_v62 = vpop.f32.mrf.mxu0  ;;  %v17103_v41 = vpop.f32.mrf.mxu1 }
 0x3f1   : > { %21168 = vst [vmem:[#allocation122_spill] sm:$0xff] %v17089_v62  ;;  %21171 = vst [vmem:[#allocation125_spill] sm:$0xff] %v17103_v41  ;;  %v5214_v12 = vsel %vm878_vm2, %v17103_v41, -inf }
 0x3f2   : > { %v17101_v23 = vpop.f32.mrf.mxu0 }
 0x3f3   : > { %21170 = vst [vmem:[#allocation124_spill] sm:$0xff] %v17101_v23 }
 0x3f4   : > { %5197 = vmax.xlane.f32.xlu1 %v5196_v37  ;;  %5209 = vmax.xlane.f32.xlu0 %v5208_v6  ;;  %v5226_v37 = vsel %vm878_vm2, %v17089_v62, -inf  ;;  %v5217_v6 = vsel %vm878_vm2, %v17093_v60, -inf  ;;  %v17113_v62 = vpop.f32.mrf.mxu1 }
 0x3f5   : > { %v17085_v18 = vpop.xlane.xlu1 %5038  ;;  %21173 = vst [vmem:[#allocation127_spill] sm:$0xff] %v17113_v62 }
 0x3f8   : > { %5230 = vmax.xlane.f32.xlu1 %v5229_v57  ;;  %5077 = vmax.xlane.f32.xlu0 %v5076_v33  ;;  %v5235_v57 = vsel %vm878_vm2, %v17101_v23, -inf  ;;  %v17107_v33 = vpop.f32.mrf.mxu0  ;;  %v17121_v23 = vpop.f32.mrf.mxu1 }
 0x3f9   : > { %v17095_v43 = vpop.xlane.xlu1 %5035  ;;  %21172 = vst [vmem:[#allocation126_spill] sm:$0xff] %v17107_v33  ;;  %21175 = vst [vmem:[#allocation129_spill] sm:$0xff] %v17121_v23  ;;  %v5220_v41 = vsel %vm878_vm2, %v17121_v23, -inf }
 0x3fa   : > { %v17119_v60 = vpop.f32.mrf.mxu0 }
 0x3fb   : > { %21174 = vst [vmem:[#allocation128_spill] sm:$0xff] %v17119_v60 }
 0x3fc   : > { %5227 = vmax.xlane.f32.xlu1 %v5226_v37  ;;  %5218 = vmax.xlane.f32.xlu0 %v5217_v6  ;;  %v5232_v37 = vsel %vm878_vm2, %v17107_v33, -inf  ;;  %v5223_v6 = vsel %vm878_vm2, %v17113_v62, -inf  ;;  %v17131_v33 = vpop.f32.mrf.mxu1 }
 0x3fd   : > { %v17109_v47 = vpop.xlane.xlu1 %5044  ;;  %21177 = vst [vmem:[#allocation131_spill] sm:$0xff] %v17131_v33 }
 0x400   : > { %5236 = vmax.xlane.f32.xlu1 %v5235_v57  ;;  %5215 = vmax.xlane.f32.xlu0 %v5214_v12  ;;  %v5241_v57 = vsel %vm878_vm2, %v17119_v60, -inf  ;;  %v17127_v12 = vpop.f32.mrf.mxu0  ;;  %v17141_v60 = vpop.f32.mrf.mxu1 }
 0x401   : > { %v17123_v19 = vpop.xlane.xlu1 %5041  ;;  %21176 = vst [vmem:[#allocation130_spill] sm:$0xff] %v17127_v12  ;;  %21179 = vst [vmem:[#allocation133_spill] sm:$0xff] %v17141_v60 }
 0x402   : > { %v17137_v62 = vpop.f32.mrf.mxu0 }
 0x403   : > { %21178 = vst [vmem:[#allocation132_spill] sm:$0xff] %v17137_v62 }
 0x404   : > { %5233 = vmax.xlane.f32.xlu1 %v5232_v37  ;;  %5224 = vmax.xlane.f32.xlu0 %v5223_v6  ;;  %v5238_v37 = vsel %vm878_vm2, %v17127_v12, -inf  ;;  %v5253_v6 = vsel %vm878_vm2, %v17131_v33, -inf  ;;  %v5250_v12 = vsel %vm878_vm2, %v17141_v60, -inf  ;;  %v17151_v33 = vpop.f32.mrf.mxu1 }
 0x405   : > { %v17139_v0 = vpop.xlane.xlu1 %5050  ;;  %21181 = vst [vmem:[#allocation135_spill] sm:$0xff] %v17151_v33 }
 0x406   : > { %v17163_v53 = vpop.f32.mrf.mxu1 }
 0x407   : > { %21183 = vst [vmem:[#allocation137_spill] sm:$0xff] %v17163_v53 }
 0x408   : > { %5242 = vmax.xlane.f32.xlu1 %v5241_v57  ;;  %5221 = vmax.xlane.f32.xlu0 %v5220_v41  ;;  %v5247_v41 = vsel %vm878_vm2, %v17137_v62, -inf  ;;  %v17147_v57 = vpop.f32.mrf.mxu0  ;;  %v17161_v62 = vpop.xlane.xlu0 %5011 }
 0x409   : > { %21180 = vst [vmem:[#allocation134_spill] sm:$0xff] %v17147_v57  ;;  %v17153_v23 = vpop.xlane.xlu1 %5047 }
 0x40a   : > { %v17159_v42 = vpop.f32.mrf.mxu0 }
 0x40b   : > { %21182 = vst [vmem:[#allocation136_spill] sm:$0xff] %v17159_v42 }
 0x40c   : > { %5239 = vmax.xlane.f32.xlu1 %v5238_v37  ;;  %5254 = vmax.xlane.f32.xlu0 %v5253_v6  ;;  %v5244_v37 = vsel %vm878_vm2, %v17147_v57, -inf  ;;  %v5259_v6 = vsel %vm878_vm2, %v17151_v33, -inf  ;;  %v5256_v57 = vsel %vm878_vm2, %v17163_v53, -inf  ;;  %v17173_v33 = vpop.f32.mrf.mxu1  ;;  %v17175_v1 = vpop.xlane.xlu0 %5020 }
 0x40d   : > { %v17169_v60 = vpop.xlane.xlu1 %5056  ;;  %21185 = vst [vmem:[#allocation139_spill] sm:$0xff] %v17173_v33 }
 0x410   : > { %5248 = vmax.xlane.f32.xlu1 %v5247_v41  ;;  %5251 = vmax.xlane.f32.xlu0 %v5250_v12  ;;  %v5277_v12 = vsel %vm878_vm2, %v17159_v42, -inf  ;;  %v17167_v41 = vpop.f32.mrf.mxu0  ;;  %v17189_v53 = vpop.xlane.xlu0 %5017 }
 0x411   : > { %21184 = vst [vmem:[#allocation138_spill] sm:$0xff] %v17167_v41  ;;  %v17183_v14 = vpop.xlane.xlu1 %5053 }
 0x412   : > { %v17181_v42 = vpop.f32.mrf.mxu0 }
 0x413   : > { %21186 = vst [vmem:[#allocation140_spill] sm:$0xff] %v17181_v42 }
 0x414   : > { %5245 = vmax.xlane.f32.xlu1 %v5244_v37  ;;  %5260 = vmax.xlane.f32.xlu0 %v5259_v6  ;;  %v5274_v37 = vsel %vm878_vm2, %v17167_v41, -inf  ;;  %v5265_v6 = vsel %vm878_vm2, %v17173_v33, -inf  ;;  %v17193_v41 = vpop.f32.mrf.mxu1  ;;  %v17205_v35 = vpop.xlane.xlu0 %5026 }
 0x415   : > { %21188 = vst [vmem:[#allocation142_spill] sm:$0xff] %v17193_v41 }
 0x416   : > { %v17215_v51 = vpop.f32.mrf.mxu1 }
 0x417   : > { %21192 = vst [vmem:[#allocation146_spill] sm:$0xff] %v17215_v51  ;;  %v5271_v56 = vsel %vm878_vm2, %v17215_v51, -inf }
 0x418   : > { %5278 = vmax.xlane.f32.xlu1 %v5277_v12  ;;  %5257 = vmax.xlane.f32.xlu0 %v5256_v57  ;;  %v5283_v12 = vsel %vm878_vm2, %v17181_v42, -inf  ;;  %v17187_v57 = vpop.f32.mrf.mxu0  ;;  %v5262_v42 = vsel %vm878_vm2, %v17193_v41, -inf  ;;  %v17227_v22 = vpop.xlane.xlu0 %5023 }
 0x419   : > { %21187 = vst [vmem:[#allocation141_spill] sm:$0xff] %v17187_v57  ;;  %v17239_v51 = vpop.f32.mrf.mxu1 }
 0x41a   : > { %21197 = vst [vmem:[#allocation151_spill] sm:$0xff] %v17239_v51 }
 0x41c   : > { %5275 = vmax.xlane.f32.xlu1 %v5274_v37  ;;  %5266 = vmax.xlane.f32.xlu0 %v5265_v6  ;;  %v5280_v37 = vsel %vm878_vm2, %v17187_v57, -inf  ;;  %v17199_v6 = vpop.f32.mrf.mxu0  ;;  %v5106_v57 = vsel %vm878_vm2, %v16920_v8, -inf }
 0x41d   : > { %21189 = vst [vmem:[#allocation143_spill] sm:$0xff] %v17199_v6 }
 0x41e   : > { %v17203_v58 = vpop.f32.mrf.mxu0 }
 0x41f   : > { %21190 = vst [vmem:[#allocation144_spill] sm:$0xff] %v17203_v58  ;;  %v5286_v41 = vsel %vm878_vm2, %v17203_v58, -inf  ;;  %v5115_v58 = vsel %vm878_vm2, %v16924_v3, -inf }
 0x420   : > { %5284 = vmax.xlane.f32.xlu1 %v5283_v12  ;;  %5110 = vmax.xlane.f32.xlu0 %v5109_v11  ;;  %v5289_v11 = vsel %vm878_vm2, %v17199_v6, -inf  ;;  %v17211_v63 = vpop.f32.mrf.mxu0 }
 0x421   : > { %v17195_v33 = vpop.xlane.xlu1 %5086  ;;  %21191 = vst [vmem:[#allocation145_spill] sm:$0xff] %v17211_v63  ;;  %v5295_v8 = vsel %vm878_vm2, %v17211_v63, -inf  ;;  %v5268_v63 = vsel %vm878_vm2, %v17239_v51, -inf }
 0x424   : > { %5281 = vmax.xlane.f32.xlu1 %v5280_v37  ;;  %5263 = vmax.xlane.f32.xlu0 %v5262_v42  ;;  %v17217_v37 = vpop.f32.mrf.mxu0 }
 0x425   : > { %v17207_v12 = vpop.xlane.xlu1 %5083  ;;  %21193 = vst [vmem:[#allocation147_spill] sm:$0xff] %v17217_v37  ;;  %v5292_v32 = vsel %vm878_vm2, %v17217_v37, -inf  ;;  %v17263_v37 = vpop.f32.mrf.mxu1 }
 0x426   : > { %v17225_v6 = vpop.f32.mrf.mxu0  ;;  %21201 = vst [vmem:[#allocation155_spill] sm:$0xff] %v17263_v37  ;;  %v5301_v51 = vsel %vm878_vm2, %v17263_v37, -inf }
 0x427   : > { %21194 = vst [vmem:[#allocation148_spill] sm:$0xff] %v17225_v6  ;;  %v5325_v3 = vsel %vm878_vm2, %v17225_v6, -inf }
 0x428   : > { %5290 = vmax.xlane.f32.xlu1 %v5289_v11  ;;  %5107 = vmax.xlane.f32.xlu0 %v5106_v57  ;;  %v17229_v11 = vpop.f32.mrf.mxu0 }
 0x429   : > { %v17219_v42 = vpop.xlane.xlu1 %5092  ;;  %21195 = vst [vmem:[#allocation149_spill] sm:$0xff] %v17229_v11 }
 0x42a   : > { %v17235_v38 = vpop.f32.mrf.mxu0 }
 0x42b   : > { %21196 = vst [vmem:[#allocation150_spill] sm:$0xff] %v17235_v38 }
 0x42c   : > { %5287 = vmax.xlane.f32.xlu1 %v5286_v41  ;;  %5272 = vmax.xlane.f32.xlu0 %v5271_v56  ;;  %v17241_v9 = vpop.f32.mrf.mxu0  ;;  %v17243_v41 = vpop.xlane.xlu0 %5032 }
 0x42d   : > { %v17231_v57 = vpop.xlane.xlu1 %5089  ;;  %21198 = vst [vmem:[#allocation152_spill] sm:$0xff] %v17241_v9 }
 0x42e   : > { %v17249_v45 = vpop.f32.mrf.mxu0 }
 0x42f   : > { %21199 = vst [vmem:[#allocation153_spill] sm:$0xff] %v17249_v45 }
 0x430   : > { %5296 = vmax.xlane.f32.xlu1 %v5295_v8  ;;  %5116 = vmax.xlane.f32.xlu0 %v5115_v58  ;;  %v17259_v21 = vpop.f32.mrf.mxu0 }
 0x431   : > { %v17245_v56 = vpop.xlane.xlu1 %5098  ;;  %21200 = vst [vmem:[#allocation154_spill] sm:$0xff] %v17259_v21 }
 0x432   : > { %v17273_v6 = vpop.f32.mrf.mxu0 }
 0x433   : > { %21203 = vst [vmem:[#allocation157_spill] sm:$0xff] %v17273_v6 }
 0x434   : > { %5293 = vmax.xlane.f32.xlu1 %v5292_v32  ;;  %5269 = vmax.xlane.f32.xlu0 %v5268_v63  ;;  %v5322_v63 = vsel %vm878_vm2, %v17229_v11, -inf  ;;  %v17281_v61 = vpop.f32.mrf.mxu0  ;;  %v17285_v11 = vpop.f32.mrf.mxu1 }
 0x435   : > { %v17253_v8 = vpop.xlane.xlu1 %5095  ;;  %v17255_v58 = vpop.xlane.xlu0 %5158  ;;  %21206 = vst [vmem:[#allocation160_spill] sm:$0xff] %v17281_v61  ;;  %21207 = vst [vmem:[#allocation161_spill] sm:$0xff] %v17285_v11 }
 0x438   : > { %5326 = vmax.xlane.f32.xlu1 %v5325_v3  ;;  %5113 = vmax.xlane.f32.xlu0 %v5112_v5  ;;  %v5331_v5 = vsel %vm878_vm2, %v17235_v38, -inf  ;;  %v5298_v38 = vsel %vm878_vm2, %v17285_v11, -inf }
 0x439   : > { %v17265_v40 = vpop.xlane.xlu1 %5104  ;;  %v17267_v32 = vpop.xlane.xlu0 %5155 }
 0x43a   : > { %21202 = vst [vmem:[#allocation156_spill] sm:$0xff] %v17267_v32  ;;  %v5121_v32 = vsel %vm878_vm2, %v16938_v54, -inf }
 0x43c   : > { %5323 = vmax.xlane.f32.xlu1 %v5322_v63  ;;  %5302 = vmax.xlane.f32.xlu0 %v5301_v51  ;;  %v5328_v51 = vsel %vm878_vm2, %v17241_v9, -inf }
 0x43d   : > { %v17275_v49 = vpop.xlane.xlu1 %5101  ;;  %v17277_v3 = vpop.xlane.xlu0 %5164 }
 0x43e   : > { %21204 = vst [vmem:[#allocation158_spill] sm:$0xff] %v17275_v49  ;;  %21205 = vst [vmem:[#allocation159_spill] sm:$0xff] %v17277_v3  ;;  %v17293_v3 = vpop.f32.mrf.mxu0 }
 0x43f   : > { %21209 = vst [vmem:[#allocation163_spill] sm:$0xff] %v17293_v3 }
 0x440   : > { %5332 = vmax.xlane.f32.xlu1 %v5331_v5  ;;  %5122 = vmax.xlane.f32.xlu0 %v5121_v32  ;;  %v5337_v32 = vsel %vm878_vm2, %v17249_v45, -inf  ;;  %v17303_v54 = vpop.f32.mrf.mxu0  ;;  %v5499_v45 = vsub.f32 %v16796_v44, %v17085_v18  ;;  %v5127_v44 = vsel %vm878_vm2, %v16948_v48, -inf }
 0x441   : > { %v17287_v37 = vpop.xlane.xlu1 %5134  ;;  %v17289_v63 = vpop.xlane.xlu0 %5161  ;;  %21211 = vst [vmem:[#allocation165_spill] sm:$0xff] %v17303_v54 }
 0x442   : > { %21208 = vst [vmem:[#allocation162_spill] sm:$0xff] %v17287_v37  ;;  %v5118_v37 = vsel %vm878_vm2, %v16943_v27, -inf  ;;  %v17315_v11 = vpop.f32.mrf.mxu0  ;;  %v5343_v27 = vsel %vm878_vm2, %v17273_v6, -inf  ;;  %v5668_v54 = vmul.f32 1.442695, %v5499_v45  ;;  %v5498_v45 = vsub.f32 %v16808_v55, %v17095_v43 }
 0x443   : > { %21214 = vst [vmem:[#allocation168_spill] sm:$0xff] %v17315_v11 }
 0x444   : > { %5329 = vmax.xlane.f32.xlu1 %v5328_v51  ;;  %5299 = vmax.xlane.f32.xlu0 %v5298_v38  ;;  %v5334_v38 = vsel %vm878_vm2, %v17259_v21, -inf  ;;  %v17313_v51 = vpop.f32.mrf.mxu1  ;;  %14555 = vpow2.f32 %v5668_v54  ;;  %v5501_v54 = vsub.f32 %v16820_v26, %v17109_v47  ;;  %v5666_v55 = vmul.f32 1.442695, %v5498_v45 }
 0x445   : > { %v17297_v49 = vpop.xlane.xlu1 %5131  ;;  %v17299_v5 = vpop.xlane.xlu0 %5170  ;;  %21213 = vst [vmem:[#allocation167_spill] sm:$0xff] %v17313_v51  ;;  %v5500_v47 = vsub.f32 %v16826_v59, %v17123_v19 }
 0x446   : > { %21210 = vst [vmem:[#allocation164_spill] sm:$0xff] %v17297_v49  ;;  %v5307_v49 = vsel %vm878_vm2, %v17313_v51, -inf  ;;  %v17327_v21 = vpop.f32.mrf.mxu1  ;;  %v5340_v51 = vsel %vm878_vm2, %v17281_v61, -inf  ;;  %14557 = vpow2.f32 %v5666_v55  ;;  %v5503_v55 = vsub.f32 %v16832_v29, %v17139_v0 }
 0x447   : > { %21216 = vst [vmem:[#allocation170_spill] sm:$0xff] %v17327_v21  ;;  %v5304_v48 = vsel %vm878_vm2, %v17327_v21, -inf  ;;  %v5502_v0 = vsub.f32 %v16838_v15, %v17153_v23 }
 0x448   : > { %5338 = vmax.xlane.f32.xlu1 %v5337_v32  ;;  %5119 = vmax.xlane.f32.xlu0 %v5118_v37  ;;  %v17333_v18 = vpop.f32.mrf.mxu1 }
 0x449   : > { %v17307_v9 = vpop.xlane.xlu1 %5140  ;;  %v17309_v3 = vpop.xlane.xlu0 %5062  ;;  %21218 = vst [vmem:[#allocation172_spill] sm:$0xff] %v17333_v18  ;;  %v5674_v23 = vmul.f32 1.442695, %v5502_v0  ;;  %v5504_v0 = vsub.f32 %v16850_v31, %v17183_v14  ;;  %v5515_v14 = vsub.f32 %v16882_v10, %v17195_v33  ;;  %v5495_v10 = vsub.f32 %v16774_v25, %v17205_v35 }
 0x44a   : > { %21212 = vst [vmem:[#allocation166_spill] sm:$0xff] %v17307_v9  ;;  %v17329_v9 = vpop.f32.mrf.mxu0  ;;  %v5494_v35 = vsub.f32 %v16780_v2, %v17227_v22 }
 0x44b   : > { %21217 = vst [vmem:[#allocation171_spill] sm:$0xff] %v17329_v9  ;;  %v5678_v31 = vmul.f32 1.442695, %v5504_v0  ;;  %v5514_v0 = vsub.f32 %v16888_v46, %v17207_v12  ;;  %v5660_v25 = vmul.f32 1.442695, %v5495_v10  ;;  %v5497_v10 = vsub.f32 %v16782_v50, %v17243_v41 }
 0x44c   : > { %5335 = vmax.xlane.f32.xlu1 %v5334_v38  ;;  %5308 = vmax.xlane.f32.xlu0 %v5307_v49  ;;  %v17341_v6 = vpop.f32.mrf.mxu0  ;;  %v5658_v2 = vmul.f32 1.442695, %v5494_v35  ;;  %v5496_v41 = vsub.f32 %v16788_v36, %v17077_v17 }
 0x44d   : > { %v17321_v37 = vpop.xlane.xlu1 %5137  ;;  %v17323_v32 = vpop.xlane.xlu0 %5167  ;;  %21220 = vst [vmem:[#allocation174_spill] sm:$0xff] %v17341_v6  ;;  %v5385_v61 = vsel %vm878_vm2, %v17341_v6, -inf  ;;  %v5698_v12 = vmul.f32 1.442695, %v5514_v0  ;;  %v5516_v0 = vsub.f32 %v16896_v20, %v17231_v57  ;;  %v5664_v35 = vmul.f32 1.442695, %v5497_v10 }
 0x44e   : > { %21215 = vst [vmem:[#allocation169_spill] sm:$0xff] %v17321_v37  ;;  %v17357_v37 = vpop.f32.mrf.mxu0  ;;  %v5518_v10 = vsub.f32 %v16904_v7, %v17253_v8 }
 0x44f   : > { %21223 = vst [vmem:[#allocation177_spill] sm:$0xff] %v17357_v37  ;;  %v5382_v6 = vsel %vm878_vm2, %v17357_v37, -inf  ;;  %v5670_v37 = vmul.f32 1.442695, %v5500_v47  ;;  %v5702_v57 = vmul.f32 1.442695, %v5516_v0 }
 0x450   : > { %5344 = vmax.xlane.f32.xlu1 %v5343_v27  ;;  %5128 = vmax.xlane.f32.xlu0 %v5127_v44  ;;  %v17347_v27 = vpop.f32.mrf.mxu1  ;;  %v17369_v9 = vpop.f32.mrf.mxu0  ;;  %v21244_v0 = vld [vmem:[#allocation88_spill] sm:$0xff]  ;;  %v5706_v8 = vmul.f32 1.442695, %v5518_v10 }
 0x451   : > { %v17335_v49 = vpop.xlane.xlu1 %5146  ;;  %v17337_v38 = vpop.xlane.xlu0 %5059  ;;  %21221 = vst [vmem:[#allocation175_spill] sm:$0xff] %v17347_v27  ;;  %21225 = vst [vmem:[#allocation179_spill] sm:$0xff] %v17369_v9  ;;  %v5310_v59 = vsel %vm878_vm2, %v17347_v27, -inf }
 0x452   : > { %21219 = vst [vmem:[#allocation173_spill] sm:$0xff] %v17335_v49  ;;  %v17359_v43 = vpop.f32.mrf.mxu1  ;;  %v17389_v19 = vpop.eup %14555 }
 0x453   : > { %21224 = vst [vmem:[#allocation178_spill] sm:$0xff] %v17359_v43  ;;  %21228 = vst [vmem:[#allocation182_spill] sm:$0xff] %v17389_v19  ;;  %v17401_v29 = vpop.f32.mrf.mxu0  ;;  %v5997_v47 = vsel %vm878_vm2, %v17389_v19, 0.0 }
 0x454   : > { %5341 = vmax.xlane.f32.xlu1 %v5340_v51  ;;  %5305 = vmax.xlane.f32.xlu0 %v5304_v48  ;;  %v5124_v48 = vsel %vm878_vm2, %v16955_v34, -inf  ;;  %v17371_v26 = vpop.f32.mrf.mxu1  ;;  %21231 = vst [vmem:[#allocation185_spill] sm:$0xff] %v17401_v29 }
 0x455   : > { %v17349_v44 = vpop.xlane.xlu1 %5143  ;;  %v17351_v49 = vpop.xlane.xlu0 %5176  ;;  %21226 = vst [vmem:[#allocation180_spill] sm:$0xff] %v17371_v26 }
 0x456   : > { %21222 = vst [vmem:[#allocation176_spill] sm:$0xff] %v17349_v44  ;;  %v5672_v44 = vmul.f32 1.442695, %v5501_v54  ;;  %v17377_v45 = vpop.f32.mrf.mxu1  ;;  %v5391_v54 = vsel %vm878_vm2, %v17369_v9, -inf  ;;  %v5676_v9 = vmul.f32 1.442695, %v5503_v55 }
 0x457   : > { %21227 = vst [vmem:[#allocation181_spill] sm:$0xff] %v17377_v45 }
 0x458   : > { %5386 = vmax.xlane.f32.xlu1 %v5385_v61  ;;  %5125 = vmax.xlane.f32.xlu0 %v5124_v48  ;;  %v5313_v61 = vsel %vm878_vm2, %v17333_v18, -inf  ;;  %14559 = vpow2.f32 %v5672_v44  ;;  %v5491_v44 = vsub.f32 %v16755_v24, %v17143_v52  ;;  %v5388_v52 = vsel %vm878_vm2, %v17401_v29, -inf }
 0x459   : > { %v17363_v51 = vpop.xlane.xlu1 %5152  ;;  %v17365_v21 = vpop.xlane.xlu0 %5068  ;;  %14561 = vpow2.f32 %v5670_v37  ;;  %v5490_v37 = vsub.f32 %v16760_v13, %v17161_v62 }
 0x45a   : > { %v5652_v55 = vmul.f32 1.442695, %v5491_v44  ;;  %14563 = vpow2.f32 %v5676_v9 }
 0x45b   : > { %v5650_v9 = vmul.f32 1.442695, %v5490_v37 }
 0x45c   : > { %5383 = vmax.xlane.f32.xlu1 %v5382_v6  ;;  %5314 = vmax.xlane.f32.xlu0 %v5313_v61  ;;  %v17391_v6 = vpop.f32.mrf.mxu1  ;;  %14565 = vpow2.f32 %v5652_v55 }
 0x45d   : > { %v17379_v48 = vpop.xlane.xlu1 %5149  ;;  %v17381_v34 = vpop.xlane.xlu0 %5173  ;;  %21229 = vst [vmem:[#allocation183_spill] sm:$0xff] %v17391_v6  ;;  %14567 = vpow2.f32 %v5674_v23 }
 0x45e   : > { %v17399_v45 = vpop.f32.mrf.mxu1  ;;  %14569 = vpow2.f32 %v5650_v9 }
 0x45f   : > { %21230 = vst [vmem:[#allocation184_spill] sm:$0xff] %v17399_v45 }
 0x460   : > { %5392 = vmax.xlane.f32.xlu1 %v5391_v54  ;;  %5311 = vmax.xlane.f32.xlu0 %v5310_v59  ;;  %v5319_v54 = vsel %vm878_vm2, %v17359_v43, -inf  ;;  %v17417_v15 = vpop.f32.mrf.mxu1  ;;  %v5505_v43 = vsub.f32 %v16844_v30, %v17169_v60  ;;  %v5493_v30 = vsub.f32 %v16764_v4, %v17175_v1  ;;  %v5492_v1 = vsub.f32 %v16770_v28, %v17189_v53 }
 0x461   : > { %v17393_v61 = vpop.xlane.xlu1 %5182  ;;  %v17395_v18 = vpop.xlane.xlu0 %5065  ;;  %21232 = vst [vmem:[#allocation186_spill] sm:$0xff] %v17417_v15 }
 0x462   : > { %v17425_v27 = vpop.f32.mrf.mxu1  ;;  %v5680_v62 = vmul.f32 1.442695, %v5505_v43  ;;  %v5656_v4 = vmul.f32 1.442695, %v5493_v30  ;;  %v5654_v30 = vmul.f32 1.442695, %v5492_v1 }
 0x463   : > { %21234 = vst [vmem:[#allocation188_spill] sm:$0xff] %v17425_v27  ;;  %v5361_v13 = vsel %vm878_vm2, %v17425_v27, -inf }
 0x464   : > { %5998 = vadd.xlane.f32.xlu1 %v5997_v47  ;;  %5320 = vmax.xlane.f32.xlu0 %v5319_v54  ;;  %v5316_v47 = vsel %vm878_vm2, %v17371_v26, -inf  ;;  %v17423_v54 = vpop.eup %14557  ;;  %14571 = vpow2.f32 %v5680_v62  ;;  %v5700_v62 = vmul.f32 1.442695, %v5515_v14  ;;  %v21252_v26 = vld [vmem:[#allocation84_spill] sm:$0xff] }
 0x465   : > { %v17409_v59 = vpop.xlane.xlu1 %5179  ;;  %v17411_v24 = vpop.xlane.xlu0 %5206  ;;  %21233 = vst [vmem:[#allocation187_spill] sm:$0xff] %v17423_v54  ;;  %14573 = vpow2.f32 %v5656_v4 }
 0x466   : > { %v17435_v60 = vpop.eup %14559  ;;  %14575 = vpow2.f32 %v5678_v31  ;;  %v5517_v31 = vsub.f32 %v16892_v16, %v17219_v42 }
 0x467   : > { %21235 = vst [vmem:[#allocation189_spill] sm:$0xff] %v17435_v60  ;;  %v6003_v43 = vsel %vm878_vm2, %v17435_v60, 0.0  ;;  %v17455_v23 = vpop.eup %14561  ;;  %14577 = vpow2.f32 %v5654_v30 }
 0x468   : > { %5389 = vmax.xlane.f32.xlu1 %v5388_v52  ;;  %5317 = vmax.xlane.f32.xlu0 %v5316_v47  ;;  %v5994_v52 = vsel %vm878_vm2, %v17423_v54, 0.0  ;;  %v17441_v47 = vpop.f32.mrf.mxu1  ;;  %21237 = vst [vmem:[#allocation191_spill] sm:$0xff] %v17455_v23  ;;  %v17467_v33 = vpop.eup %14563  ;;  %14579 = vpow2.f32 %v5700_v62  ;;  %v5704_v42 = vmul.f32 1.442695, %v5517_v31  ;;  %v5519_v31 = vsub.f32 %v16900_v39, %v17245_v56 }
 0x469   : > { %v17427_v44 = vpop.xlane.xlu1 %5188  ;;  %v17429_v29 = vpop.xlane.xlu0 %5074  ;;  %21236 = vst [vmem:[#allocation190_spill] sm:$0xff] %v17441_v47  ;;  %v5358_v37 = vsel %vm878_vm2, %v17441_v47, -inf  ;;  %v6009_v1 = vsel %vm878_vm2, %v17467_v33, 0.0  ;;  %14581 = vpow2.f32 %v5660_v25 }
 0x46a   : > { %v17483_v46 = vpop.eup %14565  ;;  %14583 = vpow2.f32 %v5698_v12  ;;  %v5708_v56 = vmul.f32 1.442695, %v5519_v31 }
 0x46b   : > { %21240 = vst [vmem:[#allocation194_spill] sm:$0xff] %v17483_v46  ;;  %v5973_v62 = vsel %vm878_vm2, %v17483_v46, 0.0  ;;  %14585 = vpow2.f32 %v5658_v2  ;;  %v5662_v2 = vmul.f32 1.442695, %v5496_v41 }
 0x46c   : > { %5995 = vadd.xlane.f32.xlu1 %v5994_v52  ;;  %5362 = vmax.xlane.f32.xlu0 %v5361_v13  ;;  %v17457_v13 = vpop.f32.mrf.mxu1  ;;  %v6000_v52 = vsel %vm878_vm2, %v17455_v23, 0.0  ;;  %14587 = vpow2.f32 %v5704_v42 }
 0x46d   : > { %v17443_v27 = vpop.xlane.xlu1 %5185  ;;  %v17445_v55 = vpop.xlane.xlu0 %5203  ;;  %21238 = vst [vmem:[#allocation192_spill] sm:$0xff] %v17457_v13  ;;  %v5367_v53 = vsel %vm878_vm2, %v17457_v13, -inf  ;;  %14589 = vpow2.f32 %v5664_v35  ;;  %v21246_v35 = vld [vmem:[#allocation83_spill] sm:$0xff]  ;;  %v21249_v13 = vld [vmem:[#allocation90_spill] sm:$0xff] }
 0x46e   : > { %14591 = vpow2.f32 %v5702_v57  ;;  %v5521_v57 = vsub.f32 %v21246_v35, %v17265_v40  ;;  %v21251_v35 = vld [vmem:[#allocation158_spill] sm:$0xff] }
 0x46f   : > { %14593 = vpow2.f32 %v5662_v2 }
 0x470   : > { %6004 = vadd.xlane.f32.xlu1 %v6003_v43  ;;  %5359 = vmax.xlane.f32.xlu0 %v5358_v37  ;;  %v17473_v43 = vpop.f32.mrf.mxu1  ;;  %14595 = vpow2.f32 %v5708_v56  ;;  %v5712_v10 = vmul.f32 1.442695, %v5521_v57  ;;  %v5520_v56 = vsub.f32 %v21252_v26, %v21251_v35 }
 0x471   : > { %v17459_v9 = vpop.xlane.xlu1 %5194  ;;  %v17461_v28 = vpop.xlane.xlu0 %5071  ;;  %21239 = vst [vmem:[#allocation193_spill] sm:$0xff] %v17473_v43  ;;  %v5364_v14 = vsel %vm878_vm2, %v17473_v43, -inf  ;;  %v21248_v43 = vld [vmem:[#allocation156_spill] sm:$0xff]  ;;  %14597 = vpow2.f32 %v5706_v8 }
 0x472   : > { %v5710_v57 = vmul.f32 1.442695, %v5520_v56 }
 0x474   : > { %6001 = vadd.xlane.f32.xlu1 %v6000_v52  ;;  %5368 = vmax.xlane.f32.xlu0 %v5367_v53  ;;  %v17489_v53 = vpop.eup %14567 }
 0x475   : > { %v17475_v37 = vpop.xlane.xlu1 %5191  ;;  %v17477_v4 = vpop.xlane.xlu0 %5212  ;;  %v6006_v52 = vsel %vm878_vm2, %v17489_v53, 0.0 }
 0x476   : > { %v17499_v16 = vpop.eup %14569 }
 0x477   : > { %21241 = vst [vmem:[#allocation195_spill] sm:$0xff] %v17499_v16  ;;  %v5970_v12 = vsel %vm878_vm2, %v17499_v16, 0.0  ;;  %v21255_v16 = vld [vmem:[#allocation94_spill] sm:$0xff] }
 0x478   : > { %6010 = vadd.xlane.f32.xlu1 %v6009_v1  ;;  %5365 = vmax.xlane.f32.xlu0 %v5364_v14  ;;  %v17505_v1 = vpop.eup %14571 }
 0x479   : > { %v17491_v30 = vpop.xlane.xlu1 %5200  ;;  %v17493_v22 = vpop.xlane.xlu0 %5080  ;;  %v6015_v14 = vsel %vm878_vm2, %v17505_v1, 0.0 }
 0x47a   : > { %v17515_v20 = vpop.eup %14573 }
 0x47b   : > { %21242 = vst [vmem:[#allocation196_spill] sm:$0xff] %v17515_v20  ;;  %v5979_v42 = vsel %vm878_vm2, %v17515_v20, 0.0 }
 0x47c   : > { %6007 = vadd.xlane.f32.xlu1 %v6006_v52  ;;  %5974 = vadd.xlane.f32.xlu0 %v5973_v62  ;;  %v17521_v62 = vpop.eup %14575  ;;  %v5539_v52 = vsub.f32 %v21244_v0, %v17255_v58 }
 0x47d   : > { %v17507_v25 = vpop.xlane.xlu1 %5197  ;;  %v17509_v50 = vpop.xlane.xlu0 %5209 }
 0x47e   : > { %v17531_v39 = vpop.eup %14577  ;;  %v5748_v0 = vmul.f32 1.442695, %v5539_v52 }
 0x47f   : > { %21243 = vst [vmem:[#allocation197_spill] sm:$0xff] %v17531_v39  ;;  %v5976_v31 = vsel %vm878_vm2, %v17531_v39, 0.0 }
 0x480   : > { %6016 = vadd.xlane.f32.xlu1 %v6015_v14  ;;  %5971 = vadd.xlane.f32.xlu0 %v5970_v12  ;;  %v6012_v12 = vsel %vm878_vm2, %v17521_v62, 0.0  ;;  %v17537_v14 = vpop.eup %14579  ;;  %14599 = vpow2.f32 %v5748_v0 }
 0x481   : > { %v17523_v36 = vpop.xlane.xlu1 %5230  ;;  %v17525_v17 = vpop.xlane.xlu0 %5077  ;;  %21245 = vst [vmem:[#allocation88_spill] sm:$0xff] %v17537_v14  ;;  %14601 = vpow2.f32 %v5712_v10 }
 0x482   : > { %v17547_v58 = vpop.eup %14581 }
 0x483   : > { %21247 = vst [vmem:[#allocation83_spill] sm:$0xff] %v17547_v58  ;;  %v17553_v47 = vpop.eup %14583  ;;  %v5985_v52 = vsel %vm878_vm2, %v17547_v58, 0.0 }
 0x484   : > { %6013 = vadd.xlane.f32.xlu1 %v6012_v12  ;;  %5980 = vadd.xlane.f32.xlu0 %v5979_v42  ;;  %v5538_v12 = vsub.f32 %v21249_v13, %v21248_v43  ;;  %v6045_v42 = vsel %vm878_vm2, %v17537_v14, 0.0  ;;  %21250 = vst [vmem:[#allocation156_spill] sm:$0xff] %v17553_v47  ;;  %v17563_v13 = vpop.eup %14585  ;;  %v21254_v14 = vld [vmem:[#allocation159_spill] sm:$0xff] }
 0x485   : > { %v17539_v41 = vpop.xlane.xlu1 %5227  ;;  %v17541_v7 = vpop.xlane.xlu0 %5218  ;;  %21253 = vst [vmem:[#allocation90_spill] sm:$0xff] %v17563_v13  ;;  %v5982_v0 = vsel %vm878_vm2, %v17563_v13, 0.0 }
 0x486   : > { %v5746_v43 = vmul.f32 1.442695, %v5538_v12  ;;  %v17569_v46 = vpop.eup %14587 }
 0x487   : > { %21256 = vst [vmem:[#allocation158_spill] sm:$0xff] %v17569_v46  ;;  %v17577_v12 = vpop.eup %14589 }
 0x488   : > { %6046 = vadd.xlane.f32.xlu1 %v6045_v42  ;;  %5977 = vadd.xlane.f32.xlu0 %v5976_v31  ;;  %v5541_v42 = vsub.f32 %v21255_v16, %v21254_v14  ;;  %v6042_v31 = vsel %vm878_vm2, %v17553_v47, 0.0  ;;  %21257 = vst [vmem:[#allocation84_spill] sm:$0xff] %v17577_v12  ;;  %14603 = vpow2.f32 %v5746_v43  ;;  %v21258_v14 = vld [vmem:[#allocation96_spill] sm:$0xff]  ;;  %v5991_v56 = vsel %vm878_vm2, %v17577_v12, 0.0 }
 0x489   : > { %v17555_v2 = vpop.xlane.xlu1 %5236  ;;  %v17557_v40 = vpop.xlane.xlu0 %5215  ;;  %v5540_v35 = vsub.f32 %v21258_v14, %v17289_v63  ;;  %14605 = vpow2.f32 %v5710_v57  ;;  %v21261_v63 = vld [vmem:[#allocation99_spill] sm:$0xff] }
 0x48a   : > { %v5752_v16 = vmul.f32 1.442695, %v5541_v42  ;;  %v5543_v14 = vsub.f32 %v21261_v63, %v17299_v5  ;;  %v21265_v5 = vld [vmem:[#allocation52_spill] sm:$0xff] }
 0x48b   : > { %v5750_v42 = vmul.f32 1.442695, %v5540_v35  ;;  %v5507_v35 = vsub.f32 %v21265_v5, %v17309_v3  ;;  %v21269_v3 = vld [vmem:[#allocation102_spill] sm:$0xff] }
 0x48c   : > { %6043 = vadd.xlane.f32.xlu1 %v6042_v31  ;;  %5986 = vadd.xlane.f32.xlu0 %v5985_v52  ;;  %v6051_v31 = vsel %vm878_vm2, %v17569_v46, 0.0  ;;  %v17583_v52 = vpop.eup %14591  ;;  %14607 = vpow2.f32 %v5752_v16  ;;  %v5756_v16 = vmul.f32 1.442695, %v5543_v14  ;;  %v5542_v14 = vsub.f32 %v21269_v3, %v17323_v32 }
 0x48d   : > { %v17571_v8 = vpop.xlane.xlu1 %5233  ;;  %v17573_v26 = vpop.xlane.xlu0 %5224  ;;  %21259 = vst [vmem:[#allocation159_spill] sm:$0xff] %v17583_v52  ;;  %v6048_v46 = vsel %vm878_vm2, %v17583_v52, 0.0  ;;  %14609 = vpow2.f32 %v5750_v42  ;;  %v5684_v42 = vmul.f32 1.442695, %v5507_v35 }
 0x48e   : > { %v17591_v43 = vpop.eup %14593  ;;  %14611 = vpow2.f32 %v5756_v16  ;;  %v5754_v16 = vmul.f32 1.442695, %v5542_v14 }
 0x48f   : > { %21260 = vst [vmem:[#allocation94_spill] sm:$0xff] %v17591_v43  ;;  %v5988_v39 = vsel %vm878_vm2, %v17591_v43, 0.0  ;;  %14613 = vpow2.f32 %v5684_v42  ;;  %v17647_v42 = vpop.f32.mrf.mxu0  ;;  %v21284_v43 = vld [vmem:[#allocation171_spill] sm:$0xff] }
 0x490   : > { %6052 = vadd.xlane.f32.xlu1 %v6051_v31  ;;  %5983 = vadd.xlane.f32.xlu0 %v5982_v0  ;;  %v17597_v31 = vpop.eup %14595  ;;  %14615 = vpow2.f32 %v5754_v16 }
 0x491   : > { %v17585_v47 = vpop.xlane.xlu1 %5242  ;;  %v17587_v10 = vpop.xlane.xlu0 %5221  ;;  %21262 = vst [vmem:[#allocation96_spill] sm:$0xff] %v17597_v31  ;;  %v6057_v63 = vsel %vm878_vm2, %v17597_v31, 0.0 }
 0x492   : > { %v17605_v20 = vpop.eup %14597  ;;  %v17661_v16 = vpop.f32.mrf.mxu0 }
 0x493   : > { %21264 = vst [vmem:[#allocation198_spill] sm:$0xff] %v17605_v20  ;;  %v17611_v52 = vpop.eup %14599  ;;  %v6054_v13 = vsel %vm878_vm2, %v17605_v20, 0.0  ;;  %v21271_v20 = vld [vmem:[#allocation76_spill] sm:$0xff] }
 0x494   : > { %6049 = vadd.xlane.f32.xlu1 %v6048_v46  ;;  %5992 = vadd.xlane.f32.xlu0 %v5991_v56  ;;  %21266 = vst [vmem:[#allocation52_spill] sm:$0xff] %v17611_v52  ;;  %v6117_v5 = vsel %vm878_vm2, %v17611_v52, 0.0 }
 0x495   : > { %v17599_v0 = vpop.xlane.xlu1 %5239  ;;  %v17601_v57 = vpop.xlane.xlu0 %5254 }
 0x496   : > { %21263 = vst [vmem:[#allocation99_spill] sm:$0xff] %v17601_v57  ;;  %v17619_v57 = vpop.eup %14601 }
 0x497   : > { %21268 = vst [vmem:[#allocation200_spill] sm:$0xff] %v17619_v57  ;;  %v17625_v31 = vpop.eup %14603  ;;  %v6063_v32 = vsel %vm878_vm2, %v17619_v57, 0.0 }
 0x498   : > { %6058 = vadd.xlane.f32.xlu1 %v6057_v63  ;;  %5989 = vadd.xlane.f32.xlu0 %v5988_v39  ;;  %21270 = vst [vmem:[#allocation102_spill] sm:$0xff] %v17625_v31  ;;  %v17633_v58 = vpop.eup %14605  ;;  %v6114_v35 = vsel %vm878_vm2, %v17625_v31, 0.0 }
 0x499   : > { %v17613_v46 = vpop.xlane.xlu1 %5248  ;;  %v17615_v56 = vpop.xlane.xlu0 %5251  ;;  %21272 = vst [vmem:[#allocation76_spill] sm:$0xff] %v17633_v58  ;;  %v6060_v14 = vsel %vm878_vm2, %v17633_v58, 0.0  ;;  %v5379_v58 = vsel %vm878_vm2, %v17315_v11, -inf  ;;  %v5376_v11 = vsel %vm878_vm2, %v21284_v43, -inf  ;;  %v21290_v43 = vld [vmem:[#allocation163_spill] sm:$0xff] }
 0x49a   : > { %21267 = vst [vmem:[#allocation199_spill] sm:$0xff] %v17615_v56  ;;  %v5506_v56 = vsub.f32 %v21271_v20, %v17337_v38  ;;  %v17639_v3 = vpop.eup %14607  ;;  %v21275_v38 = vld [vmem:[#allocation105_spill] sm:$0xff] }
 0x49b   : > { %21273 = vst [vmem:[#allocation201_spill] sm:$0xff] %v17639_v3  ;;  %v5545_v20 = vsub.f32 %v21275_v38, %v17351_v49  ;;  %21276 = vst [vmem:[#allocation105_spill] sm:$0xff] %v17647_v42  ;;  %v6123_v31 = vsel %vm878_vm2, %v17639_v3, 0.0  ;;  %v17653_v57 = vpop.eup %14609  ;;  %v21278_v49 = vld [vmem:[#allocation77_spill] sm:$0xff] }
 0x49c   : > { %6055 = vadd.xlane.f32.xlu1 %v6054_v13  ;;  %6118 = vadd.xlane.f32.xlu0 %v6117_v5  ;;  %v5682_v52 = vmul.f32 1.442695, %v5506_v56  ;;  %21277 = vst [vmem:[#allocation203_spill] sm:$0xff] %v17653_v57  ;;  %v5509_v38 = vsub.f32 %v21278_v49, %v17365_v21  ;;  %21279 = vst [vmem:[#allocation77_spill] sm:$0xff] %v17661_v16  ;;  %v6120_v3 = vsel %vm878_vm2, %v17653_v57, 0.0  ;;  %v17667_v54 = vpop.eup %14611 }
 0x49d   : > { %v17627_v39 = vpop.xlane.xlu1 %5245  ;;  %v17629_v63 = vpop.xlane.xlu0 %5260  ;;  %v5760_v56 = vmul.f32 1.442695, %v5545_v20  ;;  %21280 = vst [vmem:[#allocation204_spill] sm:$0xff] %v17667_v54  ;;  %v21283_v20 = vld [vmem:[#allocation108_spill] sm:$0xff]  ;;  %v6129_v57 = vsel %vm878_vm2, %v17667_v54, 0.0  ;;  %v5373_v54 = vsel %vm878_vm2, %v21290_v43, -inf }
 0x49e   : > { %14617 = vpow2.f32 %v5682_v52  ;;  %v5688_v21 = vmul.f32 1.442695, %v5509_v38  ;;  %v5544_v49 = vsub.f32 %v21283_v20, %v17381_v34  ;;  %v17681_v19 = vpop.eup %14613  ;;  %v21289_v38 = vld [vmem:[#allocation78_spill] sm:$0xff]  ;;  %v21296_v43 = vld [vmem:[#allocation79_spill] sm:$0xff] }
 0x49f   : > { %14619 = vpow2.f32 %v5760_v56  ;;  %21285 = vst [vmem:[#allocation108_spill] sm:$0xff] %v17681_v19  ;;  %v5508_v20 = vsub.f32 %v21289_v38, %v17395_v18 }
 0x4a0   : > { %6064 = vadd.xlane.f32.xlu1 %v6063_v32  ;;  %6115 = vadd.xlane.f32.xlu0 %v6114_v35  ;;  %14621 = vpow2.f32 %v5688_v21  ;;  %v5758_v34 = vmul.f32 1.442695, %v5544_v49  ;;  %v21293_v21 = vld [vmem:[#allocation165_spill] sm:$0xff] }
 0x4a1   : > { %v17641_v13 = vpop.xlane.xlu1 %5278  ;;  %v17643_v5 = vpop.xlane.xlu0 %5257  ;;  %v5370_v49 = vsel %vm878_vm2, %v21293_v21, -inf  ;;  %v5686_v38 = vmul.f32 1.442695, %v5508_v20 }
 0x4a2   : > { %21274 = vst [vmem:[#allocation202_spill] sm:$0xff] %v17643_v5  ;;  %14623 = vpow2.f32 %v5758_v34 }
 0x4a3   : > { %14625 = vpow2.f32 %v5686_v38 }
 0x4a4   : > { %6061 = vadd.xlane.f32.xlu1 %v6060_v14  ;;  %6124 = vadd.xlane.f32.xlu0 %v6123_v31  ;;  %v17669_v31 = vpop.f32.mrf.mxu0 }
 0x4a5   : > { %v17655_v32 = vpop.xlane.xlu1 %5275  ;;  %v17657_v35 = vpop.xlane.xlu0 %5266  ;;  %21281 = vst [vmem:[#allocation205_spill] sm:$0xff] %v17669_v31 }
 0x4a8   : > { %5380 = vmax.xlane.f32.xlu1 %v5379_v58  ;;  %6121 = vadd.xlane.f32.xlu0 %v6120_v3  ;;  %v17683_v58 = vpop.f32.mrf.mxu0 }
 0x4a9   : > { %v17671_v14 = vpop.xlane.xlu1 %5284  ;;  %v17673_v52 = vpop.xlane.xlu0 %5110  ;;  %21286 = vst [vmem:[#allocation207_spill] sm:$0xff] %v17683_v58 }
 0x4aa   : > { %21282 = vst [vmem:[#allocation206_spill] sm:$0xff] %v17671_v14  ;;  %v17689_v56 = vpop.f32.mrf.mxu0 }
 0x4ab   : > { %21288 = vst [vmem:[#allocation209_spill] sm:$0xff] %v17689_v56 }
 0x4ac   : > { %5377 = vmax.xlane.f32.xlu1 %v5376_v11  ;;  %6130 = vadd.xlane.f32.xlu0 %v6129_v57  ;;  %v6021_v11 = vsel %vm878_vm2, %v17681_v19, 0.0  ;;  %v17697_v57 = vpop.eup %14615  ;;  %v17705_v60 = vpop.f32.mrf.mxu0  ;;  %v5511_v19 = vsub.f32 %v21296_v43, %v17429_v29  ;;  %v21300_v29 = vld [vmem:[#allocation80_spill] sm:$0xff] }
 0x4ad   : > { %v17685_v3 = vpop.xlane.xlu1 %5281  ;;  %v17687_v12 = vpop.xlane.xlu0 %5263  ;;  %21291 = vst [vmem:[#allocation78_spill] sm:$0xff] %v17697_v57  ;;  %21294 = vst [vmem:[#allocation211_spill] sm:$0xff] %v17705_v60  ;;  %v5510_v43 = vsub.f32 %v21300_v29, %v17461_v28  ;;  %v21303_v28 = vld [vmem:[#allocation117_spill] sm:$0xff] }
 0x4ae   : > { %21287 = vst [vmem:[#allocation208_spill] sm:$0xff] %v17685_v3  ;;  %v17707_v18 = vpop.eup %14617  ;;  %v5692_v34 = vmul.f32 1.442695, %v5511_v19  ;;  %v5557_v38 = vsub.f32 %v21303_v28, %v17477_v4 }
 0x4af   : > { %21295 = vst [vmem:[#allocation212_spill] sm:$0xff] %v17707_v18  ;;  %v6018_v21 = vsel %vm878_vm2, %v17707_v18, 0.0  ;;  %v17721_v14 = vpop.eup %14619  ;;  %v5690_v19 = vmul.f32 1.442695, %v5510_v43  ;;  %v21305_v43 = vld [vmem:[#allocation81_spill] sm:$0xff] }
 0x4b0   : > { %5374 = vmax.xlane.f32.xlu1 %v5373_v54  ;;  %6022 = vadd.xlane.f32.xlu0 %v6021_v11  ;;  %v6126_v54 = vsel %vm878_vm2, %v17697_v57, 0.0  ;;  %v17713_v11 = vpop.f32.mrf.mxu0  ;;  %21299 = vst [vmem:[#allocation214_spill] sm:$0xff] %v17721_v14  ;;  %v6135_v18 = vsel %vm878_vm2, %v17721_v14, 0.0  ;;  %14627 = vpow2.f32 %v5692_v34  ;;  %v5784_v34 = vmul.f32 1.442695, %v5557_v38 }
 0x4b1   : > { %v17699_v23 = vpop.xlane.xlu1 %5290  ;;  %v17701_v3 = vpop.xlane.xlu0 %5107  ;;  %21297 = vst [vmem:[#allocation79_spill] sm:$0xff] %v17713_v11  ;;  %v5439_v20 = vsel %vm878_vm2, %v17713_v11, -inf  ;;  %v5433_v11 = vsel %vm878_vm2, %v17689_v56, -inf  ;;  %14629 = vpow2.f32 %v5690_v19  ;;  %v5513_v4 = vsub.f32 %v21305_v43, %v17493_v22 }
 0x4b2   : > { %21292 = vst [vmem:[#allocation210_spill] sm:$0xff] %v17699_v23  ;;  %v21309_v56 = vmov 0.0   ;;  %v5430_v22 = vsel %vm878_vm2, %v17705_v60, -inf  ;;  %14631 = vpow2.f32 %v5784_v34  ;;  %v21316_v60 = vld [vmem:[#allocation97_spill] sm:$0xff] }
 0x4b3   : > { %13921 = vmatprep.mubr.msk.f32.mxu0 %vm15258_vm4, %v21309_v56  ;;  %13902 = vmatprep.mubr.msk.f32.mxu1 %vm15258_vm4, %v21309_v56  ;;  %v5696_v19 = vmul.f32 1.442695, %v5513_v4  ;;  %v5427_v4 = vsel %vm878_vm2, %v17669_v31, -inf  ;;  %v21320_v31 = vld [vmem:[#allocation164_spill] sm:$0xff] }
 0x4b4   : > { %5371 = vmax.xlane.f32.xlu1 %v5370_v49  ;;  %6127 = vadd.xlane.f32.xlu0 %v6126_v54  ;;  %v17727_v49 = vpop.f32.mrf.mxu0 }
 0x4b5   : > { %v17715_v23 = vpop.xlane.xlu1 %5287  ;;  %v17717_v5 = vpop.xlane.xlu0 %5272  ;;  %21301 = vst [vmem:[#allocation80_spill] sm:$0xff] %v17727_v49  ;;  %v5436_v29 = vsel %vm878_vm2, %v17727_v49, -inf  ;;  %14633 = vpow2.f32 %v5696_v19  ;;  %v5424_v19 = vsel %vm878_vm2, %v17683_v58, -inf }
 0x4b6   : > { %21298 = vst [vmem:[#allocation213_spill] sm:$0xff] %v17715_v23  ;;  %v17735_v23 = vpop.eup %14621 }
 0x4b7   : > { %21302 = vst [vmem:[#allocation215_spill] sm:$0xff] %v17735_v23  ;;  %v6027_v14 = vsel %vm878_vm2, %v17735_v23, 0.0  ;;  %v17751_v28 = vpop.eup %14623 }
 0x4b8   : > { %5440 = vmax.xlane.f32.xlu1 %v5439_v20  ;;  %6019 = vadd.xlane.f32.xlu0 %v6018_v21  ;;  %21306 = vst [vmem:[#allocation81_spill] sm:$0xff] %v17751_v28  ;;  %v6132_v38 = vsel %vm878_vm2, %v17751_v28, 0.0  ;;  %v17769_v43 = vpop.eup %14625  ;;  %v21318_v28 = vld [vmem:[#allocation82_spill] sm:$0xff] }
 0x4b9   : > { %v17729_v54 = vpop.xlane.xlu1 %5296  ;;  %v17731_v57 = vpop.xlane.xlu0 %5116 }
 0x4bc   : > { %5437 = vmax.xlane.f32.xlu1 %v5436_v29  ;;  %6136 = vadd.xlane.f32.xlu0 %v6135_v18  ;;  %v17753_v18 = vpop.f32.mrf.mxu0 }
 0x4bd   : > { %v17741_v21 = vpop.xlane.xlu1 %5293  ;;  %v17743_v20 = vpop.xlane.xlu0 %5269  ;;  %21307 = vst [vmem:[#allocation216_spill] sm:$0xff] %v17753_v18 }
 0x4be   : > { %21304 = vst [vmem:[#allocation117_spill] sm:$0xff] %v17741_v21  ;;  %v17771_v18 = vpop.f32.mrf.mxu0  ;;  %v21315_v21 = vld [vmem:[#allocation162_spill] sm:$0xff] }
 0x4bf   : > { %21312 = vst [vmem:[#allocation218_spill] sm:$0xff] %v17771_v18  ;;  %v5531_v34 = vsub.f32 %v21316_v60, %v21315_v21  ;;  %v17787_v18 = vpop.eup %14627 }
 0x4c0   : > { %5434 = vmax.xlane.f32.xlu1 %v5433_v11  ;;  %6028 = vadd.xlane.f32.xlu0 %v6027_v14  ;;  %v21310_v14 = vld [vmem:[#allocation120_spill] sm:$0xff]  ;;  %21319 = vst [vmem:[#allocation97_spill] sm:$0xff] %v17787_v18 }
 0x4c1   : > { %v17755_v29 = vpop.xlane.xlu1 %5326  ;;  %v17757_v49 = vpop.xlane.xlu0 %5113  ;;  %v5556_v11 = vsub.f32 %v21310_v14, %v17509_v50  ;;  %21311 = vst [vmem:[#allocation120_spill] sm:$0xff] %v17769_v43  ;;  %v5732_v21 = vmul.f32 1.442695, %v5531_v34 }
 0x4c2   : > { %21308 = vst [vmem:[#allocation217_spill] sm:$0xff] %v17755_v29  ;;  %v17781_v50 = vpop.f32.mrf.mxu0 }
 0x4c3   : > { %21317 = vst [vmem:[#allocation162_spill] sm:$0xff] %v17781_v50  ;;  %v5782_v14 = vmul.f32 1.442695, %v5556_v11 }
 0x4c4   : > { %5431 = vmax.xlane.f32.xlu1 %v5430_v22  ;;  %6133 = vadd.xlane.f32.xlu0 %v6132_v38  ;;  %v5512_v22 = vsub.f32 %v21318_v28, %v17525_v17  ;;  %v6024_v38 = vsel %vm878_vm2, %v17769_v43, 0.0  ;;  %v17797_v11 = vpop.f32.mrf.mxu0  ;;  %v21323_v28 = vld [vmem:[#allocation123_spill] sm:$0xff] }
 0x4c5   : > { %v17773_v23 = vpop.xlane.xlu1 %5323  ;;  %v17775_v29 = vpop.xlane.xlu0 %5302  ;;  %21322 = vst [vmem:[#allocation82_spill] sm:$0xff] %v17797_v11  ;;  %14635 = vpow2.f32 %v5782_v14  ;;  %v5559_v43 = vsub.f32 %v21323_v28, %v17541_v7  ;;  %v21327_v14 = vld [vmem:[#allocation166_spill] sm:$0xff]  ;;  %v5421_v7 = vsel %vm878_vm2, %v17647_v42, -inf }
 0x4c6   : > { %21313 = vst [vmem:[#allocation219_spill] sm:$0xff] %v17773_v23  ;;  %21314 = vst [vmem:[#allocation220_spill] sm:$0xff] %v17775_v29  ;;  %v21321_v23 = vld [vmem:[#allocation98_spill] sm:$0xff]  ;;  %v5694_v17 = vmul.f32 1.442695, %v5512_v22  ;;  %v17805_v34 = vpop.f32.mrf.mxu0  ;;  %14637 = vpow2.f32 %v5732_v21  ;;  %v21328_v22 = vld [vmem:[#allocation100_spill] sm:$0xff] }
 0x4c7   : > { %v5530_v50 = vsub.f32 %v21321_v23, %v21320_v31  ;;  %21325 = vst [vmem:[#allocation98_spill] sm:$0xff] %v17805_v34  ;;  %v5533_v11 = vsub.f32 %v21328_v22, %v21327_v14  ;;  %v5788_v28 = vmul.f32 1.442695, %v5559_v43  ;;  %v21333_v43 = vld [vmem:[#allocation101_spill] sm:$0xff] }
 0x4c8   : > { %5428 = vmax.xlane.f32.xlu1 %v5427_v4  ;;  %6025 = vadd.xlane.f32.xlu0 %v6024_v38  ;;  %v6033_v4 = vsel %vm878_vm2, %v17787_v18, 0.0  ;;  %v17803_v38 = vpop.eup %14629  ;;  %14639 = vpow2.f32 %v5694_v17  ;;  %v21329_v18 = vld [vmem:[#allocation125_spill] sm:$0xff]  ;;  %v17821_v21 = vpop.f32.mrf.mxu0 }
 0x4c9   : > { %v17789_v29 = vpop.xlane.xlu1 %5332  ;;  %v17791_v60 = vpop.xlane.xlu0 %5122  ;;  %21324 = vst [vmem:[#allocation164_spill] sm:$0xff] %v17803_v38  ;;  %v5730_v58 = vmul.f32 1.442695, %v5530_v50  ;;  %21331 = vst [vmem:[#allocation100_spill] sm:$0xff] %v17821_v21  ;;  %v5736_v22 = vmul.f32 1.442695, %v5533_v11 }
 0x4ca   : > { %v17819_v34 = vpop.eup %14631  ;;  %v21332_v17 = vld [vmem:[#allocation169_spill] sm:$0xff] }
 0x4cb   : > { %21330 = vst [vmem:[#allocation166_spill] sm:$0xff] %v17819_v34  ;;  %14641 = vpow2.f32 %v5730_v58  ;;  %v5532_v42 = vsub.f32 %v21333_v43, %v21332_v17  ;;  %v17837_v21 = vpop.eup %14633 }
 0x4cc   : > { %5425 = vmax.xlane.f32.xlu1 %v5424_v19  ;;  %6034 = vadd.xlane.f32.xlu0 %v6033_v4  ;;  %v5558_v19 = vsub.f32 %v21329_v18, %v17557_v40  ;;  %v6030_v4 = vsel %vm878_vm2, %v17803_v38, 0.0  ;;  %v5418_v40 = vsel %vm878_vm2, %v17661_v16, -inf  ;;  %14643 = vpow2.f32 %v5788_v28  ;;  %v21334_v38 = vld [vmem:[#allocation127_spill] sm:$0xff]  ;;  %21336 = vst [vmem:[#allocation169_spill] sm:$0xff] %v17837_v21  ;;  %v21339_v28 = vld [vmem:[#allocation173_spill] sm:$0xff] }
 0x4cd   : > { %v17807_v23 = vpop.xlane.xlu1 %5329  ;;  %v17809_v31 = vpop.xlane.xlu0 %5299  ;;  %14645 = vpow2.f32 %v5736_v22  ;;  %v5734_v17 = vmul.f32 1.442695, %v5532_v42 }
 0x4ce   : > { %21326 = vst [vmem:[#allocation123_spill] sm:$0xff] %v17809_v31  ;;  %v5786_v18 = vmul.f32 1.442695, %v5558_v19  ;;  %v17835_v31 = vpop.f32.mrf.mxu0  ;;  %v21340_v19 = vld [vmem:[#allocation103_spill] sm:$0xff] }
 0x4cf   : > { %21335 = vst [vmem:[#allocation125_spill] sm:$0xff] %v17835_v31  ;;  %v5535_v43 = vsub.f32 %v21340_v19, %v21339_v28 }
 0x4d0   : > { %5422 = vmax.xlane.f32.xlu1 %v5421_v7  ;;  %6031 = vadd.xlane.f32.xlu0 %v6030_v4  ;;  %v5561_v7 = vsub.f32 %v21334_v38, %v17573_v26  ;;  %v6171_v4 = vsel %vm878_vm2, %v17819_v34, 0.0  ;;  %v5487_v26 = vsel %vm878_vm2, %v17835_v31, -inf  ;;  %14647 = vpow2.f32 %v5786_v18  ;;  %v21341_v34 = vld [vmem:[#allocation129_spill] sm:$0xff]  ;;  %v21344_v18 = vld [vmem:[#allocation176_spill] sm:$0xff] }
 0x4d1   : > { %v17823_v50 = vpop.xlane.xlu1 %5338  ;;  %v17825_v14 = vpop.xlane.xlu0 %5119  ;;  %v5560_v16 = vsub.f32 %v21341_v34, %v17587_v10  ;;  %14649 = vpow2.f32 %v5734_v17  ;;  %v5740_v28 = vmul.f32 1.442695, %v5535_v43 }
 0x4d2   : > { %v5792_v38 = vmul.f32 1.442695, %v5561_v7  ;;  %v21345_v7 = vld [vmem:[#allocation104_spill] sm:$0xff] }
 0x4d3   : > { %v5534_v19 = vsub.f32 %v21345_v7, %v21344_v18  ;;  %v5790_v31 = vmul.f32 1.442695, %v5560_v16  ;;  %v21349_v7 = vld [vmem:[#allocation106_spill] sm:$0xff] }
 0x4d4   : > { %5419 = vmax.xlane.f32.xlu1 %v5418_v40  ;;  %6172 = vadd.xlane.f32.xlu0 %v6171_v4  ;;  %v6039_v40 = vsel %vm878_vm2, %v17837_v21, 0.0  ;;  %v17851_v4 = vpop.f32.mrf.mxu0  ;;  %14651 = vpow2.f32 %v5792_v38  ;;  %v21347_v21 = vld [vmem:[#allocation85_spill] sm:$0xff]  ;;  %v5537_v38 = vsub.f32 %v21349_v7, %v17363_v51  ;;  %v21353_v7 = vld [vmem:[#allocation107_spill] sm:$0xff] }
 0x4d5   : > { %v17839_v58 = vpop.xlane.xlu1 %5335  ;;  %v17841_v11 = vpop.xlane.xlu0 %5308  ;;  %21342 = vst [vmem:[#allocation173_spill] sm:$0xff] %v17851_v4  ;;  %v5484_v10 = vsel %vm878_vm2, %v17851_v4, -inf  ;;  %14653 = vpow2.f32 %v5740_v28  ;;  %v5738_v18 = vmul.f32 1.442695, %v5534_v19 }
 0x4d6   : > { %21337 = vst [vmem:[#allocation101_spill] sm:$0xff] %v17839_v58  ;;  %21338 = vst [vmem:[#allocation127_spill] sm:$0xff] %v17841_v11  ;;  %v17853_v58 = vpop.eup %14635  ;;  %14655 = vpow2.f32 %v5790_v31  ;;  %v5744_v19 = vmul.f32 1.442695, %v5537_v38  ;;  %v5536_v31 = vsub.f32 %v21353_v7, %v17379_v48  ;;  %v21358_v7 = vld [vmem:[#allocation109_spill] sm:$0xff] }
 0x4d7   : > { %21343 = vst [vmem:[#allocation103_spill] sm:$0xff] %v17853_v58  ;;  %v17863_v34 = vpop.eup %14637  ;;  %14657 = vpow2.f32 %v5738_v18 }
 0x4d8   : > { %5488 = vmax.xlane.f32.xlu1 %v5487_v26  ;;  %6040 = vadd.xlane.f32.xlu0 %v6039_v40  ;;  %21346 = vst [vmem:[#allocation129_spill] sm:$0xff] %v17863_v34  ;;  %v5523_v26 = vsub.f32 %v21347_v21, %v17673_v52  ;;  %v6168_v40 = vsel %vm878_vm2, %v17853_v58, 0.0  ;;  %v17869_v11 = vpop.eup %14639  ;;  %v6093_v16 = vsel %vm878_vm2, %v17863_v34, 0.0  ;;  %v21351_v58 = vld [vmem:[#allocation86_spill] sm:$0xff]  ;;  %v21355_v34 = vld [vmem:[#allocation87_spill] sm:$0xff] }
 0x4d9   : > { %v17855_v42 = vpop.xlane.xlu1 %5344  ;;  %v17857_v22 = vpop.xlane.xlu0 %5128  ;;  %21348 = vst [vmem:[#allocation176_spill] sm:$0xff] %v17869_v11  ;;  %v5742_v38 = vmul.f32 1.442695, %v5536_v31 }
 0x4da   : > { %v17879_v52 = vpop.eup %14641  ;;  %v5716_v21 = vmul.f32 1.442695, %v5523_v26 }
 0x4db   : > { %21350 = vst [vmem:[#allocation104_spill] sm:$0xff] %v17879_v52  ;;  %v17885_v4 = vpop.eup %14643  ;;  %v6090_v26 = vsel %vm878_vm2, %v17879_v52, 0.0 }
 0x4dc   : > { %5485 = vmax.xlane.f32.xlu1 %v5484_v10  ;;  %6169 = vadd.xlane.f32.xlu0 %v6168_v40  ;;  %v5522_v10 = vsub.f32 %v21351_v58, %v17701_v3  ;;  %v6036_v40 = vsel %vm878_vm2, %v17869_v11, 0.0  ;;  %21352 = vst [vmem:[#allocation85_spill] sm:$0xff] %v17885_v4  ;;  %v17895_v3 = vpop.eup %14645  ;;  %14659 = vpow2.f32 %v5716_v21  ;;  %v5547_v21 = vsub.f32 %v21358_v7, %v17393_v61  ;;  %v21363_v7 = vld [vmem:[#allocation110_spill] sm:$0xff] }
 0x4dd   : > { %v17871_v17 = vpop.xlane.xlu1 %5341  ;;  %v17873_v43 = vpop.xlane.xlu0 %5305  ;;  %21354 = vst [vmem:[#allocation106_spill] sm:$0xff] %v17895_v3  ;;  %14661 = vpow2.f32 %v5744_v19 }
 0x4de   : > { %v5714_v58 = vmul.f32 1.442695, %v5522_v10  ;;  %v17901_v11 = vpop.eup %14647  ;;  %v6099_v10 = vsel %vm878_vm2, %v17895_v3, 0.0  ;;  %v5764_v31 = vmul.f32 1.442695, %v5547_v21 }
 0x4df   : > { %21356 = vst [vmem:[#allocation86_spill] sm:$0xff] %v17901_v11 }
 0x4e0   : > { %6094 = vadd.xlane.f32.xlu1 %v6093_v16  ;;  %6037 = vadd.xlane.f32.xlu0 %v6036_v40  ;;  %v5525_v16 = vsub.f32 %v21355_v34, %v17731_v57  ;;  %v6177_v40 = vsel %vm878_vm2, %v17885_v4, 0.0  ;;  %v17911_v57 = vpop.eup %14649  ;;  %14663 = vpow2.f32 %v5714_v58  ;;  %v21360_v4 = vld [vmem:[#allocation89_spill] sm:$0xff]  ;;  %v5546_v58 = vsub.f32 %v21363_v7, %v17409_v59  ;;  %v21367_v7 = vld [vmem:[#allocation112_spill] sm:$0xff] }
 0x4e1   : > { %v17887_v28 = vpop.xlane.xlu1 %5386  ;;  %v17889_v51 = vpop.xlane.xlu0 %5125  ;;  %21359 = vst [vmem:[#allocation87_spill] sm:$0xff] %v17911_v57  ;;  %14665 = vpow2.f32 %v5742_v38 }
 0x4e2   : > { %v5720_v34 = vmul.f32 1.442695, %v5525_v16  ;;  %v17917_v52 = vpop.eup %14651  ;;  %v6096_v16 = vsel %vm878_vm2, %v17911_v57, 0.0  ;;  %v5762_v21 = vmul.f32 1.442695, %v5546_v58 }
 0x4e3   : > { %21361 = vst [vmem:[#allocation109_spill] sm:$0xff] %v17917_v52 }
 0x4e4   : > { %6091 = vadd.xlane.f32.xlu1 %v6090_v26  ;;  %6178 = vadd.xlane.f32.xlu0 %v6177_v40  ;;  %v5524_v26 = vsub.f32 %v21360_v4, %v17757_v49  ;;  %v6174_v40 = vsel %vm878_vm2, %v17901_v11, 0.0  ;;  %v17927_v49 = vpop.eup %14653  ;;  %14667 = vpow2.f32 %v5720_v34  ;;  %v21365_v11 = vld [vmem:[#allocation91_spill] sm:$0xff]  ;;  %v5549_v34 = vsub.f32 %v21367_v7, %v17427_v44  ;;  %v21372_v7 = vld [vmem:[#allocation113_spill] sm:$0xff] }
 0x4e5   : > { %v17903_v18 = vpop.xlane.xlu1 %5383  ;;  %v17905_v48 = vpop.xlane.xlu0 %5314  ;;  %21364 = vst [vmem:[#allocation110_spill] sm:$0xff] %v17927_v49  ;;  %14669 = vpow2.f32 %v5764_v31 }
 0x4e6   : > { %21357 = vst [vmem:[#allocation107_spill] sm:$0xff] %v17903_v18  ;;  %v5718_v4 = vmul.f32 1.442695, %v5524_v26  ;;  %v17933_v3 = vpop.eup %14655  ;;  %v6105_v26 = vsel %vm878_vm2, %v17927_v49, 0.0  ;;  %v5768_v58 = vmul.f32 1.442695, %v5549_v34 }
 0x4e7   : > { %21366 = vst [vmem:[#allocation91_spill] sm:$0xff] %v17933_v3  ;;  %v21452_v18 = vld [vmem:[#allocation210_spill] sm:$0xff] }
 0x4e8   : > { %6100 = vadd.xlane.f32.xlu1 %v6099_v10  ;;  %6175 = vadd.xlane.f32.xlu0 %v6174_v40  ;;  %v5527_v10 = vsub.f32 %v21365_v11, %v17791_v60  ;;  %v6183_v40 = vsel %vm878_vm2, %v17917_v52, 0.0  ;;  %v17943_v60 = vpop.eup %14657  ;;  %14671 = vpow2.f32 %v5718_v4  ;;  %v21369_v52 = vld [vmem:[#allocation92_spill] sm:$0xff]  ;;  %v5548_v4 = vsub.f32 %v21372_v7, %v17443_v27  ;;  %v21377_v7 = vld [vmem:[#allocation115_spill] sm:$0xff] }
 0x4e9   : > { %v17919_v19 = vpop.xlane.xlu1 %5392  ;;  %v17921_v61 = vpop.xlane.xlu0 %5311  ;;  %21368 = vst [vmem:[#allocation112_spill] sm:$0xff] %v17943_v60  ;;  %14673 = vpow2.f32 %v5762_v21 }
 0x4ea   : > { %21362 = vst [vmem:[#allocation89_spill] sm:$0xff] %v17919_v19  ;;  %v5724_v11 = vmul.f32 1.442695, %v5527_v10  ;;  %v17949_v57 = vpop.eup %14659  ;;  %v6102_v10 = vsel %vm878_vm2, %v17943_v60, 0.0  ;;  %v5766_v34 = vmul.f32 1.442695, %v5548_v4 }
 0x4eb   : > { %21370 = vst [vmem:[#allocation92_spill] sm:$0xff] %v17949_v57 }
 0x4ec   : > { %6097 = vadd.xlane.f32.xlu1 %v6096_v16  ;;  %6184 = vadd.xlane.f32.xlu0 %v6183_v40  ;;  %v5526_v16 = vsub.f32 %v21369_v52, %v17825_v14  ;;  %v6180_v40 = vsel %vm878_vm2, %v17933_v3, 0.0  ;;  %v17959_v14 = vpop.eup %14661  ;;  %14675 = vpow2.f32 %v5724_v11  ;;  %v21374_v3 = vld [vmem:[#allocation93_spill] sm:$0xff]  ;;  %v5551_v11 = vsub.f32 %v21377_v7, %v17459_v9 }
 0x4ed   : > { %v17935_v38 = vpop.xlane.xlu1 %5998  ;;  %v17937_v59 = vpop.xlane.xlu0 %5320  ;;  %21373 = vst [vmem:[#allocation113_spill] sm:$0xff] %v17959_v14  ;;  %14677 = vpow2.f32 %v5768_v58 }
 0x4ee   : > { %v5722_v52 = vmul.f32 1.442695, %v5526_v16  ;;  %v17965_v49 = vpop.eup %14663  ;;  %v6111_v16 = vsel %vm878_vm2, %v17959_v14, 0.0  ;;  %v5772_v4 = vmul.f32 1.442695, %v5551_v11  ;;  %v21386_v11 = vld [vmem:[#allocation111_spill] sm:$0xff] }
 0x4ef   : > { %21375 = vst [vmem:[#allocation93_spill] sm:$0xff] %v17965_v49 }
 0x4f0   : > { %6106 = vadd.xlane.f32.xlu1 %v6105_v26  ;;  %6181 = vadd.xlane.f32.xlu0 %v6180_v40  ;;  %v5529_v26 = vsub.f32 %v21374_v3, %v17857_v22  ;;  %v6069_v40 = vsel %vm878_vm2, %v17949_v57, 0.0  ;;  %v17975_v22 = vpop.eup %14665  ;;  %14679 = vpow2.f32 %v5722_v52  ;;  %v21379_v57 = vld [vmem:[#allocation95_spill] sm:$0xff] }
 0x4f1   : > { %v17951_v31 = vpop.xlane.xlu1 %5389  ;;  %v17953_v44 = vpop.xlane.xlu0 %5317  ;;  %21378 = vst [vmem:[#allocation115_spill] sm:$0xff] %v17975_v22  ;;  %14681 = vpow2.f32 %v5766_v34  ;;  %v6108_v52 = vsel %vm878_vm2, %v17975_v22, 0.0  ;;  %v5555_v22 = vsub.f32 %v21386_v11, %v17411_v24 }
 0x4f2   : > { %21371 = vst [vmem:[#allocation221_spill] sm:$0xff] %v17951_v31  ;;  %v5728_v3 = vmul.f32 1.442695, %v5529_v26  ;;  %v17981_v60 = vpop.eup %14667 }
 0x4f3   : > { %21380 = vst [vmem:[#allocation95_spill] sm:$0xff] %v17981_v60  ;;  %v17989_v26 = vpop.eup %14669 }
 0x4f4   : > { %6103 = vadd.xlane.f32.xlu1 %v6102_v10  ;;  %6070 = vadd.xlane.f32.xlu0 %v6069_v40  ;;  %v5528_v10 = vsub.f32 %v21379_v57, %v17889_v51  ;;  %v6066_v40 = vsel %vm878_vm2, %v17965_v49, 0.0  ;;  %21382 = vst [vmem:[#allocation224_spill] sm:$0xff] %v17989_v26  ;;  %v21383_v51 = vld [vmem:[#allocation116_spill] sm:$0xff]  ;;  %14683 = vpow2.f32 %v5728_v3 }
 0x4f5   : > { %v17967_v21 = vpop.xlane.xlu1 %5995  ;;  %v17969_v27 = vpop.xlane.xlu0 %5362  ;;  %v5550_v57 = vsub.f32 %v21383_v51, %v17475_v37  ;;  %14685 = vpow2.f32 %v5772_v4  ;;  %v6141_v37 = vsel %vm878_vm2, %v17989_v26, 0.0  ;;  %v21388_v51 = vld [vmem:[#allocation118_spill] sm:$0xff]  ;;  %v5780_v4 = vmul.f32 1.442695, %v5555_v22 }
 0x4f6   : > { %21376 = vst [vmem:[#allocation222_spill] sm:$0xff] %v17969_v27  ;;  %v5726_v7 = vmul.f32 1.442695, %v5528_v10 }
 0x4f7   : > { %v5770_v10 = vmul.f32 1.442695, %v5550_v57 }
 0x4f8   : > { %6112 = vadd.xlane.f32.xlu1 %v6111_v16  ;;  %6067 = vadd.xlane.f32.xlu0 %v6066_v40  ;;  %v6075_v16 = vsel %vm878_vm2, %v17981_v60, 0.0  ;;  %v17995_v40 = vpop.eup %14671  ;;  %v5553_v60 = vsub.f32 %v21388_v51, %v17491_v30  ;;  %14687 = vpow2.f32 %v5726_v7  ;;  %v21392_v7 = vld [vmem:[#allocation119_spill] sm:$0xff] }
 0x4f9   : > { %v17983_v58 = vpop.xlane.xlu1 %6004  ;;  %v17985_v9 = vpop.xlane.xlu0 %5359  ;;  %21384 = vst [vmem:[#allocation116_spill] sm:$0xff] %v17995_v40  ;;  %14689 = vpow2.f32 %v5770_v10  ;;  %v5552_v51 = vsub.f32 %v21392_v7, %v17507_v25  ;;  %v21396_v7 = vld [vmem:[#allocation121_spill] sm:$0xff] }
 0x4fa   : > { %21381 = vst [vmem:[#allocation223_spill] sm:$0xff] %v17985_v9  ;;  %v18005_v3 = vpop.eup %14673  ;;  %v5776_v30 = vmul.f32 1.442695, %v5553_v60  ;;  %14691 = vpow2.f32 %v5780_v4 }
 0x4fb   : > { %21387 = vst [vmem:[#allocation111_spill] sm:$0xff] %v18005_v3  ;;  %v6138_v11 = vsel %vm878_vm2, %v18005_v3, 0.0  ;;  %v5774_v25 = vmul.f32 1.442695, %v5552_v51 }
 0x4fc   : > { %6109 = vadd.xlane.f32.xlu1 %v6108_v52  ;;  %6076 = vadd.xlane.f32.xlu0 %v6075_v16  ;;  %v6072_v52 = vsel %vm878_vm2, %v17995_v40, 0.0  ;;  %v18011_v16 = vpop.eup %14675  ;;  %14693 = vpow2.f32 %v5776_v30 }
 0x4fd   : > { %v17997_v49 = vpop.xlane.xlu1 %6001  ;;  %v17999_v34 = vpop.xlane.xlu0 %5368  ;;  %21389 = vst [vmem:[#allocation118_spill] sm:$0xff] %v18011_v16  ;;  %v6081_v26 = vsel %vm878_vm2, %v18011_v16, 0.0  ;;  %v5563_v16 = vsub.f32 %v21396_v7, %v17523_v36  ;;  %v21399_v7 = vld [vmem:[#allocation122_spill] sm:$0xff] }
 0x4fe   : > { %21385 = vst [vmem:[#allocation225_spill] sm:$0xff] %v17999_v34  ;;  %v18019_v57 = vpop.eup %14677 }
 0x4ff   : > { %21391 = vst [vmem:[#allocation227_spill] sm:$0xff] %v18019_v57  ;;  %v6147_v60 = vsel %vm878_vm2, %v18019_v57, 0.0  ;;  %v5796_v36 = vmul.f32 1.442695, %v5563_v16  ;;  %v5562_v57 = vsub.f32 %v21399_v7, %v17539_v41 }
 0x500   : > { %6142 = vadd.xlane.f32.xlu1 %v6141_v37  ;;  %6073 = vadd.xlane.f32.xlu0 %v6072_v52  ;;  %v18025_v37 = vpop.eup %14679  ;;  %v21394_v52 = vld [vmem:[#allocation114_spill] sm:$0xff] }
 0x501   : > { %v18013_v14 = vpop.xlane.xlu1 %6010  ;;  %v18015_v24 = vpop.xlane.xlu0 %5365  ;;  %21393 = vst [vmem:[#allocation119_spill] sm:$0xff] %v18025_v37  ;;  %v5554_v40 = vsub.f32 %v21394_v52, %v17445_v55  ;;  %v6078_v55 = vsel %vm878_vm2, %v18025_v37, 0.0  ;;  %v5794_v16 = vmul.f32 1.442695, %v5562_v57  ;;  %v21405_v57 = vld [vmem:[#allocation128_spill] sm:$0xff] }
 0x502   : > { %21390 = vst [vmem:[#allocation226_spill] sm:$0xff] %v18015_v24  ;;  %v18035_v10 = vpop.eup %14681  ;;  %14695 = vrcp.f32 %v18013_v14 }
 0x503   : > { %21395 = vst [vmem:[#allocation114_spill] sm:$0xff] %v18035_v10  ;;  %v6144_v30 = vsel %vm878_vm2, %v18035_v10, 0.0 }
 0x504   : > { %6139 = vadd.xlane.f32.xlu1 %v6138_v11  ;;  %6082 = vadd.xlane.f32.xlu0 %v6081_v26  ;;  %v18041_v11 = vpop.eup %14683  ;;  %v5778_v26 = vmul.f32 1.442695, %v5554_v40 }
 0x505   : > { %v18029_v22 = vpop.xlane.xlu1 %6007  ;;  %v18031_v3 = vpop.xlane.xlu0 %5974  ;;  %21397 = vst [vmem:[#allocation121_spill] sm:$0xff] %v18041_v11  ;;  %v6087_v40 = vsel %vm878_vm2, %v18041_v11, 0.0 }
 0x506   : > { %v18048_v51 = vpop.eup %14685 }
 0x507   : > { %21398 = vst [vmem:[#allocation228_spill] sm:$0xff] %v18048_v51  ;;  %v6153_v41 = vsel %vm878_vm2, %v18048_v51, 0.0 }
 0x508   : > { %6148 = vadd.xlane.f32.xlu1 %v6147_v60  ;;  %6079 = vadd.xlane.f32.xlu0 %v6078_v55  ;;  %v18054_v60 = vpop.eup %14687  ;;  %v21401_v55 = vld [vmem:[#allocation124_spill] sm:$0xff] }
 0x509   : > { %v6017_v4 = vpop.xlane.xlu1 %6016  ;;  %v18044_v52 = vpop.xlane.xlu0 %5971  ;;  %21400 = vst [vmem:[#allocation122_spill] sm:$0xff] %v18054_v60  ;;  %v5565_v37 = vsub.f32 %v21401_v55, %v17555_v2  ;;  %v21404_v2 = vld [vmem:[#allocation146_spill] sm:$0xff] }
 0x50a   : > { %14697 = vrcp.f32 %v6017_v4 }
 0x50b   : > { %14699 = vpow2.f32 %v5774_v25  ;;  %v21402_v25 = vld [vmem:[#allocation126_spill] sm:$0xff]  ;;  %v5800_v55 = vmul.f32 1.442695, %v5565_v37 }
 0x50c   : > { %14701 = vpow2.f32 %v5778_v26  ;;  %6145 = vadd.xlane.f32.xlu1 %v6144_v30  ;;  %6088 = vadd.xlane.f32.xlu0 %v6087_v40  ;;  %v5564_v7 = vsub.f32 %v21402_v25, %v17571_v8  ;;  %v6084_v26 = vsel %vm878_vm2, %v18054_v60, 0.0  ;;  %v18067_v30 = vpop.eup %14689  ;;  %v5577_v40 = vsub.f32 %v21404_v2, %v17717_v5  ;;  %v21407_v5 = vld [vmem:[#allocation130_spill] sm:$0xff] }
 0x50d   : > { %14703 = vrcp.f32 %v18029_v22  ;;  %v6014_v10 = vpop.xlane.xlu1 %6013  ;;  %v18059_v24 = vpop.xlane.xlu0 %5980  ;;  %21403 = vst [vmem:[#allocation124_spill] sm:$0xff] %v18067_v30  ;;  %v5567_v8 = vsub.f32 %v21405_v57, %v17585_v47  ;;  %v5355_v25 = vsel %vm878_vm2, %v17399_v45, -inf  ;;  %v6150_v37 = vsel %vm878_vm2, %v18067_v30, 0.0 }
 0x50e   : > { %14705 = vrcp.f32 %v6014_v10  ;;  %v18080_v51 = vpop.eup %14691  ;;  %v5798_v60 = vmul.f32 1.442695, %v5564_v7  ;;  %v5824_v2 = vmul.f32 1.442695, %v5577_v40 }
 0x50f   : > { %14707 = vpow2.f32 %v5796_v36  ;;  %21406 = vst [vmem:[#allocation126_spill] sm:$0xff] %v18080_v51  ;;  %v6165_v40 = vsel %vm878_vm2, %v18080_v51, 0.0 }
 0x510   : > { %6154 = vadd.xlane.f32.xlu1 %v6153_v41  ;;  %6085 = vadd.xlane.f32.xlu0 %v6084_v26  ;;  %14709 = vrcp.f32 %v17983_v58  ;;  %v5566_v41 = vsub.f32 %v21407_v5, %v17599_v0  ;;  %v18086_v26 = vpop.eup %14693 }
 0x511   : > { %v18072_v11 = vpop.xlane.xlu1 %6046  ;;  %v18074_v36 = vpop.xlane.xlu0 %5977  ;;  %14711 = vpow2.f32 %v5794_v16  ;;  %21408 = vst [vmem:[#allocation146_spill] sm:$0xff] %v18086_v26  ;;  %v5804_v16 = vmul.f32 1.442695, %v5567_v8  ;;  %v6159_v5 = vsel %vm878_vm2, %v18086_v26, 0.0 }
 0x512   : > { %14713 = vpow2.f32 %v5800_v55  ;;  %v18092_v45 = vpop.eup %14695  ;;  %v5802_v0 = vmul.f32 1.442695, %v5566_v41  ;;  %v21410_v55 = vld [vmem:[#allocation151_spill] sm:$0xff] }
 0x513   : > { %14715 = vrcp.f32 %v17997_v49  ;;  %v6623_v26 = vmul.f32 %v18092_v45, %v18013_v14  ;;  %v21414_v14 = vld [vmem:[#allocation134_spill] sm:$0xff] }
 0x514   : > { %6151 = vadd.xlane.f32.xlu1 %v6150_v37  ;;  %5356 = vmax.xlane.f32.xlu0 %v5355_v25  ;;  %14717 = vpow2.f32 %v5798_v60  ;;  %v5576_v37 = vsub.f32 %v21410_v55, %v17743_v20  ;;  %v21412_v60 = vld [vmem:[#allocation132_spill] sm:$0xff]  ;;  %v5568_v55 = vsub.f32 %v21414_v14, %v17627_v39 }
 0x515   : > { %v18088_v47 = vpop.xlane.xlu1 %6043  ;;  %v18090_v57 = vpop.xlane.xlu0 %5986  ;;  %14719 = vpow2.f32 %v5824_v2  ;;  %v5569_v41 = vsub.f32 %v21412_v60, %v17613_v46  ;;  %v5352_v46 = vsel %vm878_vm2, %v17417_v15, -inf }
 0x516   : > { %14721 = vrcp.f32 %v17935_v38  ;;  %v5822_v60 = vmul.f32 1.442695, %v5576_v37 }
 0x517   : > { %v14698_v7 = vpop.eup %14697  ;;  %14723 = vpow2.f32 %v5804_v16  ;;  %v5808_v16 = vmul.f32 1.442695, %v5569_v41  ;;  %v5806_v41 = vmul.f32 1.442695, %v5568_v55 }
 0x518   : > { %v18099_v25 = vpop.eup %14699  ;;  %v6625_v30 = vmul.f32 %v14698_v7, %v6017_v4  ;;  %6160 = vadd.xlane.f32.xlu1 %v6159_v5  ;;  %6166 = vadd.xlane.f32.xlu0 %v6165_v40  ;;  %14725 = vpow2.f32 %v5802_v0 }
 0x519   : > { %21409 = vst [vmem:[#allocation128_spill] sm:$0xff] %v18099_v25  ;;  %v18103_v8 = vpop.eup %14701  ;;  %v18110_v51 = vpop.xlane.xlu1 %6052  ;;  %v6156_v5 = vsel %vm878_vm2, %v18099_v25, 0.0  ;;  %14727 = vrcp.f32 %v17967_v21  ;;  %v6783_v25 = vsub.f32 2.0, %v6623_v26 }
 0x51a   : > { %21411 = vst [vmem:[#allocation130_spill] sm:$0xff] %v18103_v8  ;;  %v18112_v34 = vpop.xlane.xlu0 %5983  ;;  %v18114_v2 = vpop.eup %14703  ;;  %v6785_v20 = vsub.f32 2.0, %v6625_v30  ;;  %v21415_v30 = vld [vmem:[#allocation136_spill] sm:$0xff]  ;;  %14729 = vrcp.f32 %v18090_v57  ;;  %v6162_v26 = vsel %vm878_vm2, %v18103_v8, 0.0 }
 0x51b   : > { %v14706_v4 = vpop.eup %14705  ;;  %v5579_v0 = vsub.f32 %v21415_v30, %v17641_v13  ;;  %v6622_v39 = vmul.f32 %v18114_v2, %v18029_v22 }
 0x51c   : > { %v18120_v40 = vpop.eup %14707  ;;  %v6945_v9 = vmul.f32 %v14698_v7, %v6785_v20  ;;  %v6624_v27 = vmul.f32 %v14706_v4, %v6014_v10  ;;  %6157 = vadd.xlane.f32.xlu1 %v6156_v5  ;;  %5353 = vmax.xlane.f32.xlu0 %v5352_v46  ;;  %v21417_v20 = vld [vmem:[#allocation139_spill] sm:$0xff] }
 0x51d   : > { %21413 = vst [vmem:[#allocation151_spill] sm:$0xff] %v18120_v40  ;;  %v18127_v31 = vpop.xlane.xlu1 %6049  ;;  %v18131_v19 = vpop.eup %14709  ;;  %v6189_v13 = vsel %vm878_vm2, %v18120_v40, 0.0  ;;  %v5575_v5 = vsub.f32 %v21417_v20, %v17657_v35  ;;  %v6782_v55 = vsub.f32 2.0, %v6622_v39  ;;  %v21437_v40 = vld [vmem:[#allocation202_spill] sm:$0xff] }
 0x51e   : > { %v18129_v15 = vpop.xlane.xlu0 %5992  ;;  %v7105_v10 = vmul.f32 %v17505_v1, %v6945_v9  ;;  %v6784_v7 = vsub.f32 2.0, %v6624_v27  ;;  %v18142_v37 = vpop.eup %14711  ;;  %v5828_v27 = vmul.f32 1.442695, %v5579_v0  ;;  %v6621_v9 = vmul.f32 %v18131_v19, %v17983_v58  ;;  %v21421_v0 = vld [vmem:[#allocation138_spill] sm:$0xff] }
 0x51f   : > { %14731 = vrcp.f32 %v18129_v15  ;;  %21416 = vst [vmem:[#allocation132_spill] sm:$0xff] %v18142_v37  ;;  %v18146_v1 = vpop.f32.mrf.mxu1  ;;  %v18156_v35 = vpop.eup %14713  ;;  %v6186_v58 = vsel %vm878_vm2, %v18142_v37, 0.0 }
 0x520   : > { %14733 = vpow2.f32 %v5822_v60  ;;  %v6944_v22 = vmul.f32 %v14706_v4, %v6784_v7  ;;  %21418 = vst [vmem:[#allocation134_spill] sm:$0xff] %v18146_v1  ;;  %13906 = vmatpush3.xpose.msk.msra.mxu0 %vm878_vm2, %v7105_v10  ;;  %6190 = vadd.xlane.f32.xlu1 %v6189_v13  ;;  %21419 = vst [vmem:[#allocation136_spill] sm:$0xff] %v18156_v35  ;;  %v6943_v4 = vmul.f32 %v18092_v45, %v6783_v25 }
 0x521   : > { %14735 = vpow2.f32 %v5808_v16  ;;  %6163 = vadd.xlane.f32.xlu0 %v6162_v26  ;;  %v18151_v46 = vpop.xlane.xlu1 %6058  ;;  %13907 = vmatprep.subr.mxu0 %v21309_v56  ;;  %v18161_v16 = vpop.eup %14715  ;;  %v5578_v10 = vsub.f32 %v21421_v0, %v17655_v32  ;;  %v5820_v7 = vmul.f32 1.442695, %v5575_v5 }
 0x522   : > { %v18153_v14 = vpop.xlane.xlu0 %5989  ;;  %v7104_v60 = vmul.f32 %v17521_v62, %v6944_v22  ;;  %14737 = vrcp.f32 %v18112_v34  ;;  %v18166_v30 = vpop.eup %14717  ;;  %v21423_v62 = vld [vmem:[#allocation181_spill] sm:$0xff]  ;;  %v6620_v20 = vmul.f32 %v18161_v16, %v17997_v49  ;;  %v7103_v5 = vmul.f32 %v17467_v33, %v6943_v4  ;;  %v21430_v33 = vld [vmem:[#allocation142_spill] sm:$0xff] }
 0x523   : > { %14739 = vrcp.f32 %v18153_v14  ;;  %21420 = vst [vmem:[#allocation139_spill] sm:$0xff] %v18166_v30  ;;  %v18170_v45 = vpop.f32.mrf.mxu1  ;;  %v5349_v25 = vsel %vm878_vm2, %v21423_v62, -inf  ;;  %v18175_v39 = vpop.eup %14719  ;;  %v6942_v22 = vmul.f32 %v18114_v2, %v6782_v55  ;;  %v5826_v8 = vmul.f32 1.442695, %v5578_v10  ;;  %v21449_v62 = vld [vmem:[#allocation191_spill] sm:$0xff] }
 0x524   : > { %14741 = vpow2.f32 %v5806_v41  ;;  %21422 = vst [vmem:[#allocation138_spill] sm:$0xff] %v18170_v45  ;;  %13908 = vmatpush3.xpose.msk.msra.mxu0 %vm878_vm2, %v7104_v60  ;;  %6187 = vadd.xlane.f32.xlu1 %v6186_v58  ;;  %21424 = vst [vmem:[#allocation229_spill] sm:$0xff] %v18175_v39  ;;  %v18182_v32 = vpop.eup %14721  ;;  %v6781_v41 = vsub.f32 2.0, %v6621_v9  ;;  %v21428_v58 = vld [vmem:[#allocation135_spill] sm:$0xff]  ;;  %v5574_v49 = vsub.f32 %v21430_v33, %v17687_v12  ;;  %v6231_v2 = vsel %vm878_vm2, %v18175_v39, 0.0 }
 0x525   : > { %14743 = vpow2.f32 %v5828_v27  ;;  %5350 = vmax.xlane.f32.xlu0 %v5349_v25  ;;  %v18177_v13 = vpop.xlane.xlu1 %6055  ;;  %13909 = vmatprep.subr.mxu0 %v21309_v56  ;;  %v18188_v60 = vpop.f32.mrf.mxu1  ;;  %v5573_v0 = vsub.f32 %v21428_v58, %v17629_v63  ;;  %v6195_v25 = vsel %vm878_vm2, %v18156_v35, 0.0  ;;  %v6619_v63 = vmul.f32 %v18182_v32, %v17935_v38  ;;  %v21438_v35 = vld [vmem:[#allocation137_spill] sm:$0xff] }
 0x526   : > { %v18179_v26 = vpop.xlane.xlu0 %6118  ;;  %21426 = vst [vmem:[#allocation231_spill] sm:$0xff] %v18188_v60  ;;  %v18190_v27 = vpop.eup %14723  ;;  %14745 = vrcp.f32 %v18059_v24  ;;  %v6941_v12 = vmul.f32 %v18131_v19, %v6781_v41  ;;  %v5346_v33 = vsel %vm878_vm2, %v17391_v6, -inf  ;;  %v21433_v19 = vld [vmem:[#allocation206_spill] sm:$0xff]  ;;  %v21434_v41 = vld [vmem:[#allocation140_spill] sm:$0xff] }
 0x527   : > { %21425 = vst [vmem:[#allocation230_spill] sm:$0xff] %v18179_v26  ;;  %21427 = vst [vmem:[#allocation232_spill] sm:$0xff] %v18190_v27  ;;  %v18197_v9 = vpop.eup %14725  ;;  %14747 = vpow2.f32 %v5820_v7  ;;  %v6780_v7 = vsub.f32 2.0, %v6620_v20  ;;  %v18216_v58 = vpop.f32.mrf.mxu1  ;;  %v5816_v39 = vmul.f32 1.442695, %v5573_v0 }
 0x528   : > { %21429 = vst [vmem:[#allocation135_spill] sm:$0xff] %v18197_v9  ;;  %13910 = vmatpush3.xpose.msk.msra.mxu0 %vm878_vm2, %v7103_v5  ;;  %6196 = vadd.xlane.f32.xlu1 %v6195_v25  ;;  %14749 = vrcp.f32 %v18151_v46  ;;  %v18212_v10 = vpop.eup %14727  ;;  %v7102_v5 = vmul.f32 %v17489_v53, %v6942_v22  ;;  %21432 = vst [vmem:[#allocation233_spill] sm:$0xff] %v18216_v58  ;;  %v6192_v25 = vsel %vm878_vm2, %v18166_v30, 0.0  ;;  %v5818_v20 = vmul.f32 1.442695, %v5574_v49 }
 0x529   : > { %6232 = vadd.xlane.f32.xlu0 %v6231_v2  ;;  %v18207_v4 = vpop.xlane.xlu1 %6064  ;;  %13911 = vmatprep.subr.mxu0 %v21309_v56  ;;  %v18219_v38 = vpop.eup %14729  ;;  %v5581_v53 = vsub.f32 %v21434_v41, %v21433_v19  ;;  %v5572_v30 = vsub.f32 %v21438_v35, %v21437_v40  ;;  %v6940_v40 = vmul.f32 %v18161_v16, %v6780_v7 }
 0x52a   : > { %v18209_v55 = vpop.xlane.xlu0 %6115  ;;  %14751 = vrcp.f32 %v18207_v4  ;;  %v18228_v22 = vpop.f32.mrf.mxu1  ;;  %v6615_v35 = vmul.f32 %v18219_v38, %v18090_v57  ;;  %v21444_v57 = vld [vmem:[#allocation208_spill] sm:$0xff] }
 0x52b   : > { %21431 = vst [vmem:[#allocation142_spill] sm:$0xff] %v18209_v55  ;;  %14753 = vrcp.f32 %v18074_v36  ;;  %21435 = vst [vmem:[#allocation206_spill] sm:$0xff] %v18228_v22  ;;  %v6779_v55 = vsub.f32 2.0, %v6619_v63  ;;  %v5832_v6 = vmul.f32 1.442695, %v5581_v53 }
 0x52c   : > { %v14732_v2 = vpop.eup %14731  ;;  %14755 = vpow2.f32 %v5826_v8  ;;  %13912 = vmatpush3.xpose.msk.msra.mxu0 %vm878_vm2, %v7102_v5  ;;  %6193 = vadd.xlane.f32.xlu1 %v6192_v25  ;;  %v6618_v5 = vmul.f32 %v18212_v10, %v17967_v21  ;;  %v21441_v25 = vld [vmem:[#allocation189_spill] sm:$0xff]  ;;  %v18256_v21 = vpop.f32.mrf.mxu1 }
 0x52d   : > { %v18231_v37 = vpop.eup %14733  ;;  %v6617_v26 = vmul.f32 %v14732_v2, %v18129_v15  ;;  %14757 = vrcp.f32 %v18177_v13  ;;  %5347 = vmax.xlane.f32.xlu0 %v5346_v33  ;;  %v18237_v8 = vpop.xlane.xlu1 %6061  ;;  %13913 = vmatprep.subr.mxu0 %v21309_v56  ;;  %v7101_v19 = vmul.f32 %v21441_v25, %v6941_v12  ;;  %v6201_v33 = vsel %vm878_vm2, %v18190_v27, 0.0  ;;  %21442 = vst [vmem:[#allocation189_spill] sm:$0xff] %v18256_v21 }
 0x52e   : > { %21436 = vst [vmem:[#allocation140_spill] sm:$0xff] %v18231_v37  ;;  %v18239_v0 = vpop.xlane.xlu0 %6124  ;;  %v18242_v49 = vpop.eup %14735  ;;  %14759 = vrcp.f32 %v18237_v8  ;;  %v6228_v16 = vsel %vm878_vm2, %v18231_v37, 0.0  ;;  %v6198_v12 = vsel %vm878_vm2, %v18197_v9, 0.0  ;;  %v6939_v37 = vmul.f32 %v18182_v32, %v6779_v55  ;;  %v21453_v32 = vld [vmem:[#allocation143_spill] sm:$0xff] }
 0x52f   : > { %21439 = vst [vmem:[#allocation202_spill] sm:$0xff] %v18239_v0  ;;  %21440 = vst [vmem:[#allocation137_spill] sm:$0xff] %v18242_v49  ;;  %v18249_v15 = vpop.eup %14737  ;;  %14761 = vrcp.f32 %v18031_v3  ;;  %v6777_v63 = vsub.f32 2.0, %v6617_v26  ;;  %v21445_v26 = vld [vmem:[#allocation141_spill] sm:$0xff]  ;;  %v6778_v9 = vsub.f32 2.0, %v6618_v5  ;;  %v7100_v0 = vmul.f32 %v21449_v62, %v6940_v40 }
 0x530   : > { %v14740_v41 = vpop.eup %14739  ;;  %14763 = vpow2.f32 %v5818_v20  ;;  %13914 = vmatpush3.xpose.msk.msra.mxu0 %vm878_vm2, %v7101_v19  ;;  %6202 = vadd.xlane.f32.xlu1 %v6201_v33  ;;  %v5580_v25 = vsub.f32 %v21445_v26, %v21444_v57  ;;  %v18279_v57 = vpop.f32.mrf.mxu1  ;;  %v5583_v55 = vsub.f32 %v21453_v32, %v21452_v18  ;;  %v21456_v18 = vld [vmem:[#allocation182_spill] sm:$0xff] }
 0x531   : > { %v18263_v7 = vpop.eup %14741  ;;  %14765 = vrcp.f32 %v18044_v52  ;;  %v6937_v53 = vmul.f32 %v14732_v2, %v6777_v63  ;;  %v6616_v20 = vmul.f32 %v14740_v41, %v18153_v14  ;;  %6229 = vadd.xlane.f32.xlu0 %v6228_v16  ;;  %v18269_v27 = vpop.xlane.xlu1 %5380  ;;  %13915 = vmatprep.subr.mxu0 %v21309_v56  ;;  %21450 = vst [vmem:[#allocation191_spill] sm:$0xff] %v18279_v57  ;;  %v6775_v2 = vsub.f32 2.0, %v6615_v35  ;;  %v21451_v63 = vld [vmem:[#allocation84_spill] sm:$0xff] }
 0x532   : > { %21443 = vst [vmem:[#allocation234_spill] sm:$0xff] %v18263_v7  ;;  %21446 = vst [vmem:[#allocation208_spill] sm:$0xff] %v18269_v27  ;;  %v18271_v19 = vpop.xlane.xlu0 %6121  ;;  %v18274_v33 = vpop.eup %14743  ;;  %14767 = vrcp.f32 %v18110_v51  ;;  %v6614_v14 = vmul.f32 %v18249_v15, %v18112_v34  ;;  %v5814_v27 = vmul.f32 1.442695, %v5572_v30  ;;  %v5415_v62 = vsel %vm878_vm2, %v18279_v57, -inf }
 0x533   : > { %21447 = vst [vmem:[#allocation141_spill] sm:$0xff] %v18271_v19  ;;  %21448 = vst [vmem:[#allocation235_spill] sm:$0xff] %v18274_v33  ;;  %v7097_v16 = vmul.f32 %v21451_v63, %v6937_v53  ;;  %v6776_v26 = vsub.f32 2.0, %v6616_v20  ;;  %v18284_v19 = vpop.eup %14745  ;;  %14769 = vpow2.f32 %v5816_v39  ;;  %v5830_v34 = vmul.f32 1.442695, %v5580_v25  ;;  %v18303_v53 = vpop.f32.mrf.mxu1  ;;  %v21458_v63 = vld [vmem:[#allocation94_spill] sm:$0xff] }
 0x534   : > { %13916 = vmatpush3.xpose.msk.msra.mxu0 %vm878_vm2, %v7100_v0  ;;  %6199 = vadd.xlane.f32.xlu1 %v6198_v12  ;;  %v18291_v5 = vpop.eup %14747  ;;  %14771 = vpow2.f32 %v5832_v6  ;;  %v7099_v0 = vmul.f32 %v21456_v18, %v6939_v37  ;;  %v6938_v12 = vmul.f32 %v18212_v10, %v6778_v9  ;;  %21457 = vst [vmem:[#allocation143_spill] sm:$0xff] %v18303_v53  ;;  %v6207_v6 = vsel %vm878_vm2, %v18242_v49, 0.0  ;;  %v21465_v49 = vld [vmem:[#allocation99_spill] sm:$0xff] }
 0x535   : > { %21454 = vst [vmem:[#allocation84_spill] sm:$0xff] %v18291_v5  ;;  %v6936_v40 = vmul.f32 %v14740_v41, %v6776_v26  ;;  %5416 = vmax.xlane.f32.xlu0 %v5415_v62  ;;  %13887 = vmatpush3.xpose.msk.msra.mxu1 %vm878_vm2, %v7097_v16  ;;  %v18294_v35 = vpop.xlane.xlu1 %5377  ;;  %v18298_v39 = vpop.eup %14749  ;;  %14773 = vrcp.f32 %v18127_v31  ;;  %v6613_v25 = vmul.f32 %v18284_v19, %v18059_v24  ;;  %v6774_v37 = vsub.f32 2.0, %v6614_v14  ;;  %v21460_v14 = vld [vmem:[#allocation187_spill] sm:$0xff] }
 0x536   : > { %v18296_v30 = vpop.xlane.xlu0 %6130  ;;  %13888 = vmatprep.subr.mxu1 %v21309_v56  ;;  %13917 = vmatprep.subr.mxu0 %v21309_v56  ;;  %v6935_v20 = vmul.f32 %v18219_v38, %v6775_v2  ;;  %14775 = vpow2.f32 %v5814_v27  ;;  %v5836_v16 = vmul.f32 1.442695, %v5583_v55  ;;  %v6225_v32 = vsel %vm878_vm2, %v18291_v5, 0.0  ;;  %v21463_v5 = vld [vmem:[#allocation144_spill] sm:$0xff] }
 0x537   : > { %21455 = vst [vmem:[#allocation210_spill] sm:$0xff] %v18296_v30  ;;  %v14752_v41 = vpop.eup %14751  ;;  %v7096_v9 = vmul.f32 %v21458_v63, %v6936_v40  ;;  %14777 = vpow2.f32 %v5830_v34  ;;  %v6204_v27 = vsel %vm878_vm2, %v18263_v7, 0.0  ;;  %v7098_v55 = vmul.f32 %v21460_v14, %v6938_v12  ;;  %v21461_v63 = vld [vmem:[#allocation83_spill] sm:$0xff]  ;;  %v21462_v14 = vld [vmem:[#allocation213_spill] sm:$0xff] }
 0x538   : > { %v18313_v10 = vpop.eup %14753  ;;  %v6641_v26 = vmul.f32 %v14752_v41, %v18207_v4  ;;  %13918 = vmatpush3.xpose.msk.msra.mxu0 %vm878_vm2, %v7099_v0  ;;  %6208 = vadd.xlane.f32.xlu1 %v6207_v6  ;;  %v5412_v4 = vsel %vm878_vm2, %v18303_v53, -inf  ;;  %14779 = vrcp.f32 %v18072_v11  ;;  %v6639_v34 = vmul.f32 %v18298_v39, %v18151_v46 }
 0x539   : > { %v18319_v62 = vpop.eup %14755  ;;  %6226 = vadd.xlane.f32.xlu0 %v6225_v32  ;;  %13889 = vmatpush3.xpose.msk.msra.mxu1 %vm878_vm2, %v7096_v9  ;;  %v18322_v24 = vpop.xlane.xlu1 %5374  ;;  %v6773_v0 = vsub.f32 2.0, %v6613_v25  ;;  %v6612_v6 = vmul.f32 %v18313_v10, %v18074_v36  ;;  %v7095_v9 = vmul.f32 %v21461_v63, %v6935_v20  ;;  %v6934_v32 = vmul.f32 %v18249_v15, %v6774_v37  ;;  %v21466_v36 = vld [vmem:[#allocation131_spill] sm:$0xff] }
 0x53a   : > { %21459 = vst [vmem:[#allocation182_spill] sm:$0xff] %v18319_v62  ;;  %v18324_v38 = vpop.xlane.xlu0 %6022  ;;  %v18330_v2 = vpop.eup %14757  ;;  %v6801_v40 = vsub.f32 2.0, %v6641_v26  ;;  %13890 = vmatprep.subr.mxu1 %v21309_v56  ;;  %13919 = vmatprep.subr.mxu0 %v21309_v56  ;;  %14781 = vpow2.f32 %v5836_v16  ;;  %v5582_v46 = vsub.f32 %v21463_v5, %v21462_v14  ;;  %v5571_v53 = vsub.f32 %v21466_v36, %v21465_v49  ;;  %v21467_v16 = vld [vmem:[#allocation200_spill] sm:$0xff] }
 0x53b   : > { %v14760_v18 = vpop.eup %14759  ;;  %14783 = vrcp.f32 %v18088_v47  ;;  %v6638_v37 = vmul.f32 %v18330_v2, %v18177_v13  ;;  %v6772_v63 = vsub.f32 2.0, %v6612_v6  ;;  %v21469_v14 = vld [vmem:[#allocation56_spill] sm:$0xff] }
 0x53c   : > { %v18342_v12 = vpop.eup %14761  ;;  %v6961_v26 = vmul.f32 %v14752_v41, %v6801_v40  ;;  %v6640_v7 = vmul.f32 %v14760_v18, %v18237_v8  ;;  %13920 = vmatpush3.xpose.msk.msra.mxu0 %vm878_vm2, %v7098_v55  ;;  %6205 = vadd.xlane.f32.xlu1 %v6204_v27  ;;  %v6237_v8 = vsel %vm878_vm2, %v18274_v33, 0.0  ;;  %v6799_v41 = vsub.f32 2.0, %v6639_v34 }
 0x53d   : > { %v18348_v25 = vpop.eup %14763  ;;  %5413 = vmax.xlane.f32.xlu0 %v5412_v4  ;;  %13891 = vmatpush3.xpose.msk.msra.mxu1 %vm878_vm2, %v7095_v9  ;;  %v18354_v15 = vpop.xlane.xlu1 %5371  ;;  %v6611_v55 = vmul.f32 %v18342_v12, %v18031_v3  ;;  %v6933_v40 = vmul.f32 %v18284_v19, %v6773_v0  ;;  %v21468_v9 = vld [vmem:[#allocation90_spill] sm:$0xff]  ;;  %v5834_v13 = vmul.f32 1.442695, %v5582_v46  ;;  %v5812_v19 = vmul.f32 1.442695, %v5571_v53 }
 0x53e   : > { %21464 = vst [vmem:[#allocation94_spill] sm:$0xff] %v18348_v25  ;;  %v18356_v20 = vpop.xlane.xlu0 %6127  ;;  %v18360_v5 = vpop.eup %14765  ;;  %v7121_v49 = vmul.f32 %v21467_v16, %v6961_v26  ;;  %v6800_v27 = vsub.f32 2.0, %v6640_v7  ;;  %13892 = vmatprep.subr.mxu1 %v21309_v56  ;;  %13943 = vmatprep.subr.mxu0 %v21309_v56  ;;  %v7094_v34 = vmul.f32 %v21468_v9, %v6934_v32  ;;  %v21470_v7 = vld [vmem:[#allocation145_spill] sm:$0xff]  ;;  %v6222_v16 = vsel %vm878_vm2, %v18348_v25, 0.0 }
 0x53f   : > { %v18367_v4 = vpop.eup %14767  ;;  %13922 = vmatmul.mubr.msk.f32.vlgmr.msra.gmra.mxu0 %vm878_vm2, %v21469_v14  ;;  %v5585_v26 = vsub.f32 %v21470_v7, %v17729_v54  ;;  %v6234_v54 = vsel %vm878_vm2, %v18319_v62, 0.0  ;;  %v6959_v46 = vmul.f32 %v18298_v39, %v6799_v41  ;;  %v6771_v9 = vsub.f32 2.0, %v6611_v55  ;;  %v21474_v14 = vld [vmem:[#allocation196_spill] sm:$0xff]  ;;  %v21475_v39 = vld [vmem:[#allocation117_spill] sm:$0xff]  ;;  %v21476_v41 = vld [vmem:[#allocation147_spill] sm:$0xff] }
 0x540   : > { %v6960_v36 = vmul.f32 %v14760_v18, %v6800_v27  ;;  %13944 = vmatpush3.xpose.msk.msra.mxu0 %vm878_vm2, %v7121_v49  ;;  %6238 = vadd.xlane.f32.xlu1 %v6237_v8  ;;  %v18380_v3 = vpop.eup %14769  ;;  %v6637_v32 = vmul.f32 %v18367_v4, %v18110_v51  ;;  %v6798_v8 = vsub.f32 2.0, %v6638_v37  ;;  %v21473_v49 = vld [vmem:[#allocation76_spill] sm:$0xff]  ;;  %v7093_v7 = vmul.f32 %v21474_v14, %v6933_v40 }
 0x541   : > { %21471 = vst [vmem:[#allocation187_spill] sm:$0xff] %v18380_v3  ;;  %6223 = vadd.xlane.f32.xlu0 %v6222_v16  ;;  %13893 = vmatpush3.xpose.msk.msra.mxu1 %vm878_vm2, %v7094_v34  ;;  %v18383_v0 = vpop.xlane.xlu1 %5440  ;;  %v18389_v18 = vpop.eup %14771  ;;  %v6610_v34 = vmul.f32 %v18360_v5, %v18044_v52  ;;  %v6932_v16 = vmul.f32 %v18313_v10, %v6772_v63  ;;  %14785 = vpow2.f32 %v5834_v13  ;;  %v5840_v51 = vmul.f32 1.442695, %v5585_v26  ;;  %v21479_v26 = vld [vmem:[#allocation96_spill] sm:$0xff] }
 0x542   : > { %v18385_v6 = vpop.xlane.xlu0 %6019  ;;  %21472 = vst [vmem:[#allocation83_spill] sm:$0xff] %v18389_v18  ;;  %v7120_v53 = vmul.f32 %v21473_v49, %v6960_v36  ;;  %13894 = vmatprep.subr.mxu1 %v21309_v56  ;;  %13945 = vmatprep.subr.mxu0 %v21309_v56  ;;  %v18397_v27 = vpop.eup %14773  ;;  %v5584_v37 = vsub.f32 %v21476_v41, %v21475_v39  ;;  %v5409_v55 = vsel %vm878_vm2, %v18228_v22, -inf  ;;  %14787 = vpow2.f32 %v5812_v19  ;;  %v21481_v41 = vld [vmem:[#allocation199_spill] sm:$0xff] }
 0x543   : > { %13959 = vmatprep.mubr.msk.f32.mxu0 %vm15258_vm4, %v21309_v56  ;;  %v18410_v36 = vpop.eup %14775  ;;  %v6797_v63 = vsub.f32 2.0, %v6637_v32  ;;  %v6636_v13 = vmul.f32 %v18397_v27, %v18127_v31  ;;  %v6958_v49 = vmul.f32 %v18330_v2, %v6798_v8  ;;  %v6770_v14 = vsub.f32 2.0, %v6610_v34 }
 0x544   : > { %13946 = vmatpush3.xpose.msk.msra.mxu0 %vm878_vm2, %v7120_v53  ;;  %6235 = vadd.xlane.f32.xlu1 %v6234_v54  ;;  %21477 = vst [vmem:[#allocation213_spill] sm:$0xff] %v18410_v36  ;;  %v18417_v40 = vpop.eup %14777  ;;  %v7119_v54 = vmul.f32 %v21479_v26, %v6959_v46  ;;  %v6931_v53 = vmul.f32 %v18342_v12, %v6771_v9  ;;  %v6243_v32 = vsel %vm878_vm2, %v18389_v18, 0.0  ;;  %14789 = vpow2.f32 %v5840_v51  ;;  %v21484_v26 = vld [vmem:[#allocation198_spill] sm:$0xff]  ;;  %v21523_v18 = vld [vmem:[#allocation180_spill] sm:$0xff] }
 0x545   : > { %5410 = vmax.xlane.f32.xlu0 %v5409_v55  ;;  %13895 = vmatpush3.xpose.msk.msra.mxu1 %vm878_vm2, %v7093_v7  ;;  %v18413_v52 = vpop.xlane.xlu1 %5437  ;;  %21478 = vst [vmem:[#allocation144_spill] sm:$0xff] %v18417_v40  ;;  %v14780_v19 = vpop.eup %14779  ;;  %v21480_v7 = vld [vmem:[#allocation197_spill] sm:$0xff]  ;;  %v5838_v46 = vmul.f32 1.442695, %v5584_v37  ;;  %v6219_v2 = vsel %vm878_vm2, %v18380_v3, 0.0  ;;  %v6957_v51 = vmul.f32 %v18367_v4, %v6797_v63  ;;  %v6796_v37 = vsub.f32 2.0, %v6636_v13 }
 0x546   : > { %v18415_v10 = vpop.xlane.xlu0 %6136  ;;  %13896 = vmatprep.subr.mxu1 %v21309_v56  ;;  %13947 = vmatprep.subr.mxu0 %v21309_v56  ;;  %v7092_v39 = vmul.f32 %v21480_v7, %v6932_v16  ;;  %v21482_v55 = vld [vmem:[#allocation133_spill] sm:$0xff]  ;;  %v6635_v16 = vmul.f32 %v14780_v19, %v18072_v11  ;;  %v21485_v7 = vld [vmem:[#allocation194_spill] sm:$0xff]  ;;  %v5406_v11 = vsel %vm878_vm2, %v18256_v21, -inf }
 0x547   : > { %v5570_v31 = vsub.f32 %v21482_v55, %v21481_v41  ;;  %v18434_v8 = vpop.eup %14781  ;;  %v6240_v41 = vsel %vm878_vm2, %v18417_v40, 0.0  ;;  %14791 = vpow2.f32 %v5838_v46  ;;  %v21560_v21 = vld [vmem:[#allocation190_spill] sm:$0xff] }
 0x548   : > { %13948 = vmatpush3.xpose.msk.msra.mxu0 %vm878_vm2, %v7119_v54  ;;  %6244 = vadd.xlane.f32.xlu1 %v6243_v32  ;;  %21483 = vst [vmem:[#allocation99_spill] sm:$0xff] %v18434_v8  ;;  %v14784_v34 = vpop.eup %14783  ;;  %v7118_v54 = vmul.f32 %v21484_v26, %v6958_v49  ;;  %v7091_v32 = vmul.f32 %v21485_v7, %v6931_v53  ;;  %v6795_v13 = vsub.f32 2.0, %v6635_v16  ;;  %v21486_v49 = vld [vmem:[#allocation158_spill] sm:$0xff]  ;;  %v21491_v7 = vld [vmem:[#allocation45_spill] sm:$0xff] }
 0x549   : > { %6220 = vadd.xlane.f32.xlu0 %v6219_v2  ;;  %13897 = vmatpush3.xpose.msk.msra.mxu1 %vm878_vm2, %v7092_v39  ;;  %v18437_v12 = vpop.xlane.xlu1 %5434  ;;  %v6930_v39 = vmul.f32 %v18360_v5, %v6770_v14  ;;  %v5810_v55 = vmul.f32 1.442695, %v5570_v31  ;;  %v6634_v5 = vmul.f32 %v14784_v34, %v18088_v47  ;;  %v7117_v53 = vmul.f32 %v21486_v49, %v6957_v51  ;;  %v21487_v31 = vld [vmem:[#allocation195_spill] sm:$0xff]  ;;  %v21488_v26 = vld [vmem:[#allocation150_spill] sm:$0xff] }
 0x54a   : > { %v18439_v9 = vpop.xlane.xlu0 %6028  ;;  %13898 = vmatprep.subr.mxu1 %v21309_v56  ;;  %13949 = vmatprep.subr.mxu0 %v21309_v56  ;;  %v6956_v14 = vmul.f32 %v18397_v27, %v6796_v37  ;;  %v6249_v2 = vsel %vm878_vm2, %v18434_v8, 0.0  ;;  %v6216_v47 = vsel %vm878_vm2, %v18410_v36, 0.0  ;;  %v21529_v8 = vld [vmem:[#allocation220_spill] sm:$0xff] }
 0x54b   : > { %v7090_v46 = vmul.f32 %v21487_v31, %v6930_v39  ;;  %14793 = vpow2.f32 %v5810_v55  ;;  %v6955_v39 = vmul.f32 %v14780_v19, %v6795_v13  ;;  %v21493_v55 = vld [vmem:[#allocation159_spill] sm:$0xff]  ;;  %v5403_v19 = vsel %vm878_vm2, %v18188_v60, -inf }
 0x54c   : > { %13950 = vmatpush3.xpose.msk.msra.mxu0 %vm878_vm2, %v7118_v54  ;;  %6241 = vadd.xlane.f32.xlu1 %v6240_v41  ;;  %v5597_v54 = vsub.f32 %v21488_v26, %v17789_v29  ;;  %v6794_v41 = vsub.f32 2.0, %v6634_v5 }
 0x54d   : > { %5407 = vmax.xlane.f32.xlu0 %v5406_v11  ;;  %13899 = vmatpush3.xpose.msk.msra.mxu1 %vm878_vm2, %v7091_v32  ;;  %v18454_v4 = vpop.xlane.xlu1 %5431  ;;  %v21492_v32 = vld [vmem:[#allocation46_spill] sm:$0xff]  ;;  %v7116_v11 = vmul.f32 %v21493_v55, %v6956_v14 }
 0x54e   : > { %v18456_v63 = vpop.xlane.xlu0 %6133  ;;  %13900 = vmatprep.subr.mxu1 %v21309_v56  ;;  %13951 = vmatprep.subr.mxu0 %v21309_v56  ;;  %v18471_v27 = vpop.eup %14785  ;;  %v1691_v29 = vadd.f32 %v21492_v32, %v21491_v7  ;;  %v5864_v49 = vmul.f32 1.442695, %v5597_v54  ;;  %v6954_v26 = vmul.f32 %v14784_v34, %v6794_v41  ;;  %v21497_v32 = vld [vmem:[#allocation153_spill] sm:$0xff] }
 0x54f   : > { %21489 = vst [vmem:[#allocation131_spill] sm:$0xff] %v18471_v27  ;;  %v18478_v37 = vpop.eup %14787  ;;  %v18500_v54 = vpop.f32.mrf.mxu1 }
 0x550   : > { %13952 = vmatpush3.xpose.msk.msra.mxu0 %vm878_vm2, %v7117_v53  ;;  %6250 = vadd.xlane.f32.xlu1 %v6249_v2  ;;  %21490 = vst [vmem:[#allocation200_spill] sm:$0xff] %v18478_v37  ;;  %v21494_v53 = vld [vmem:[#allocation152_spill] sm:$0xff]  ;;  %14795 = vpow2.f32 %v5864_v49 }
 0x551   : > { %6217 = vadd.xlane.f32.xlu0 %v6216_v47  ;;  %13901 = vmatpush3.xpose.msk.msra.mxu1 %vm878_vm2, %v7090_v46  ;;  %v18474_v16 = vpop.xlane.xlu1 %5428  ;;  %v5596_v31 = vsub.f32 %v21494_v53, %v17807_v23  ;;  %v6246_v46 = vsel %vm878_vm2, %v18471_v27, 0.0  ;;  %v18493_v13 = vpop.eup %14789  ;;  %v21496_v2 = vld [vmem:[#allocation88_spill] sm:$0xff]  ;;  %v6213_v47 = vsel %vm878_vm2, %v18478_v37, 0.0 }
 0x552   : > { %v18476_v51 = vpop.xlane.xlu0 %6025  ;;  %13953 = vmatprep.subr.mxu0 %v21309_v56  ;;  %13924 = vmatprep.subr.mxu1 %v21309_v56  ;;  %21495 = vst [vmem:[#allocation90_spill] sm:$0xff] %v18493_v13  ;;  %v7115_v23 = vmul.f32 %v21496_v2, %v6955_v39  ;;  %v6255_v34 = vsel %vm878_vm2, %v18493_v13, 0.0  ;;  %v18519_v49 = vpop.f32.mrf.mxu1 }
 0x553   : > { %v5862_v7 = vmul.f32 1.442695, %v5596_v31  ;;  %21500 = vst [vmem:[#allocation145_spill] sm:$0xff] %v18519_v49 }
 0x554   : > { %13903 = vmatmul.mubr.msk.f32.vlgmr.msra.gmra.mxu1 %vm878_vm2, %v1691_v29  ;;  %13954 = vmatpush3.xpose.msk.msra.mxu0 %vm878_vm2, %v7116_v11  ;;  %v5599_v29 = vsub.f32 %v21497_v32, %v17823_v50  ;;  %v18512_v39 = vpop.eup %14791  ;;  %v21499_v11 = vld [vmem:[#allocation156_spill] sm:$0xff]  ;;  %v5400_v50 = vsel %vm878_vm2, %v18216_v58, -inf }
 0x555   : > { %6247 = vadd.xlane.f32.xlu1 %v6246_v46  ;;  %5404 = vmax.xlane.f32.xlu0 %v5403_v19  ;;  %v18495_v5 = vpop.xlane.xlu1 %5425  ;;  %21498 = vst [vmem:[#allocation56_spill] sm:$0xff] %v18512_v39  ;;  %v7114_v53 = vmul.f32 %v21499_v11, %v6954_v26  ;;  %14797 = vpow2.f32 %v5862_v7  ;;  %v21501_v46 = vld [vmem:[#allocation101_spill] sm:$0xff]  ;;  %v21502_v19 = vld [vmem:[#allocation154_spill] sm:$0xff]  ;;  %v21507_v11 = vld [vmem:[#allocation172_spill] sm:$0xff] }
 0x556   : > { %v18497_v14 = vpop.xlane.xlu0 %6034  ;;  %13955 = vmatprep.subr.mxu0 %v21309_v56  ;;  %13940 = vmatprep.mubr.msk.f32.mxu1 %vm15258_vm4, %v21309_v56  ;;  %v5868_v31 = vmul.f32 1.442695, %v5599_v29  ;;  %v5598_v2 = vsub.f32 %v21502_v19, %v21501_v46  ;;  %v21506_v7 = vld [vmem:[#allocation157_spill] sm:$0xff]  ;;  %v5591_v46 = vsub.f32 %v21507_v11, %v17905_v48  ;;  %v21511_v11 = vld [vmem:[#allocation175_spill] sm:$0xff] }
 0x557   : > { %v5601_v29 = vsub.f32 %v21506_v7, %v17855_v42  ;;  %v21510_v42 = vld [vmem:[#allocation160_spill] sm:$0xff] }
 0x558   : > { %13956 = vmatpush3.xpose.msk.msra.mxu0 %vm878_vm2, %v7115_v23  ;;  %v18526_v23 = vpop.f32.mrf.mxu1  ;;  %v18531_v26 = vpop.eup %14793  ;;  %14799 = vpow2.f32 %v5868_v31  ;;  %v5866_v19 = vmul.f32 1.442695, %v5598_v2  ;;  %v5600_v7 = vsub.f32 %v21510_v42, %v17871_v17  ;;  %v5852_v25 = vmul.f32 1.442695, %v5591_v46 }
 0x559   : > { %6256 = vadd.xlane.f32.xlu1 %v6255_v34  ;;  %6214 = vadd.xlane.f32.xlu0 %v6213_v47  ;;  %v18514_v41 = vpop.xlane.xlu1 %5422  ;;  %21503 = vst [vmem:[#allocation76_spill] sm:$0xff] %v18526_v23  ;;  %v6252_v47 = vsel %vm878_vm2, %v18512_v39, 0.0  ;;  %21504 = vst [vmem:[#allocation196_spill] sm:$0xff] %v18531_v26  ;;  %v6210_v36 = vsel %vm878_vm2, %v18531_v26, 0.0  ;;  %v5872_v2 = vmul.f32 1.442695, %v5601_v29 }
 0x55a   : > { %v18516_v55 = vpop.xlane.xlu0 %6031  ;;  %13957 = vmatprep.subr.mxu0 %v21309_v56  ;;  %v18544_v37 = vpop.f32.mrf.mxu1  ;;  %v21513_v26 = vld [vmem:[#allocation100_spill] sm:$0xff]  ;;  %v5397_v17 = vsel %vm878_vm2, %v18146_v1, -inf  ;;  %v21530_v39 = vld [vmem:[#allocation155_spill] sm:$0xff] }
 0x55b   : > { %v5478_v62 = vsel %vm878_vm2, %v21513_v26, -inf  ;;  %v5587_v13 = vsub.f32 %v21530_v39, %v21529_v8 }
 0x55c   : > { %13958 = vmatpush3.xpose.msk.msra.mxu0 %vm878_vm2, %v7114_v53  ;;  %v21508_v53 = vld [vmem:[#allocation58_spill] sm:$0xff]  ;;  %v18558_v3 = vpop.f32.mrf.mxu1 }
 0x55d   : > { %6253 = vadd.xlane.f32.xlu1 %v6252_v47  ;;  %5401 = vmax.xlane.f32.xlu0 %v5400_v50  ;;  %v18533_v32 = vpop.xlane.xlu1 %5419  ;;  %v21509_v50 = vld [vmem:[#allocation98_spill] sm:$0xff]  ;;  %21512 = vst [vmem:[#allocation147_spill] sm:$0xff] %v18558_v3 }
 0x55e   : > { %v18535_v34 = vpop.xlane.xlu0 %6172  ;;  %13981 = vmatprep.subr.mxu0 %v21309_v56  ;;  %v5481_v47 = vsel %vm878_vm2, %v21509_v50, -inf  ;;  %v18570_v46 = vpop.f32.mrf.mxu1  ;;  %v21535_v50 = vld [vmem:[#allocation161_spill] sm:$0xff] }
 0x55f   : > { %21505 = vst [vmem:[#allocation117_spill] sm:$0xff] %v18535_v34  ;;  %13960 = vmatmul.mubr.msk.f32.vlgmr.msra.gmra.mxu0 %vm878_vm2, %v21508_v53  ;;  %v5590_v53 = vsub.f32 %v21511_v11, %v17921_v61  ;;  %21517 = vst [vmem:[#allocation133_spill] sm:$0xff] %v18570_v46 }
 0x560   : > { %13997 = vmatprep.mubr.msk.f32.mxu0 %vm15258_vm4, %v21309_v56  ;;  %v18574_v33 = vpop.f32.mrf.mxu1 }
 0x561   : > { %5482 = vmax.xlane.f32.xlu1 %v5481_v47  ;;  %6211 = vadd.xlane.f32.xlu0 %v6210_v36  ;;  %v18554_v48 = vpop.xlane.xlu1 %5488  ;;  %v18564_v47 = vpop.eup %14795  ;;  %v5870_v36 = vmul.f32 1.442695, %v5600_v7  ;;  %v5850_v61 = vmul.f32 1.442695, %v5590_v53  ;;  %21519 = vst [vmem:[#allocation198_spill] sm:$0xff] %v18574_v33  ;;  %v5394_v7 = vsel %vm878_vm2, %v18170_v45, -inf }
 0x562   : > { %v6041_v31 = vpop.xlane.xlu0 %6040  ;;  %21514 = vst [vmem:[#allocation96_spill] sm:$0xff] %v18564_v47  ;;  %v21522_v53 = vld [vmem:[#allocation148_spill] sm:$0xff]  ;;  %v18592_v27 = vpop.f32.mrf.mxu1  ;;  %v21531_v45 = vld [vmem:[#allocation127_spill] sm:$0xff] }
 0x563   : > { %14801 = vrcp.f32 %v6041_v31  ;;  %21524 = vst [vmem:[#allocation158_spill] sm:$0xff] %v18592_v27 }
 0x564   : > { %14803 = vpow2.f32 %v5866_v19  ;;  %v21518_v19 = vld [vmem:[#allocation178_spill] sm:$0xff] }
 0x565   : > { %5479 = vmax.xlane.f32.xlu1 %v5478_v62  ;;  %5398 = vmax.xlane.f32.xlu0 %v5397_v17  ;;  %v18566_v29 = vpop.xlane.xlu1 %5485  ;;  %14805 = vpow2.f32 %v5872_v2  ;;  %v5593_v11 = vsub.f32 %v21518_v19, %v17937_v59  ;;  %v6291_v62 = vsel %vm878_vm2, %v18564_v47, 0.0  ;;  %v18581_v17 = vpop.eup %14797  ;;  %v21521_v59 = vld [vmem:[#allocation217_spill] sm:$0xff]  ;;  %v5592_v47 = vsub.f32 %v21523_v18, %v17953_v44 }
 0x566   : > { %21515 = vst [vmem:[#allocation197_spill] sm:$0xff] %v18566_v29  ;;  %v18568_v42 = vpop.xlane.xlu0 %6169  ;;  %14807 = vpow2.f32 %v5852_v25  ;;  %21520 = vst [vmem:[#allocation194_spill] sm:$0xff] %v18581_v17  ;;  %v5595_v19 = vsub.f32 %v21522_v53, %v21521_v59  ;;  %v21526_v59 = vld [vmem:[#allocation219_spill] sm:$0xff]  ;;  %v21575_v29 = vld [vmem:[#allocation168_spill] sm:$0xff] }
 0x567   : > { %21516 = vst [vmem:[#allocation199_spill] sm:$0xff] %v18568_v42  ;;  %14809 = vrcp.f32 %v18497_v14  ;;  %v5856_v40 = vmul.f32 1.442695, %v5593_v11 }
 0x568   : > { %14811 = vpow2.f32 %v5870_v36  ;;  %v6288_v36 = vsel %vm878_vm2, %v18581_v17, 0.0  ;;  %v5860_v53 = vmul.f32 1.442695, %v5595_v19  ;;  %v21532_v17 = vld [vmem:[#allocation167_spill] sm:$0xff] }
 0x569   : > { %6292 = vadd.xlane.f32.xlu1 %v6291_v62  ;;  %5395 = vmax.xlane.f32.xlu0 %v5394_v7  ;;  %v18583_v2 = vpop.xlane.xlu1 %6094  ;;  %14813 = vpow2.f32 %v5850_v61  ;;  %v5463_v62 = vsel %vm878_vm2, %v18574_v33, -inf  ;;  %v18599_v7 = vpop.eup %14799  ;;  %v21527_v61 = vld [vmem:[#allocation149_spill] sm:$0xff]  ;;  %v5589_v1 = vsub.f32 %v21532_v17, %v21531_v45  ;;  %v5854_v33 = vmul.f32 1.442695, %v5592_v47  ;;  %v21537_v17 = vld [vmem:[#allocation170_spill] sm:$0xff] }
 0x56a   : > { %v18585_v25 = vpop.xlane.xlu0 %6037  ;;  %14815 = vrcp.f32 %v18516_v55  ;;  %21525 = vst [vmem:[#allocation195_spill] sm:$0xff] %v18599_v7  ;;  %v5594_v11 = vsub.f32 %v21527_v61, %v21526_v59  ;;  %v21534_v61 = vld [vmem:[#allocation123_spill] sm:$0xff]  ;;  %v5844_v47 = vmul.f32 1.442695, %v5587_v13 }
 0x56b   : > { %14817 = vrcp.f32 %v18585_v25  ;;  %v5586_v8 = vsub.f32 %v21535_v50, %v21534_v61 }
 0x56c   : > { %14819 = vpow2.f32 %v5856_v40  ;;  %v5858_v19 = vmul.f32 1.442695, %v5594_v11 }
 0x56d   : > { %6289 = vadd.xlane.f32.xlu1 %v6288_v36  ;;  %5464 = vmax.xlane.f32.xlu0 %v5463_v62  ;;  %v18603_v44 = vpop.xlane.xlu1 %6091  ;;  %14821 = vrcp.f32 %v18439_v9  ;;  %v6297_v36 = vsel %vm878_vm2, %v18599_v7, 0.0  ;;  %v5460_v62 = vsel %vm878_vm2, %v18592_v27, -inf  ;;  %v5588_v7 = vsub.f32 %v21537_v17, %v17873_v43  ;;  %v21540_v43 = vld [vmem:[#allocation174_spill] sm:$0xff]  ;;  %v21543_v17 = vld [vmem:[#allocation107_spill] sm:$0xff] }
 0x56e   : > { %v18605_v18 = vpop.xlane.xlu0 %6178  ;;  %14823 = vpow2.f32 %v5860_v53  ;;  %v5848_v27 = vmul.f32 1.442695, %v5589_v1  ;;  %v5842_v13 = vmul.f32 1.442695, %v5586_v8  ;;  %v21547_v8 = vld [vmem:[#allocation179_spill] sm:$0xff] }
 0x56f   : > { %21528 = vst [vmem:[#allocation150_spill] sm:$0xff] %v18605_v18  ;;  %14825 = vpow2.f32 %v5854_v33  ;;  %v21567_v18 = vld [vmem:[#allocation226_spill] sm:$0xff] }
 0x570   : > { %v14802_v26 = vpop.eup %14801  ;;  %14827 = vrcp.f32 %v18476_v51 }
 0x571   : > { %v18616_v59 = vpop.eup %14803  ;;  %v6633_v39 = vmul.f32 %v14802_v26, %v6041_v31  ;;  %6298 = vadd.xlane.f32.xlu1 %v6297_v36  ;;  %5461 = vmax.xlane.f32.xlu0 %v5460_v62  ;;  %v18620_v45 = vpop.xlane.xlu1 %6100  ;;  %v5457_v31 = vsel %vm878_vm2, %v18558_v3, -inf  ;;  %14829 = vpow2.f32 %v5858_v19  ;;  %v5615_v36 = vsub.f32 %v21540_v43, %v17887_v28  ;;  %v21546_v19 = vld [vmem:[#allocation89_spill] sm:$0xff] }
 0x572   : > { %21533 = vst [vmem:[#allocation45_spill] sm:$0xff] %v18616_v59  ;;  %v18622_v40 = vpop.xlane.xlu0 %6175  ;;  %v18626_v58 = vpop.eup %14805  ;;  %v6294_v50 = vsel %vm878_vm2, %v18616_v59, 0.0  ;;  %14831 = vpow2.f32 %v5844_v47  ;;  %v21544_v59 = vld [vmem:[#allocation177_spill] sm:$0xff]  ;;  %v5617_v28 = vsub.f32 %v21547_v8, %v21546_v19 }
 0x573   : > { %21536 = vst [vmem:[#allocation46_spill] sm:$0xff] %v18622_v40  ;;  %21538 = vst [vmem:[#allocation159_spill] sm:$0xff] %v18626_v58  ;;  %v6793_v11 = vsub.f32 2.0, %v6633_v39  ;;  %v18628_v42 = vpop.eup %14807  ;;  %v5846_v39 = vmul.f32 1.442695, %v5588_v7  ;;  %v5614_v3 = vsub.f32 %v21544_v59, %v21543_v17  ;;  %14833 = vpow2.f32 %v5848_v27  ;;  %v21550_v8 = vld [vmem:[#allocation221_spill] sm:$0xff] }
 0x574   : > { %21539 = vst [vmem:[#allocation152_spill] sm:$0xff] %v18628_v42  ;;  %v14810_v53 = vpop.eup %14809  ;;  %14835 = vrcp.f32 %v18324_v38  ;;  %v6303_v7 = vsel %vm878_vm2, %v18626_v58, 0.0  ;;  %v6273_v59 = vsel %vm878_vm2, %v18628_v42, 0.0  ;;  %v5900_v27 = vmul.f32 1.442695, %v5615_v36 }
 0x575   : > { %v6953_v62 = vmul.f32 %v14802_v26, %v6793_v11  ;;  %6295 = vadd.xlane.f32.xlu1 %v6294_v50  ;;  %5458 = vmax.xlane.f32.xlu0 %v5457_v31  ;;  %v18637_v1 = vpop.xlane.xlu1 %6097  ;;  %v18641_v61 = vpop.eup %14811  ;;  %v21548_v26 = vld [vmem:[#allocation169_spill] sm:$0xff]  ;;  %v6631_v31 = vmul.f32 %v14810_v53, %v18497_v14  ;;  %14837 = vpow2.f32 %v5842_v13  ;;  %v5898_v17 = vmul.f32 1.442695, %v5614_v3 }
 0x576   : > { %v18639_v33 = vpop.xlane.xlu0 %6184  ;;  %21542 = vst [vmem:[#allocation153_spill] sm:$0xff] %v18641_v61  ;;  %v18645_v60 = vpop.eup %14813  ;;  %14839 = vpow2.f32 %v5846_v39  ;;  %v5904_v14 = vmul.f32 1.442695, %v5617_v28  ;;  %v6300_v13 = vsel %vm878_vm2, %v18641_v61, 0.0  ;;  %v21555_v61 = vld [vmem:[#allocation222_spill] sm:$0xff] }
 0x577   : > { %21541 = vst [vmem:[#allocation88_spill] sm:$0xff] %v18639_v33  ;;  %21545 = vst [vmem:[#allocation156_spill] sm:$0xff] %v18645_v60  ;;  %v7113_v11 = vmul.f32 %v21548_v26, %v6953_v62  ;;  %v18650_v50 = vpop.eup %14815  ;;  %v21551_v26 = vld [vmem:[#allocation185_spill] sm:$0xff]  ;;  %v6270_v36 = vsel %vm878_vm2, %v18645_v60, 0.0  ;;  %14841 = vrcp.f32 %v18385_v6  ;;  %v6791_v3 = vsub.f32 2.0, %v6631_v31 }
 0x578   : > { %v14818_v47 = vpop.eup %14817  ;;  %v5616_v58 = vsub.f32 %v21551_v26, %v21550_v8  ;;  %14843 = vpow2.f32 %v5900_v27  ;;  %v21553_v26 = vld [vmem:[#allocation162_spill] sm:$0xff] }
 0x579   : > { %6304 = vadd.xlane.f32.xlu1 %v6303_v7  ;;  %6274 = vadd.xlane.f32.xlu0 %v6273_v59  ;;  %v18658_v43 = vpop.xlane.xlu1 %6106  ;;  %v6632_v19 = vmul.f32 %v14818_v47, %v18585_v25  ;;  %v18671_v7 = vpop.eup %14819  ;;  %v6630_v25 = vmul.f32 %v18650_v50, %v18516_v55  ;;  %14845 = vpow2.f32 %v5898_v17  ;;  %v5475_v60 = vsel %vm878_vm2, %v21553_v26, -inf  ;;  %v21556_v55 = vld [vmem:[#allocation188_spill] sm:$0xff]  ;;  %v21559_v26 = vld [vmem:[#allocation223_spill] sm:$0xff] }
 0x57a   : > { %v18660_v62 = vpop.xlane.xlu0 %6181  ;;  %13925 = vmatpush3.xpose.msk.msra.mxu1 %vm878_vm2, %v7113_v11  ;;  %21552 = vst [vmem:[#allocation154_spill] sm:$0xff] %v18671_v7  ;;  %v14822_v28 = vpop.eup %14821  ;;  %14847 = vpow2.f32 %v5904_v14  ;;  %v5902_v31 = vmul.f32 1.442695, %v5616_v58  ;;  %v6279_v27 = vsel %vm878_vm2, %v18671_v7, 0.0  ;;  %v6951_v40 = vmul.f32 %v14810_v53, %v6791_v3  ;;  %v21563_v3 = vld [vmem:[#allocation225_spill] sm:$0xff] }
 0x57b   : > { %21549 = vst [vmem:[#allocation101_spill] sm:$0xff] %v18660_v62  ;;  %13926 = vmatprep.subr.mxu1 %v21309_v56  ;;  %v6792_v39 = vsub.f32 2.0, %v6632_v19  ;;  %v18682_v42 = vpop.eup %14823  ;;  %v5607_v19 = vsub.f32 %v21556_v55, %v21555_v61  ;;  %v6790_v17 = vsub.f32 2.0, %v6630_v25  ;;  %v5606_v14 = vsub.f32 %v21560_v21, %v21559_v26  ;;  %v21568_v62 = vld [vmem:[#allocation193_spill] sm:$0xff] }
 0x57c   : > { %21554 = vst [vmem:[#allocation157_spill] sm:$0xff] %v18682_v42  ;;  %14849 = vrcp.f32 %v18658_v43 }
 0x57d   : > { %6301 = vadd.xlane.f32.xlu1 %v6300_v13  ;;  %6271 = vadd.xlane.f32.xlu0 %v6270_v36  ;;  %v18676_v11 = vpop.xlane.xlu1 %6103  ;;  %v6952_v8 = vmul.f32 %v14818_v47, %v6792_v39  ;;  %v18688_v13 = vpop.eup %14825  ;;  %v6629_v36 = vmul.f32 %v14822_v28, %v18439_v9  ;;  %v21558_v47 = vld [vmem:[#allocation176_spill] sm:$0xff]  ;;  %v6285_v9 = vsel %vm878_vm2, %v18682_v42, 0.0  ;;  %v5884_v21 = vmul.f32 1.442695, %v5607_v19 }
 0x57e   : > { %v18678_v59 = vpop.xlane.xlu0 %6070  ;;  %21557 = vst [vmem:[#allocation172_spill] sm:$0xff] %v18688_v13  ;;  %v18692_v34 = vpop.eup %14827  ;;  %v6950_v7 = vmul.f32 %v18650_v50, %v6790_v17  ;;  %v5882_v19 = vmul.f32 1.442695, %v5606_v14 }
 0x57f   : > { %v7112_v39 = vmul.f32 %v21558_v47, %v6952_v8  ;;  %v18701_v55 = vpop.eup %14829  ;;  %v6276_v8 = vsel %vm878_vm2, %v18688_v13, 0.0  ;;  %v6628_v47 = vmul.f32 %v18692_v34, %v18476_v51 }
 0x580   : > { %21561 = vst [vmem:[#allocation58_spill] sm:$0xff] %v18701_v55  ;;  %v18707_v53 = vpop.eup %14831 }
 0x581   : > { %5476 = vmax.xlane.f32.xlu1 %v5475_v60  ;;  %6280 = vadd.xlane.f32.xlu0 %v6279_v27  ;;  %v18697_v58 = vpop.xlane.xlu1 %6112  ;;  %21562 = vst [vmem:[#allocation160_spill] sm:$0xff] %v18707_v53  ;;  %v21564_v60 = vld [vmem:[#allocation192_spill] sm:$0xff]  ;;  %v18714_v26 = vpop.eup %14833  ;;  %v6789_v27 = vsub.f32 2.0, %v6629_v36 }
 0x582   : > { %v18699_v61 = vpop.xlane.xlu0 %6067  ;;  %13927 = vmatpush3.xpose.msk.msra.mxu1 %vm878_vm2, %v7112_v39  ;;  %14851 = vrcp.f32 %v18697_v58  ;;  %v5609_v25 = vsub.f32 %v21564_v60, %v21563_v3  ;;  %21565 = vst [vmem:[#allocation175_spill] sm:$0xff] %v18714_v26  ;;  %v21566_v39 = vld [vmem:[#allocation97_spill] sm:$0xff]  ;;  %v5608_v3 = vsub.f32 %v21568_v62, %v21567_v18  ;;  %v21571_v18 = vld [vmem:[#allocation82_spill] sm:$0xff]  ;;  %v6267_v62 = vsel %vm878_vm2, %v18714_v26, 0.0 }
 0x583   : > { %14853 = vpow2.f32 %v5902_v31  ;;  %13928 = vmatprep.subr.mxu1 %v21309_v56  ;;  %v7111_v42 = vmul.f32 %v21566_v39, %v6951_v40  ;;  %v14836_v31 = vpop.eup %14835  ;;  %v5472_v50 = vsel %vm878_vm2, %v21571_v18, -inf  ;;  %v6949_v14 = vmul.f32 %v14822_v28, %v6789_v27  ;;  %v21574_v18 = vld [vmem:[#allocation208_spill] sm:$0xff] }
 0x584   : > { %14855 = vrcp.f32 %v18676_v11  ;;  %v18727_v36 = vpop.eup %14837  ;;  %v5888_v40 = vmul.f32 1.442695, %v5609_v25  ;;  %v6627_v17 = vmul.f32 %v14836_v31, %v18324_v38  ;;  %v5886_v22 = vmul.f32 1.442695, %v5608_v3 }
 0x585   : > { %6286 = vadd.xlane.f32.xlu1 %v6285_v9  ;;  %6277 = vadd.xlane.f32.xlu0 %v6276_v8  ;;  %v18723_v60 = vpop.xlane.xlu1 %6109  ;;  %21569 = vst [vmem:[#allocation178_spill] sm:$0xff] %v18727_v36  ;;  %v18731_v51 = vpop.eup %14839  ;;  %v6788_v9 = vsub.f32 2.0, %v6628_v47  ;;  %v21572_v8 = vld [vmem:[#allocation164_spill] sm:$0xff]  ;;  %v5613_v26 = vsub.f32 %v21575_v29, %v21574_v18  ;;  %v5454_v28 = vsel %vm878_vm2, %v18570_v46, -inf  ;;  %v21584_v46 = vld [vmem:[#allocation163_spill] sm:$0xff] }
 0x586   : > { %v18725_v13 = vpop.xlane.xlu0 %6076  ;;  %13929 = vmatpush3.xpose.msk.msra.mxu1 %vm878_vm2, %v7111_v42  ;;  %14857 = vrcp.f32 %v18723_v60  ;;  %21570 = vst [vmem:[#allocation217_spill] sm:$0xff] %v18731_v51  ;;  %v7110_v42 = vmul.f32 %v21572_v8, %v6950_v7  ;;  %v14842_v39 = vpop.eup %14841  ;;  %v6282_v7 = vsel %vm878_vm2, %v18701_v55, 0.0  ;;  %v6787_v47 = vsub.f32 2.0, %v6627_v17 }
 0x587   : > { %14859 = vpow2.f32 %v5884_v21  ;;  %13930 = vmatprep.subr.mxu1 %v21309_v56  ;;  %v18744_v33 = vpop.eup %14843  ;;  %v6626_v29 = vmul.f32 %v14842_v39, %v18385_v6  ;;  %v6948_v18 = vmul.f32 %v18692_v34, %v6788_v9  ;;  %v5896_v8 = vmul.f32 1.442695, %v5613_v26  ;;  %v21579_v6 = vld [vmem:[#allocation202_spill] sm:$0xff] }
 0x588   : > { %14861 = vpow2.f32 %v5882_v19  ;;  %21573 = vst [vmem:[#allocation148_spill] sm:$0xff] %v18744_v33  ;;  %v18750_v38 = vpop.eup %14845  ;;  %v21578_v19 = vld [vmem:[#allocation215_spill] sm:$0xff]  ;;  %v6947_v26 = vmul.f32 %v14836_v31, %v6787_v47 }
 0x589   : > { %5473 = vmax.xlane.f32.xlu1 %v5472_v50  ;;  %6268 = vadd.xlane.f32.xlu0 %v6267_v62  ;;  %v18740_v21 = vpop.xlane.xlu1 %6142  ;;  %14863 = vrcp.f32 %v18620_v45  ;;  %21576 = vst [vmem:[#allocation180_spill] sm:$0xff] %v18750_v38  ;;  %v18757_v27 = vpop.eup %14847  ;;  %v7109_v3 = vmul.f32 %v21578_v19, %v6949_v14  ;;  %v21580_v14 = vld [vmem:[#allocation171_spill] sm:$0xff]  ;;  %v21583_v19 = vld [vmem:[#allocation120_spill] sm:$0xff] }
 0x58a   : > { %v18742_v25 = vpop.xlane.xlu0 %6073  ;;  %13931 = vmatpush3.xpose.msk.msra.mxu1 %vm878_vm2, %v7110_v42  ;;  %14865 = vpow2.f32 %v5888_v40  ;;  %21577 = vst [vmem:[#allocation219_spill] sm:$0xff] %v18757_v27  ;;  %v18766_v62 = vpop.eup %14849  ;;  %v5612_v34 = vsub.f32 %v21580_v14, %v18294_v35  ;;  %v6264_v42 = vsel %vm878_vm2, %v18731_v51, 0.0 }
 0x58b   : > { %13932 = vmatprep.subr.mxu1 %v21309_v56  ;;  %14867 = vpow2.f32 %v5886_v22  ;;  %v21581_v22 = vld [vmem:[#allocation216_spill] sm:$0xff]  ;;  %v6655_v35 = vmul.f32 %v18766_v62, %v18658_v43  ;;  %v5451_v43 = vsel %vm878_vm2, %v18526_v23, -inf }
 0x58c   : > { %14869 = vrcp.f32 %v18637_v1  ;;  %v5469_v9 = vsel %vm878_vm2, %v21581_v22, -inf }
 0x58d   : > { %6283 = vadd.xlane.f32.xlu1 %v6282_v7  ;;  %5455 = vmax.xlane.f32.xlu0 %v5454_v28  ;;  %v18762_v40 = vpop.xlane.xlu1 %6139  ;;  %14871 = vrcp.f32 %v21579_v6  ;;  %v6786_v28 = vsub.f32 2.0, %v6626_v29  ;;  %v5611_v6 = vsub.f32 %v21584_v46, %v18322_v24  ;;  %v5894_v29 = vmul.f32 1.442695, %v5612_v34  ;;  %v21585_v24 = vld [vmem:[#allocation218_spill] sm:$0xff]  ;;  %v21587_v34 = vld [vmem:[#allocation165_spill] sm:$0xff] }
 0x58e   : > { %v18764_v50 = vpop.xlane.xlu0 %6082  ;;  %13933 = vmatpush3.xpose.msk.msra.mxu1 %vm878_vm2, %v7109_v3  ;;  %v7108_v3 = vmul.f32 %v21583_v19, %v6948_v18  ;;  %14873 = vrcp.f32 %v18583_v2  ;;  %v5466_v46 = vsel %vm878_vm2, %v21585_v24, -inf  ;;  %v5610_v22 = vsub.f32 %v21587_v34, %v18354_v15  ;;  %v21592_v34 = vld [vmem:[#allocation115_spill] sm:$0xff] }
 0x58f   : > { %v14852_v17 = vpop.eup %14851  ;;  %13934 = vmatprep.subr.mxu1 %v21309_v56  ;;  %14875 = vpow2.f32 %v5896_v8  ;;  %v6946_v8 = vmul.f32 %v14842_v39, %v6786_v28 }
 0x590   : > { %v18778_v7 = vpop.eup %14853  ;;  %v6657_v55 = vmul.f32 %v14852_v17, %v18697_v58  ;;  %14877 = vrcp.f32 %v18296_v30  ;;  %v6815_v30 = vsub.f32 2.0, %v6655_v35  ;;  %v6261_v35 = vsel %vm878_vm2, %v18707_v53, 0.0 }
 0x591   : > { %21582 = vst [vmem:[#allocation149_spill] sm:$0xff] %v18778_v7  ;;  %5470 = vmax.xlane.f32.xlu1 %v5469_v9  ;;  %6265 = vadd.xlane.f32.xlu0 %v6264_v42  ;;  %v18787_v14 = vpop.xlane.xlu1 %6148  ;;  %v18791_v31 = vpop.eup %14855  ;;  %v21586_v9 = vld [vmem:[#allocation108_spill] sm:$0xff]  ;;  %14879 = vrcp.f32 %v18603_v44 }
 0x592   : > { %v18789_v51 = vpop.xlane.xlu0 %6079  ;;  %v6817_v47 = vsub.f32 2.0, %v6657_v55  ;;  %13935 = vmatpush3.xpose.msk.msra.mxu1 %vm878_vm2, %v7108_v3  ;;  %v7107_v42 = vmul.f32 %v21586_v9, %v6947_v26  ;;  %v5892_v3 = vmul.f32 1.442695, %v5611_v6  ;;  %v6654_v39 = vmul.f32 %v18791_v31, %v18676_v11  ;;  %v21589_v26 = vld [vmem:[#allocation79_spill] sm:$0xff] }
 0x593   : > { %v14858_v58 = vpop.eup %14857  ;;  %13936 = vmatprep.subr.mxu1 %v21309_v56  ;;  %14881 = vrcp.f32 %v18764_v50  ;;  %v5633_v28 = vsub.f32 %v21589_v26, %v18383_v0  ;;  %v6351_v9 = vsel %vm878_vm2, %v18757_v27, 0.0  ;;  %v5890_v0 = vmul.f32 1.442695, %v5610_v22 }
 0x594   : > { %v18800_v18 = vpop.eup %14859  ;;  %v6977_v55 = vmul.f32 %v14852_v17, %v6817_v47  ;;  %v6656_v19 = vmul.f32 %v14858_v58, %v18723_v60  ;;  %v21588_v17 = vld [vmem:[#allocation113_spill] sm:$0xff]  ;;  %v21591_v47 = vld [vmem:[#allocation212_spill] sm:$0xff] }
 0x595   : > { %5467 = vmax.xlane.f32.xlu1 %v5466_v46  ;;  %5452 = vmax.xlane.f32.xlu0 %v5451_v43  ;;  %v18807_v24 = vpop.xlane.xlu1 %6145  ;;  %v18811_v57 = vpop.eup %14861  ;;  %v7106_v46 = vmul.f32 %v21591_v47, %v6946_v8  ;;  %v6814_v8 = vsub.f32 2.0, %v6654_v39  ;;  %v5936_v26 = vmul.f32 1.442695, %v5633_v28 }
 0x596   : > { %v18809_v23 = vpop.xlane.xlu0 %6088  ;;  %v7137_v60 = vmul.f32 %v21588_v17, %v6977_v55  ;;  %v6816_v6 = vsub.f32 2.0, %v6656_v19  ;;  %13937 = vmatpush3.xpose.msk.msra.mxu1 %vm878_vm2, %v7107_v42  ;;  %v18818_v15 = vpop.eup %14863 }
 0x597   : > { %14883 = vrcp.f32 %v18809_v23  ;;  %13938 = vmatprep.subr.mxu1 %v21309_v56  ;;  %v18826_v11 = vpop.eup %14865 }
 0x598   : > { %21590 = vst [vmem:[#allocation220_spill] sm:$0xff] %v18826_v11  ;;  %14885 = vpow2.f32 %v5894_v29  ;;  %v6976_v43 = vmul.f32 %v14858_v58, %v6816_v6  ;;  %13982 = vmatpush3.xpose.msk.msra.mxu0 %vm878_vm2, %v7137_v60  ;;  %v18836_v19 = vpop.eup %14867  ;;  %v6653_v29 = vmul.f32 %v18818_v15, %v18620_v45  ;;  %v6975_v58 = vmul.f32 %v18766_v62, %v6815_v30  ;;  %v21594_v60 = vld [vmem:[#allocation48_spill] sm:$0xff] }
 0x599   : > { %14887 = vpow2.f32 %v5892_v3  ;;  %6352 = vadd.xlane.f32.xlu1 %v6351_v9  ;;  %6262 = vadd.xlane.f32.xlu0 %v6261_v35  ;;  %v18832_v42 = vpop.xlane.xlu1 %6154  ;;  %v18844_v22 = vpop.eup %14869  ;;  %v21593_v3 = vld [vmem:[#allocation47_spill] sm:$0xff]  ;;  %v6348_v30 = vsel %vm878_vm2, %v18778_v7, 0.0  ;;  %v5448_v62 = vsel %vm878_vm2, %v18544_v37, -inf }
 0x59a   : > { %v18834_v55 = vpop.xlane.xlu0 %6085  ;;  %v7136_v17 = vmul.f32 %v21592_v34, %v6976_v43  ;;  %13939 = vmatpush3.xpose.msk.msra.mxu1 %vm878_vm2, %v7106_v46  ;;  %13983 = vmatprep.subr.mxu0 %v21309_v56  ;;  %v1701_v6 = vadd.f32 %v21594_v60, %v21593_v3  ;;  %v18850_v45 = vpop.eup %14871  ;;  %v6813_v47 = vsub.f32 2.0, %v6653_v29  ;;  %v6652_v46 = vmul.f32 %v18844_v22, %v18637_v1  ;;  %v21595_v43 = vld [vmem:[#allocation110_spill] sm:$0xff]  ;;  %v21596_v29 = vld [vmem:[#allocation80_spill] sm:$0xff] }
 0x59b   : > { %14889 = vrcp.f32 %v18834_v55  ;;  %13962 = vmatprep.subr.mxu1 %v21309_v56  ;;  %v18863_v35 = vpop.eup %14873  ;;  %v7135_v9 = vmul.f32 %v21595_v43, %v6975_v58  ;;  %v5632_v3 = vsub.f32 %v21596_v29, %v18413_v52  ;;  %v6345_v1 = vsel %vm878_vm2, %v18744_v33, 0.0 }
 0x59c   : > { %14891 = vrcp.f32 %v18789_v51  ;;  %13984 = vmatpush3.xpose.msk.msra.mxu0 %vm878_vm2, %v7136_v17  ;;  %v18870_v34 = vpop.eup %14875  ;;  %v6258_v58 = vsel %vm878_vm2, %v18727_v36, 0.0  ;;  %v5445_v52 = vsel %vm878_vm2, %v18500_v54, -inf  ;;  %v6327_v29 = vsel %vm878_vm2, %v18826_v11, 0.0 }
 0x59d   : > { %14893 = vpow2.f32 %v5890_v0  ;;  %13941 = vmatmul.mubr.msk.f32.vlgmr.msra.gmra.mxu1 %vm878_vm2, %v1701_v6  ;;  %6349 = vadd.xlane.f32.xlu1 %v6348_v30  ;;  %v18859_v39 = vpop.xlane.xlu1 %6151  ;;  %v6974_v0 = vmul.f32 %v18791_v31, %v6814_v8  ;;  %v18874_v17 = vpop.eup %14877  ;;  %v6651_v31 = vmul.f32 %v18863_v35, %v18583_v2  ;;  %v6812_v30 = vsub.f32 2.0, %v6652_v46  ;;  %v21598_v46 = vld [vmem:[#allocation209_spill] sm:$0xff] }
 0x59e   : > { %v18861_v28 = vpop.xlane.xlu0 %5356  ;;  %5449 = vmax.xlane.f32.xlu0 %v5448_v62  ;;  %13985 = vmatprep.subr.mxu0 %v21309_v56  ;;  %14895 = vpow2.f32 %v5936_v26  ;;  %v18894_v6 = vpop.eup %14879  ;;  %v6973_v26 = vmul.f32 %v18818_v15, %v6813_v47  ;;  %v21597_v62 = vld [vmem:[#allocation112_spill] sm:$0xff]  ;;  %v5934_v47 = vmul.f32 1.442695, %v5632_v3 }
 0x59f   : > { %13978 = vmatprep.mubr.msk.f32.mxu1 %vm15258_vm4, %v21309_v56  ;;  %14897 = vrcp.f32 %v18725_v13  ;;  %v7134_v2 = vmul.f32 %v21597_v62, %v6974_v0  ;;  %v5631_v0 = vsub.f32 %v21598_v46, %v18437_v12  ;;  %v6811_v53 = vsub.f32 2.0, %v6651_v31  ;;  %v21601_v46 = vld [vmem:[#allocation106_spill] sm:$0xff] }
 0x5a0   : > { %13986 = vmatpush3.xpose.msk.msra.mxu0 %vm878_vm2, %v7135_v9  ;;  %14899 = vrcp.f32 %v18415_v10  ;;  %v18899_v43 = vpop.eup %14881  ;;  %v6342_v9 = vsel %vm878_vm2, %v18750_v38, 0.0  ;;  %v21600_v38 = vld [vmem:[#allocation184_spill] sm:$0xff]  ;;  %v7133_v31 = vmul.f32 %v21601_v46, %v6973_v26  ;;  %v21602_v26 = vld [vmem:[#allocation205_spill] sm:$0xff] }
 0x5a1   : > { %6346 = vadd.xlane.f32.xlu1 %v6345_v1  ;;  %v18887_v8 = vpop.xlane.xlu1 %6160  ;;  %13987 = vmatprep.subr.mxu0 %v21309_v56  ;;  %14901 = vrcp.f32 %v18832_v42  ;;  %v18908_v1 = vsel %vm878_vm2, %v18519_v49, -inf  ;;  %v5605_v3 = vsub.f32 %v21600_v38, %v18861_v28  ;;  %v6339_v28 = vsel %vm878_vm2, %v18870_v34, 0.0 }
 0x5a2   : > { %v18889_v60 = vpop.xlane.xlu0 %6166  ;;  %6259 = vadd.xlane.f32.xlu0 %v6258_v58  ;;  %14903 = vrcp.f32 %v18887_v8  ;;  %v21599_v58 = vld [vmem:[#allocation211_spill] sm:$0xff]  ;;  %v5932_v7 = vmul.f32 1.442695, %v5631_v0  ;;  %v5629_v46 = vsub.f32 %v21602_v26, %v18474_v16  ;;  %v6971_v0 = vmul.f32 %v18863_v35, %v6811_v53 }
 0x5a3   : > { %v5630_v62 = vsub.f32 %v21599_v58, %v18454_v4  ;;  %14905 = vrcp.f32 %v18742_v25  ;;  %v6972_v58 = vmul.f32 %v18844_v22, %v6812_v30  ;;  %v21603_v30 = vld [vmem:[#allocation186_spill] sm:$0xff] }
 0x5a4   : > { %v14884_v15 = vpop.eup %14883  ;;  %13988 = vmatpush3.xpose.msk.msra.mxu0 %vm878_vm2, %v7134_v2  ;;  %14907 = vrcp.f32 %v18678_v59  ;;  %v6650_v2 = vmul.f32 %v18894_v6, %v18603_v44 }
 0x5a5   : > { %v18916_v36 = vpop.eup %14885  ;;  %v6649_v11 = vmul.f32 %v14884_v15, %v18809_v23  ;;  %6343 = vadd.xlane.f32.xlu1 %v6342_v9  ;;  %v18922_v33 = vpop.xlane.xlu1 %6157  ;;  %13989 = vmatprep.subr.mxu0 %v21309_v56  ;;  %v6647_v23 = vmul.f32 %v18899_v43, %v18764_v50  ;;  %v5930_v44 = vmul.f32 1.442695, %v5630_v62  ;;  %v21604_v62 = vld [vmem:[#allocation87_spill] sm:$0xff] }
 0x5a6   : > { %v5354_v12 = vpop.xlane.xlu0 %5353  ;;  %v18925_v4 = vpop.eup %14887  ;;  %5446 = vmax.xlane.f32.xlu0 %v5445_v52  ;;  %14909 = vrcp.f32 %v18922_v33  ;;  %v6810_v16 = vsub.f32 2.0, %v6650_v2  ;;  %v6336_v35 = vsel %vm878_vm2, %v18916_v36, 0.0 }
 0x5a7   : > { %v6809_v38 = vsub.f32 2.0, %v6649_v11  ;;  %14911 = vrcp.f32 %v18859_v39  ;;  %v5880_v11 = vmul.f32 1.442695, %v5605_v3  ;;  %v5604_v27 = vsub.f32 %v21603_v30, %v5354_v12  ;;  %v21605_v3 = vld [vmem:[#allocation121_spill] sm:$0xff] }
 0x5a8   : > { %v14890_v9 = vpop.eup %14889  ;;  %14913 = vpow2.f32 %v5934_v47  ;;  %13990 = vmatpush3.xpose.msk.msra.mxu0 %vm878_vm2, %v7133_v31  ;;  %v7132_v31 = vmul.f32 %v21604_v62, %v6972_v58  ;;  %v6970_v62 = vmul.f32 %v18894_v6, %v6810_v16 }
 0x5a9   : > { %v18940_v22 = vpop.eup %14891  ;;  %v6969_v52 = vmul.f32 %v14884_v15, %v6809_v38  ;;  %v6648_v50 = vmul.f32 %v14890_v9, %v18834_v55  ;;  %6340 = vadd.xlane.f32.xlu1 %v6339_v28  ;;  %v18944_v49 = vpop.xlane.xlu1 %6190  ;;  %13991 = vmatprep.subr.mxu0 %v21309_v56  ;;  %14915 = vrcp.f32 %v18699_v61  ;;  %v6807_v55 = vsub.f32 2.0, %v6647_v23 }
 0x5aa   : > { %v18947_v47 = vpop.eup %14893  ;;  %6328 = vadd.xlane.f32.xlu0 %v6327_v29  ;;  %v18952_v15 = vpop.xlane.xlu0 %6163  ;;  %14917 = vrcp.f32 %v18787_v14  ;;  %v6646_v53 = vmul.f32 %v18940_v22, %v18789_v51  ;;  %v18965_v29 = vsel %vm878_vm2, %v18800_v18, 0.0  ;;  %v5878_v23 = vmul.f32 1.442695, %v5604_v27 }
 0x5ab   : > { %v7129_v12 = vmul.f32 %v21605_v3, %v6969_v52  ;;  %v6808_v38 = vsub.f32 2.0, %v6648_v50  ;;  %v18956_v28 = vpop.eup %14895  ;;  %14919 = vpow2.f32 %v5932_v7  ;;  %v6324_v51 = vsel %vm878_vm2, %v18836_v19, 0.0  ;;  %v21606_v50 = vld [vmem:[#allocation129_spill] sm:$0xff] }
 0x5ac   : > { %13992 = vmatpush3.xpose.msk.msra.mxu0 %vm878_vm2, %v7132_v31  ;;  %v18967_v2 = vpop.eup %14897  ;;  %14921 = vpow2.f32 %v5880_v11  ;;  %v5928_v52 = vmul.f32 1.442695, %v5629_v46  ;;  %v7131_v30 = vmul.f32 %v21606_v50, %v6971_v0  ;;  %v6967_v11 = vmul.f32 %v18899_v43, %v6807_v55  ;;  %v21607_v31 = vld [vmem:[#allocation122_spill] sm:$0xff]  ;;  %v21609_v43 = vld [vmem:[#allocation207_spill] sm:$0xff] }
 0x5ad   : > { %v6968_v58 = vmul.f32 %v14890_v9, %v6808_v38  ;;  %6337 = vadd.xlane.f32.xlu1 %v6336_v35  ;;  %13963 = vmatpush3.xpose.msk.msra.mxu1 %vm878_vm2, %v7129_v12  ;;  %v18970_v7 = vpop.xlane.xlu1 %6187  ;;  %v18974_v26 = vpop.eup %14899  ;;  %14923 = vrcp.f32 %v18456_v63  ;;  %v21608_v12 = vld [vmem:[#allocation181_spill] sm:$0xff]  ;;  %v6645_v6 = vmul.f32 %v18967_v2, %v18725_v13  ;;  %v6806_v0 = vsub.f32 2.0, %v6646_v53 }
 0x5ae   : > { %5443 = vmax.xlane.f32.xlu0 %v18908_v1  ;;  %v5351_v27 = vpop.xlane.xlu0 %5350  ;;  %13964 = vmatprep.subr.mxu1 %v21309_v56  ;;  %v18981_v9 = vpop.eup %14901  ;;  %14925 = vpow2.f32 %v5930_v44  ;;  %v6333_v1 = vsel %vm878_vm2, %v18925_v4, 0.0  ;;  %v5628_v16 = vsub.f32 %v21609_v43, %v18495_v5  ;;  %v6330_v5 = vsel %vm878_vm2, %v18947_v47, 0.0 }
 0x5af   : > { %v7128_v3 = vmul.f32 %v21607_v31, %v6968_v58  ;;  %v5603_v38 = vsub.f32 %v21608_v12, %v5351_v27  ;;  %13993 = vmatprep.subr.mxu0 %v21309_v56  ;;  %v14904_v46 = vpop.eup %14903  ;;  %14927 = vrcp.f32 %v18807_v24  ;;  %v21610_v58 = vld [vmem:[#allocation104_spill] sm:$0xff]  ;;  %v21611_v27 = vld [vmem:[#allocation118_spill] sm:$0xff] }
 0x5b0   : > { %13994 = vmatpush3.xpose.msk.msra.mxu0 %vm878_vm2, %v7131_v30  ;;  %v18993_v44 = vpop.eup %14905  ;;  %v6673_v55 = vmul.f32 %v14904_v46, %v18887_v8  ;;  %14929 = vpow2.f32 %v5878_v23  ;;  %v7130_v50 = vmul.f32 %v21610_v58, %v6970_v62  ;;  %v6318_v8 = vsel %vm878_vm2, %v18811_v57, 0.0 }
 0x5b1   : > { %v5876_v35 = vmul.f32 1.442695, %v5603_v38  ;;  %6334 = vadd.xlane.f32.xlu1 %v6333_v1  ;;  %13965 = vmatpush3.xpose.msk.msra.mxu1 %vm878_vm2, %v7128_v3  ;;  %v18999_v13 = vpop.xlane.xlu1 %6196  ;;  %v19001_v53 = vpop.eup %14907  ;;  %14931 = vpow2.f32 %v5928_v52  ;;  %v7127_v31 = vmul.f32 %v21611_v27, %v6967_v11  ;;  %v6671_v52 = vmul.f32 %v18981_v9, %v18832_v42 }
 0x5b2   : > { %6325 = vadd.xlane.f32.xlu0 %v6324_v51  ;;  %v19004_v30 = vpop.xlane.xlu0 %6232  ;;  %13966 = vmatprep.subr.mxu1 %v21309_v56  ;;  %14933 = vrcp.f32 %v18740_v21  ;;  %v6833_v62 = vsub.f32 2.0, %v6673_v55  ;;  %v6805_v3 = vsub.f32 2.0, %v6645_v6  ;;  %v6644_v12 = vmul.f32 %v18993_v44, %v18742_v25  ;;  %v21612_v25 = vld [vmem:[#allocation105_spill] sm:$0xff] }
 0x5b3   : > { %v14910_v23 = vpop.eup %14909  ;;  %13995 = vmatprep.subr.mxu0 %v21309_v56  ;;  %v6966_v38 = vmul.f32 %v18940_v22, %v6806_v0  ;;  %v5926_v11 = vmul.f32 1.442695, %v5628_v16  ;;  %14935 = vpow2.f32 %v5876_v35  ;;  %v6399_v6 = vsel %vm878_vm2, %v18956_v28, 0.0 }
 0x5b4   : > { %v19016_v51 = vpop.eup %14911  ;;  %v6672_v1 = vmul.f32 %v14910_v23, %v18922_v33  ;;  %13996 = vmatpush3.xpose.msk.msra.mxu0 %vm878_vm2, %v7130_v50  ;;  %v6993_v58 = vmul.f32 %v14904_v46, %v6833_v62  ;;  %v5627_v22 = vsub.f32 %v21612_v25, %v18514_v41  ;;  %v19034_v33 = vmul.f32 %v19001_v53, %v18678_v59  ;;  %v21613_v50 = vld [vmem:[#allocation146_spill] sm:$0xff]  ;;  %v21615_v59 = vld [vmem:[#allocation60_spill] sm:$0xff] }
 0x5b5   : > { %v19023_v43 = vpop.eup %14913  ;;  %6331 = vadd.xlane.f32.xlu1 %v6330_v5  ;;  %13967 = vmatpush3.xpose.msk.msra.mxu1 %vm878_vm2, %v7127_v31  ;;  %v19026_v42 = vpop.xlane.xlu1 %6193  ;;  %14937 = vrcp.f32 %v18762_v40  ;;  %v6831_v55 = vsub.f32 2.0, %v6671_v52  ;;  %v6670_v35 = vmul.f32 %v19016_v51, %v18859_v39  ;;  %v21614_v5 = vld [vmem:[#allocation183_spill] sm:$0xff]  ;;  %v6804_v62 = vsub.f32 2.0, %v6644_v12 }
 0x5b6   : > { %v6832_v0 = vsub.f32 2.0, %v6672_v1  ;;  %6322 = vadd.xlane.f32.xlu0 %v18965_v29  ;;  %v5348_v46 = vpop.xlane.xlu0 %5347  ;;  %13968 = vmatprep.subr.mxu1 %v21309_v56  ;;  %v19039_v16 = vpop.eup %14915  ;;  %v7153_v41 = vmul.f32 %v21613_v50, %v6993_v58  ;;  %v6965_v29 = vmul.f32 %v18967_v2, %v6805_v3  ;;  %v21616_v1 = vld [vmem:[#allocation119_spill] sm:$0xff]  ;;  %14939 = vrcp.f32 %v18356_v20 }
 0x5b7   : > { %v5602_v27 = vsub.f32 %v21614_v5, %v5348_v46  ;;  %13998 = vmatmul.mubr.msk.f32.vlgmr.msra.gmra.mxu0 %vm878_vm2, %v21615_v59  ;;  %14019 = vmatprep.subr.mxu0 %v21309_v56  ;;  %v19048_v31 = vpop.eup %14917  ;;  %v7126_v25 = vmul.f32 %v21616_v1, %v6966_v38  ;;  %v19059_v58 = vmul.f32 %v18974_v26, %v18415_v10  ;;  %v21617_v46 = vld [vmem:[#allocation77_spill] sm:$0xff]  ;;  %14941 = vpow2.f32 %v5926_v11  ;;  %v21619_v38 = vld [vmem:[#allocation128_spill] sm:$0xff]  ;;  %v21620_v11 = vld [vmem:[#allocation95_spill] sm:$0xff] }
 0x5b8   : > { %v6992_v52 = vmul.f32 %v14910_v23, %v6832_v0  ;;  %14035 = vmatprep.mubr.msk.f32.mxu0 %vm15258_vm4, %v21309_v56  ;;  %v19054_v39 = vpop.eup %14919  ;;  %v5626_v50 = vsub.f32 %v21617_v46, %v18533_v32  ;;  %14020 = vmatpush3.xpose.msk.msra.mxu0 %vm878_vm2, %v7153_v41  ;;  %v5924_v3 = vmul.f32 1.442695, %v5627_v22  ;;  %v6642_v12 = vmul.f32 %v19039_v16, %v18699_v61 }
 0x5b9   : > { %v5874_v5 = vmul.f32 1.442695, %v5602_v27  ;;  %6400 = vadd.xlane.f32.xlu1 %v6399_v6  ;;  %v19064_v2 = vpop.xlane.xlu1 %6202  ;;  %v19066_v23 = vpop.eup %14921  ;;  %13969 = vmatpush3.xpose.msk.msra.mxu1 %vm878_vm2, %v7126_v25  ;;  %v6669_v6 = vmul.f32 %v19048_v31, %v18787_v14  ;;  %v6991_v41 = vmul.f32 %v18981_v9, %v6831_v55  ;;  %v6830_v27 = vsub.f32 2.0, %v6670_v35  ;;  %v21621_v9 = vld [vmem:[#allocation141_spill] sm:$0xff] }
 0x5ba   : > { %21618 = vst [vmem:[#allocation155_spill] sm:$0xff] %v19066_v23  ;;  %v7152_v0 = vmul.f32 %v21619_v38, %v6992_v52  ;;  %6319 = vadd.xlane.f32.xlu0 %v6318_v8  ;;  %v19072_v10 = vpop.xlane.xlu0 %6229  ;;  %v19074_v32 = vpop.eup %14923  ;;  %13970 = vmatprep.subr.mxu1 %v21309_v56  ;;  %v6803_v8 = vsub.f32 2.0, %v19034_v33  ;;  %v7125_v22 = vmul.f32 %v21620_v11, %v6965_v29  ;;  %v6396_v1 = vsel %vm878_vm2, %v19023_v43, 0.0  ;;  %v21622_v29 = vld [vmem:[#allocation125_spill] sm:$0xff]  ;;  %v21624_v38 = vld [vmem:[#allocation228_spill] sm:$0xff] }
 0x5bb   : > { %14943 = vpow2.f32 %v5874_v5  ;;  %14021 = vmatprep.subr.mxu0 %v21309_v56  ;;  %v19081_v61 = vpop.eup %14925  ;;  %v6964_v59 = vmul.f32 %v18993_v44, %v6804_v62  ;;  %v5922_v55 = vmul.f32 1.442695, %v5626_v50  ;;  %v6315_v35 = vsel %vm878_vm2, %v19066_v23, 0.0 }
 0x5bc   : > { %v19088_v14 = vpop.eup %14927  ;;  %14945 = vrcp.f32 %v21621_v9  ;;  %14022 = vmatpush3.xpose.msk.msra.mxu0 %vm878_vm2, %v7152_v0  ;;  %v6825_v44 = vsub.f32 2.0, %v19059_v58  ;;  %v5649_v62 = vsub.f32 %v21622_v29, %v18554_v48  ;;  %v6802_v52 = vsub.f32 2.0, %v6642_v12 }
 0x5bd   : > { %6397 = vadd.xlane.f32.xlu1 %v6396_v1  ;;  %v19094_v25 = vpop.xlane.xlu1 %6199  ;;  %v19096_v33 = vpop.eup %14929  ;;  %14947 = vpow2.f32 %v5924_v3  ;;  %13971 = vmatpush3.xpose.msk.msra.mxu1 %vm878_vm2, %v7125_v22  ;;  %v6829_v5 = vsub.f32 2.0, %v6669_v6  ;;  %v7151_v0 = vmul.f32 %v21624_v38, %v6991_v41  ;;  %v6990_v11 = vmul.f32 %v19016_v51, %v6830_v27  ;;  %v21625_v1 = vld [vmem:[#allocation191_spill] sm:$0xff]  ;;  %v21626_v3 = vld [vmem:[#allocation116_spill] sm:$0xff] }
 0x5be   : > { %6316 = vadd.xlane.f32.xlu0 %v6315_v35  ;;  %v5417_v46 = vpop.xlane.xlu0 %5416  ;;  %v19102_v50 = vpop.eup %14931  ;;  %13972 = vmatprep.subr.mxu1 %v21309_v56  ;;  %v6963_v48 = vmul.f32 %v19001_v53, %v6803_v8  ;;  %v7124_v12 = vmul.f32 %v21626_v3, %v6964_v59  ;;  %v6668_v22 = vmul.f32 %v19088_v14, %v18807_v24  ;;  %v6393_v6 = vsel %vm878_vm2, %v19054_v39, 0.0  ;;  %v21628_v59 = vld [vmem:[#allocation197_spill] sm:$0xff] }
 0x5bf   : > { %21623 = vst [vmem:[#allocation127_spill] sm:$0xff] %v19102_v50  ;;  %v5625_v23 = vsub.f32 %v21625_v1, %v5417_v46  ;;  %14023 = vmatprep.subr.mxu0 %v21309_v56  ;;  %v19109_v58 = vpop.eup %14933  ;;  %v19119_v51 = vmul.f32 %v19074_v32, %v18456_v63  ;;  %14949 = vpow2.f32 %v5922_v55  ;;  %v6312_v53 = vsel %vm878_vm2, %v19096_v33, 0.0  ;;  %v21629_v35 = vld [vmem:[#allocation173_spill] sm:$0xff]  ;;  %v21631_v1 = vld [vmem:[#allocation92_spill] sm:$0xff] }
 0x5c0   : > { %14024 = vmatpush3.xpose.msk.msra.mxu0 %vm878_vm2, %v7151_v0  ;;  %v19126_v8 = vpop.eup %14935  ;;  %v5968_v24 = vmul.f32 1.442695, %v5649_v62  ;;  %v5648_v29 = vsub.f32 %v21629_v35, %v21628_v59  ;;  %v6962_v46 = vmul.f32 %v19039_v16, %v6802_v52  ;;  %v6989_v38 = vmul.f32 %v19048_v31, %v6829_v5  ;;  %v21630_v62 = vld [vmem:[#allocation124_spill] sm:$0xff]  ;;  %v21633_v16 = vld [vmem:[#allocation210_spill] sm:$0xff]  ;;  %v21635_v59 = vld [vmem:[#allocation93_spill] sm:$0xff] }
 0x5c1   : > { %v5920_v41 = vmul.f32 1.442695, %v5625_v23  ;;  %6394 = vadd.xlane.f32.xlu1 %v6393_v6  ;;  %v19124_v27 = vpop.xlane.xlu1 %6208  ;;  %21627 = vst [vmem:[#allocation167_spill] sm:$0xff] %v19126_v8  ;;  %13973 = vmatpush3.xpose.msk.msra.mxu1 %vm878_vm2, %v7124_v12  ;;  %v6390_v23 = vsel %vm878_vm2, %v19081_v61, 0.0  ;;  %v7150_v0 = vmul.f32 %v21630_v62, %v6990_v11  ;;  %v7123_v3 = vmul.f32 %v21631_v1, %v6963_v48 }
 0x5c2   : > { %6313 = vadd.xlane.f32.xlu0 %v6312_v53  ;;  %14951 = vrcp.f32 %v19124_v27  ;;  %v19132_v63 = vpop.xlane.xlu0 %6226  ;;  %v19136_v55 = vpop.eup %14937  ;;  %13974 = vmatprep.subr.mxu1 %v21309_v56  ;;  %v6667_v12 = vmul.f32 %v19109_v58, %v18740_v21  ;;  %v6828_v6 = vsub.f32 2.0, %v6668_v22  ;;  %v21632_v53 = vld [vmem:[#allocation230_spill] sm:$0xff]  ;;  %v6663_v31 = vmul.f32 %v18874_v17, %v21633_v16 }
 0x5c3   : > { %14953 = vpow2.f32 %v5920_v41  ;;  %14025 = vmatprep.subr.mxu0 %v21309_v56  ;;  %v6985_v52 = vmul.f32 %v18974_v26, %v6825_v44  ;;  %v6309_v5 = vsel %vm878_vm2, %v19126_v8, 0.0  ;;  %v19156_v48 = vpop.eup %14939  ;;  %v6824_v21 = vsub.f32 2.0, %v19119_v51 }
 0x5c4   : > { %14955 = vrcp.f32 %v19064_v2  ;;  %14026 = vmatpush3.xpose.msk.msra.mxu0 %vm878_vm2, %v7150_v0  ;;  %v5966_v22 = vmul.f32 1.442695, %v5648_v29  ;;  %v6387_v26 = vsel %vm878_vm2, %v19102_v50, 0.0  ;;  %v19163_v44 = vpop.eup %14941  ;;  %v7122_v35 = vmul.f32 %v21635_v59, %v6962_v46  ;;  %v21637_v0 = vld [vmem:[#allocation143_spill] sm:$0xff]  ;;  %v21641_v59 = vld [vmem:[#allocation50_spill] sm:$0xff] }
 0x5c5   : > { %14957 = vrcp.f32 %v21632_v53  ;;  %6391 = vadd.xlane.f32.xlu1 %v6390_v23  ;;  %v19154_v11 = vpop.xlane.xlu1 %6205  ;;  %13975 = vmatpush3.xpose.msk.msra.mxu1 %vm878_vm2, %v7123_v3  ;;  %21634 = vst [vmem:[#allocation123_spill] sm:$0xff] %v19163_v44  ;;  %v21636_v23 = vld [vmem:[#allocation227_spill] sm:$0xff]  ;;  %v6827_v29 = vsub.f32 2.0, %v6667_v12  ;;  %v6666_v3 = vmul.f32 %v19136_v55, %v18762_v40  ;;  %v6988_v16 = vmul.f32 %v19088_v14, %v6828_v6  ;;  %v21640_v12 = vld [vmem:[#allocation49_spill] sm:$0xff] }
 0x5c6   : > { %6310 = vadd.xlane.f32.xlu0 %v6309_v5  ;;  %14959 = vrcp.f32 %v19154_v11  ;;  %v5414_v41 = vpop.xlane.xlu0 %5413  ;;  %v7149_v62 = vmul.f32 %v21636_v23, %v6989_v38  ;;  %13976 = vmatprep.subr.mxu1 %v21309_v56  ;;  %v1711_v40 = vadd.f32 %v21641_v59, %v21640_v12  ;;  %v6823_v23 = vsub.f32 2.0, %v6663_v31  ;;  %v21647_v59 = vld [vmem:[#allocation88_spill] sm:$0xff] }
 0x5c7   : > { %14961 = vpow2.f32 %v5968_v24  ;;  %v5624_v1 = vsub.f32 %v21637_v0, %v5414_v41  ;;  %14027 = vmatprep.subr.mxu0 %v21309_v56  ;;  %v21639_v24 = vld [vmem:[#allocation142_spill] sm:$0xff]  ;;  %v6662_v14 = vmul.f32 %v19156_v48, %v18356_v20  ;;  %v6384_v20 = vsel %vm878_vm2, %v19163_v44, 0.0 }
 0x5c8   : > { %v19170_v51 = vpop.eup %14943  ;;  %14963 = vrcp.f32 %v19094_v25  ;;  %14028 = vmatpush3.xpose.msk.msra.mxu0 %vm878_vm2, %v7149_v62  ;;  %v21643_v62 = vld [vmem:[#allocation214_spill] sm:$0xff]  ;;  %v6987_v31 = vmul.f32 %v19109_v58, %v6827_v29  ;;  %v6983_v12 = vmul.f32 %v18874_v17, %v6823_v23 }
 0x5c9   : > { %21638 = vst [vmem:[#allocation161_spill] sm:$0xff] %v19170_v51  ;;  %14965 = vrcp.f32 %v21639_v24  ;;  %v5918_v46 = vmul.f32 1.442695, %v5624_v1  ;;  %6388 = vadd.xlane.f32.xlu1 %v6387_v26  ;;  %v19178_v38 = vpop.xlane.xlu1 %6238  ;;  %v6306_v5 = vsel %vm878_vm2, %v19170_v51, 0.0  ;;  %v19182_v41 = vpop.eup %14945  ;;  %13977 = vmatpush3.xpose.msk.msra.mxu1 %vm878_vm2, %v7122_v35  ;;  %v7145_v0 = vmul.f32 %v21643_v62, %v6985_v52  ;;  %v21644_v35 = vld [vmem:[#allocation114_spill] sm:$0xff] }
 0x5ca   : > { %14967 = vpow2.f32 %v5966_v22  ;;  %6307 = vadd.xlane.f32.xlu0 %v6306_v5  ;;  %v19189_v6 = vpop.xlane.xlu0 %6223  ;;  %v19191_v26 = vpop.eup %14947  ;;  %v6984_v1 = vmul.f32 %v19074_v32, %v6824_v21  ;;  %14000 = vmatprep.subr.mxu1 %v21309_v56  ;;  %v6826_v22 = vsub.f32 2.0, %v6666_v3  ;;  %v7148_v5 = vmul.f32 %v21644_v35, %v6988_v16  ;;  %v21646_v21 = vld [vmem:[#allocation202_spill] sm:$0xff]  ;;  %v21648_v16 = vld [vmem:[#allocation81_spill] sm:$0xff]  ;;  %v21651_v35 = vld [vmem:[#allocation224_spill] sm:$0xff] }
 0x5cb   : > { %21642 = vst [vmem:[#allocation170_spill] sm:$0xff] %v19191_v26  ;;  %14969 = vpow2.f32 %v5918_v46  ;;  %14029 = vmatprep.subr.mxu0 %v21309_v56  ;;  %v6661_v46 = vmul.f32 %v18850_v45, %v21646_v21  ;;  %v6822_v3 = vsub.f32 2.0, %v6662_v14  ;;  %v21649_v62 = vld [vmem:[#allocation206_spill] sm:$0xff]  ;;  %v6381_v17 = vsel %vm878_vm2, %v19191_v26, 0.0  ;;  %v21652_v21 = vld [vmem:[#allocation101_spill] sm:$0xff] }
 0x5cc   : > { %14971 = vrcp.f32 %v18999_v13  ;;  %13979 = vmatmul.mubr.msk.f32.vlgmr.msra.gmra.mxu1 %vm878_vm2, %v1711_v40  ;;  %v19205_v32 = vpop.eup %14949  ;;  %14030 = vmatpush3.xpose.msk.msra.mxu0 %vm878_vm2, %v7148_v5  ;;  %v7144_v40 = vmul.f32 %v21648_v16, %v6984_v1  ;;  %v6986_v5 = vmul.f32 %v19136_v55, %v6826_v22 }
 0x5cd   : > { %6385 = vadd.xlane.f32.xlu1 %v6384_v20  ;;  %v19203_v52 = vpop.xlane.xlu1 %6235  ;;  %21645 = vst [vmem:[#allocation174_spill] sm:$0xff] %v19205_v32  ;;  %14973 = vrcp.f32 %v21647_v59  ;;  %14001 = vmatpush3.xpose.msk.msra.mxu1 %vm878_vm2, %v7145_v0  ;;  %v7147_v0 = vmul.f32 %v21651_v35, %v6987_v31  ;;  %v6821_v55 = vsub.f32 2.0, %v6661_v46  ;;  %v21653_v35 = vld [vmem:[#allocation204_spill] sm:$0xff] }
 0x5ce   : > { %v5411_v58 = vpop.xlane.xlu0 %5410  ;;  %14002 = vmatprep.subr.mxu1 %v21309_v56  ;;  %14031 = vmatprep.subr.mxu0 %v21309_v56  ;;  %14975 = vrcp.f32 %v19026_v42  ;;  %v7143_v26 = vmul.f32 %v21653_v35, %v6983_v12 }
 0x5cf   : > { %v14952_v29 = vpop.eup %14951  ;;  %v5623_v20 = vsub.f32 %v21649_v62, %v5411_v58  ;;  %14016 = vmatprep.mubr.msk.f32.mxu1 %vm15258_vm4, %v21309_v56  ;;  %14977 = vrcp.f32 %v21652_v21 }
 0x5d0   : > { %v19219_v23 = vpop.eup %14953  ;;  %v6689_v14 = vmul.f32 %v14952_v29, %v19124_v27  ;;  %v6660_v27 = vmul.f32 %v19182_v41, %v21621_v9  ;;  %14979 = vrcp.f32 %v18944_v49  ;;  %14032 = vmatpush3.xpose.msk.msra.mxu0 %vm878_vm2, %v7147_v0  ;;  %v6378_v9 = vsel %vm878_vm2, %v19205_v32, 0.0  ;;  %v21660_v32 = vld [vmem:[#allocation189_spill] sm:$0xff] }
 0x5d1   : > { %21650 = vst [vmem:[#allocation107_spill] sm:$0xff] %v19219_v23  ;;  %v19227_v1 = vpop.eup %14955  ;;  %v5916_v58 = vmul.f32 1.442695, %v5623_v20  ;;  %6382 = vadd.xlane.f32.xlu1 %v6381_v17  ;;  %v19230_v16 = vpop.xlane.xlu1 %6244  ;;  %v6375_v31 = vsel %vm878_vm2, %v19219_v23, 0.0  ;;  %14003 = vmatpush3.xpose.msk.msra.mxu1 %vm878_vm2, %v7144_v40  ;;  %v6982_v23 = vmul.f32 %v19156_v48, %v6822_v3 }
 0x5d2   : > { %v19234_v62 = vpop.eup %14957  ;;  %v6849_v22 = vsub.f32 2.0, %v6689_v14  ;;  %v19241_v20 = vpop.xlane.xlu0 %6220  ;;  %6376 = vadd.xlane.f32.xlu0 %v6375_v31  ;;  %14004 = vmatprep.subr.mxu1 %v21309_v56  ;;  %v21655_v14 = vld [vmem:[#allocation111_spill] sm:$0xff]  ;;  %v6687_v0 = vmul.f32 %v19227_v1, %v19064_v2  ;;  %v21656_v31 = vld [vmem:[#allocation150_spill] sm:$0xff]  ;;  %v21657_v2 = vld [vmem:[#allocation137_spill] sm:$0xff] }
 0x5d3   : > { %v14960_v17 = vpop.eup %14959  ;;  %14981 = vpow2.f32 %v5916_v58  ;;  %v7146_v40 = vmul.f32 %v21655_v14, %v6986_v5  ;;  %14033 = vmatprep.subr.mxu0 %v21309_v56  ;;  %v6659_v12 = vmul.f32 %v19234_v62, %v21632_v53  ;;  %v6981_v5 = vmul.f32 %v18850_v45, %v6821_v55 }
 0x5d4   : > { %v19248_v46 = vpop.eup %14961  ;;  %v7009_v44 = vmul.f32 %v14952_v29, %v6849_v22  ;;  %v6688_v51 = vmul.f32 %v14960_v17, %v19154_v11  ;;  %14983 = vrcp.f32 %v21656_v31  ;;  %v6820_v53 = vsub.f32 2.0, %v6660_v27 }
 0x5d5   : > { %21654 = vst [vmem:[#allocation177_spill] sm:$0xff] %v19248_v46  ;;  %v19255_v48 = vpop.eup %14963  ;;  %6379 = vadd.xlane.f32.xlu1 %v6378_v9  ;;  %v19259_v3 = vpop.xlane.xlu1 %6241  ;;  %14005 = vmatpush3.xpose.msk.msra.mxu1 %vm878_vm2, %v7143_v26  ;;  %v21659_v9 = vld [vmem:[#allocation78_spill] sm:$0xff]  ;;  %v6447_v45 = vsel %vm878_vm2, %v19248_v46, 0.0  ;;  %14985 = vrcp.f32 %v18970_v7 }
 0x5d6   : > { %v19261_v58 = vpop.eup %14965  ;;  %v7169_v29 = vmul.f32 %v21657_v2, %v7009_v44  ;;  %v6848_v22 = vsub.f32 2.0, %v6688_v51  ;;  %14034 = vmatpush3.xpose.msk.msra.mxu0 %vm878_vm2, %v7146_v40  ;;  %v5408_v11 = vpop.xlane.xlu0 %5407  ;;  %v7142_v14 = vmul.f32 %v21659_v9, %v6982_v23  ;;  %14006 = vmatprep.subr.mxu1 %v21309_v56  ;;  %v6847_v51 = vsub.f32 2.0, %v6687_v0  ;;  %v21662_v23 = vld [vmem:[#allocation117_spill] sm:$0xff]  ;;  %v21663_v40 = vld [vmem:[#allocation62_spill] sm:$0xff] }
 0x5d7   : > { %v19268_v35 = vpop.eup %14967  ;;  %v5622_v50 = vsub.f32 %v21660_v32, %v5408_v11  ;;  %14057 = vmatprep.subr.mxu0 %v21309_v56  ;;  %v6686_v26 = vmul.f32 %v19255_v48, %v19094_v25  ;;  %14987 = vrcp.f32 %v21662_v23  ;;  %v6658_v0 = vmul.f32 %v19261_v58, %v21639_v24  ;;  %v21664_v9 = vld [vmem:[#allocation46_spill] sm:$0xff] }
 0x5d8   : > { %21658 = vst [vmem:[#allocation89_spill] sm:$0xff] %v19268_v35  ;;  %v19276_v44 = vpop.eup %14969  ;;  %v7008_v55 = vmul.f32 %v14960_v17, %v6848_v22  ;;  %14989 = vrcp.f32 %v21664_v9  ;;  %v21665_v25 = vld [vmem:[#allocation234_spill] sm:$0xff]  ;;  %v6980_v8 = vmul.f32 %v19182_v41, %v6820_v53 }
 0x5d9   : > { %21661 = vst [vmem:[#allocation179_spill] sm:$0xff] %v19276_v44  ;;  %v19281_v27 = vpop.eup %14971  ;;  %v5914_v32 = vmul.f32 1.442695, %v5622_v50  ;;  %14036 = vmatmul.mubr.msk.f32.vlgmr.msra.gmra.mxu0 %vm878_vm2, %v21663_v40  ;;  %6448 = vadd.xlane.f32.xlu1 %v6447_v45  ;;  %v19286_v2 = vpop.xlane.xlu1 %6250  ;;  %v6372_v11 = vsel %vm878_vm2, %v19276_v44, 0.0  ;;  %v6819_v45 = vsub.f32 2.0, %v6659_v12  ;;  %v21666_v40 = vld [vmem:[#allocation201_spill] sm:$0xff] }
 0x5da   : > { %v7168_v17 = vmul.f32 %v21665_v25, %v7008_v55  ;;  %14007 = vmatpush3.xpose.msk.msra.mxu1 %vm878_vm2, %v7142_v14  ;;  %14058 = vmatpush3.xpose.msk.msra.mxu0 %vm878_vm2, %v7169_v29  ;;  %v19296_v50 = vpop.xlane.xlu0 %6217  ;;  %v14974_v22 = vpop.eup %14973  ;;  %v7141_v46 = vmul.f32 %v21666_v40, %v6981_v5  ;;  %v6685_v24 = vmul.f32 %v19281_v27, %v18999_v13  ;;  %v6846_v14 = vsub.f32 2.0, %v6686_v26  ;;  %v21668_v25 = vld [vmem:[#allocation231_spill] sm:$0xff] }
 0x5db   : > { %14991 = vpow2.f32 %v5914_v32  ;;  %6373 = vadd.xlane.f32.xlu0 %v6372_v11  ;;  %14008 = vmatprep.subr.mxu1 %v21309_v56  ;;  %v7007_v55 = vmul.f32 %v19227_v1, %v6847_v51  ;;  %v6444_v29 = vsel %vm878_vm2, %v19268_v35, 0.0  ;;  %v14976_v12 = vpop.eup %14975  ;;  %v6818_v5 = vsub.f32 2.0, %v6658_v0  ;;  %v21667_v32 = vld [vmem:[#allocation203_spill] sm:$0xff] }
 0x5dc   : > { %14059 = vmatprep.subr.mxu0 %v21309_v56  ;;  %14073 = vmatprep.mubr.msk.f32.mxu0 %vm15258_vm4, %v21309_v56  ;;  %v19309_v41 = vpop.eup %14977  ;;  %v6681_v53 = vmul.f32 %v14974_v22, %v21647_v59  ;;  %v6979_v26 = vmul.f32 %v19234_v62, %v6819_v45  ;;  %v7140_v11 = vmul.f32 %v21667_v32, %v6980_v8  ;;  %v21670_v44 = vld [vmem:[#allocation199_spill] sm:$0xff] }
 0x5dd   : > { %6445 = vadd.xlane.f32.xlu1 %v6444_v29  ;;  %v19316_v51 = vpop.eup %14979  ;;  %v6684_v0 = vmul.f32 %v14976_v12, %v19026_v42  ;;  %v7006_v35 = vmul.f32 %v19255_v48, %v6846_v14  ;;  %14993 = vrcp.f32 %v21670_v44  ;;  %v6978_v45 = vmul.f32 %v19261_v58, %v6818_v5 }
 0x5de   : > { %14009 = vmatpush3.xpose.msk.msra.mxu1 %vm878_vm2, %v7141_v46  ;;  %14060 = vmatpush3.xpose.msk.msra.mxu0 %vm878_vm2, %v7168_v17  ;;  %v19314_v13 = vpop.xlane.xlu1 %6247  ;;  %v5405_v1 = vpop.xlane.xlu0 %5404  ;;  %v6845_v46 = vsub.f32 2.0, %v6685_v24  ;;  %v21669_v17 = vld [vmem:[#allocation232_spill] sm:$0xff]  ;;  %14995 = vrcp.f32 %v19286_v2  ;;  %v6680_v32 = vmul.f32 %v19309_v41, %v21652_v21  ;;  %v6683_v58 = vmul.f32 %v19316_v51, %v18944_v49  ;;  %v21673_v21 = vld [vmem:[#allocation102_spill] sm:$0xff] }
 0x5df   : > { %v5621_v40 = vsub.f32 %v21668_v25, %v5405_v1  ;;  %14010 = vmatprep.subr.mxu1 %v21309_v56  ;;  %14061 = vmatprep.subr.mxu0 %v21309_v56  ;;  %v7167_v29 = vmul.f32 %v21669_v17, %v7007_v55  ;;  %v6841_v1 = vsub.f32 2.0, %v6681_v53  ;;  %v21671_v55 = vld [vmem:[#allocation52_spill] sm:$0xff]  ;;  %v6844_v53 = vsub.f32 2.0, %v6684_v0 }
 0x5e0   : > { %v19323_v59 = vpop.eup %14981  ;;  %v7139_v14 = vmul.f32 %v21671_v55, %v6979_v26  ;;  %v7005_v5 = vmul.f32 %v19281_v27, %v6845_v46  ;;  %v7138_v17 = vmul.f32 %v21673_v21, %v6978_v45  ;;  %v6840_v0 = vsub.f32 2.0, %v6680_v32  ;;  %v21676_v32 = vld [vmem:[#allocation51_spill] sm:$0xff] }
 0x5e1   : > { %v5912_v62 = vmul.f32 1.442695, %v5621_v40  ;;  %v6369_v8 = vsel %vm878_vm2, %v19323_v59, 0.0  ;;  %v19339_v48 = vpop.eup %14983 }
 0x5e2   : > { %14011 = vmatpush3.xpose.msk.msra.mxu1 %vm878_vm2, %v7140_v11  ;;  %14062 = vmatpush3.xpose.msk.msra.mxu0 %vm878_vm2, %v7167_v29  ;;  %v19335_v42 = vpop.xlane.xlu1 %6256  ;;  %v19337_v24 = vpop.xlane.xlu0 %6214  ;;  %v21672_v11 = vld [vmem:[#allocation135_spill] sm:$0xff]  ;;  %v6679_v49 = vmul.f32 %v19339_v48, %v21656_v31  ;;  %v7001_v29 = vmul.f32 %v14974_v22, %v6841_v1  ;;  %v21675_v1 = vld [vmem:[#allocation136_spill] sm:$0xff] }
 0x5e3   : > { %14997 = vpow2.f32 %v5912_v62  ;;  %6370 = vadd.xlane.f32.xlu0 %v6369_v8  ;;  %14012 = vmatprep.subr.mxu1 %v21309_v56  ;;  %v7166_v25 = vmul.f32 %v21672_v11, %v7006_v35  ;;  %v19351_v26 = vpop.eup %14985  ;;  %v6843_v62 = vsub.f32 2.0, %v6683_v58  ;;  %v21674_v8 = vld [vmem:[#allocation233_spill] sm:$0xff]  ;;  %v7165_v55 = vmul.f32 %v21675_v1, %v7005_v5 }
 0x5e4   : > { %14999 = vrcp.f32 %v19335_v42  ;;  %14063 = vmatprep.subr.mxu0 %v21309_v56  ;;  %v19353_v40 = vpop.eup %14987  ;;  %v6682_v22 = vmul.f32 %v19351_v26, %v18970_v7  ;;  %v21677_v58 = vld [vmem:[#allocation53_spill] sm:$0xff]  ;;  %v7000_v1 = vmul.f32 %v19309_v41, %v6840_v0 }
 0x5e5   : > { %15001 = vrcp.f32 %v18889_v60  ;;  %v19363_v46 = vpop.eup %14989  ;;  %v1721_v11 = vadd.f32 %v21677_v58, %v21676_v32  ;;  %v21680_v58 = vld [vmem:[#allocation139_spill] sm:$0xff] }
 0x5e6   : > { %14013 = vmatpush3.xpose.msk.msra.mxu1 %vm878_vm2, %v7139_v14  ;;  %14064 = vmatpush3.xpose.msk.msra.mxu0 %vm878_vm2, %v7166_v25  ;;  %v19361_v35 = vpop.xlane.xlu1 %6253  ;;  %v5402_v27 = vpop.xlane.xlu0 %5401  ;;  %v7004_v14 = vmul.f32 %v14976_v12, %v6844_v53  ;;  %v6678_v7 = vmul.f32 %v19363_v46, %v21664_v9  ;;  %v21678_v53 = vld [vmem:[#allocation109_spill] sm:$0xff]  ;;  %v7003_v9 = vmul.f32 %v19316_v51, %v6843_v62 }
 0x5e7   : > { %15003 = vrcp.f32 %v19361_v35  ;;  %v5620_v45 = vsub.f32 %v21674_v8, %v5402_v27  ;;  %14014 = vmatprep.subr.mxu1 %v21309_v56  ;;  %14065 = vmatprep.subr.mxu0 %v21309_v56  ;;  %v19381_v27 = vmul.f32 %v19353_v40, %v21662_v23  ;;  %v6839_v8 = vsub.f32 2.0, %v6679_v49  ;;  %v21679_v23 = vld [vmem:[#allocation98_spill] sm:$0xff] }
 0x5e8   : > { %v19369_v31 = vpop.eup %14991  ;;  %15005 = vrcp.f32 %v19314_v13  ;;  %v6842_v49 = vsub.f32 2.0, %v6682_v22  ;;  %v6838_v0 = vsub.f32 2.0, %v6678_v7  ;;  %v21683_v7 = vld [vmem:[#allocation91_spill] sm:$0xff] }
 0x5e9   : > { %v5910_v25 = vmul.f32 1.442695, %v5620_v45  ;;  %v6366_v21 = vsel %vm878_vm2, %v19369_v31, 0.0  ;;  %15007 = vrcp.f32 %v18952_v15  ;;  %v7161_v45 = vmul.f32 %v21678_v53, %v7001_v29 }
 0x5ea   : > { %14015 = vmatpush3.xpose.msk.msra.mxu1 %vm878_vm2, %v7138_v17  ;;  %14066 = vmatpush3.xpose.msk.msra.mxu0 %vm878_vm2, %v7165_v55  ;;  %v5483_v12 = vpop.xlane.xlu1 %5482  ;;  %v19388_v5 = vpop.xlane.xlu0 %6211  ;;  %v7164_v17 = vmul.f32 %v21680_v58, %v7004_v14  ;;  %v6837_v41 = vsub.f32 2.0, %v19381_v27  ;;  %v6999_v14 = vmul.f32 %v19339_v48, %v6839_v8  ;;  %v7160_v53 = vmul.f32 %v21683_v7, %v7000_v1 }
 0x5eb   : > { %15009 = vpow2.f32 %v5910_v25  ;;  %v5647_v32 = vsub.f32 %v21679_v23, %v5483_v12  ;;  %6367 = vadd.xlane.f32.xlu0 %v6366_v21  ;;  %14038 = vmatprep.subr.mxu1 %v21309_v56  ;;  %v19399_v29 = vpop.eup %14993  ;;  %v21681_v25 = vld [vmem:[#allocation100_spill] sm:$0xff]  ;;  %v21682_v21 = vld [vmem:[#allocation134_spill] sm:$0xff] }
 0x5ec   : > { %15011 = vrcp.f32 %v19230_v16  ;;  %14067 = vmatprep.subr.mxu0 %v21309_v56  ;;  %v19405_v22 = vpop.eup %14995  ;;  %v6676_v1 = vmul.f32 %v19399_v29, %v21670_v44  ;;  %v21686_v44 = vld [vmem:[#allocation138_spill] sm:$0xff] }
 0x5ed   : > { %v5964_v55 = vmul.f32 1.442695, %v5647_v32  ;;  %14017 = vmatmul.mubr.msk.f32.vlgmr.msra.gmra.mxu1 %vm878_vm2, %v1721_v11  ;;  %15013 = vrcp.f32 %v19004_v30  ;;  %v7002_v32 = vmul.f32 %v19351_v26, %v6842_v49 }
 0x5ee   : > { %14039 = vmatpush3.xpose.msk.msra.mxu1 %vm878_vm2, %v7161_v45  ;;  %14068 = vmatpush3.xpose.msk.msra.mxu0 %vm878_vm2, %v7164_v17  ;;  %v5480_v51 = vpop.xlane.xlu1 %5479  ;;  %v5399_v62 = vpop.xlane.xlu0 %5398  ;;  %v21684_v45 = vld [vmem:[#allocation151_spill] sm:$0xff] }
 0x5ef   : > { %15015 = vpow2.f32 %v5964_v55  ;;  %v5646_v11 = vsub.f32 %v21681_v25, %v5480_v51  ;;  %v5619_v12 = vsub.f32 %v21682_v21, %v5399_v62  ;;  %14040 = vmatprep.subr.mxu1 %v21309_v56  ;;  %14069 = vmatprep.subr.mxu0 %v21309_v56  ;;  %v7163_v23 = vmul.f32 %v21684_v45, %v7003_v9  ;;  %v21685_v62 = vld [vmem:[#allocation85_spill] sm:$0xff] }
 0x5f0   : > { %v19412_v27 = vpop.eup %14997  ;;  %15017 = vrcp.f32 %v19259_v3  ;;  %14054 = vmatprep.mubr.msk.f32.mxu1 %vm15258_vm4, %v21309_v56  ;;  %v6998_v9 = vmul.f32 %v19363_v46, %v6838_v0  ;;  %v7159_v25 = vmul.f32 %v21685_v62, %v6999_v14  ;;  %v21687_v0 = vld [vmem:[#allocation132_spill] sm:$0xff]  ;;  %v6703_v21 = vmul.f32 %v19405_v22, %v19286_v2  ;;  %v21690_v62 = vld [vmem:[#allocation90_spill] sm:$0xff] }
 0x5f1   : > { %v15000_v48 = vpop.eup %14999  ;;  %15019 = vrcp.f32 %v19072_v10  ;;  %v5962_v8 = vmul.f32 1.442695, %v5646_v11  ;;  %v5908_v58 = vmul.f32 1.442695, %v5619_v12  ;;  %v6363_v17 = vsel %vm878_vm2, %v19412_v27, 0.0 }
 0x5f2   : > { %15021 = vrcp.f32 %v19178_v38  ;;  %v6705_v26 = vmul.f32 %v15000_v48, %v19335_v42  ;;  %14041 = vmatpush3.xpose.msk.msra.mxu1 %vm878_vm2, %v7160_v53  ;;  %14070 = vmatpush3.xpose.msk.msra.mxu0 %vm878_vm2, %v7163_v23  ;;  %v19430_v49 = vpop.xlane.xlu1 %6292  ;;  %v5396_v55 = vpop.xlane.xlu0 %5395  ;;  %v7162_v42 = vmul.f32 %v21687_v0, %v7002_v32  ;;  %v6997_v14 = vmul.f32 %v19353_v40, %v6837_v41  ;;  %v21689_v41 = vld [vmem:[#allocation198_spill] sm:$0xff]  ;;  %v21691_v0 = vld [vmem:[#allocation64_spill] sm:$0xff] }
 0x5f3   : > { %v19432_v51 = vpop.eup %15001  ;;  %15023 = vpow2.f32 %v5962_v8  ;;  %6364 = vadd.xlane.f32.xlu0 %v6363_v17  ;;  %v5618_v11 = vsub.f32 %v21686_v44, %v5396_v55  ;;  %14042 = vmatprep.subr.mxu1 %v21309_v56  ;;  %v6836_v23 = vsub.f32 2.0, %v6676_v1  ;;  %v21688_v8 = vld [vmem:[#allocation86_spill] sm:$0xff] }
 0x5f4   : > { %v15004_v46 = vpop.eup %15003  ;;  %v6865_v12 = vsub.f32 2.0, %v6705_v26  ;;  %15025 = vpow2.f32 %v5908_v58  ;;  %14071 = vmatprep.subr.mxu0 %v21309_v56  ;;  %v7158_v17 = vmul.f32 %v21688_v8, %v6998_v9  ;;  %v6675_v40 = vmul.f32 %v19432_v51, %v18889_v60  ;;  %v21692_v8 = vld [vmem:[#allocation56_spill] sm:$0xff] }
 0x5f5   : > { %v19441_v7 = vpop.eup %15005  ;;  %v6704_v53 = vmul.f32 %v15004_v46, %v19361_v35  ;;  %v5906_v45 = vmul.f32 1.442695, %v5618_v11  ;;  %15027 = vrcp.f32 %v19132_v63  ;;  %v6863_v9 = vsub.f32 2.0, %v6703_v21 }
 0x5f6   : > { %v7025_v32 = vmul.f32 %v15000_v48, %v6865_v12  ;;  %14043 = vmatpush3.xpose.msk.msra.mxu1 %vm878_vm2, %v7159_v25  ;;  %14072 = vmatpush3.xpose.msk.msra.mxu0 %vm878_vm2, %v7162_v42  ;;  %v19449_v2 = vpop.xlane.xlu1 %6289  ;;  %v5465_v58 = vpop.xlane.xlu0 %5464  ;;  %v6702_v55 = vmul.f32 %v19441_v7, %v19314_v13  ;;  %v6996_v12 = vmul.f32 %v19399_v29, %v6836_v23 }
 0x5f7   : > { %v19451_v26 = vpop.eup %15007  ;;  %v6864_v35 = vsub.f32 2.0, %v6704_v53  ;;  %15029 = vpow2.f32 %v5906_v45  ;;  %v5641_v1 = vsub.f32 %v21689_v41, %v5465_v58  ;;  %14044 = vmatprep.subr.mxu1 %v21309_v56  ;;  %14095 = vmatprep.subr.mxu0 %v21309_v56  ;;  %v6835_v45 = vsub.f32 2.0, %v6675_v40  ;;  %v21693_v58 = vld [vmem:[#allocation158_spill] sm:$0xff] }
 0x5f8   : > { %v19458_v48 = vpop.eup %15009  ;;  %15031 = vrcp.f32 %v19203_v52  ;;  %v7185_v25 = vmul.f32 %v21690_v62, %v7025_v32  ;;  %v6674_v21 = vmul.f32 %v19451_v26, %v18952_v15  ;;  %v21694_v15 = vld [vmem:[#allocation166_spill] sm:$0xff]  ;;  %v7023_v41 = vmul.f32 %v19405_v22, %v6863_v9 }
 0x5f9   : > { %v19464_v44 = vpop.eup %15011  ;;  %15033 = vrcp.f32 %v19189_v6  ;;  %v7024_v60 = vmul.f32 %v15004_v46, %v6864_v35  ;;  %v5952_v11 = vmul.f32 1.442695, %v5641_v1  ;;  %14074 = vmatmul.mubr.msk.f32.vlgmr.msra.gmra.mxu0 %vm878_vm2, %v21691_v0  ;;  %v6360_v42 = vsel %vm878_vm2, %v19458_v48, 0.0 }
 0x5fa   : > { %14045 = vmatpush3.xpose.msk.msra.mxu1 %vm878_vm2, %v7158_v17  ;;  %14096 = vmatpush3.xpose.msk.msra.mxu0 %vm878_vm2, %v7185_v25  ;;  %v19476_v13 = vpop.xlane.xlu1 %6298  ;;  %v5462_v53 = vpop.xlane.xlu0 %5461  ;;  %v7157_v23 = vmul.f32 %v21694_v15, %v6997_v14  ;;  %v6701_v17 = vmul.f32 %v19464_v44, %v19230_v16  ;;  %v6862_v1 = vsub.f32 2.0, %v6702_v55  ;;  %v6834_v14 = vsub.f32 2.0, %v6674_v21  ;;  %v21696_v21 = vld [vmem:[#allocation147_spill] sm:$0xff] }
 0x5fb   : > { %v19478_v46 = vpop.eup %15013  ;;  %v7184_v32 = vmul.f32 %v21692_v8, %v7024_v60  ;;  %15035 = vpow2.f32 %v5952_v11  ;;  %6361 = vadd.xlane.f32.xlu0 %v6360_v42  ;;  %v5640_v35 = vsub.f32 %v21693_v58, %v5462_v53  ;;  %14046 = vmatprep.subr.mxu1 %v21309_v56  ;;  %v21695_v11 = vld [vmem:[#allocation103_spill] sm:$0xff]  ;;  %v6995_v42 = vmul.f32 %v19432_v51, %v6835_v45 }
 0x5fc   : > { %v19483_v29 = vpop.eup %15015  ;;  %14097 = vmatprep.subr.mxu0 %v21309_v56  ;;  %14111 = vmatprep.mubr.msk.f32.mxu0 %vm15258_vm4, %v21309_v56  ;;  %v6697_v16 = vmul.f32 %v19478_v46, %v19004_v30  ;;  %15037 = vrcp.f32 %v19241_v20  ;;  %v7156_v0 = vmul.f32 %v21695_v11, %v6996_v12  ;;  %v7022_v12 = vmul.f32 %v19441_v7, %v6862_v1 }
 0x5fd   : > { %v19492_v40 = vpop.eup %15017  ;;  %v5950_v62 = vmul.f32 1.442695, %v5640_v35  ;;  %v6441_v25 = vsel %vm878_vm2, %v19483_v29, 0.0  ;;  %v21698_v35 = vld [vmem:[#allocation99_spill] sm:$0xff] }
 0x5fe   : > { %v19496_v60 = vpop.eup %15019  ;;  %14047 = vmatpush3.xpose.msk.msra.mxu1 %vm878_vm2, %v7157_v23  ;;  %14098 = vmatpush3.xpose.msk.msra.mxu0 %vm878_vm2, %v7184_v32  ;;  %v19503_v22 = vpop.xlane.xlu1 %6295  ;;  %v6861_v32 = vsub.f32 2.0, %v6701_v17  ;;  %v6700_v58 = vmul.f32 %v19492_v40, %v19259_v3  ;;  %v7183_v15 = vmul.f32 %v21698_v35, %v7023_v41  ;;  %v6994_v17 = vmul.f32 %v19451_v26, %v6834_v14 }
 0x5ff   : > { %v5459_v9 = vpop.xlane.xlu0 %5458  ;;  %v19505_v55 = vpop.eup %15021  ;;  %15039 = vpow2.f32 %v5950_v62  ;;  %6442 = vadd.xlane.f32.xlu1 %v6441_v25  ;;  %14048 = vmatprep.subr.mxu1 %v21309_v56  ;;  %v6857_v25 = vsub.f32 2.0, %v6697_v16  ;;  %v6696_v26 = vmul.f32 %v19496_v60, %v19072_v10 }
 0x600   : > { %v5639_v53 = vsub.f32 %v21696_v21, %v5459_v9  ;;  %v19510_v30 = vpop.f32.mrf.mxu0  ;;  %v19513_v8 = vpop.eup %15023  ;;  %14099 = vmatprep.subr.mxu0 %v21309_v56  ;;  %15041 = vrcp.f32 %v19296_v50  ;;  %v21699_v9 = vld [vmem:[#allocation126_spill] sm:$0xff]  ;;  %v6699_v14 = vmul.f32 %v19505_v55, %v19178_v38  ;;  %v6860_v21 = vsub.f32 2.0, %v6700_v58 }
 0x601   : > { %21697 = vst [vmem:[#allocation169_spill] sm:$0xff] %v19510_v30  ;;  %v19520_v51 = vpop.eup %15025  ;;  %v6438_v62 = vsel %vm878_vm2, %v19513_v8, 0.0  ;;  %15043 = vrcp.f32 %v19476_v13  ;;  %v7155_v11 = vmul.f32 %v21699_v9, %v6995_v42 }
 0x602   : > { %v5948_v45 = vmul.f32 1.442695, %v5639_v53  ;;  %v13923_v23 = vpop.f32.mrf.mxu0  ;;  %14049 = vmatpush3.xpose.msk.msra.mxu1 %vm878_vm2, %v7156_v0  ;;  %14100 = vmatpush3.xpose.msk.msra.mxu0 %vm878_vm2, %v7183_v15  ;;  %v19529_v3 = vpop.xlane.xlu1 %6304  ;;  %v6357_v7 = vsel %vm878_vm2, %v19520_v51, 0.0  ;;  %v7021_v0 = vmul.f32 %v19464_v44, %v6861_v32  ;;  %v21700_v53 = vld [vmem:[#allocation131_spill] sm:$0xff]  ;;  %v21701_v15 = vld [vmem:[#allocation130_spill] sm:$0xff]  ;;  %v7017_v44 = vmul.f32 %v19478_v46, %v6857_v25 }
 0x603   : > { %v19533_v41 = vpop.xlane.xlu0 %6274  ;;  %v19535_v1 = vpop.eup %15027  ;;  %6439 = vadd.xlane.f32.xlu1 %v6438_v62  ;;  %6358 = vadd.xlane.f32.xlu0 %v6357_v7  ;;  %v7182_v35 = vmul.f32 %v21700_v53, %v7022_v12  ;;  %v6856_v12 = vsub.f32 2.0, %v6696_v26  ;;  %v6859_v62 = vsub.f32 2.0, %v6699_v14  ;;  %v21703_v25 = vld [vmem:[#allocation83_spill] sm:$0xff]  ;;  %v7020_v9 = vmul.f32 %v19492_v40, %v6860_v21  ;;  %v21704_v26 = vld [vmem:[#allocation54_spill] sm:$0xff] }
 0x604   : > { %15045 = vpow2.f32 %v5948_v45  ;;  %v19542_v16 = vpop.eup %15029  ;;  %14050 = vmatprep.subr.mxu1 %v21309_v56  ;;  %14101 = vmatprep.subr.mxu0 %v21309_v56  ;;  %v7154_v45 = vmul.f32 %v21701_v15, %v6994_v17  ;;  %v6695_v23 = vmul.f32 %v19535_v1, %v19132_v63  ;;  %v7181_v7 = vmul.f32 %v21703_v25, %v7021_v0  ;;  %v21705_v14 = vld [vmem:[#allocation55_spill] sm:$0xff] }
 0x605   : > { %15047 = vrcp.f32 %v19529_v3  ;;  %v19549_v10 = vpop.eup %15031  ;;  %v6354_v38 = vsel %vm878_vm2, %v19542_v16, 0.0  ;;  %v1731_v53 = vadd.f32 %v21705_v14, %v21704_v26  ;;  %v21708_v14 = vld [vmem:[#allocation144_spill] sm:$0xff] }
 0x606   : > { %v19553_v42 = vpop.eup %15033  ;;  %15049 = vrcp.f32 %v19337_v24  ;;  %14051 = vmatpush3.xpose.msk.msra.mxu1 %vm878_vm2, %v7155_v11  ;;  %14102 = vmatpush3.xpose.msk.msra.mxu0 %vm878_vm2, %v7182_v35  ;;  %v19560_v32 = vpop.xlane.xlu1 %6301  ;;  %v6698_v17 = vmul.f32 %v19549_v10, %v19203_v52  ;;  %v7016_v35 = vmul.f32 %v19496_v60, %v6856_v12  ;;  %v6855_v26 = vsub.f32 2.0, %v6695_v23 }
 0x607   : > { %v19562_v58 = vpop.xlane.xlu0 %6271  ;;  %15051 = vrcp.f32 %v19560_v32  ;;  %6355 = vadd.xlane.f32.xlu0 %v6354_v38  ;;  %14052 = vmatprep.subr.mxu1 %v21309_v56  ;;  %v6694_v63 = vmul.f32 %v19553_v42, %v19189_v6  ;;  %v21706_v6 = vld [vmem:[#allocation229_spill] sm:$0xff]  ;;  %v21707_v38 = vld [vmem:[#allocation162_spill] sm:$0xff]  ;;  %v7180_v30 = vmul.f32 %v21708_v14, %v7020_v9  ;;  %v21709_v9 = vld [vmem:[#allocation140_spill] sm:$0xff] }
 0x608   : > { %v19568_v46 = vpop.eup %15035  ;;  %15053 = vrcp.f32 %v19503_v22  ;;  %14103 = vmatprep.subr.mxu0 %v21309_v56  ;;  %v7177_v21 = vmul.f32 %v21706_v6, %v7017_v44 }
 0x609   : > { %21702 = vst [vmem:[#allocation221_spill] sm:$0xff] %v19568_v46  ;;  %15055 = vrcp.f32 %v19388_v5  ;;  %v6423_v11 = vsel %vm878_vm2, %v19568_v46, 0.0  ;;  %v19588_v0 = vpop.eup %15037  ;;  %v6854_v46 = vsub.f32 2.0, %v6694_v63  ;;  %v7176_v63 = vmul.f32 %v21709_v9, %v7016_v35 }
 0x60a   : > { %15057 = vrcp.f32 %v19430_v49  ;;  %14053 = vmatpush3.xpose.msk.msra.mxu1 %vm878_vm2, %v7154_v45  ;;  %14104 = vmatpush3.xpose.msk.msra.mxu0 %vm878_vm2, %v7181_v7  ;;  %v5477_v52 = vpop.xlane.xlu1 %5476  ;;  %v7019_v45 = vmul.f32 %v19505_v55, %v6859_v62  ;;  %v6858_v7 = vsub.f32 2.0, %v6698_v17  ;;  %v6693_v23 = vmul.f32 %v19588_v0, %v19241_v20 }
 0x60b   : > { %v19586_v40 = vpop.xlane.xlu0 %6280  ;;  %v5645_v15 = vsub.f32 %v21707_v38, %v5477_v52  ;;  %6424 = vadd.xlane.f32.xlu0 %v6423_v11  ;;  %14076 = vmatprep.subr.mxu1 %v21309_v56  ;;  %15059 = vrcp.f32 %v19449_v2  ;;  %v7015_v20 = vmul.f32 %v19535_v1, %v6855_v26 }
 0x60c   : > { %v19594_v25 = vpop.eup %15039  ;;  %14105 = vmatprep.subr.mxu0 %v21309_v56  ;;  %15061 = vrcp.f32 %v19586_v40  ;;  %v6853_v38 = vsub.f32 2.0, %v6693_v23 }
 0x60d   : > { %v5960_v44 = vmul.f32 1.442695, %v5645_v15  ;;  %14055 = vmatmul.mubr.msk.f32.vlgmr.msra.gmra.mxu1 %vm878_vm2, %v1731_v53  ;;  %v6420_v60 = vsel %vm878_vm2, %v19594_v25, 0.0  ;;  %v19603_v12 = vpop.eup %15041  ;;  %v21710_v53 = vld [vmem:[#allocation235_spill] sm:$0xff] }
 0x60e   : > { %14077 = vmatpush3.xpose.msk.msra.mxu1 %vm878_vm2, %v7177_v21  ;;  %14106 = vmatpush3.xpose.msk.msra.mxu0 %vm878_vm2, %v7180_v30  ;;  %v19610_v55 = vpop.xlane.xlu1 %6286  ;;  %v19614_v17 = vpop.eup %15043  ;;  %v7179_v52 = vmul.f32 %v21710_v53, %v7019_v45  ;;  %v7018_v30 = vmul.f32 %v19549_v10, %v6858_v7  ;;  %v7014_v21 = vmul.f32 %v19553_v42, %v6854_v46  ;;  %v21711_v46 = vld [vmem:[#allocation82_spill] sm:$0xff] }
 0x60f   : > { %v19612_v62 = vpop.xlane.xlu0 %6277  ;;  %15063 = vpow2.f32 %v5960_v44  ;;  %6421 = vadd.xlane.f32.xlu0 %v6420_v60  ;;  %14078 = vmatprep.subr.mxu1 %v21309_v56  ;;  %v6692_v15 = vmul.f32 %v19603_v12, %v19296_v50  ;;  %v6719_v42 = vmul.f32 %v19614_v17, %v19476_v13  ;;  %v21713_v44 = vld [vmem:[#allocation182_spill] sm:$0xff] }
 0x610   : > { %14107 = vmatprep.subr.mxu0 %v21309_v56  ;;  %14092 = vmatprep.mubr.msk.f32.mxu1 %vm15258_vm4, %v21309_v56  ;;  %15065 = vrcp.f32 %v19610_v55  ;;  %v7178_v60 = vmul.f32 %v21713_v44, %v7018_v30 }
 0x611   : > { %v19618_v11 = vpop.eup %15045  ;;  %15067 = vrcp.f32 %v19612_v62 }
 0x612   : > { %v15048_v6 = vpop.eup %15047  ;;  %v6417_v35 = vsel %vm878_vm2, %v19618_v11, 0.0  ;;  %14079 = vmatpush3.xpose.msk.msra.mxu1 %vm878_vm2, %v7176_v63  ;;  %14108 = vmatpush3.xpose.msk.msra.mxu0 %vm878_vm2, %v7179_v52  ;;  %v5474_v10 = vpop.xlane.xlu1 %5473  ;;  %v21714_v63 = vld [vmem:[#allocation94_spill] sm:$0xff]  ;;  %15069 = vrcp.f32 %v19533_v41 }
 0x613   : > { %v6721_v1 = vmul.f32 %v15048_v6, %v19529_v3  ;;  %v19634_v26 = vpop.xlane.xlu0 %6268  ;;  %v19636_v45 = vpop.eup %15049  ;;  %v5644_v7 = vsub.f32 %v21711_v46, %v5474_v10  ;;  %6418 = vadd.xlane.f32.xlu0 %v6417_v35  ;;  %14080 = vmatprep.subr.mxu1 %v21309_v56  ;;  %v21712_v3 = vld [vmem:[#allocation84_spill] sm:$0xff]  ;;  %v7174_v53 = vmul.f32 %v21714_v63, %v7014_v21  ;;  %v6852_v46 = vsub.f32 2.0, %v6692_v15 }
 0x614   : > { %v15052_v50 = vpop.eup %15051  ;;  %v7175_v14 = vmul.f32 %v21712_v3, %v7015_v20  ;;  %v19646_v9 = vpop.f32.mrf.mxu1  ;;  %14109 = vmatprep.subr.mxu0 %v21309_v56  ;;  %v7013_v20 = vmul.f32 %v19588_v0, %v6853_v38  ;;  %v6879_v21 = vsub.f32 2.0, %v6719_v42  ;;  %v21715_v38 = vld [vmem:[#allocation159_spill] sm:$0xff] }
 0x615   : > { %v6881_v23 = vsub.f32 2.0, %v6721_v1  ;;  %v19649_v13 = vpop.eup %15053  ;;  %v6720_v52 = vmul.f32 %v15052_v50, %v19560_v32  ;;  %v5958_v35 = vmul.f32 1.442695, %v5644_v7  ;;  %v6691_v32 = vmul.f32 %v19636_v45, %v19337_v24 }
 0x616   : > { %v19653_v10 = vpop.eup %15055  ;;  %14081 = vmatpush3.xpose.msk.msra.mxu1 %vm878_vm2, %v7175_v14  ;;  %14110 = vmatpush3.xpose.msk.msra.mxu0 %vm878_vm2, %v7178_v60  ;;  %v19659_v1 = vpop.xlane.xlu1 %6283  ;;  %v21716_v14 = vld [vmem:[#allocation133_spill] sm:$0xff] }
 0x617   : > { %v7041_v30 = vmul.f32 %v15048_v6, %v6881_v23  ;;  %v13904_v3 = vpop.f32.mrf.mxu1  ;;  %v19661_v44 = vpop.eup %15057  ;;  %v6880_v7 = vsub.f32 2.0, %v6720_v52  ;;  %15071 = vpow2.f32 %v5958_v35  ;;  %14082 = vmatprep.subr.mxu1 %v21309_v56  ;;  %14133 = vmatprep.subr.mxu0 %v21309_v56  ;;  %v6718_v6 = vmul.f32 %v19649_v13, %v19503_v22  ;;  %v21717_v23 = vld [vmem:[#allocation66_spill] sm:$0xff]  ;;  %v21718_v52 = vld [vmem:[#allocation187_spill] sm:$0xff] }
 0x618   : > { %v5456_v0 = vpop.xlane.xlu0 %5455  ;;  %15073 = vrcp.f32 %v19659_v1  ;;  %v6690_v24 = vmul.f32 %v19653_v10, %v19388_v5  ;;  %v19676_v63 = vpop.eup %15059  ;;  %v7173_v35 = vmul.f32 %v21718_v52, %v7013_v20  ;;  %v6717_v22 = vmul.f32 %v19661_v44, %v19430_v49 }
 0x619   : > { %v7201_v15 = vmul.f32 %v21715_v38, %v7041_v30  ;;  %v5638_v60 = vsub.f32 %v21716_v14, %v5456_v0  ;;  %v7040_v42 = vmul.f32 %v15052_v50, %v6880_v7  ;;  %14112 = vmatmul.mubr.msk.f32.vlgmr.msra.gmra.mxu0 %vm878_vm2, %v21717_v23  ;;  %v19683_v0 = vpop.eup %15061  ;;  %v7012_v5 = vmul.f32 %v19603_v12, %v6852_v46  ;;  %v21719_v50 = vld [vmem:[#allocation153_spill] sm:$0xff]  ;;  %v21720_v38 = vld [vmem:[#allocation216_spill] sm:$0xff] }
 0x61a   : > { %14083 = vmatpush3.xpose.msk.msra.mxu1 %vm878_vm2, %v7174_v53  ;;  %v5471_v30 = vpop.xlane.xlu1 %5470  ;;  %15075 = vrcp.f32 %v19562_v58  ;;  %v6851_v53 = vsub.f32 2.0, %v6691_v32  ;;  %14149 = vmatprep.mubr.msk.f32.mxu0 %vm15258_vm4, %v21309_v56  ;;  %v6850_v12 = vsub.f32 2.0, %v6690_v24  ;;  %v6877_v23 = vsub.f32 2.0, %v6717_v22  ;;  %v21721_v32 = vld [vmem:[#allocation213_spill] sm:$0xff]  ;;  %v21722_v24 = vld [vmem:[#allocation218_spill] sm:$0xff] }
 0x61b   : > { %v5946_v3 = vmul.f32 1.442695, %v5638_v60  ;;  %14134 = vmatpush3.xpose.msk.msra.mxu0 %vm878_vm2, %v7201_v15  ;;  %v7200_v7 = vmul.f32 %v21719_v50, %v7040_v42  ;;  %v5643_v14 = vsub.f32 %v21720_v38, %v5471_v30  ;;  %14084 = vmatprep.subr.mxu1 %v21309_v56  ;;  %v7039_v15 = vmul.f32 %v19614_v17, %v6879_v21  ;;  %v21723_v50 = vld [vmem:[#allocation195_spill] sm:$0xff] }
 0x61c   : > { %v19689_v20 = vpop.xlane.xlu0 %6265  ;;  %14135 = vmatprep.subr.mxu0 %v21309_v56  ;;  %v19693_v49 = vpop.eup %15063  ;;  %v6878_v60 = vsub.f32 2.0, %v6718_v6  ;;  %v6716_v52 = vmul.f32 %v19676_v63, %v19449_v2  ;;  %v7172_v21 = vmul.f32 %v21721_v32, %v7012_v5  ;;  %v6713_v6 = vmul.f32 %v19683_v0, %v19586_v40  ;;  %v21724_v5 = vld [vmem:[#allocation76_spill] sm:$0xff] }
 0x61d   : > { %15077 = vpow2.f32 %v5946_v3  ;;  %v5956_v46 = vmul.f32 1.442695, %v5643_v14  ;;  %v6435_v42 = vsel %vm878_vm2, %v19693_v49, 0.0  ;;  %v15066_v2 = vpop.eup %15065  ;;  %v7037_v32 = vmul.f32 %v19661_v44, %v6877_v23 }
 0x61e   : > { %15079 = vrcp.f32 %v19634_v26  ;;  %14085 = vmatpush3.xpose.msk.msra.mxu1 %vm878_vm2, %v7173_v35  ;;  %v5468_v17 = vpop.xlane.xlu1 %5467  ;;  %6436 = vadd.xlane.f32.xlu1 %v6435_v42  ;;  %v7011_v35 = vmul.f32 %v19636_v45, %v6851_v53  ;;  %v7038_v38 = vmul.f32 %v19649_v13, %v6878_v60  ;;  %v19717_v40 = vpop.eup %15067  ;;  %v6715_v60 = vmul.f32 %v15066_v2, %v19610_v55 }
 0x61f   : > { %14136 = vmatpush3.xpose.msk.msra.mxu0 %vm878_vm2, %v7200_v7  ;;  %15081 = vpow2.f32 %v5956_v46  ;;  %v5642_v3 = vsub.f32 %v21722_v24, %v5468_v17  ;;  %v19709_v30 = vpop.f32.mrf.mxu0  ;;  %14086 = vmatprep.subr.mxu1 %v21309_v56  ;;  %v7199_v7 = vmul.f32 %v21723_v50, %v7039_v15  ;;  %v7010_v46 = vmul.f32 %v19653_v10, %v6850_v12  ;;  %v19726_v53 = vpop.eup %15069  ;;  %v21725_v12 = vld [vmem:[#allocation200_spill] sm:$0xff] }
 0x620   : > { %v5453_v22 = vpop.xlane.xlu0 %5452  ;;  %14137 = vmatprep.subr.mxu0 %v21309_v56  ;;  %v6876_v24 = vsub.f32 2.0, %v6716_v52  ;;  %15083 = vrcp.f32 %v19689_v20  ;;  %v6873_v15 = vsub.f32 2.0, %v6713_v6  ;;  %v7171_v23 = vmul.f32 %v21725_v12, %v7011_v35  ;;  %v21726_v52 = vld [vmem:[#allocation45_spill] sm:$0xff] }
 0x621   : > { %v5637_v14 = vsub.f32 %v21724_v5, %v5453_v22  ;;  %v5954_v42 = vmul.f32 1.442695, %v5642_v3  ;;  %v13961_v17 = vpop.f32.mrf.mxu0  ;;  %v6712_v3 = vmul.f32 %v19717_v40, %v19612_v62  ;;  %v21727_v22 = vld [vmem:[#allocation196_spill] sm:$0xff]  ;;  %v6711_v62 = vmul.f32 %v19726_v53, %v19533_v41 }
 0x622   : > { %14087 = vmatpush3.xpose.msk.msra.mxu1 %vm878_vm2, %v7172_v21  ;;  %v19724_v13 = vpop.xlane.xlu1 %6352  ;;  %v7198_v21 = vmul.f32 %v21726_v52, %v7038_v38  ;;  %v7170_v50 = vmul.f32 %v21727_v22, %v7010_v46  ;;  %v7033_v38 = vmul.f32 %v19683_v0, %v6873_v15  ;;  %v21729_v0 = vld [vmem:[#allocation57_spill] sm:$0xff] }
 0x623   : > { %v5944_v45 = vmul.f32 1.442695, %v5637_v14  ;;  %14138 = vmatpush3.xpose.msk.msra.mxu0 %vm878_vm2, %v7199_v7  ;;  %15085 = vpow2.f32 %v5954_v42  ;;  %14088 = vmatprep.subr.mxu1 %v21309_v56  ;;  %v21728_v7 = vld [vmem:[#allocation96_spill] sm:$0xff]  ;;  %v7036_v14 = vmul.f32 %v19676_v63, %v6876_v24  ;;  %v6875_v42 = vsub.f32 2.0, %v6715_v60  ;;  %v21731_v60 = vld [vmem:[#allocation194_spill] sm:$0xff] }
 0x624   : > { %v19729_v10 = vpop.xlane.xlu0 %6262  ;;  %14139 = vmatprep.subr.mxu0 %v21309_v56  ;;  %v19733_v44 = vpop.eup %15071  ;;  %v7197_v5 = vmul.f32 %v21728_v7, %v7037_v32  ;;  %v6872_v63 = vsub.f32 2.0, %v6712_v3  ;;  %v21732_v7 = vld [vmem:[#allocation154_spill] sm:$0xff] }
 0x625   : > { %15087 = vpow2.f32 %v5944_v45  ;;  %v15074_v6 = vpop.eup %15073  ;;  %v6432_v55 = vsel %vm878_vm2, %v19733_v44, 0.0  ;;  %v21730_v45 = vld [vmem:[#allocation59_spill] sm:$0xff]  ;;  %v7196_v12 = vmul.f32 %v21731_v60, %v7036_v14 }
 0x626   : > { %15089 = vrcp.f32 %v19724_v13  ;;  %14089 = vmatpush3.xpose.msk.msra.mxu1 %vm878_vm2, %v7171_v23  ;;  %v19747_v35 = vpop.xlane.xlu1 %6349  ;;  %6433 = vadd.xlane.f32.xlu1 %v6432_v55  ;;  %v6714_v32 = vmul.f32 %v15074_v6, %v19659_v1  ;;  %v1741_v15 = vadd.f32 %v21730_v45, %v21729_v0  ;;  %v7035_v55 = vmul.f32 %v15066_v2, %v6875_v42  ;;  %v21734_v45 = vld [vmem:[#allocation172_spill] sm:$0xff] }
 0x627   : > { %14140 = vmatpush3.xpose.msk.msra.mxu0 %vm878_vm2, %v7198_v21  ;;  %15091 = vrcp.f32 %v19747_v35  ;;  %14090 = vmatprep.subr.mxu1 %v21309_v56  ;;  %v19754_v17 = vpop.eup %15075  ;;  %v6871_v21 = vsub.f32 2.0, %v6711_v62  ;;  %v7032_v14 = vmul.f32 %v19717_v40, %v6872_v63 }
 0x628   : > { %v5450_v46 = vpop.xlane.xlu0 %5449  ;;  %15093 = vrcp.f32 %v19729_v10  ;;  %14141 = vmatprep.subr.mxu0 %v21309_v56  ;;  %v6710_v3 = vmul.f32 %v19754_v17, %v19562_v58 }
 0x629   : > { %v5636_v24 = vsub.f32 %v18544_v37, %v5450_v46  ;;  %v6874_v46 = vsub.f32 2.0, %v6714_v32  ;;  %v7031_v40 = vmul.f32 %v19726_v53, %v6871_v21 }
 0x62a   : > { %v19760_v41 = vpop.eup %15077  ;;  %14091 = vmatpush3.xpose.msk.msra.mxu1 %vm878_vm2, %v7170_v50  ;;  %v19767_v52 = vpop.xlane.xlu1 %6346  ;;  %v6870_v0 = vsub.f32 2.0, %v6710_v3 }
 0x62b   : > { %v5942_v23 = vmul.f32 1.442695, %v5636_v24  ;;  %14142 = vmatpush3.xpose.msk.msra.mxu0 %vm878_vm2, %v7197_v5  ;;  %v6414_v1 = vsel %vm878_vm2, %v19760_v41, 0.0  ;;  %v19771_v37 = vpop.eup %15079  ;;  %15095 = vrcp.f32 %v19767_v52  ;;  %14114 = vmatprep.subr.mxu1 %v21309_v56  ;;  %v7193_v5 = vmul.f32 %v21732_v7, %v7033_v38  ;;  %v21733_v38 = vld [vmem:[#allocation157_spill] sm:$0xff] }
 0x62c   : > { %6415 = vadd.xlane.f32.xlu0 %v6414_v1  ;;  %v19776_v22 = vpop.xlane.xlu0 %6259  ;;  %v19779_v50 = vpop.eup %15081  ;;  %14143 = vmatprep.subr.mxu0 %v21309_v56  ;;  %v7195_v42 = vmul.f32 %v21733_v38, %v7035_v55  ;;  %v6709_v63 = vmul.f32 %v19771_v37, %v19634_v26  ;;  %v7034_v60 = vmul.f32 %v15074_v6, %v6874_v46  ;;  %v21735_v6 = vld [vmem:[#allocation152_spill] sm:$0xff] }
 0x62d   : > { %15097 = vpow2.f32 %v5942_v23  ;;  %14093 = vmatmul.mubr.msk.f32.vlgmr.msra.gmra.mxu1 %vm878_vm2, %v1741_v15  ;;  %v6429_v58 = vsel %vm878_vm2, %v19779_v50, 0.0  ;;  %v19792_v62 = vpop.eup %15083  ;;  %v7192_v15 = vmul.f32 %v21734_v45, %v7032_v14  ;;  %v7191_v3 = vmul.f32 %v21735_v6, %v7031_v40 }
 0x62e   : > { %15099 = vrcp.f32 %v19776_v22  ;;  %14115 = vmatpush3.xpose.msk.msra.mxu1 %vm878_vm2, %v7193_v5  ;;  %v19790_v2 = vpop.xlane.xlu1 %6343  ;;  %6430 = vadd.xlane.f32.xlu1 %v6429_v58  ;;  %v6869_v55 = vsub.f32 2.0, %v6709_v63  ;;  %v7030_v46 = vmul.f32 %v19754_v17, %v6870_v0  ;;  %v21736_v58 = vld [vmem:[#allocation58_spill] sm:$0xff] }
 0x62f   : > { %14144 = vmatpush3.xpose.msk.msra.mxu0 %vm878_vm2, %v7196_v12  ;;  %15101 = vrcp.f32 %v19790_v2  ;;  %14116 = vmatprep.subr.mxu1 %v21309_v56  ;;  %v7194_v38 = vmul.f32 %v21736_v58, %v7034_v60 }
 0x630   : > { %v5447_v32 = vpop.xlane.xlu0 %5446  ;;  %v19800_v24 = vpop.eup %15085  ;;  %14145 = vmatprep.subr.mxu0 %v21309_v56  ;;  %14130 = vmatprep.mubr.msk.f32.mxu1 %vm15258_vm4, %v21309_v56 }
 0x631   : > { %v5635_v12 = vsub.f32 %v18500_v54, %v5447_v32  ;;  %v6426_v53 = vsel %vm878_vm2, %v19800_v24, 0.0  ;;  %v7029_v32 = vmul.f32 %v19771_v37, %v6869_v55  ;;  %v21739_v37 = vld [vmem:[#allocation219_spill] sm:$0xff] }
 0x632   : > { %v19807_v26 = vpop.eup %15087  ;;  %14117 = vmatpush3.xpose.msk.msra.mxu1 %vm878_vm2, %v7192_v15  ;;  %v19813_v21 = vpop.xlane.xlu1 %6340  ;;  %6427 = vadd.xlane.f32.xlu1 %v6426_v53  ;;  %v21737_v15 = vld [vmem:[#allocation156_spill] sm:$0xff] }
 0x633   : > { %v15090_v23 = vpop.eup %15089  ;;  %v5940_v1 = vmul.f32 1.442695, %v5635_v12  ;;  %14146 = vmatpush3.xpose.msk.msra.mxu0 %vm878_vm2, %v7195_v42  ;;  %v6411_v54 = vsel %vm878_vm2, %v19807_v26, 0.0  ;;  %15103 = vrcp.f32 %v19813_v21  ;;  %v6708_v42 = vmul.f32 %v19792_v62, %v19689_v20  ;;  %14118 = vmatprep.subr.mxu1 %v21309_v56 }
 0x634   : > { %v6737_v7 = vmul.f32 %v15090_v23, %v19724_v13  ;;  %6412 = vadd.xlane.f32.xlu0 %v6411_v54  ;;  %v19820_v5 = vpop.xlane.xlu0 %6328  ;;  %v15092_v14 = vpop.eup %15091  ;;  %14147 = vmatprep.subr.mxu0 %v21309_v56  ;;  %v7190_v60 = vmul.f32 %v21737_v15, %v7030_v46 }
 0x635   : > { %15105 = vpow2.f32 %v5940_v1  ;;  %v15094_v13 = vpop.eup %15093  ;;  %v6736_v63 = vmul.f32 %v15092_v14, %v19747_v35  ;;  %v6868_v12 = vsub.f32 2.0, %v6708_v42  ;;  %v21738_v1 = vld [vmem:[#allocation145_spill] sm:$0xff]  ;;  %v21741_v42 = vld [vmem:[#allocation175_spill] sm:$0xff] }
 0x636   : > { %v6897_v40 = vsub.f32 2.0, %v6737_v7  ;;  %15107 = vrcp.f32 %v19820_v5  ;;  %14119 = vmatpush3.xpose.msk.msra.mxu1 %vm878_vm2, %v7191_v3  ;;  %v19832_v17 = vpop.xlane.xlu1 %6337  ;;  %v6707_v53 = vmul.f32 %v15094_v13, %v19729_v10  ;;  %v21740_v7 = vld [vmem:[#allocation68_spill] sm:$0xff] }
 0x637   : > { %14148 = vmatpush3.xpose.msk.msra.mxu0 %vm878_vm2, %v7194_v38  ;;  %v6896_v0 = vsub.f32 2.0, %v6736_v63  ;;  %15109 = vrcp.f32 %v19832_v17  ;;  %14120 = vmatprep.subr.mxu1 %v21309_v56 }
 0x638   : > { %v7057_v20 = vmul.f32 %v15090_v23, %v6897_v40  ;;  %v5444_v45 = vpop.xlane.xlu0 %5443  ;;  %14171 = vmatprep.subr.mxu0 %v21309_v56  ;;  %v15096_v35 = vpop.eup %15095  ;;  %v7189_v40 = vmul.f32 %v21741_v42, %v7029_v32  ;;  %v6867_v15 = vsub.f32 2.0, %v6707_v53 }
 0x639   : > { %v5634_v54 = vsub.f32 %v21738_v1, %v5444_v45  ;;  %v7056_v3 = vmul.f32 %v15092_v14, %v6896_v0  ;;  %v6735_v55 = vmul.f32 %v15096_v35, %v19767_v52  ;;  %v21742_v14 = vld [vmem:[#allocation149_spill] sm:$0xff]  ;;  %v7028_v45 = vmul.f32 %v19792_v62, %v6868_v12 }
 0x63a   : > { %v19841_v6 = vpop.eup %15097  ;;  %v7217_v23 = vmul.f32 %v21739_v37, %v7057_v20  ;;  %14150 = vmatmul.mubr.msk.f32.vlgmr.msra.gmra.mxu0 %vm878_vm2, %v21740_v7  ;;  %14121 = vmatpush3.xpose.msk.msra.mxu1 %vm878_vm2, %v7190_v60  ;;  %v19848_v46 = vpop.xlane.xlu1 %6334  ;;  %v21743_v37 = vld [vmem:[#allocation148_spill] sm:$0xff]  ;;  %v21744_v12 = vld [vmem:[#allocation217_spill] sm:$0xff]  ;;  %v7027_v53 = vmul.f32 %v15094_v13, %v6867_v15 }
 0x63b   : > { %v15100_v58 = vpop.eup %15099  ;;  %v5938_v38 = vmul.f32 1.442695, %v5634_v54  ;;  %v6408_v10 = vsel %vm878_vm2, %v19841_v6, 0.0  ;;  %14187 = vmatprep.mubr.msk.f32.mxu0 %vm15258_vm4, %v21309_v56  ;;  %v7216_v63 = vmul.f32 %v21742_v14, %v7056_v3  ;;  %v6895_v52 = vsub.f32 2.0, %v6735_v55  ;;  %14122 = vmatprep.subr.mxu1 %v21309_v56  ;;  %v21745_v14 = vld [vmem:[#allocation180_spill] sm:$0xff] }
 0x63c   : > { %14172 = vmatpush3.xpose.msk.msra.mxu0 %vm878_vm2, %v7217_v23  ;;  %15111 = vrcp.f32 %v19848_v46  ;;  %6409 = vadd.xlane.f32.xlu0 %v6408_v10  ;;  %v19858_v20 = vpop.xlane.xlu0 %6325  ;;  %v15102_v0 = vpop.eup %15101  ;;  %v6706_v60 = vmul.f32 %v15100_v58, %v19776_v22 }
 0x63d   : > { %15113 = vpow2.f32 %v5938_v38  ;;  %14173 = vmatprep.subr.mxu0 %v21309_v56  ;;  %v7055_v32 = vmul.f32 %v15096_v35, %v6895_v52  ;;  %v6734_v1 = vmul.f32 %v15102_v0, %v19790_v2  ;;  %v7188_v2 = vmul.f32 %v21744_v12, %v7028_v45  ;;  %v21746_v45 = vld [vmem:[#allocation160_spill] sm:$0xff] }
 0x63e   : > { %15115 = vrcp.f32 %v19858_v20  ;;  %14123 = vmatpush3.xpose.msk.msra.mxu1 %vm878_vm2, %v7189_v40  ;;  %v19867_v54 = vpop.xlane.xlu1 %6331  ;;  %v6866_v3 = vsub.f32 2.0, %v6706_v60  ;;  %v7187_v15 = vmul.f32 %v21746_v45, %v7027_v53 }
 0x63f   : > { %v7215_v23 = vmul.f32 %v21743_v37, %v7055_v32  ;;  %v6894_v62 = vsub.f32 2.0, %v6734_v1  ;;  %15117 = vrcp.f32 %v19867_v54  ;;  %14124 = vmatprep.subr.mxu1 %v21309_v56 }
 0x640   : > { %14174 = vmatpush3.xpose.msk.msra.mxu0 %vm878_vm2, %v7216_v63  ;;  %v19872_v22 = vpop.xlane.xlu0 %6322  ;;  %v15104_v35 = vpop.eup %15103  ;;  %v7026_v60 = vmul.f32 %v15100_v58, %v6866_v3 }
 0x641   : > { %15119 = vrcp.f32 %v19872_v22  ;;  %14175 = vmatprep.subr.mxu0 %v21309_v56  ;;  %v7054_v7 = vmul.f32 %v15102_v0, %v6894_v62  ;;  %v6733_v38 = vmul.f32 %v15104_v35, %v19813_v21 }
 0x642   : > { %v19878_v55 = vpop.eup %15105  ;;  %14125 = vmatpush3.xpose.msk.msra.mxu1 %vm878_vm2, %v7188_v2  ;;  %v19882_v42 = vpop.xlane.xlu1 %6400 }
 0x643   : > { %v15108_v10 = vpop.eup %15107  ;;  %v6405_v40 = vsel %vm878_vm2, %v19878_v55, 0.0  ;;  %v7214_v13 = vmul.f32 %v21745_v14, %v7054_v7  ;;  %v6893_v63 = vsub.f32 2.0, %v6733_v38  ;;  %15121 = vrcp.f32 %v19882_v42  ;;  %14126 = vmatprep.subr.mxu1 %v21309_v56  ;;  %v21748_v38 = vld [vmem:[#allocation61_spill] sm:$0xff] }
 0x644   : > { %v6729_v52 = vmul.f32 %v15108_v10, %v19820_v5  ;;  %14176 = vmatpush3.xpose.msk.msra.mxu0 %vm878_vm2, %v7215_v23  ;;  %6406 = vadd.xlane.f32.xlu0 %v6405_v40  ;;  %v19890_v0 = vpop.xlane.xlu0 %6319  ;;  %v15110_v21 = vpop.eup %15109  ;;  %v21749_v40 = vld [vmem:[#allocation63_spill] sm:$0xff] }
 0x645   : > { %15123 = vrcp.f32 %v19890_v0  ;;  %14177 = vmatprep.subr.mxu0 %v21309_v56  ;;  %v7053_v32 = vmul.f32 %v15104_v35, %v6893_v63  ;;  %v6732_v5 = vmul.f32 %v15110_v21, %v19832_v17  ;;  %v21747_v35 = vld [vmem:[#allocation178_spill] sm:$0xff]  ;;  %v1751_v14 = vadd.f32 %v21749_v40, %v21748_v38 }
 0x646   : > { %v6889_v1 = vsub.f32 2.0, %v6729_v52  ;;  %14127 = vmatpush3.xpose.msk.msra.mxu1 %vm878_vm2, %v7187_v15  ;;  %v19898_v37 = vpop.xlane.xlu1 %6397  ;;  %v7186_v2 = vmul.f32 %v21747_v35, %v7026_v60  ;;  %v21750_v15 = vld [vmem:[#allocation220_spill] sm:$0xff] }
 0x647   : > { %v7213_v23 = vmul.f32 %v18870_v34, %v7053_v32  ;;  %v6892_v62 = vsub.f32 2.0, %v6732_v5  ;;  %15125 = vrcp.f32 %v19898_v37  ;;  %14128 = vmatprep.subr.mxu1 %v21309_v56 }
 0x648   : > { %14178 = vmatpush3.xpose.msk.msra.mxu0 %vm878_vm2, %v7214_v13  ;;  %v19903_v58 = vpop.xlane.xlu0 %6316  ;;  %v7049_v53 = vmul.f32 %v15108_v10, %v6889_v1 }
 0x649   : > { %v15112_v12 = vpop.eup %15111  ;;  %15127 = vrcp.f32 %v19903_v58  ;;  %14179 = vmatprep.subr.mxu0 %v21309_v56  ;;  %v7052_v34 = vmul.f32 %v15110_v21, %v6892_v62 }
 0x64a   : > { %v19909_v17 = vpop.eup %15113  ;;  %v6731_v3 = vmul.f32 %v15112_v12, %v19848_v46  ;;  %14129 = vmatpush3.xpose.msk.msra.mxu1 %vm878_vm2, %v7186_v2  ;;  %v19915_v13 = vpop.xlane.xlu1 %6394  ;;  %v7209_v60 = vmul.f32 %v21750_v15, %v7049_v53 }
 0x64b   : > { %v15116_v7 = vpop.eup %15115  ;;  %v6402_v10 = vsel %vm878_vm2, %v19909_v17, 0.0  ;;  %v7212_v63 = vmul.f32 %v18916_v36, %v7052_v34  ;;  %15129 = vrcp.f32 %v19915_v13  ;;  %14152 = vmatprep.subr.mxu1 %v21309_v56 }
 0x64c   : > { %v6891_v52 = vsub.f32 2.0, %v6731_v3  ;;  %v6728_v45 = vmul.f32 %v15116_v7, %v19858_v20  ;;  %14180 = vmatpush3.xpose.msk.msra.mxu0 %vm878_vm2, %v7213_v23  ;;  %6403 = vadd.xlane.f32.xlu0 %v6402_v10  ;;  %v19923_v46 = vpop.xlane.xlu0 %6313  ;;  %v15118_v21 = vpop.eup %15117 }
 0x64d   : > { %15131 = vrcp.f32 %v19923_v46  ;;  %14181 = vmatprep.subr.mxu0 %v21309_v56  ;;  %v6730_v20 = vmul.f32 %v15118_v21, %v19867_v54  ;;  %14131 = vmatmul.mubr.msk.f32.vlgmr.msra.gmra.mxu1 %vm878_vm2, %v1751_v14 }
 0x64e   : > { %v15120_v36 = vpop.eup %15119  ;;  %v7051_v32 = vmul.f32 %v15112_v12, %v6891_v52  ;;  %v6888_v1 = vsub.f32 2.0, %v6728_v45  ;;  %14153 = vmatpush3.xpose.msk.msra.mxu1 %vm878_vm2, %v7209_v60  ;;  %v19933_v23 = vpop.xlane.xlu1 %6391  ;;  %14168 = vmatprep.mubr.msk.f32.mxu1 %vm15258_vm4, %v21309_v56 }
 0x64f   : > { %v6727_v5 = vmul.f32 %v15120_v36, %v19872_v22  ;;  %v6890_v2 = vsub.f32 2.0, %v6730_v20  ;;  %15133 = vrcp.f32 %v19933_v23  ;;  %14154 = vmatprep.subr.mxu1 %v21309_v56 }
 0x650   : > { %v7211_v62 = vmul.f32 %v18925_v4, %v7051_v32  ;;  %v7048_v35 = vmul.f32 %v15116_v7, %v6888_v1  ;;  %14182 = vmatpush3.xpose.msk.msra.mxu0 %vm878_vm2, %v7212_v63  ;;  %v19940_v54 = vpop.xlane.xlu0 %6310  ;;  %v15122_v22 = vpop.eup %15121 }
 0x651   : > { %v6887_v12 = vsub.f32 2.0, %v6727_v5  ;;  %15135 = vrcp.f32 %v19940_v54  ;;  %14183 = vmatprep.subr.mxu0 %v21309_v56  ;;  %v7050_v4 = vmul.f32 %v15118_v21, %v6890_v2  ;;  %v6753_v3 = vmul.f32 %v15122_v22, %v19882_v42 }
 0x652   : > { %v15124_v53 = vpop.eup %15123  ;;  %v7208_v34 = vmul.f32 %v18836_v19, %v7048_v35  ;;  %v19948_v40 = vpop.xlane.xlu1 %6388  ;;  %v21751_v35 = vld [vmem:[#allocation70_spill] sm:$0xff] }
 0x653   : > { %v7047_v7 = vmul.f32 %v15120_v36, %v6887_v12  ;;  %v6726_v38 = vmul.f32 %v15124_v53, %v19890_v0  ;;  %v7210_v14 = vmul.f32 %v18947_v47, %v7050_v4  ;;  %v6913_v10 = vsub.f32 2.0, %v6753_v3 }
 0x654   : > { %14155 = vmatpush3.xpose.msk.msra.mxu1 %vm878_vm2, %v7208_v34  ;;  %14184 = vmatpush3.xpose.msk.msra.mxu0 %vm878_vm2, %v7211_v62  ;;  %15137 = vrcp.f32 %v19948_v40  ;;  %v19954_v63 = vpop.xlane.xlu0 %6307  ;;  %v15126_v19 = vpop.eup %15125 }
 0x655   : > { %v7207_v52 = vmul.f32 %v18800_v18, %v7047_v7  ;;  %v6886_v42 = vsub.f32 2.0, %v6726_v38  ;;  %15139 = vrcp.f32 %v19954_v63  ;;  %14156 = vmatprep.subr.mxu1 %v21309_v56  ;;  %14185 = vmatprep.subr.mxu0 %v21309_v56  ;;  %v7073_v0 = vmul.f32 %v15122_v22, %v6913_v10 }
 0x656   : > { %v15128_v47 = vpop.eup %15127  ;;  %v6752_v45 = vmul.f32 %v15126_v19, %v19898_v37  ;;  %v19962_v60 = vpop.xlane.xlu1 %6385 }
 0x657   : > { %v7046_v21 = vmul.f32 %v15124_v53, %v6886_v42  ;;  %v6725_v15 = vmul.f32 %v15128_v47, %v19903_v58  ;;  %v7233_v36 = vmul.f32 %v18956_v28, %v7073_v0  ;;  %15141 = vrcp.f32 %v19962_v60  ;;  %v21752_v53 = vld [vmem:[#allocation155_spill] sm:$0xff] }
 0x658   : > { %v6912_v32 = vsub.f32 2.0, %v6752_v45  ;;  %14157 = vmatpush3.xpose.msk.msra.mxu1 %vm878_vm2, %v7207_v52  ;;  %14186 = vmatpush3.xpose.msk.msra.mxu0 %vm878_vm2, %v7210_v14  ;;  %v15130_v18 = vpop.eup %15129 }
 0x659   : > { %v7206_v1 = vmul.f32 %v18811_v57, %v7046_v21  ;;  %v6885_v20 = vsub.f32 2.0, %v6725_v15  ;;  %14158 = vmatprep.subr.mxu1 %v21309_v56  ;;  %14209 = vmatprep.subr.mxu0 %v21309_v56  ;;  %v6751_v5 = vmul.f32 %v15130_v18, %v19915_v13 }
 0x65a   : > { %v15132_v37 = vpop.eup %15131  ;;  %v7072_v58 = vmul.f32 %v15126_v19, %v6912_v32  ;;  %v19975_v2 = vpop.xlane.xlu1 %6382 }
 0x65b   : > { %v7045_v28 = vmul.f32 %v15128_v47, %v6885_v20  ;;  %v6724_v62 = vmul.f32 %v15132_v37, %v19923_v46  ;;  %14188 = vmatmul.mubr.msk.f32.vlgmr.msra.gmra.mxu0 %vm878_vm2, %v21751_v35  ;;  %v6911_v57 = vsub.f32 2.0, %v6751_v5  ;;  %15143 = vrcp.f32 %v19975_v2  ;;  %v6377_v4 = vpop.xlane.xlu0 %6376 }
 0x65c   : > { %v7232_v22 = vmul.f32 %v19023_v43, %v7072_v58  ;;  %14159 = vmatpush3.xpose.msk.msra.mxu1 %vm878_vm2, %v7206_v1  ;;  %14210 = vmatpush3.xpose.msk.msra.mxu0 %vm878_vm2, %v7233_v36  ;;  %v15134_v12 = vpop.eup %15133  ;;  %15145 = vrcp.f32 %v6377_v4  ;;  %v21753_v1 = vld [vmem:[#allocation167_spill] sm:$0xff] }
 0x65d   : > { %v7205_v13 = vmul.f32 %v21752_v53, %v7045_v28  ;;  %v6884_v34 = vsub.f32 2.0, %v6724_v62  ;;  %14160 = vmatprep.subr.mxu1 %v21309_v56  ;;  %14211 = vmatprep.subr.mxu0 %v21309_v56  ;;  %v7071_v3 = vmul.f32 %v15130_v18, %v6911_v57  ;;  %v6750_v43 = vmul.f32 %v15134_v12, %v19933_v23  ;;  %v19985_v7 = vpop.f32.mrf.mxu1  ;;  %v21754_v28 = vld [vmem:[#allocation127_spill] sm:$0xff]  ;;  %v21755_v57 = vld [vmem:[#allocation161_spill] sm:$0xff] }
 0x65e   : > { %v15136_v46 = vpop.eup %15135  ;;  %14225 = vmatprep.mubr.msk.f32.mxu0 %vm15258_vm4, %v21309_v56  ;;  %v6380_v10 = vpop.xlane.xlu1 %6379 }
 0x65f   : > { %v7044_v38 = vmul.f32 %v15132_v37, %v6884_v34  ;;  %v6723_v14 = vmul.f32 %v15136_v46, %v19940_v54  ;;  %v7231_v19 = vmul.f32 %v19054_v39, %v7071_v3  ;;  %v6910_v52 = vsub.f32 2.0, %v6750_v43  ;;  %v13942_v42 = vpop.f32.mrf.mxu1  ;;  %v21756_v34 = vld [vmem:[#allocation123_spill] sm:$0xff] }
 0x660   : > { %14161 = vmatpush3.xpose.msk.msra.mxu1 %vm878_vm2, %v7205_v13  ;;  %14212 = vmatpush3.xpose.msk.msra.mxu0 %vm878_vm2, %v7232_v22  ;;  %15147 = vrcp.f32 %v6380_v10 }
 0x661   : > { %v15138_v23 = vpop.eup %15137  ;;  %v7204_v47 = vmul.f32 %v19096_v33, %v7044_v38  ;;  %v6883_v0 = vsub.f32 2.0, %v6723_v14  ;;  %14162 = vmatprep.subr.mxu1 %v21309_v56  ;;  %14213 = vmatprep.subr.mxu0 %v21309_v56  ;;  %v7070_v54 = vmul.f32 %v15134_v12, %v6910_v52  ;;  %v21757_v14 = vld [vmem:[#allocation65_spill] sm:$0xff] }
 0x662   : > { %v15140_v45 = vpop.eup %15139  ;;  %v6749_v21 = vmul.f32 %v15138_v23, %v19948_v40  ;;  %v6449_v36 = vpop.xlane.xlu1 %6448 }
 0x663   : > { %v7043_v39 = vmul.f32 %v15136_v46, %v6883_v0  ;;  %v6722_v15 = vmul.f32 %v15140_v45, %v19954_v63  ;;  %v7230_v32 = vmul.f32 %v19081_v61, %v7070_v54  ;;  %15149 = vrcp.f32 %v6449_v36 }
 0x664   : > { %v6909_v18 = vsub.f32 2.0, %v6749_v21  ;;  %14163 = vmatpush3.xpose.msk.msra.mxu1 %vm878_vm2, %v7204_v47  ;;  %14214 = vmatpush3.xpose.msk.msra.mxu0 %vm878_vm2, %v7231_v19  ;;  %v15142_v33 = vpop.eup %15141  ;;  %v6374_v58 = vpop.xlane.xlu0 %6373  ;;  %v21758_v19 = vld [vmem:[#allocation67_spill] sm:$0xff] }
 0x665   : > { %v7203_v20 = vmul.f32 %v21753_v1, %v7043_v39  ;;  %v6882_v37 = vsub.f32 2.0, %v6722_v15  ;;  %14164 = vmatprep.subr.mxu1 %v21309_v56  ;;  %14215 = vmatprep.subr.mxu0 %v21309_v56  ;;  %v6748_v63 = vmul.f32 %v15142_v33, %v19962_v60  ;;  %15151 = vrcp.f32 %v6374_v58  ;;  %v21760_v39 = vld [vmem:[#allocation107_spill] sm:$0xff] }
 0x666   : > { %v7069_v40 = vmul.f32 %v15138_v23, %v6909_v18  ;;  %v6446_v5 = vpop.xlane.xlu1 %6445  ;;  %v1761_v52 = vadd.f32 %v21758_v19, %v21757_v14 }
 0x667   : > { %v7042_v61 = vmul.f32 %v15140_v45, %v6882_v37  ;;  %v6908_v35 = vsub.f32 2.0, %v6748_v63  ;;  %15153 = vrcp.f32 %v6446_v5 }
 0x668   : > { %v7229_v62 = vmul.f32 %v21754_v28, %v7069_v40  ;;  %14165 = vmatpush3.xpose.msk.msra.mxu1 %vm878_vm2, %v7203_v20  ;;  %14216 = vmatpush3.xpose.msk.msra.mxu0 %vm878_vm2, %v7230_v32  ;;  %v15144_v22 = vpop.eup %15143 }
 0x669   : > { %v7202_v12 = vmul.f32 %v21755_v57, %v7042_v61  ;;  %14217 = vmatprep.subr.mxu0 %v21309_v56  ;;  %14166 = vmatprep.subr.mxu1 %v21309_v56  ;;  %v7068_v53 = vmul.f32 %v15142_v33, %v6908_v35  ;;  %v6747_v60 = vmul.f32 %v15144_v22, %v19975_v2  ;;  %v15146_v13 = vpop.eup %15145  ;;  %v21761_v33 = vld [vmem:[#allocation174_spill] sm:$0xff] }
 0x66a   : > { %v6745_v43 = vmul.f32 %v15146_v13, %v6377_v4  ;;  %v21759_v4 = vld [vmem:[#allocation170_spill] sm:$0xff] }
 0x66b   : > { %v7228_v46 = vmul.f32 %v21756_v34, %v7068_v53  ;;  %v6907_v3 = vsub.f32 2.0, %v6747_v60 }
 0x66c   : > { %14218 = vmatpush3.xpose.msk.msra.mxu0 %vm878_vm2, %v7229_v62  ;;  %14167 = vmatpush3.xpose.msk.msra.mxu1 %vm878_vm2, %v7202_v12  ;;  %v6371_v42 = vpop.xlane.xlu0 %6370  ;;  %v6905_v2 = vsub.f32 2.0, %v6745_v43  ;;  %v21763_v12 = vld [vmem:[#allocation179_spill] sm:$0xff] }
 0x66d   : > { %v15148_v38 = vpop.eup %15147  ;;  %14219 = vmatprep.subr.mxu0 %v21309_v56  ;;  %14190 = vmatprep.subr.mxu1 %v21309_v56  ;;  %v7067_v23 = vmul.f32 %v15144_v22, %v6907_v3  ;;  %15155 = vrcp.f32 %v6371_v42 }
 0x66e   : > { %v6746_v47 = vmul.f32 %v15148_v38, %v6380_v10  ;;  %v7065_v45 = vmul.f32 %v15146_v13, %v6905_v2 }
 0x66f   : > { %14169 = vmatmul.mubr.msk.f32.vlgmr.msra.gmra.mxu1 %vm878_vm2, %v1761_v52  ;;  %v7227_v0 = vmul.f32 %v21759_v4, %v7067_v23 }
 0x670   : > { %v6906_v54 = vsub.f32 2.0, %v6746_v47  ;;  %14220 = vmatpush3.xpose.msk.msra.mxu0 %vm878_vm2, %v7228_v46  ;;  %14206 = vmatprep.mubr.msk.f32.mxu1 %vm15258_vm4, %v21309_v56  ;;  %v15150_v21 = vpop.eup %15149  ;;  %v7225_v15 = vmul.f32 %v21760_v39, %v7065_v45  ;;  %v21764_v46 = vld [vmem:[#allocation72_spill] sm:$0xff] }
 0x671   : > { %14221 = vmatprep.subr.mxu0 %v21309_v56  ;;  %v6769_v18 = vmul.f32 %v15150_v21, %v6449_v36  ;;  %v21762_v36 = vld [vmem:[#allocation177_spill] sm:$0xff] }
 0x672   : > { %v7066_v32 = vmul.f32 %v15148_v38, %v6906_v54  ;;  %v15152_v10 = vpop.eup %15151  ;;  %14191 = vmatpush3.xpose.msk.msra.mxu1 %vm878_vm2, %v7225_v15 }
 0x673   : > { %v6929_v20 = vsub.f32 2.0, %v6769_v18  ;;  %v6744_v37 = vmul.f32 %v15152_v10, %v6374_v58  ;;  %14192 = vmatprep.subr.mxu1 %v21309_v56 }
 0x674   : > { %v7226_v1 = vmul.f32 %v21761_v33, %v7066_v32  ;;  %14222 = vmatpush3.xpose.msk.msra.mxu0 %vm878_vm2, %v7227_v0  ;;  %v15154_v40 = vpop.eup %15153  ;;  %v6368_v63 = vpop.xlane.xlu0 %6367 }
 0x675   : > { %14223 = vmatprep.subr.mxu0 %v21309_v56  ;;  %v7089_v61 = vmul.f32 %v15150_v21, %v6929_v20  ;;  %v6904_v28 = vsub.f32 2.0, %v6744_v37  ;;  %v6768_v62 = vmul.f32 %v15154_v40, %v6446_v5  ;;  %15157 = vrcp.f32 %v6368_v63  ;;  %v21765_v5 = vld [vmem:[#allocation89_spill] sm:$0xff] }
 0x677   : > { %v7249_v35 = vmul.f32 %v21762_v36, %v7089_v61  ;;  %v7064_v22 = vmul.f32 %v15152_v10, %v6904_v28  ;;  %v6928_v57 = vsub.f32 2.0, %v6768_v62  ;;  %v20033_v58 = vpop.f32.mrf.mxu0 }
 0x678   : > { %14224 = vmatpush3.xpose.msk.msra.mxu0 %vm878_vm2, %v7226_v1 }
 0x679   : > { %14247 = vmatprep.subr.mxu0 %v21309_v56  ;;  %v7224_v53 = vmul.f32 %v21763_v12, %v7064_v22  ;;  %v7088_v60 = vmul.f32 %v15154_v40, %v6928_v57  ;;  %v13999_v13 = vpop.f32.mrf.mxu0 }
 0x67a   : > { %v15156_v34 = vpop.eup %15155 }
 0x67b   : > { %14226 = vmatmul.mubr.msk.f32.vlgmr.msra.gmra.mxu0 %vm878_vm2, %v21764_v46  ;;  %v7248_v3 = vmul.f32 %v21765_v5, %v7088_v60  ;;  %v6743_v43 = vmul.f32 %v15156_v34, %v6371_v42  ;;  %14193 = vmatpush3.xpose.msk.msra.mxu1 %vm878_vm2, %v7224_v53 }
 0x67c   : > { %14248 = vmatpush3.xpose.msk.msra.mxu0 %vm878_vm2, %v7249_v35  ;;  %v6365_v38 = vpop.xlane.xlu0 %6364  ;;  %14194 = vmatprep.subr.mxu1 %v21309_v56 }
 0x67d   : > { %14249 = vmatprep.subr.mxu0 %v21309_v56  ;;  %v6903_v14 = vsub.f32 2.0, %v6743_v43  ;;  %15159 = vrcp.f32 %v6365_v38  ;;  %14263 = vmatprep.mubr.msk.f32.mxu0 %vm15258_vm4, %v21309_v56 }
 0x67f   : > { %v7063_v19 = vmul.f32 %v15156_v34, %v6903_v14 }
 0x680   : > { %14250 = vmatpush3.xpose.msk.msra.mxu0 %vm878_vm2, %v7248_v3 }
 0x681   : > { %14251 = vmatprep.subr.mxu0 %v21309_v56  ;;  %v7223_v52 = vmul.f32 %v19323_v59, %v7063_v19 }
 0x682   : > { %v15158_v42 = vpop.eup %15157 }
 0x683   : > { %v6742_v23 = vmul.f32 %v15158_v42, %v6368_v63  ;;  %14195 = vmatpush3.xpose.msk.msra.mxu1 %vm878_vm2, %v7223_v52 }
 0x684   : > { %v6362_v2 = vpop.xlane.xlu0 %6361  ;;  %14196 = vmatprep.subr.mxu1 %v21309_v56 }
 0x685   : > { %v6902_v47 = vsub.f32 2.0, %v6742_v23  ;;  %15161 = vrcp.f32 %v6362_v2 }
 0x687   : > { %v7062_v4 = vmul.f32 %v15158_v42, %v6902_v47 }
 0x688   : > { %v6443_v0 = vpop.xlane.xlu1 %6442 }
 0x689   : > { %v7222_v45 = vmul.f32 %v19369_v31, %v7062_v4  ;;  %15163 = vrcp.f32 %v6443_v0 }
 0x68a   : > { %v15160_v54 = vpop.eup %15159 }
 0x68b   : > { %v6741_v21 = vmul.f32 %v15160_v54, %v6365_v38  ;;  %14197 = vmatpush3.xpose.msk.msra.mxu1 %vm878_vm2, %v7222_v45 }
 0x68c   : > { %v6440_v39 = vpop.xlane.xlu1 %6439  ;;  %v6359_v59 = vpop.xlane.xlu0 %6358  ;;  %14198 = vmatprep.subr.mxu1 %v21309_v56 }
 0x68d   : > { %v6901_v15 = vsub.f32 2.0, %v6741_v21  ;;  %15165 = vrcp.f32 %v6440_v39  ;;  %v20054_v32 = vpop.f32.mrf.mxu1  ;;  %v21767_v21 = vld [vmem:[#allocation71_spill] sm:$0xff] }
 0x68e   : > { %15167 = vrcp.f32 %v6359_v59 }
 0x68f   : > { %v7061_v18 = vmul.f32 %v15160_v54, %v6901_v15  ;;  %v13980_v10 = vpop.f32.mrf.mxu1 }
 0x690   : > { %v6356_v33 = vpop.xlane.xlu0 %6355 }
 0x691   : > { %v7221_v1 = vmul.f32 %v19412_v27, %v7061_v18  ;;  %15169 = vrcp.f32 %v6356_v33 }
 0x692   : > { %v15162_v31 = vpop.eup %15161 }
 0x693   : > { %v6740_v20 = vmul.f32 %v15162_v31, %v6362_v2  ;;  %14199 = vmatpush3.xpose.msk.msra.mxu1 %vm878_vm2, %v7221_v1 }
 0x694   : > { %v6425_v37 = vpop.xlane.xlu0 %6424  ;;  %14200 = vmatprep.subr.mxu1 %v21309_v56 }
 0x695   : > { %v6900_v40 = vsub.f32 2.0, %v6740_v20  ;;  %15171 = vrcp.f32 %v6425_v37 }
 0x696   : > { %v15164_v63 = vpop.eup %15163 }
 0x697   : > { %v7060_v61 = vmul.f32 %v15162_v31, %v6900_v40  ;;  %v6767_v28 = vmul.f32 %v15164_v63, %v6443_v0 }
 0x698   : > { %v6422_v62 = vpop.xlane.xlu0 %6421 }
 0x699   : > { %v7220_v36 = vmul.f32 %v19458_v48, %v7060_v61  ;;  %v6927_v35 = vsub.f32 2.0, %v6767_v28  ;;  %15173 = vrcp.f32 %v6422_v62  ;;  %v20060_v22 = vpop.f32.mrf.mxu0 }
 0x69a   : > { %v15166_v27 = vpop.eup %15165 }
 0x69b   : > { %v15168_v57 = vpop.eup %15167  ;;  %v7087_v12 = vmul.f32 %v15164_v63, %v6927_v35  ;;  %v6766_v53 = vmul.f32 %v15166_v27, %v6440_v39  ;;  %v14037_v60 = vpop.f32.mrf.mxu0  ;;  %14201 = vmatpush3.xpose.msk.msra.mxu1 %vm878_vm2, %v7220_v36 }
 0x69c   : > { %v6739_v13 = vmul.f32 %v15168_v57, %v6359_v59  ;;  %v6419_v34 = vpop.xlane.xlu0 %6418  ;;  %14202 = vmatprep.subr.mxu1 %v21309_v56  ;;  %v21768_v59 = vld [vmem:[#allocation221_spill] sm:$0xff] }
 0x69d   : > { %v7247_v46 = vmul.f32 %v19483_v29, %v7087_v12  ;;  %v6926_v5 = vsub.f32 2.0, %v6766_v53  ;;  %15175 = vrcp.f32 %v6419_v34 }
 0x69e   : > { %v15170_v48 = vpop.eup %15169  ;;  %v6899_v3 = vsub.f32 2.0, %v6739_v13 }
 0x69f   : > { %v7086_v43 = vmul.f32 %v15166_v27, %v6926_v5  ;;  %v6738_v38 = vmul.f32 %v15170_v48, %v6356_v33  ;;  %14252 = vmatpush3.xpose.msk.msra.mxu0 %vm878_vm2, %v7247_v46 }
 0x6a0   : > { %v7059_v14 = vmul.f32 %v15168_v57, %v6899_v3  ;;  %14253 = vmatprep.subr.mxu0 %v21309_v56 }
 0x6a1   : > { %v7246_v19 = vmul.f32 %v19513_v8, %v7086_v43  ;;  %v6898_v52 = vsub.f32 2.0, %v6738_v38 }
 0x6a2   : > { %v15172_v42 = vpop.eup %15171  ;;  %v7219_v23 = vmul.f32 %v19520_v51, %v7059_v14  ;;  %v21766_v51 = vld [vmem:[#allocation69_spill] sm:$0xff] }
 0x6a3   : > { %v7058_v2 = vmul.f32 %v15170_v48, %v6898_v52  ;;  %v6761_v47 = vmul.f32 %v15172_v42, %v6425_v37  ;;  %14254 = vmatpush3.xpose.msk.msra.mxu0 %vm878_vm2, %v7246_v19  ;;  %v1771_v39 = vadd.f32 %v21767_v21, %v21766_v51 }
 0x6a4   : > { %14203 = vmatpush3.xpose.msk.msra.mxu1 %vm878_vm2, %v7219_v23  ;;  %14255 = vmatprep.subr.mxu0 %v21309_v56 }
 0x6a5   : > { %v7218_v29 = vmul.f32 %v19542_v16, %v7058_v2  ;;  %v6921_v4 = vsub.f32 2.0, %v6761_v47  ;;  %14204 = vmatprep.subr.mxu1 %v21309_v56 }
 0x6a6   : > { %v15174_v0 = vpop.eup %15173 }
 0x6a7   : > { %v7081_v45 = vmul.f32 %v15172_v42, %v6921_v4  ;;  %v6760_v8 = vmul.f32 %v15174_v0, %v6422_v62  ;;  %v6437_v54 = vpop.xlane.xlu1 %6436 }
 0x6a8   : > { %14205 = vmatpush3.xpose.msk.msra.mxu1 %vm878_vm2, %v7218_v29  ;;  %15177 = vrcp.f32 %v6437_v54 }
 0x6a9   : > { %v7241_v15 = vmul.f32 %v21768_v59, %v7081_v45  ;;  %v6920_v18 = vsub.f32 2.0, %v6760_v8  ;;  %14228 = vmatprep.subr.mxu1 %v21309_v56 }
 0x6aa   : > { %v15176_v10 = vpop.eup %15175 }
 0x6ab   : > { %v7080_v16 = vmul.f32 %v15174_v0, %v6920_v18  ;;  %v6759_v33 = vmul.f32 %v15176_v10, %v6419_v34  ;;  %14207 = vmatmul.mubr.msk.f32.vlgmr.msra.gmra.mxu1 %vm878_vm2, %v1771_v39 }
 0x6ac   : > { %14229 = vmatpush3.xpose.msk.msra.mxu1 %vm878_vm2, %v7241_v15  ;;  %14244 = vmatprep.mubr.msk.f32.mxu1 %vm15258_vm4, %v21309_v56 }
 0x6ad   : > { %v7240_v1 = vmul.f32 %v19594_v25, %v7080_v16  ;;  %v6919_v31 = vsub.f32 2.0, %v6759_v33  ;;  %v20084_v20 = vpop.f32.mrf.mxu1  ;;  %14230 = vmatprep.subr.mxu1 %v21309_v56  ;;  %v21769_v33 = vld [vmem:[#allocation74_spill] sm:$0xff] }
 0x6af   : > { %v7079_v37 = vmul.f32 %v15176_v10, %v6919_v31  ;;  %v14018_v40 = vpop.f32.mrf.mxu1  ;;  %v6434_v63 = vpop.xlane.xlu1 %6433 }
 0x6b0   : > { %14231 = vmatpush3.xpose.msk.msra.mxu1 %vm878_vm2, %v7240_v1  ;;  %15179 = vrcp.f32 %v6434_v63 }
 0x6b1   : > { %v7239_v61 = vmul.f32 %v19618_v11, %v7079_v37  ;;  %14232 = vmatprep.subr.mxu1 %v21309_v56 }
 0x6b4   : > { %14233 = vmatpush3.xpose.msk.msra.mxu1 %vm878_vm2, %v7239_v61 }
 0x6b5   : > { %v6416_v28 = vpop.xlane.xlu0 %6415  ;;  %14234 = vmatprep.subr.mxu1 %v21309_v56  ;;  %v15178_v25 = vpop.eup %15177 }
 0x6b6   : > { %15181 = vrcp.f32 %v6416_v28  ;;  %v6765_v62 = vmul.f32 %v15178_v25, %v6437_v54 }
 0x6b7   : > { %v6431_v36 = vpop.xlane.xlu1 %6430 }
 0x6b8   : > { %v6925_v35 = vsub.f32 2.0, %v6765_v62  ;;  %15183 = vrcp.f32 %v6431_v36 }
 0x6b9   : > { %v20092_v27 = vpop.f32.mrf.mxu0 }
 0x6ba   : > { %v7085_v57 = vmul.f32 %v15178_v25, %v6925_v35 }
 0x6bb   : > { %v14075_v12 = vpop.f32.mrf.mxu0  ;;  %v6428_v53 = vpop.xlane.xlu1 %6427 }
 0x6bc   : > { %v7245_v60 = vmul.f32 %v19693_v49, %v7085_v57  ;;  %15185 = vrcp.f32 %v6428_v53  ;;  %v21776_v12 = vld [vmem:[#allocation12_spill] sm:$0xff] }
 0x6bd   : > { %v6413_v11 = vpop.xlane.xlu0 %6412  ;;  %v15180_v13 = vpop.eup %15179 }
 0x6be   : > { %15187 = vrcp.f32 %v6413_v11  ;;  %v6764_v34 = vmul.f32 %v15180_v13, %v6434_v63  ;;  %14256 = vmatpush3.xpose.msk.msra.mxu0 %vm878_vm2, %v7245_v60  ;;  %v21772_v63 = vld [vmem:[#allocation8_spill] sm:$0xff]  ;;  %v21778_v60 = vld [vmem:[#allocation15_spill] sm:$0xff] }
 0x6bf   : > { %14257 = vmatprep.subr.mxu0 %v21309_v56  ;;  %v21773_v61 = vmax.f32 %v21772_v63, 0.0  ;;  %v21804_v63 = vld [vmem:[#allocation9_spill] sm:$0xff] }
 0x6c0   : > { %v6924_v46 = vsub.f32 2.0, %v6764_v34  ;;  %v9215_v34 = vld [vmem:[%s20696_s4 + $0x5] sm:$0x1] }
 0x6c2   : > { %v7084_v48 = vmul.f32 %v15180_v13, %v6924_v46  ;;  %v21779_v13 = vmax.f32 %v21778_v60, 0.0 }
 0x6c3   : > { %v15182_v5 = vpop.eup %15181 }
 0x6c4   : > { %v6758_v3 = vmul.f32 %v15182_v5, %v6416_v28  ;;  %v7244_v38 = vmul.f32 %v19733_v44, %v7084_v48 }
 0x6c5   : > { %v6410_v43 = vpop.xlane.xlu0 %6409  ;;  %v15184_v19 = vpop.eup %15183 }
 0x6c6   : > { %v6918_v14 = vsub.f32 2.0, %v6758_v3  ;;  %15189 = vrcp.f32 %v6410_v43  ;;  %v6763_v49 = vmul.f32 %v15184_v19, %v6431_v36  ;;  %14258 = vmatpush3.xpose.msk.msra.mxu0 %vm878_vm2, %v7244_v38  ;;  %v21774_v36 = vld [vmem:[#allocation11_spill] sm:$0xff] }
 0x6c7   : > { %14259 = vmatprep.subr.mxu0 %v21309_v56  ;;  %v21775_v35 = vmax.f32 %v21774_v36, 0.0  ;;  %v21782_v38 = vld [vmem:[#allocation19_spill] sm:$0xff]  ;;  %v21808_v36 = vld [vmem:[#allocation10_spill] sm:$0xff] }
 0x6c8   : > { %v7078_v52 = vmul.f32 %v15182_v5, %v6918_v14  ;;  %v6923_v23 = vsub.f32 2.0, %v6763_v49  ;;  %v21780_v5 = vld [vmem:[#allocation16_spill] sm:$0xff]  ;;  %v21783_v14 = vmax.f32 %v21782_v38, 0.0  ;;  %v21818_v38 = vld [vmem:[#allocation17_spill] sm:$0xff] }
 0x6c9   : > { %v15186_v2 = vpop.eup %15185  ;;  %v21781_v48 = vmax.f32 %v21780_v5, 0.0  ;;  %v21815_v5 = vld [vmem:[#allocation14_spill] sm:$0xff] }
 0x6ca   : > { %v7238_v42 = vmul.f32 %v19760_v41, %v7078_v52  ;;  %v7083_v29 = vmul.f32 %v15184_v19, %v6923_v23  ;;  %v6762_v4 = vmul.f32 %v15186_v2, %v6428_v53  ;;  %v21777_v53 = vmax.f32 %v21776_v12, 0.0  ;;  %v9217_v19 = vld [vmem:[%s20696_s4 + $0x7] sm:$0x1]  ;;  %v21786_v23 = vld [vmem:[#allocation23_spill] sm:$0xff] }
 0x6cb   : > { %v15188_v47 = vpop.eup %15187  ;;  %v21784_v52 = vld [vmem:[#allocation20_spill] sm:$0xff] }
 0x6cc   : > { %14235 = vmatpush3.xpose.msk.msra.mxu1 %vm878_vm2, %v7238_v42  ;;  %v6757_v0 = vmul.f32 %v15188_v47, %v6413_v11  ;;  %v7243_v45 = vmul.f32 %v19779_v50, %v7083_v29  ;;  %v6922_v8 = vsub.f32 2.0, %v6762_v4  ;;  %v21785_v49 = vmax.f32 %v21784_v52, 0.0  ;;  %v21788_v4 = vld [vmem:[#allocation24_spill] sm:$0xff]  ;;  %v21821_v52 = vld [vmem:[#allocation18_spill] sm:$0xff] }
 0x6cd   : > { %v6407_v44 = vpop.xlane.xlu0 %6406  ;;  %14236 = vmatprep.subr.mxu1 %v21309_v56  ;;  %v20104_v54 = vpop.f32.mrf.mxu1 }
 0x6ce   : > { %15191 = vrcp.f32 %v6407_v44  ;;  %v6917_v51 = vsub.f32 2.0, %v6757_v0  ;;  %v7082_v21 = vmul.f32 %v15186_v2, %v6922_v8  ;;  %14260 = vmatpush3.xpose.msk.msra.mxu0 %vm878_vm2, %v7243_v45  ;;  %v21787_v2 = vmax.f32 %v21786_v23, 0.0  ;;  %v9221_v8 = vld [vmem:[%s20696_s4 + $0xb] sm:$0x1]  ;;  %v21823_v23 = vld [vmem:[#allocation38_spill] sm:$0xff] }
 0x6cf   : > { %v14056_v41 = vpop.f32.mrf.mxu1  ;;  %14261 = vmatprep.subr.mxu0 %v21309_v56  ;;  %v21789_v0 = vmax.f32 %v21788_v4, 0.0  ;;  %v9218_v4 = vld [vmem:[%s20696_s4 + $0x8] sm:$0x1] }
 0x6d0   : > { %v7077_v39 = vmul.f32 %v15188_v47, %v6917_v51  ;;  %v7242_v59 = vmul.f32 %v19800_v24, %v7082_v21  ;;  %v21770_v24 = vld [vmem:[#allocation7_spill] sm:$0xff]  ;;  %v9219_v47 = vld [vmem:[%s20696_s4 + $0x9] sm:$0x1] }
 0x6d1   : > { %v21771_v31 = vmax.f32 %v21770_v24, 0.0  ;;  %v21792_v51 = vld [vmem:[#allocation73_spill] sm:$0xff]  ;;  %v21793_v21 = vld [vmem:[#allocation75_spill] sm:$0xff] }
 0x6d2   : > { %v7237_v18 = vmul.f32 %v19807_v26, %v7077_v39  ;;  %14262 = vmatpush3.xpose.msk.msra.mxu0 %vm878_vm2, %v7242_v59  ;;  %v9211_v26 = vld [vmem:[%s20696_s4 + $0x1] sm:$0x1]  ;;  %v1781_v41 = vadd.f32 %v21793_v21, %v21792_v51  ;;  %v9220_v21 = vld [vmem:[%s20696_s4 + $0xa] sm:$0x1] }
 0x6d3   : > { %v15190_v15 = vpop.eup %15189  ;;  %14273 = vmatprep.subr.mxu0 %v21309_v56  ;;  %v21794_v39 = vld [vmem:[#allocation28_spill] sm:$0xff] }
 0x6d4   : > { %v6756_v10 = vmul.f32 %v15190_v15, %v6410_v43  ;;  %14237 = vmatpush3.xpose.msk.msra.mxu1 %vm878_vm2, %v7237_v18  ;;  %v21795_v59 = vmax.f32 %v21794_v39, 0.0  ;;  %v21796_v18 = vld [vmem:[#allocation5_spill] sm:$0xff]  ;;  %v21831_v39 = vld [vmem:[#allocation26_spill] sm:$0xff] }
 0x6d5   : > { %v6404_v50 = vpop.xlane.xlu0 %6403  ;;  %14238 = vmatprep.subr.mxu1 %v21309_v56  ;;  %14264 = vmatmul.mubr.msk.f32.vlgmr.msra.gmra.mxu0 %vm878_vm2, %v21769_v33  ;;  %v9210_v33 = vld [vmem:[%s20696_s4] sm:$0x1] }
 0x6d6   : > { %v6916_v16 = vsub.f32 2.0, %v6756_v10  ;;  %15193 = vrcp.f32 %v6404_v50  ;;  %14274 = vmatpush3.msra.mxu0 %v21771_v31  ;;  %14277 = vmatprep.mubr.msk.f32.mxu0 %vm15258_vm4, %v21309_v56  ;;  %v21797_v10 = vmax.f32 %v21796_v18, 0.0  ;;  %v9223_v31 = vld [vmem:[%s20696_s4 + $0xd] sm:$0x1] }
 0x6d7   : > { %14275 = vmatprep.subr.mxu0 %v21309_v56  ;;  %v21833_v18 = vld [vmem:[#allocation29_spill] sm:$0xff] }
 0x6d8   : > { %v7076_v1 = vmul.f32 %v15190_v15, %v6916_v16  ;;  %14276 = vmatpush3.msra.mxu0 %v21773_v61  ;;  %v21805_v61 = vmax.f32 %v21804_v63, 0.0  ;;  %v20383_v63 = vld [vmem:[%s20695_s3 + $0xe] sm:$0x3] }
 0x6d9   : > { %v20125_v40 = vpop.f32.mrf.mxu0  ;;  %14278 = vmatmul.mubr.msk.f32.vlgmr.msra.gmra.mxu0 %vm9230_vm5, %v9211_v26  ;;  %14287 = vmatprep.subr.mxu0 %v21309_v56  ;;  %v21802_v26 = vld [vmem:[#allocation32_spill] sm:$0xff] }
 0x6da   : > { %v7236_v37 = vmul.f32 %v19841_v6, %v7076_v1  ;;  %14288 = vmatpush3.msra.mxu0 %v21775_v35  ;;  %v9213_v6 = vld [vmem:[%s20696_s4 + $0x3] sm:$0x1]  ;;  %14291 = vmatprep.mubr.msk.f32.mxu0 %vm15258_vm4, %v21309_v56  ;;  %v21800_v1 = vld [vmem:[#allocation6_spill] sm:$0xff]  ;;  %v21809_v35 = vmax.f32 %v21808_v36, 0.0 }
 0x6db   : > { %v15192_v28 = vpop.eup %15191  ;;  %v14113_v62 = vpop.f32.mrf.mxu0  ;;  %14289 = vmatprep.subr.mxu0 %v21309_v56  ;;  %v21801_v24 = vmax.f32 %v21800_v1, 0.0  ;;  %v20360_v1 = vld [vmem:[%s20695_s3 + $0xa] sm:$0x3]  ;;  %v9199_v36 = vld [vmem:[%s20695_s3 + $0x12] sm:$0x3] }
 0x6dc   : > { %v6755_v25 = vmul.f32 %v15192_v28, %v6407_v44  ;;  %14239 = vmatpush3.xpose.msk.msra.mxu1 %vm878_vm2, %v7236_v37  ;;  %14290 = vmatpush3.msra.mxu0 %v21777_v53  ;;  %v21790_v44 = vld [vmem:[#allocation27_spill] sm:$0xff]  ;;  %v21803_v37 = vmax.f32 %v21802_v26, 0.0  ;;  %v9212_v62 = vld [vmem:[%s20696_s4 + $0x2] sm:$0x1]  ;;  %v21839_v26 = vld [vmem:[#allocation34_spill] sm:$0xff] }
 0x6dd   : > { %14240 = vmatprep.subr.mxu1 %v21309_v56  ;;  %14292 = vmatmul.mubr.msk.f32.vlgmr.msra.gmra.mxu0 %vm9230_vm5, %v9213_v6  ;;  %v21791_v45 = vmax.f32 %v21790_v44, 0.0  ;;  %v9225_v6 = vld [vmem:[%s20696_s4 + $0xf] sm:$0x1] }
 0x6de   : > { %v6915_v57 = vsub.f32 2.0, %v6755_v25  ;;  %14301 = vmatprep.subr.mxu0 %v21309_v56  ;;  %14305 = vmatprep.mubr.msk.f32.mxu0 %vm15258_vm4, %v21309_v56 }
 0x6df   : > { %14302 = vmatpush3.msra.mxu0 %v21779_v13 }
 0x6e0   : > { %v7075_v11 = vmul.f32 %v15192_v28, %v6915_v57  ;;  %14303 = vmatprep.subr.mxu0 %v21309_v56  ;;  %v21806_v28 = vld [vmem:[#allocation35_spill] sm:$0xff]  ;;  %v21810_v57 = vld [vmem:[#allocation36_spill] sm:$0xff] }
 0x6e1   : > { %14304 = vmatpush3.msra.mxu0 %v21781_v48  ;;  %v21807_v25 = vmax.f32 %v21806_v28, 0.0  ;;  %v21811_v12 = vmax.f32 %v21810_v57, 0.0  ;;  %v21816_v48 = vmax.f32 %v21815_v5, 0.0  ;;  %v9226_v28 = vld [vmem:[%s20696_s4 + $0x10] sm:$0x1] }
 0x6e2   : > { %v7235_v46 = vmul.f32 %v19878_v55, %v7075_v11  ;;  %14306 = vmatmul.mubr.msk.f32.vlgmr.msra.gmra.mxu0 %vm9230_vm5, %v9215_v34  ;;  %14315 = vmatprep.subr.mxu0 %v21309_v56  ;;  %v21812_v11 = vld [vmem:[#allocation13_spill] sm:$0xff]  ;;  %v9201_v57 = vld [vmem:[%s20695_s3 + $0x16] sm:$0x3] }
 0x6e3   : > { %v15194_v3 = vpop.eup %15193  ;;  %14316 = vmatpush3.msra.mxu0 %v21783_v14  ;;  %14319 = vmatprep.mubr.msk.f32.mxu0 %vm15258_vm4, %v21309_v56  ;;  %v21813_v60 = vmax.f32 %v21812_v11, 0.0  ;;  %v21814_v34 = vld [vmem:[#allocation41_spill] sm:$0xff]  ;;  %v21819_v14 = vmax.f32 %v21818_v38, 0.0  ;;  %v9208_v38 = vld [vmem:[%s20695_s3 + $0x24] sm:$0x3] }
 0x6e4   : > { %v6754_v43 = vmul.f32 %v15194_v3, %v6404_v50  ;;  %14241 = vmatpush3.xpose.msk.msra.mxu1 %vm878_vm2, %v7235_v46  ;;  %14317 = vmatprep.subr.mxu0 %v21309_v56  ;;  %v21798_v50 = vld [vmem:[#allocation31_spill] sm:$0xff]  ;;  %v9214_v46 = vld [vmem:[%s20696_s4 + $0x4] sm:$0x1] }
 0x6e5   : > { %14318 = vmatpush3.msra.mxu0 %v21785_v49  ;;  %14242 = vmatprep.subr.mxu1 %v21309_v56  ;;  %v21799_v16 = vmax.f32 %v21798_v50, 0.0  ;;  %v21822_v49 = vmax.f32 %v21821_v52, 0.0  ;;  %v9222_v50 = vld [vmem:[%s20696_s4 + $0xc] sm:$0x1] }
 0x6e6   : > { %v6914_v55 = vsub.f32 2.0, %v6754_v43  ;;  %14320 = vmatmul.mubr.msk.f32.vlgmr.msra.gmra.mxu0 %vm9230_vm5, %v9217_v19  ;;  %14329 = vmatprep.subr.mxu0 %v21309_v56  ;;  %v21817_v43 = vld [vmem:[#allocation42_spill] sm:$0xff]  ;;  %v21820_v19 = vld [vmem:[#allocation37_spill] sm:$0xff] }
 0x6e7   : > { %14330 = vmatpush3.msra.mxu0 %v21787_v2  ;;  %14333 = vmatprep.mubr.msk.f32.mxu0 %vm15258_vm4, %v21309_v56  ;;  %v21824_v2 = vld [vmem:[#allocation21_spill] sm:$0xff] }
 0x6e8   : > { %v7074_v42 = vmul.f32 %v15194_v3, %v6914_v55  ;;  %14331 = vmatprep.subr.mxu0 %v21309_v56  ;;  %v9227_v3 = vld [vmem:[%s20696_s4 + $0x11] sm:$0x1]  ;;  %v9216_v55 = vld [vmem:[%s20696_s4 + $0x6] sm:$0x1] }
 0x6e9   : > { %14332 = vmatpush3.msra.mxu0 %v21789_v0  ;;  %v21827_v0 = vld [vmem:[#allocation22_spill] sm:$0xff] }
 0x6ea   : > { %v7234_v29 = vmul.f32 %v19909_v17, %v7074_v42  ;;  %14334 = vmatmul.mubr.msk.f32.vlgmr.msra.gmra.mxu0 %vm9230_vm5, %v9219_v47  ;;  %14343 = vmatprep.subr.mxu0 %v21309_v56  ;;  %v9229_v42 = vld [vmem:[%s20696_s4 + $0x13] sm:$0x1]  ;;  %v21825_v47 = vmax.f32 %v21824_v2, 0.0  ;;  %v21828_v44 = vmax.f32 %v21827_v0, 0.0 }
 0x6eb   : > { %14344 = vmatpush3.msra.mxu0 %v21791_v45  ;;  %14347 = vmatprep.mubr.msk.f32.mxu0 %vm15258_vm4, %v21309_v56  ;;  %v20312_v45 = vld [vmem:[%s20695_s3 + $0x2] sm:$0x3] }
 0x6ec   : > { %14243 = vmatpush3.xpose.msk.msra.mxu1 %vm878_vm2, %v7234_v29  ;;  %14345 = vmatprep.subr.mxu0 %v21309_v56  ;;  %v21826_v29 = vld [vmem:[#allocation169_spill] sm:$0xff] }
 0x6ed   : > { %v20196_v17 = vpop.f32.mrf.mxu1  ;;  %14346 = vmatpush3.msra.mxu0 %v21795_v59  ;;  %14266 = vmatprep.subr.mxu1 %v21309_v56  ;;  %v21832_v59 = vmax.f32 %v21831_v39, 0.0 }
 0x6ee   : > { %14348 = vmatmul.mubr.msk.f32.vlgmr.msra.gmra.mxu0 %vm9230_vm5, %v9221_v8  ;;  %14357 = vmatprep.subr.mxu0 %v21309_v56  ;;  %v21829_v8 = vld [vmem:[#allocation25_spill] sm:$0xff] }
 0x6ef   : > { %14245 = vmatmul.mubr.msk.f32.vlgmr.msra.gmra.mxu1 %vm878_vm2, %v1781_v41  ;;  %v14094_v15 = vpop.f32.mrf.mxu1  ;;  %14358 = vmatpush3.msra.mxu0 %v21799_v16  ;;  %v21830_v51 = vmax.f32 %v21829_v8, 0.0  ;;  %v21835_v16 = vld [vmem:[#allocation30_spill] sm:$0xff] }
 0x6f0   : > { %14267 = vmatpush3.msra.mxu1 %v21797_v10  ;;  %14359 = vmatprep.subr.mxu0 %v21309_v56  ;;  %v20337_v15 = vld [vmem:[%s20695_s3 + $0x6] sm:$0x3]  ;;  %v21834_v10 = vmax.f32 %v21833_v18, 0.0 }
 0x6f1   : > { %14268 = vmatprep.subr.mxu1 %v21309_v56  ;;  %14270 = vmatprep.mubr.msk.f32.mxu1 %vm15258_vm4, %v21309_v56 }
 0x6f2   : > { %14269 = vmatpush3.msra.mxu1 %v21801_v24  ;;  %14360 = vmatpush3.msra.mxu0 %v21803_v37  ;;  %v21840_v37 = vmax.f32 %v21839_v26, 0.0 }
 0x6f3   : > { %14361 = vmatprep.mubr.msk.f32.mxu0 %vm15258_vm4, %v21309_v56  ;;  %14271 = vmatmul.mubr.msk.f32.vlgmr.msra.gmra.mxu1 %vm9230_vm5, %v9210_v33  ;;  %v21836_v33 = vmax.f32 %v21835_v16, 0.0 }
 0x6f4   : > { %14280 = vmatprep.subr.mxu1 %v21309_v56  ;;  %14362 = vmatmul.mubr.msk.f32.vlgmr.msra.gmra.mxu0 %vm9230_vm5, %v9223_v31  ;;  %v9224_v31 = vld [vmem:[%s20696_s4 + $0xe] sm:$0x1] }
 0x6f5   : > { %14371 = vmatprep.subr.mxu0 %v21309_v56  ;;  %14281 = vmatpush3.msra.mxu1 %v21805_v61  ;;  %v21841_v61 = vld [vmem:[#allocation43_spill] sm:$0xff] }
 0x6f6   : > { %14372 = vmatpush3.msra.mxu0 %v21807_v25  ;;  %14282 = vmatprep.subr.mxu1 %v21309_v56 }
 0x6f7   : > { %14373 = vmatprep.subr.mxu0 %v21309_v56  ;;  %14283 = vmatpush3.msra.mxu1 %v21809_v35  ;;  %v9228_v35 = vld [vmem:[%s20696_s4 + $0x12] sm:$0x1] }
 0x6f8   : > { %14284 = vmatprep.mubr.msk.f32.mxu1 %vm15258_vm4, %v21309_v56  ;;  %14374 = vmatpush3.msra.mxu0 %v21811_v12  ;;  %v9203_v12 = vld [vmem:[%s20695_s3 + $0x1a] sm:$0x3] }
 0x6f9   : > { %14375 = vmatprep.mubr.msk.f32.mxu0 %vm15258_vm4, %v21309_v56  ;;  %14285 = vmatmul.mubr.msk.f32.vlgmr.msra.gmra.mxu1 %vm9230_vm5, %v9212_v62  ;;  %v21842_v62 = vld [vmem:[#allocation44_spill] sm:$0xff] }
 0x6fa   : > { %v20249_v53 = vpop.f32.mrf.mxu0  ;;  %14294 = vmatprep.subr.mxu1 %v21309_v56  ;;  %14376 = vmatmul.mubr.msk.f32.vlgmr.msra.gmra.mxu0 %vm9230_vm5, %v9225_v6  ;;  %v21844_v6 = vld [vmem:[#allocation40_spill] sm:$0xff] }
 0x6fb   : > { %14385 = vmatprep.subr.mxu0 %v21309_v56  ;;  %14295 = vmatpush3.msra.mxu1 %v21813_v60  ;;  %v15259_v60 = vmov 0  }
 0x6fc   : > { %v14151_v13 = vpop.f32.mrf.mxu0  ;;  %14386 = vmatpush3.msra.mxu0 %v21814_v34  ;;  %14296 = vmatprep.subr.mxu1 %v21309_v56 }
 0x6fd   : > { %14387 = vmatprep.subr.mxu0 %v21309_v56  ;;  %14297 = vmatpush3.msra.mxu1 %v21816_v48  ;;  %v9196_v13 = vld [vmem:[%s20695_s3 + $0xc] sm:$0x3]  ;;  %v9204_v48 = vld [vmem:[%s20695_s3 + $0x1c] sm:$0x3] }
 0x6fe   : > { %14298 = vmatprep.mubr.msk.f32.mxu1 %vm15258_vm4, %v21309_v56  ;;  %14388 = vmatpush3.msra.mxu0 %v21817_v43  ;;  %v9206_v43 = vld [vmem:[%s20695_s3 + $0x20] sm:$0x3] }
 0x6ff   : > { %14389 = vmatprep.mubr.msk.f32.mxu0 %vm15258_vm4, %v21309_v56  ;;  %14299 = vmatmul.mubr.msk.f32.vlgmr.msra.gmra.mxu1 %vm9230_vm5, %v9214_v46  ;;  %v9207_v46 = vld [vmem:[%s20695_s3 + $0x22] sm:$0x3] }
 0x700   : > { %14308 = vmatprep.subr.mxu1 %v21309_v56  ;;  %14390 = vmatmul.mubr.msk.f32.vlgmr.msra.gmra.mxu0 %vm9230_vm5, %v9227_v3  ;;  %v9209_v3 = vld [vmem:[%s20695_s3 + $0x26] sm:$0x3] }
 0x701   : > { %14399 = vmatprep.subr.mxu0 %v21309_v56  ;;  %14309 = vmatpush3.msra.mxu1 %v21819_v14 }
 0x702   : > { %14400 = vmatpush3.msra.mxu0 %v21820_v19  ;;  %14310 = vmatprep.subr.mxu1 %v21309_v56 }
 0x703   : > { %14401 = vmatprep.subr.mxu0 %v21309_v56  ;;  %14311 = vmatpush3.msra.mxu1 %v21822_v49 }
 0x704   : > { %14312 = vmatprep.mubr.msk.f32.mxu1 %vm15258_vm4, %v21309_v56  ;;  %14402 = vmatpush3.msra.mxu0 %v21823_v23 }
 0x705   : > { %14403 = vmatprep.mubr.msk.f32.mxu0 %vm15258_vm4, %v21309_v56  ;;  %14313 = vmatmul.mubr.msk.f32.vlgmr.msra.gmra.mxu1 %vm9230_vm5, %v9216_v55 }
 0x706   : > { %14322 = vmatprep.subr.mxu1 %v21309_v56  ;;  %14404 = vmatmul.mubr.msk.f32.vlgmr.msra.gmra.mxu0 %vm9230_vm5, %v9229_v42 }
 0x707   : > { %14411 = vmatprep.subr.mxu0 %v21309_v56  ;;  %14323 = vmatpush3.msra.mxu1 %v21825_v47 }
 0x708   : > { %14412 = vmatpush3.msra.mxu0 %v21826_v29  ;;  %14324 = vmatprep.subr.mxu1 %v21309_v56 }
 0x709   : > { %14325 = vmatpush3.msra.mxu1 %v21828_v44  ;;  %14326 = vmatprep.mubr.msk.f32.mxu1 %vm15258_vm4, %v21309_v56 }
 0x70a   : > { %14413 = vmatprep.mubr.msk.f32.mxu0 %vm15258_vm4, %v21309_v56  ;;  %14421 = vmatprep.subr.mxu0 %v21309_v56 }
 0x70b   : > { %14327 = vmatmul.mubr.msk.f32.vlgmr.msra.gmra.mxu1 %vm9230_vm5, %v9218_v4  ;;  %14336 = vmatprep.subr.mxu1 %v21309_v56 }
 0x70c   : > { %14414 = vmatmul.mubr.msk.f32.vlgmr.msra.gmra.mxu0 %vm2429_vm3, %v20312_v45  ;;  %14337 = vmatpush3.msra.mxu1 %v21830_v51 }
 0x70d   : > { %14422 = vmatpush3.msra.mxu0 %v19709_v30  ;;  %14338 = vmatprep.subr.mxu1 %v21309_v56  ;;  %v20328_v41 = vpop.f32.mrf.mxu1 }
 0x70e   : > { %14339 = vmatpush3.msra.mxu1 %v21832_v59  ;;  %14340 = vmatprep.mubr.msk.f32.mxu1 %vm15258_vm4, %v21309_v56 }
 0x70f   : > { %14423 = vmatprep.mubr.msk.f32.mxu0 %vm15258_vm4, %v21309_v56  ;;  %14431 = vmatprep.subr.mxu0 %v21309_v56  ;;  %v14132_v30 = vpop.f32.mrf.mxu1 }
 0x710   : > { %14341 = vmatmul.mubr.msk.f32.vlgmr.msra.gmra.mxu1 %vm9230_vm5, %v9220_v21  ;;  %14350 = vmatprep.subr.mxu1 %v21309_v56 }
 0x711   : > { %14424 = vmatmul.mubr.msk.f32.vlgmr.msra.gmra.mxu0 %vm2429_vm3, %v20337_v15  ;;  %14351 = vmatpush3.msra.mxu1 %v21834_v10 }
 0x712   : > { %14432 = vmatpush3.msra.mxu0 %v20033_v58  ;;  %14352 = vmatprep.subr.mxu1 %v21309_v56  ;;  %v21837_v58 = vld [vmem:[#allocation33_spill] sm:$0xff] }
 0x713   : > { %14353 = vmatpush3.msra.mxu1 %v21836_v33  ;;  %14354 = vmatprep.mubr.msk.f32.mxu1 %vm15258_vm4, %v21309_v56  ;;  %v21838_v24 = vmax.f32 %v21837_v58, 0.0 }
 0x714   : > { %14433 = vmatprep.mubr.msk.f32.mxu0 %vm15258_vm4, %v21309_v56  ;;  %14441 = vmatprep.subr.mxu0 %v21309_v56 }
 0x715   : > { %14355 = vmatmul.mubr.msk.f32.vlgmr.msra.gmra.mxu1 %vm9230_vm5, %v9222_v50  ;;  %14364 = vmatprep.subr.mxu1 %v21309_v56 }
 0x716   : > { %14434 = vmatmul.mubr.msk.f32.vlgmr.msra.gmra.mxu0 %vm2429_vm3, %v20360_v1  ;;  %14365 = vmatpush3.msra.mxu1 %v21838_v24 }
 0x717   : > { %14442 = vmatpush3.msra.mxu0 %v20060_v22  ;;  %14366 = vmatprep.subr.mxu1 %v21309_v56 }
 0x718   : > { %14367 = vmatpush3.msra.mxu1 %v21840_v37  ;;  %14368 = vmatprep.mubr.msk.f32.mxu1 %vm15258_vm4, %v21309_v56 }
 0x719   : > { %14443 = vmatprep.mubr.msk.f32.mxu0 %vm15258_vm4, %v21309_v56  ;;  %14451 = vmatprep.subr.mxu0 %v21309_v56 }
 0x71a   : > { %14369 = vmatmul.mubr.msk.f32.vlgmr.msra.gmra.mxu1 %vm9230_vm5, %v9224_v31  ;;  %14378 = vmatprep.subr.mxu1 %v21309_v56 }
 0x71b   : > { %v8798_v22 = vpop.f32.mrf.mxu0  ;;  %14444 = vmatmul.mubr.msk.f32.vlgmr.msra.gmra.mxu0 %vm2429_vm3, %v20383_v63  ;;  %14379 = vmatpush3.msra.mxu1 %v21841_v61 }
 0x71c   : > { %14452 = vmatpush3.msra.mxu0 %v20092_v27  ;;  %14380 = vmatprep.subr.mxu1 %v21309_v56  ;;  %v21843_v27 = vld [vmem:[#allocation39_spill] sm:$0xff] }
 0x71d   : > { %v14189_v25 = vpop.f32.mrf.mxu0  ;;  %14381 = vmatpush3.msra.mxu1 %v21842_v62  ;;  %14382 = vmatprep.mubr.msk.f32.mxu1 %vm15258_vm4, %v21309_v56 }
 0x71e   : > { %14453 = vmatprep.mubr.msk.f32.mxu0 %vm15258_vm4, %v21309_v56  ;;  %14461 = vmatprep.subr.mxu0 %v21309_v56 }
 0x71f   : > { %14383 = vmatmul.mubr.msk.f32.vlgmr.msra.gmra.mxu1 %vm9230_vm5, %v9226_v28  ;;  %14392 = vmatprep.subr.mxu1 %v21309_v56 }
 0x720   : > { %14454 = vmatmul.mubr.msk.f32.vlgmr.msra.gmra.mxu0 %vm2429_vm3, %v9199_v36  ;;  %14393 = vmatpush3.msra.mxu1 %v21843_v27 }
 0x721   : > { %14462 = vmatpush3.msra.mxu0 %v20125_v40  ;;  %14394 = vmatprep.subr.mxu1 %v21309_v56  ;;  %v9190_v40 = vld [vmem:[%s20695_s3] sm:$0x3] }
 0x722   : > { %14395 = vmatpush3.msra.mxu1 %v21844_v6  ;;  %14396 = vmatprep.mubr.msk.f32.mxu1 %vm15258_vm4, %v21309_v56 }
 0x723   : > { %14463 = vmatprep.mubr.msk.f32.mxu0 %vm15258_vm4, %v21309_v56  ;;  %14471 = vmatprep.subr.mxu0 %v21309_v56 }
 0x724   : > { %14397 = vmatmul.mubr.msk.f32.vlgmr.msra.gmra.mxu1 %vm9230_vm5, %v9228_v35  ;;  %14406 = vmatprep.subr.mxu1 %v21309_v56 }
 0x725   : > { %14464 = vmatmul.mubr.msk.f32.vlgmr.msra.gmra.mxu0 %vm2429_vm3, %v9201_v57  ;;  %14407 = vmatpush3.msra.mxu1 %v19646_v9  ;;  %v9192_v9 = vld [vmem:[%s20695_s3 + $0x4] sm:$0x3] }
 0x726   : > { %14472 = vmatpush3.msra.mxu0 %v20249_v53  ;;  %14408 = vmatprep.mubr.msk.f32.mxu1 %vm15258_vm4, %v21309_v56  ;;  %v9205_v53 = vld [vmem:[%s20695_s3 + $0x1e] sm:$0x3] }
 0x727   : > { %14416 = vmatprep.subr.mxu1 %v21309_v56  ;;  %14473 = vmatprep.mubr.msk.f32.mxu0 %vm15258_vm4, %v21309_v56 }
 0x728   : > { %14481 = vmatprep.subr.mxu0 %v21309_v56  ;;  %14409 = vmatmul.mubr.msk.f32.vlgmr.msra.gmra.mxu1 %vm2429_vm3, %v9190_v40 }
 0x729   : > { %14417 = vmatpush3.msra.mxu1 %v19985_v7  ;;  %14474 = vmatmul.mubr.msk.f32.vlgmr.msra.gmra.mxu0 %vm2429_vm3, %v9203_v12  ;;  %v9194_v7 = vld [vmem:[%s20695_s3 + $0x8] sm:$0x3] }
 0x72a   : > { %14482 = vmatpush3.msra.mxu0 %v8798_v22  ;;  %14418 = vmatprep.mubr.msk.f32.mxu1 %vm15258_vm4, %v21309_v56 }
 0x72b   : > { %14426 = vmatprep.subr.mxu1 %v21309_v56  ;;  %14483 = vmatprep.mubr.msk.f32.mxu0 %vm15258_vm4, %v21309_v56 }
 0x72c   : > { %14419 = vmatmul.mubr.msk.f32.vlgmr.msra.gmra.mxu1 %vm2429_vm3, %v9192_v9  ;;  %14491 = vmatprep.subr.mxu0 %v21309_v56 }
 0x72d   : > { %14427 = vmatpush3.msra.mxu1 %v20054_v32  ;;  %14428 = vmatprep.mubr.msk.f32.mxu1 %vm15258_vm4, %v21309_v56 }
 0x72e   : > { %14436 = vmatprep.subr.mxu1 %v21309_v56  ;;  %14484 = vmatmul.mubr.msk.f32.vlgmr.msra.gmra.mxu0 %vm2429_vm3, %v9205_v53 }
 0x72f   : > { %v8701_v11 = vpop.f32.mrf.mxu1  ;;  %14493 = vmatprep.mubr.msk.f32.mxu0 %vm15258_vm4, %v21309_v56  ;;  %14554 = vset.pattern.permute.xlu1 %v15259_v60 }
 0x730   : > { %14429 = vmatmul.mubr.msk.f32.vlgmr.msra.gmra.mxu1 %vm2429_vm3, %v9194_v7  ;;  %12155 = vperm.xlu1 %14554, %v20312_v45  }
 0x731   : > { %v14170_v32 = vpop.f32.mrf.mxu1  ;;  %14437 = vmatpush3.msra.mxu1 %v20084_v20  ;;  %14438 = vmatprep.mubr.msk.f32.mxu1 %vm15258_vm4, %v21309_v56  ;;  %v9198_v20 = vld [vmem:[%s20695_s3 + $0x10] sm:$0x3] }
 0x732   : > { %14446 = vmatprep.subr.mxu1 %v21309_v56  ;;  %14553 = vset.pattern.permute.xlu0 %v15259_v60 }
 0x733   : > { %12152 = vperm.xlu0 %14553, %v9190_v40  }
 0x734   : > { %14439 = vmatmul.mubr.msk.f32.vlgmr.msra.gmra.mxu1 %vm2429_vm3, %v9196_v13  ;;  %12158 = vperm.xlu1 %14554, %v9192_v9  }
 0x735   : > { %14447 = vmatpush3.msra.mxu1 %v20104_v54  ;;  %14448 = vmatprep.mubr.msk.f32.mxu1 %vm15258_vm4, %v21309_v56  ;;  %v9200_v54 = vld [vmem:[%s20695_s3 + $0x14] sm:$0x3] }
 0x736   : > { %14456 = vmatprep.subr.mxu1 %v21309_v56 }
 0x737   : > { %12179 = vperm.xlu0 %14553, %v9199_v36  }
 0x738   : > { %14449 = vmatmul.mubr.msk.f32.vlgmr.msra.gmra.mxu1 %vm2429_vm3, %v9198_v20  ;;  %12161 = vperm.xlu1 %14554, %v20337_v15  }
 0x739   : > { %14457 = vmatpush3.msra.mxu1 %v20196_v17  ;;  %14458 = vmatprep.mubr.msk.f32.mxu1 %vm15258_vm4, %v21309_v56  ;;  %v9202_v17 = vld [vmem:[%s20695_s3 + $0x18] sm:$0x3] }
 0x73a   : > { %14466 = vmatprep.subr.mxu1 %v21309_v56 }
 0x73b   : > { %v8992_v34 = vpop.f32.mrf.mxu0  ;;  %12185 = vperm.xlu0 %14553, %v9201_v57  }
 0x73c   : > { %14492 = vmatpush3.msra.mxu0 %v8992_v34  ;;  %14459 = vmatmul.mubr.msk.f32.vlgmr.msra.gmra.mxu1 %vm2429_vm3, %v9200_v54 }
 0x73d   : > { %v14227_v5 = vpop.f32.mrf.mxu0  ;;  %14501 = vmatprep.subr.mxu0 %v21309_v56  ;;  %14467 = vmatpush3.msra.mxu1 %v20328_v41 }
 0x73e   : > { %14468 = vmatprep.mubr.msk.f32.mxu1 %vm15258_vm4, %v21309_v56  ;;  %14476 = vmatprep.subr.mxu1 %v21309_v56 }
 0x73f   : > { %14494 = vmatmul.mubr.msk.f32.vlgmr.msra.gmra.mxu0 %vm2429_vm3, %v9207_v46  ;;  %12164 = vperm.xlu1 %14554, %v9194_v7  }
 0x740   : > { %14503 = vmatprep.mubr.msk.f32.mxu0 %vm15258_vm4, %v21309_v56  ;;  %14469 = vmatmul.mubr.msk.f32.vlgmr.msra.gmra.mxu1 %vm2429_vm3, %v9202_v17 }
 0x741   : > { %12191 = vperm.xlu0 %14553, %v9203_v12   ;;  %14477 = vmatpush3.msra.mxu1 %v8701_v11 }
 0x742   : > { %14478 = vmatprep.mubr.msk.f32.mxu1 %vm15258_vm4, %v21309_v56  ;;  %14486 = vmatprep.subr.mxu1 %v21309_v56 }
 0x743   : > { %12167 = vperm.xlu1 %14554, %v20360_v1  }
 0x744   : > { %14479 = vmatmul.mubr.msk.f32.vlgmr.msra.gmra.mxu1 %vm2429_vm3, %v9204_v48 }
 0x745   : > { %12197 = vperm.xlu0 %14553, %v9205_v53   ;;  %14488 = vmatprep.mubr.msk.f32.mxu1 %vm15258_vm4, %v21309_v56 }
 0x747   : > { %12170 = vperm.xlu1 %14554, %v9196_v13  }
 0x749   : > { %12203 = vperm.xlu0 %14553, %v9207_v46  }
 0x74b   : > { %12173 = vperm.xlu1 %14554, %v20383_v63  }
 0x74d   : > { %12209 = vperm.xlu0 %14553, %v9209_v3  }
 0x74f   : > { %12176 = vperm.xlu1 %14554, %v9198_v20  }
 0x753   : > { %12182 = vperm.xlu1 %14554, %v9200_v54  }
 0x757   : > { %12188 = vperm.xlu1 %14554, %v9202_v17  }
 0x75b   : > { %12194 = vperm.xlu1 %14554, %v9204_v48  }
 0x75f   : > { %12200 = vperm.xlu1 %14554, %v9206_v43  }
 0x763   : > { %12206 = vperm.xlu1 %14554, %v9208_v38  }
 0x76b   : > { %v8895_v14 = vpop.f32.mrf.mxu1 }
 0x76c   : > { %14487 = vmatpush3.msra.mxu1 %v8895_v14 }
 0x76d   : > { %v14208_v19 = vpop.f32.mrf.mxu1  ;;  %14496 = vmatprep.subr.mxu1 %v21309_v56  ;;  %14489 = vmatmul.mubr.msk.f32.vlgmr.msra.gmra.mxu1 %vm2429_vm3, %v9206_v43 }
 0x76e   : > { %14498 = vmatprep.mubr.msk.f32.mxu1 %vm15258_vm4, %v21309_v56 }
 0x795   : > { %v9186_v55 = vpop.f32.mrf.mxu0 }
 0x796   : > { %14502 = vmatpush3.msra.mxu0 %v9186_v55 }
 0x797   : > { %v14265_v52 = vpop.f32.mrf.mxu0  ;;  %14504 = vmatmul.mubr.msk.f32.vlgmr.msra.gmra.mxu0 %vm2429_vm3, %v9209_v3 }
 0x799   : > { %v9373_v49 = vpop.f32.mrf.mxu0 }
 0x79b   : > { %v14279_v42 = vpop.f32.mrf.mxu0 }
 0x79d   : > { %v9519_v23 = vpop.f32.mrf.mxu0 }
 0x79f   : > { %v14293_v2 = vpop.f32.mrf.mxu0 }
 0x7a2   : > { %v9665_v47 = vpop.f32.mrf.mxu0 }
 0x7a4   : > { %v14307_v29 = vpop.f32.mrf.mxu0 }
 0x7a6   : > { %v20535_v4 = vpop.f32.mrf.mxu0 }
 0x7a8   : > { %v14321_v0 = vpop.f32.mrf.mxu0 }
 0x7aa   : > { %v20537_v44 = vpop.f32.mrf.mxu0 }
 0x7ab   : > { %v12156_v15 = vpop.permute.xlu1 %12155 }
 0x7ac   : > { %v14335_v45 = vpop.f32.mrf.mxu0  ;;  %v12212_v62 = vrot.slane %v12156_v15, 1 }
 0x7ae   : > { %v20539_v51 = vpop.f32.mrf.mxu0  ;;  %v12153_v13 = vpop.permute.xlu0 %12152 }
 0x7af   : > { %v9089_v8 = vpop.f32.mrf.mxu1  ;;  %v20550_v16 = vpop.permute.xlu1 %12158 }
 0x7b0   : > { %14497 = vmatpush3.msra.mxu1 %v9089_v8  ;;  %v14349_v21 = vpop.f32.mrf.mxu0 }
 0x7b1   : > { %v14246_v56 = vpop.f32.mrf.mxu1  ;;  %14499 = vmatmul.mubr.msk.f32.vlgmr.msra.gmra.mxu1 %vm2429_vm3, %v9208_v38 }
 0x7b2   : > { %v12180_v3 = vpop.permute.xlu0 %12179 }
 0x7b3   : > { %v20542_v41 = vpop.f32.mrf.mxu1  ;;  %v12162_v31 = vpop.permute.xlu1 %12161 }
 0x7b4   : > { %v20544_v39 = vpop.f32.mrf.mxu0  ;;  %v12214_v9 = vrot.slane %v12162_v31, 1 }
 0x7b5   : > { %v14272_v59 = vpop.f32.mrf.mxu1 }
 0x7b6   : > { %v14363_v30 = vpop.f32.mrf.mxu0  ;;  %v12186_v2 = vpop.permute.xlu0 %12185 }
 0x7b7   : > { %v12222_v15 = vrot.slane %v12186_v2, 1 }
 0x7b9   : > { %v20546_v18 = vpop.f32.mrf.mxu1 }
 0x7ba   : > { %v20548_v10 = vpop.f32.mrf.mxu0  ;;  %v20560_v61 = vpop.permute.xlu1 %12164 }
 0x7bb   : > { %v14286_v50 = vpop.f32.mrf.mxu1 }
 0x7bc   : > { %v14377_v33 = vpop.f32.mrf.mxu0  ;;  %v12192_v30 = vpop.permute.xlu0 %12191 }
 0x7be   : > { %v12168_v35 = vpop.permute.xlu1 %12167 }
 0x7bf   : > { %v20552_v1 = vpop.f32.mrf.mxu1  ;;  %v12216_v34 = vrot.slane %v12168_v35, 1 }
 0x7c0   : > { %v20554_v58 = vpop.f32.mrf.mxu0  ;;  %v12198_v35 = vpop.permute.xlu0 %12197 }
 0x7c1   : > { %v14300_v24 = vpop.f32.mrf.mxu1 }
 0x7c2   : > { %v14391_v26 = vpop.f32.mrf.mxu0  ;;  %v20573_v60 = vpop.permute.xlu1 %12170  ;;  %v12211_v24 = vrot.slane %v12153_v13, 1 }
 0x7c5   : > { %v20556_v37 = vpop.f32.mrf.mxu1 }
 0x7c6   : > { %v20558_v63 = vpop.f32.mrf.mxu0  ;;  %v12174_v43 = vpop.permute.xlu1 %12173 }
 0x7c7   : > { %v14314_v22 = vpop.f32.mrf.mxu1  ;;  %v12218_v19 = vrot.slane %v12174_v43, 1 }
 0x7c8   : > { %v14405_v28 = vpop.f32.mrf.mxu0 }
 0x7c9   : > { %v12224_v28 = vrot.slane %v12192_v30, 1 }
 0x7cb   : > { %v20565_v25 = vpop.f32.mrf.mxu1 }
 0x7cc   : > { %v10833_v36 = vpop.f32.mrf.mxu0 }
 0x7cd   : > { %v14328_v27 = vpop.f32.mrf.mxu1  ;;  %v10834_v6 = vadd.f32 %v10833_v36, %v9373_v49 }
 0x7ce   : > { %v14415_v57 = vpop.f32.mrf.mxu0 }
 0x7cf   : > { %v12252_v40 = vadd.f32 %v12212_v62, %v10834_v6  ;;  %v12213_v6 = vrot.slane %v20550_v16, 1  ;;  %v12177_v16 = vpop.permute.xlu1 %12176 }
 0x7d0   : > { %v20567_v12 = vpop.f32.mrf.mxu1 }
 0x7d1   : > { %12273 = vst.msk [vmem:[%s20569_s26 + $0x1] sm:$0x1] %vm12271_vm6, %v12252_v40  ;;  %v10979_v53 = vpop.f32.mrf.mxu0 }
 0x7d2   : > { %v14342_v7 = vpop.f32.mrf.mxu1  ;;  %v10980_v11 = vadd.f32 %v10979_v53, %v9519_v23 }
 0x7d3   : > { %v14425_v32 = vpop.f32.mrf.mxu0  ;;  %v12226_v7 = vrot.slane %v12198_v35, 1  ;;  %v12183_v43 = vpop.permute.xlu1 %12182 }
 0x7d4   : > { %v12254_v20 = vadd.f32 %v12214_v9, %v10980_v11 }
 0x7d5   : > { %v20575_v54 = vpop.f32.mrf.mxu1 }
 0x7d6   : > { %12275 = vst.msk [vmem:[%s20569_s26 + $0x3] sm:$0x1] %vm12271_vm6, %v12254_v20  ;;  %v11125_v46 = vpop.f32.mrf.mxu0 }
 0x7d7   : > { %v14356_v5 = vpop.f32.mrf.mxu1  ;;  %v11126_v17 = vadd.f32 %v11125_v46, %v9665_v47  ;;  %v12220_v47 = vrot.slane %v12180_v3, 1  ;;  %v12189_v2 = vpop.permute.xlu1 %12188 }
 0x7d8   : > { %v14435_v48 = vpop.f32.mrf.mxu0 }
 0x7d9   : > { %v12256_v38 = vadd.f32 %v12216_v34, %v11126_v17  ;;  %v12217_v17 = vrot.slane %v20573_v60, 1  ;;  %v12204_v60 = vpop.permute.xlu0 %12203 }
 0x7da   : > { %v20579_v14 = vpop.f32.mrf.mxu1 }
 0x7db   : > { %12277 = vst.msk [vmem:[%s20569_s26 + $0x5] sm:$0x1] %vm12271_vm6, %v12256_v38  ;;  %v11271_v55 = vpop.f32.mrf.mxu0 }
 0x7dc   : > { %v14370_v52 = vpop.f32.mrf.mxu1  ;;  %v11272_v49 = vadd.f32 %v11271_v55, %v20535_v4 }
 0x7dd   : > { %v14445_v42 = vpop.f32.mrf.mxu0  ;;  %v12210_v35 = vpop.permute.xlu0 %12209 }
 0x7de   : > { %v12258_v23 = vadd.f32 %v12218_v19, %v11272_v49  ;;  %v12219_v19 = vrot.slane %v12177_v16, 1  ;;  %v12221_v42 = vrot.slane %v12183_v43, 1 }
 0x7df   : > { %v20584_v29 = vpop.f32.mrf.mxu1 }
 0x7e0   : > { %12279 = vst.msk [vmem:[%s20569_s26 + $0x7] sm:$0x1] %vm12271_vm6, %v12258_v23  ;;  %v11417_v0 = vpop.f32.mrf.mxu0 }
 0x7e1   : > { %v14384_v45 = vpop.f32.mrf.mxu1  ;;  %v11418_v8 = vadd.f32 %v11417_v0, %v20537_v44 }
 0x7e2   : > { %v14455_v56 = vpop.f32.mrf.mxu0 }
 0x7e3   : > { %v12260_v21 = vadd.f32 %v12220_v47, %v11418_v8  ;;  %v12228_v47 = vrot.slane %v12204_v60, 1  ;;  %v12223_v56 = vrot.slane %v12189_v2, 1 }
 0x7e4   : > { %v20589_v59 = vpop.f32.mrf.mxu1 }
 0x7e5   : > { %12281 = vst.msk [vmem:[%s20569_s26 + $0x9] sm:$0x1] %vm12271_vm6, %v12260_v21  ;;  %v11563_v4 = vpop.f32.mrf.mxu0 }
 0x7e6   : > { %v14398_v50 = vpop.f32.mrf.mxu1  ;;  %v11564_v33 = vadd.f32 %v11563_v4, %v20539_v51 }
 0x7e7   : > { %v14465_v31 = vpop.f32.mrf.mxu0 }
 0x7e8   : > { %v10760_v26 = vpop.f32.mrf.mxu1  ;;  %v12262_v22 = vadd.f32 %v12222_v15, %v11564_v33  ;;  %v12195_v33 = vpop.permute.xlu1 %12194 }
 0x7e9   : > { %v10761_v44 = vadd.f32 %v10760_v26, %v20542_v41  ;;  %v11709_v62 = vpop.f32.mrf.mxu0 }
 0x7ea   : > { %v14410_v36 = vpop.f32.mrf.mxu1  ;;  %12283 = vst.msk [vmem:[%s20569_s26 + $0xb] sm:$0x1] %vm12271_vm6, %v12262_v22  ;;  %v11710_v27 = vadd.f32 %v11709_v62, %v20544_v39  ;;  %v12215_v39 = vrot.slane %v20560_v61, 1 }
 0x7eb   : > { %v12251_v57 = vadd.f32 %v12211_v24, %v10761_v44  ;;  %v14475_v51 = vpop.f32.mrf.mxu0  ;;  %v12225_v24 = vrot.slane %v12195_v33, 1 }
 0x7ec   : > { %v10906_v40 = vpop.f32.mrf.mxu1  ;;  %v12264_v9 = vadd.f32 %v12224_v28, %v11710_v27 }
 0x7ed   : > { %v10907_v53 = vadd.f32 %v10906_v40, %v20546_v18  ;;  %12272 = vst.msk [vmem:[%s20569_s26] sm:$0x1] %vm12271_vm6, %v12251_v57 }
 0x7ee   : > { %v14420_v41 = vpop.f32.mrf.mxu1  ;;  %12285 = vst.msk [vmem:[%s20569_s26 + $0xd] sm:$0x1] %vm12271_vm6, %v12264_v9  ;;  %v11855_v11 = vpop.f32.mrf.mxu0 }
 0x7ef   : > { %v12253_v32 = vadd.f32 %v12213_v6, %v10907_v53  ;;  %v11856_v13 = vadd.f32 %v11855_v11, %v20548_v10  ;;  %v12230_v6 = vrot.slane %v12210_v35, 1 }
 0x7f0   : > { %v11052_v20 = vpop.f32.mrf.mxu1  ;;  %v14485_v34 = vpop.f32.mrf.mxu0 }
 0x7f1   : > { %12274 = vst.msk [vmem:[%s20569_s26 + $0x2] sm:$0x1] %vm12271_vm6, %v12253_v32  ;;  %v11053_v18 = vadd.f32 %v11052_v20, %v20552_v1  ;;  %v12266_v46 = vadd.f32 %v12226_v7, %v11856_v13 }
 0x7f2   : > { %v14430_v5 = vpop.f32.mrf.mxu1 }
 0x7f3   : > { %v12255_v48 = vadd.f32 %v12215_v39, %v11053_v18  ;;  %12287 = vst.msk [vmem:[%s20569_s26 + $0xf] sm:$0x1] %vm12271_vm6, %v12266_v46 }
 0x7f4   : > { %v11198_v3 = vpop.f32.mrf.mxu1 }
 0x7f5   : > { %12276 = vst.msk [vmem:[%s20569_s26 + $0x4] sm:$0x1] %vm12271_vm6, %v12255_v48  ;;  %v11199_v10 = vadd.f32 %v11198_v3, %v20556_v37 }
 0x7f6   : > { %v14440_v61 = vpop.f32.mrf.mxu1 }
 0x7f7   : > { %v12257_v38 = vadd.f32 %v12217_v17, %v11199_v10 }
 0x7f8   : > { %v11344_v55 = vpop.f32.mrf.mxu1 }
 0x7f9   : > { %12278 = vst.msk [vmem:[%s20569_s26 + $0x6] sm:$0x1] %vm12271_vm6, %v12257_v38  ;;  %v11345_v1 = vadd.f32 %v11344_v55, %v20565_v25 }
 0x7fa   : > { %v14450_v52 = vpop.f32.mrf.mxu1 }
 0x7fb   : > { %v12259_v49 = vadd.f32 %v12219_v19, %v11345_v1 }
 0x7fc   : > { %v11490_v23 = vpop.f32.mrf.mxu1 }
 0x7fd   : > { %12280 = vst.msk [vmem:[%s20569_s26 + $0x8] sm:$0x1] %vm12271_vm6, %v12259_v49  ;;  %v11491_v37 = vadd.f32 %v11490_v23, %v20567_v12 }
 0x7fe   : > { %v14460_v0 = vpop.f32.mrf.mxu1 }
 0x7ff   : > { %v12001_v45 = vpop.f32.mrf.mxu0  ;;  %v12261_v8 = vadd.f32 %v12221_v42, %v11491_v37 }
 0x800   : > { %v12002_v25 = vadd.f32 %v12001_v45, %v20554_v58  ;;  %v11636_v21 = vpop.f32.mrf.mxu1 }
 0x801   : > { %v14495_v15 = vpop.f32.mrf.mxu0  ;;  %12282 = vst.msk [vmem:[%s20569_s26 + $0xa] sm:$0x1] %vm12271_vm6, %v12261_v8  ;;  %v11637_v30 = vadd.f32 %v11636_v21, %v20575_v54  ;;  %v12201_v54 = vpop.permute.xlu1 %12200 }
 0x802   : > { %v12268_v4 = vadd.f32 %v12228_v47, %v12002_v25  ;;  %v14470_v50 = vpop.f32.mrf.mxu1  ;;  %v12227_v28 = vrot.slane %v12201_v54, 1 }
 0x803   : > { %v12263_v12 = vadd.f32 %v12223_v56, %v11637_v30 }
 0x804   : > { %12289 = vst.msk [vmem:[%s20569_s26 + $0x11] sm:$0x1] %vm12271_vm6, %v12268_v4  ;;  %v11782_v31 = vpop.f32.mrf.mxu1 }
 0x805   : > { %12284 = vst.msk [vmem:[%s20569_s26 + $0xc] sm:$0x1] %vm12271_vm6, %v12263_v12  ;;  %v11783_v58 = vadd.f32 %v11782_v31, %v20579_v14  ;;  %v12207_v9 = vpop.permute.xlu1 %12206 }
 0x806   : > { %v14480_v26 = vpop.f32.mrf.mxu1  ;;  %v12229_v53 = vrot.slane %v12207_v9, 1 }
 0x807   : > { %v12265_v22 = vadd.f32 %v12225_v24, %v11783_v58 }
 0x809   : > { %12286 = vst.msk [vmem:[%s20569_s26 + $0xe] sm:$0x1] %vm12271_vm6, %v12265_v22 }
 0x82d   : > { %v11928_v44 = vpop.f32.mrf.mxu1 }
 0x82e   : > { %v11929_v62 = vadd.f32 %v11928_v44, %v20584_v29 }
 0x82f   : > { %v14490_v36 = vpop.f32.mrf.mxu1 }
 0x830   : > { %v12267_v27 = vadd.f32 %v12227_v28, %v11929_v62 }
 0x832   : > { %12288 = vst.msk [vmem:[%s20569_s26 + $0x10] sm:$0x1] %vm12271_vm6, %v12267_v27 }
 0x857   : > { %v12147_v14 = vpop.f32.mrf.mxu0 }
 0x858   : > { %v12148_v57 = vadd.f32 %v12147_v14, %v20558_v63 }
 0x859   : > { %v14505_v51 = vpop.f32.mrf.mxu0 }
 0x85a   : > { %v12270_v40 = vadd.f32 %v12230_v6, %v12148_v57 }
 0x85c   : > { %12291 = vst.msk [vmem:[%s20569_s26 + $0x13] sm:$0x1] %vm12271_vm6, %v12270_v40 }
 0x871   : > { %v12074_v29 = vpop.f32.mrf.mxu1 }
 0x872   : > { %v12075_v7 = vadd.f32 %v12074_v29, %v20589_v59 }
 0x873   : > { %v14500_v41 = vpop.f32.mrf.mxu1 }
 0x874   : > { %v12269_v11 = vadd.f32 %v12229_v53, %v12075_v7 }
 0x876   : > { %12290 = vst.msk [vmem:[%s20569_s26 + $0x12] sm:$0x1] %vm12271_vm6, %v12269_v11 }
 0x877   : > { %15208 = shalt.err (!%p15205_p3)
}
 0x878   : > { %s15209_s14 = scalar_lea.hbm %s20646_s9, 320  ;;  %s15213_s17 = scalar_lea.hbm %s20697_s5, 640 }
 0x879   : > { %p15210_p4 = scmp.ne.s32.totalorder %s20646_s9, %s15209_s14  ;;  %p15214_p9 = scmp.lt.s32.totalorder %s20646_s9, %s20697_s5 }
 0x87a   : > { %p15215_p10 = scmp.lt.s32.totalorder %s15213_s17, %s15209_s14 }
 0x87b   : > { %p15211_p7 = pnand %p15210_p4, %p15331_p5 }
 0x87c   : > { %p15216_p11 = por %p15215_p10, %p15214_p9 }
 0x87d   : > { %p15212_p8 = pneg %p15211_p7 }
 0x87f   : > { %p15217_p12 = pnand %p15216_p11, %p15212_p8 }
 0x881   : > { %15220 = shalt.err (!%p15217_p12)
}
 0x882   : > { %s15261_s26 = smov 16   ;;  %s15262_s30 = smov 1  }
 0x883   : > { %14509 = dma.vmem_to_hbm [thread:$0]  (%p15331_p5), %s20641_s6, 320, %s20646_s9, %s20652_s22, %s15261_s26, %s15261_s26, %s15262_s30  }
 0x884 PF: > { %p14515_p13 = scmp.ge.s32.totalorder %s15255_s21, 2  ;;  %s12321_s7 = sand.u32 1, %s15243_s18  }
 0x885   : > { %s12322_s8 = scalar_lea.sflag [#allocation3], %s12321_s7 }
 0x886   : > { %p14512_p0 = pnand %p14515_p13, %p15335_p6 }
 0x888   : > { %p14513_p1 = pneg %p14512_p0 }
 0x88a   : > { %15238 = dma.done.wait (%p14513_p1), %s12322_s8, 320  }
 0x88b   : > { %15240 = vsyncadd (%p14513_p1), %s12322_s8, 4294966976  ;;  %p15_p2 = scmp.ge.s32.totalorder %s15318_s24, 4   ;;  %s21845_s18 = smov %s15247_s19 }
 0x88c   : > { %s21846_s19 = smov %s15251_s20  ;;  %s21847_s20 = smov %s15329_s27 }
 0x88d   : > { %s21848_s21 = smov %s15318_s24  ;;  %17 = sbr.rel (!%p15_p2) target bundleno = 3 (0x3), region = 75 }
 0x892   :  { %12327 = vsyncpa [#allocation3], 1 }
 0x893   :  { %12329 = vsyncpa [#allocation3 + $0x1], 1 }

</bundles_post_ra>
